<compile_context>
chip_gen: v5e
topology: v5e:2x2
jax: 0.10.0
libtpu: 0.0.40
codegen_flags: <defaults>
</compile_context>

<pallas_src>
import functools
import math

import jax
import jax.numpy as jnp
from jax.experimental import pallas as pl
from jax.experimental.pallas import tpu as pltpu

EPS = 1e-5           # nn.BatchNorm2d default eps
NEG_SLOPE = 0.2      # LeakyReLU(0.2)
CONV_CFG = [(4, 2, 1), (4, 2, 1), (4, 2, 1), (4, 2, 1), (4, 1, 0)]  # (k, stride, pad)
LANE = 128
SUBLANE = 8


def _round_up(x, m):
    return (x + m - 1) // m * m


def _vmem_limit_bytes(tensors):
    """tensors: iterable of (shape, dtype). Footprint-derived VMEM limit."""
    need = sum(math.prod(s) * jnp.dtype(d).itemsize for s, d in tensors)
    # in/out/scratch buffers + headroom for compiler-internal spill slabs.
    return int(min(max(2 * need + (8 << 20), 16 << 20), 48 << 20))


def _vmem_specs(n):
    return [pl.BlockSpec(memory_space=pltpu.MemorySpace.VMEM) for _ in range(n)]


# ---------------------------------------------------------------------------
# Pallas kernels
# ---------------------------------------------------------------------------
def conv_bn_lrelu_kernel(x_ref, w_ref, gamma_ref, beta_ref, o_ref, y_ref,
                         *, m_true, m_pad):
    """Fused: im2col matmul + batch-stat BatchNorm + LeakyReLU(0.2).

    x_ref      : (M_pad, K_pad) bf16 im2col patches (padded rows/cols are zero)
    w_ref      : (K_pad, C_pad) bf16 weights, rows ordered (kh, kw, cin)
    gamma/beta : (1, C_pad)     f32 BN affine parameters
    o_ref      : (M_pad, C_pad) bf16 output
    y_ref      : (M_pad, C_pad) f32 VMEM scratch (conv result, resident)
    """
    y_ref[...] = jnp.dot(x_ref[...], w_ref[...],
                         preferred_element_type=jnp.float32)
    inv_m = jnp.float32(1.0 / m_true)
    # Padded rows of x are exact zeros -> they contribute zero to the sum;
    # divide by the true row count.
    mean = jnp.sum(y_ref[...], axis=0, keepdims=True) * inv_m
    d = y_ref[...] - mean
    if m_pad > m_true:                      # static branch (config is Python)
        rows = jax.lax.broadcasted_iota(jnp.int32, (m_pad, 1), 0)
        d = jnp.where(rows < m_true, d, 0.0)
    var = jnp.sum(d * d, axis=0, keepdims=True) * inv_m
    scale = gamma_ref[...] * jax.lax.rsqrt(var + EPS)
    shift = beta_ref[...] - scale * mean     # conv bias dropped: BN cancels it
    z = y_ref[...] * scale + shift
    o_ref[...] = jnp.maximum(z, NEG_SLOPE * z).astype(o_ref.dtype)


def final_heads_kernel(x_ref, w5_ref, b5_ref, wh_ref, bh_ref, o_ref):
    """Final 4x4 valid conv (a Linear over the flattened 4x4xC4 patch) fused
    with fc_mu / fc_var (their weights concatenated into one (C5, 2L) matmul)."""
    f = jnp.dot(x_ref[...], w5_ref[...],
                preferred_element_type=jnp.float32) + b5_ref[...]
    o_ref[...] = jnp.dot(f.astype(jnp.bfloat16), wh_ref[...],
                         preferred_element_type=jnp.float32) + bh_ref[...]


# ---------------------------------------------------------------------------
# JAX glue: NHWC im2col (layout plumbing; see TODO at top of file)
# ---------------------------------------------------------------------------
def im2col_nhwc(x, k, stride, pad):
    """x: (N, H, W, C) -> (N*Ho*Wo, k*k*C); patch order (kh, kw, C)."""
    n, h, w, c = x.shape
    if pad:
        x = jnp.pad(x, ((0, 0), (pad, pad), (pad, pad), (0, 0)))
    hp, wp = h + 2 * pad, w + 2 * pad
    ho = (hp - k) // stride + 1
    wo = (wp - k) // stride + 1
    cols = []
    for kh in range(k):
        for kw in range(k):
            cols.append(x[:, kh:kh + stride * (ho - 1) + 1:stride,
                            kw:kw + stride * (wo - 1) + 1:stride, :])
    patches = jnp.stack(cols, axis=3)                   # (N, Ho, Wo, k*k, C)
    return patches.reshape(n * ho * wo, k * k * c), ho, wo


# ---------------------------------------------------------------------------
# Per-block wrappers (pallas_call setup)
# ---------------------------------------------------------------------------
def conv_bn_lrelu_block(x, blk, c_out, k, stride, pad):
    """Conv2d + BatchNorm2d (batch stats) + LeakyReLU(0.2).  NHWC in/out."""
    n = x.shape[0]
    X, ho, wo = im2col_nhwc(x, k, stride, pad)          # bf16 patches
    M, K = X.shape
    wm = blk["w"]                                       # (K_pad, C_pad) bf16
    K_pad, C_pad = wm.shape
    M_pad = _round_up(M, SUBLANE)
    Xp = jnp.pad(X, ((0, M_pad - M), (0, K_pad - K)))   # zero rows/cols: exact

    z = pl.pallas_call(
        functools.partial(conv_bn_lrelu_kernel, m_true=M, m_pad=M_pad),
        out_shape=jax.ShapeDtypeStruct((M_pad, C_pad), jnp.bfloat16),
        in_specs=_vmem_specs(4),
        out_specs=pl.BlockSpec(memory_space=pltpu.MemorySpace.VMEM),
        scratch_shapes=[pltpu.VMEM((M_pad, C_pad), jnp.float32)],
        compiler_params=pltpu.CompilerParams(
            vmem_limit_bytes=_vmem_limit_bytes([
                ((M_pad, K_pad), jnp.bfloat16),
                ((K_pad, C_pad), jnp.bfloat16),
                ((1, C_pad), jnp.float32),
                ((1, C_pad), jnp.float32),
                ((M_pad, C_pad), jnp.bfloat16),
                ((M_pad, C_pad), jnp.float32)])),
    )(Xp, wm, blk["gamma"], blk["beta"])

    return z[:M, :c_out].reshape(n, ho, wo, c_out)      # NHWC, true channels


def final_conv_and_heads(x_nhwc, fin, two_l):
    """Final conv block (no BN/act) fused with fc_mu / fc_var."""
    n = x_nhwc.shape[0]
    x5 = x_nhwc.reshape(n, -1)                          # (N, 4*4*C4), (h,w,c) order
    K5_pad, _ = fin["w5"].shape
    H_pad = fin["wh"].shape[1]
    n_pad = _round_up(n, SUBLANE)
    x5p = jnp.pad(x5, ((0, n_pad - n), (0, K5_pad - x5.shape[1])))

    out = pl.pallas_call(
        final_heads_kernel,
        out_shape=jax.ShapeDtypeStruct((n_pad, H_pad), jnp.float32),
        in_specs=_vmem_specs(5),
        out_specs=pl.BlockSpec(memory_space=pltpu.MemorySpace.VMEM),
        compiler_params=pltpu.CompilerParams(
            vmem_limit_bytes=_vmem_limit_bytes([
                ((n_pad, K5_pad), jnp.bfloat16),
                (fin["w5"].shape, jnp.bfloat16),
                (fin["b5"].shape, jnp.float32),
                (fin["wh"].shape, jnp.bfloat16),
                (fin["bh"].shape, jnp.float32),
                ((n_pad, H_pad), jnp.float32)])),
    )(x5p, fin["w5"], fin["b5"], fin["wh"], fin["bh"])

    return out[:n, :two_l]


# ---------------------------------------------------------------------------
# Parameters
# ---------------------------------------------------------------------------
def init_raw_params(key, input_dim, hidden_dim, latent_dim):
    """PyTorch-layout parameters (OIHW conv weights, (L, F) linear weights)."""
    chans = [input_dim, hidden_dim, hidden_dim * 2, hidden_dim * 4,
             hidden_dim * 8, hidden_dim * 16]
    conv = []
    for i in range(5):
        cin, cout = chans[i], chans[i + 1]
        key, k1, k2, k3, k4 = jax.random.split(key, 5)
        w = 0.1 * jax.random.normal(k1, (cout, cin, 4, 4), jnp.float32)
        b = 0.1 * jax.random.normal(k2, (cout,), jnp.float32)
        gamma = 1.0 + 0.05 * jax.random.normal(k3, (cout,), jnp.float32)
        beta = 0.05 * jax.random.normal(k4, (cout,), jnp.float32)
        conv.append((w, b, gamma, beta))
    feat = chans[-1]
    key, k1, k2, k3, k4 = jax.random.split(key, 5)
    fc_mu = (0.1 * jax.random.normal(k1, (latent_dim, feat), jnp.float32),
             0.1 * jax.random.normal(k2, (latent_dim,), jnp.float32))
    fc_var = (0.1 * jax.random.normal(k3, (latent_dim, feat), jnp.float32),
              0.1 * jax.random.normal(k4, (latent_dim,), jnp.float32))
    return {"conv": conv, "fc_mu": fc_mu, "fc_var": fc_var}


def prepare_params(raw):
    """PyTorch-layout -> kernel-ready: pre-transposed, lane-padded, bf16."""
    blocks = []
    for i in range(4):
        w, _b, gamma, beta = raw["conv"][i]     # conv bias dropped: BN cancels it
        cout, cin, kh, kw = w.shape
        K = cin * kh * kw
        K_pad = _round_up(K, LANE)
        C_pad = _round_up(cout, LANE)
        wm = w.transpose(2, 3, 1, 0).reshape(K, cout)     # rows follow (kh, kw, cin)
        wm = jnp.pad(wm, ((0, K_pad - K), (0, C_pad - cout))).astype(jnp.bfloat16)
        g = jnp.pad(gamma, (0, C_pad - cout)).reshape(1, C_pad).astype(jnp.float32)
        be = jnp.pad(beta, (0, C_pad - cout)).reshape(1, C_pad).astype(jnp.float32)
        blocks.append({"w": wm, "gamma": g, "beta": be})

    w5, b5, _, _ = raw["conv"][4]
    c5, c4, kh, kw = w5.shape
    K5 = kh * kw * c4
    K5_pad = _round_up(K5, LANE)
    C5_pad = _round_up(c5, LANE)
    w5m = w5.transpose(2, 3, 1, 0).reshape(K5, c5)        # rows follow (kh, kw, cin)
    w5m = jnp.pad(w5m, ((0, K5_pad - K5), (0, C5_pad - c5))).astype(jnp.bfloat16)
    b5p = jnp.pad(b5, (0, C5_pad - c5)).reshape(1, C5_pad).astype(jnp.float32)

    (wmu, bmu), (wvar, bvar) = raw["fc_mu"], raw["fc_var"]
    wh = jnp.concatenate([wmu.T, wvar.T], axis=1)          # (C5, 2L)
    two_l = wh.shape[1]
    H_pad = _round_up(two_l, LANE)
    wh = jnp.pad(wh, ((0, C5_pad - c5), (0, H_pad - two_l))).astype(jnp.bfloat16)
    bh = jnp.pad(jnp.concatenate([bmu, bvar]),
                 (0, H_pad - two_l)).reshape(1, H_pad).astype(jnp.float32)

    final = {"w5": w5m, "b5": b5p, "wh": wh, "bh": bh}
    return {"blocks": blocks, "final": final}


# ---------------------------------------------------------------------------
# Forward (all static config lives in the closure / module constants)
# ---------------------------------------------------------------------------
def make_encoder_forward(input_dim, hidden_dim, latent_dim):
    chans = [input_dim, hidden_dim, hidden_dim * 2, hidden_dim * 4,
             hidden_dim * 8, hidden_dim * 16]

    @jax.jit
    def forward(image, prep):
        x = jnp.transpose(image, (0, 2, 3, 1)).astype(jnp.bfloat16)   # NHWC once
        for i in range(4):
            k, s, p = CONV_CFG[i]
            x = conv_bn_lrelu_block(x, prep["blocks"][i], chans[i + 1], k, s, p)
        out = final_conv_and_heads(x, prep["final"], 2 * latent_dim)
        return out[:, :latent_dim], out[:, latent_dim:]

    return forward


# ---------------------------------------------------------------------------
# Pure-JAX reference (correctness check only, f32, NCHW)
# ---------------------------------------------------------------------------
def ref_forward(image, raw):
    x = image
    for i in range(5):
        w, b, gamma, beta = raw["conv"][i]
        k, s, p = CONV_CFG[i]
        y = jax.lax.conv_general_dilated(
            x, w, (s, s), [(p, p), (p, p)],
            dimension_numbers=("NCHW", "OIHW", "NCHW"))
        y = y + b.reshape(1, -1, 1, 1)
        if i < 4:
            mean = jnp.mean(y, axis=(0, 2, 3), keepdims=True)
            var = jnp.mean((y - mean) ** 2, axis=(0, 2, 3), keepdims=True)
            z = (gamma.reshape(1, -1, 1, 1) * (y - mean) * jax.lax.rsqrt(var + EPS)
                 + beta.reshape(1, -1, 1, 1))
            y = jnp.where(z >= 0, z, NEG_SLOPE * z)
        x = y
    flat = x.reshape(x.shape[0], -1)
    (wmu, bmu), (wvar, bvar) = raw["fc_mu"], raw["fc_var"]
    return flat @ wmu.T + bmu, flat @ wvar.T + bvar


if __name__ == "__main__":
    # The architecture (four stride-2 4x4 convs, then a 4x4 valid conv) needs a
    # 64x64 input; keep batch / hidden / latent small.
    N, INPUT_DIM, H, W = 2, 3, 64, 64
    HIDDEN_DIM, LATENT_DIM = 8, 16

    key = jax.random.PRNGKey(0)
    k_img, k_par = jax.random.split(key)
    image = jax.random.normal(k_img, (N, INPUT_DIM, H, W), jnp.float32)

    raw = init_raw_params(k_par, INPUT_DIM, HIDDEN_DIM, LATENT_DIM)
    prep = prepare_params(raw)
    encoder_forward = make_encoder_forward(INPUT_DIM, HIDDEN_DIM, LATENT_DIM)

    mu, log_var = encoder_forward(image, prep)
    jax.block_until_ready((mu, log_var))

    assert mu.shape == (N, LATENT_DIM) and log_var.shape == (N, LATENT_DIM)

    mu_ref, lv_ref = ref_forward(image, raw)

    def _max_rel(a, b):
        return float(jnp.max(jnp.abs(a.astype(jnp.float32) - b))
                     / (jnp.max(jnp.abs(b)) + 1e-6))

    err_mu = _max_rel(mu, mu_ref)
    err_lv = _max_rel(log_var, lv_ref)
    assert err_mu < 0.1 and err_lv < 0.1, (err_mu, err_lv)   # bf16 matmul tolerance

    print("KERNEL_OK")
</pallas_src>

<mosaic_0001>
module attributes {stable_mosaic.version = 11 : i64} {
  func.func @conv_bn_lrelu_kernel(%arg0: memref<2048x128xbf16, #tpu.memory_space<vmem>>, %arg1: memref<128x128xbf16, #tpu.memory_space<vmem>>, %arg2: memref<1x128xf32, #tpu.memory_space<vmem>>, %arg3: memref<1x128xf32, #tpu.memory_space<vmem>>, %arg4: memref<2048x128xbf16, #tpu.memory_space<vmem>>, %arg5: memref<2048x128xf32, #tpu.memory_space<vmem>>) attributes {dimension_semantics = [], scalar_prefetch = 0 : i64, scratch_operands = 1 : i64, tpu.core_type = #tpu.core_type<tc>} {
    %c0 = arith.constant 0 : index
    %c0_0 = arith.constant 0 : index
    %0 = vector.load %arg0[%c0, %c0_0] : memref<2048x128xbf16, #tpu.memory_space<vmem>>, vector<2048x128xbf16>
    %c0_1 = arith.constant 0 : index
    %c0_2 = arith.constant 0 : index
    %1 = vector.load %arg1[%c0_1, %c0_2] : memref<128x128xbf16, #tpu.memory_space<vmem>>, vector<128x128xbf16>
    %cst = arith.constant dense<0.000000e+00> : vector<2048x128xf32>
    %2 = tpu.matmul %0, %1, %cst {dimension_numbers = #tpu.dot_dimension_numbers<[1], [0], [0], [1], [0, 0, 1, 1], [], []>} : vector<2048x128xbf16>, vector<128x128xbf16>, vector<2048x128xf32> -> vector<2048x128xf32>
    %c0_3 = arith.constant 0 : index
    %c0_4 = arith.constant 0 : index
    %3 = vector.load %arg5[%c0_3, %c0_4] : memref<2048x128xf32, #tpu.memory_space<vmem>>, vector<2048x128xf32>
    tpu.vector_store %arg5[%c0_3, %c0_4], %2 {strides = array<i32>} : memref<2048x128xf32, #tpu.memory_space<vmem>>, vector<2048x128xf32>,
    %c0_5 = arith.constant 0 : index
    %c0_6 = arith.constant 0 : index
    %4 = vector.load %arg5[%c0_5, %c0_6] : memref<2048x128xf32, #tpu.memory_space<vmem>>, vector<2048x128xf32>
    %cst_7 = arith.constant dense<0.000000e+00> : vector<128xf32>
    %5 = vector.multi_reduction <add>, %4, %cst_7 [0] : vector<2048x128xf32> to vector<128xf32>
    %6 = vector.shape_cast %5 : vector<128xf32> to vector<1x128xf32>
    %cst_8 = arith.constant 4.8828125E-4 : f32
    %7 = vector.broadcast %cst_8 : f32 to vector<1x128xf32>
    %8 = arith.mulf %6, %7 : vector<1x128xf32>
    %c0_9 = arith.constant 0 : index
    %c0_10 = arith.constant 0 : index
    %9 = vector.load %arg5[%c0_9, %c0_10] : memref<2048x128xf32, #tpu.memory_space<vmem>>, vector<2048x128xf32>
    %10 = vector.broadcast %8 : vector<1x128xf32> to vector<2048x128xf32>
    %11 = arith.subf %9, %10 : vector<2048x128xf32>
    %12 = arith.mulf %11, %11 : vector<2048x128xf32>
    %cst_11 = arith.constant dense<0.000000e+00> : vector<128xf32>
    %13 = vector.multi_reduction <add>, %12, %cst_11 [0] : vector<2048x128xf32> to vector<128xf32>
    %14 = vector.shape_cast %13 : vector<128xf32> to vector<1x128xf32>
    %cst_12 = arith.constant 4.8828125E-4 : f32
    %15 = vector.broadcast %cst_12 : f32 to vector<1x128xf32>
    %16 = arith.mulf %14, %15 : vector<1x128xf32>
    %c0_13 = arith.constant 0 : index
    %c0_14 = arith.constant 0 : index
    %17 = vector.load %arg2[%c0_13, %c0_14] : memref<1x128xf32, #tpu.memory_space<vmem>>, vector<1x128xf32>
    %cst_15 = arith.constant 9.99999974E-6 : f32
    %18 = vector.broadcast %cst_15 : f32 to vector<1x128xf32>
    %19 = arith.addf %16, %18 : vector<1x128xf32>
    %20 = math.rsqrt %19 : vector<1x128xf32>
    %21 = arith.mulf %17, %20 : vector<1x128xf32>
    %c0_16 = arith.constant 0 : index
    %c0_17 = arith.constant 0 : index
    %22 = vector.load %arg3[%c0_16, %c0_17] : memref<1x128xf32, #tpu.memory_space<vmem>>, vector<1x128xf32>
    %23 = arith.mulf %21, %8 : vector<1x128xf32>
    %24 = arith.subf %22, %23 : vector<1x128xf32>
    %c0_18 = arith.constant 0 : index
    %c0_19 = arith.constant 0 : index
    %25 = vector.load %arg5[%c0_18, %c0_19] : memref<2048x128xf32, #tpu.memory_space<vmem>>, vector<2048x128xf32>
    %26 = vector.broadcast %21 : vector<1x128xf32> to vector<2048x128xf32>
    %27 = arith.mulf %25, %26 : vector<2048x128xf32>
    %28 = vector.broadcast %24 : vector<1x128xf32> to vector<2048x128xf32>
    %29 = arith.addf %27, %28 : vector<2048x128xf32>
    %cst_20 = arith.constant 2.000000e-01 : f32
    %30 = vector.broadcast %cst_20 : f32 to vector<2048x128xf32>
    %31 = arith.mulf %30, %29 : vector<2048x128xf32>
    %32 = arith.maximumf %29, %31 : vector<2048x128xf32>
    %33 = arith.truncf %32 : vector<2048x128xf32> to vector<2048x128xbf16>
    %c0_21 = arith.constant 0 : index
    %c0_22 = arith.constant 0 : index
    %34 = vector.load %arg4[%c0_21, %c0_22] : memref<2048x128xbf16, #tpu.memory_space<vmem>>, vector<2048x128xbf16>
    tpu.vector_store %arg4[%c0_21, %c0_22], %33 {strides = array<i32>} : memref<2048x128xbf16, #tpu.memory_space<vmem>>, vector<2048x128xbf16>,
    return
  }
}

module attributes {stable_mosaic.version = 11 : i64} {
  func.func @conv_bn_lrelu_kernel(%arg0: memref<512x128xbf16, #tpu.memory_space<vmem>>, %arg1: memref<128x128xbf16, #tpu.memory_space<vmem>>, %arg2: memref<1x128xf32, #tpu.memory_space<vmem>>, %arg3: memref<1x128xf32, #tpu.memory_space<vmem>>, %arg4: memref<512x128xbf16, #tpu.memory_space<vmem>>, %arg5: memref<512x128xf32, #tpu.memory_space<vmem>>) attributes {dimension_semantics = [], scalar_prefetch = 0 : i64, scratch_operands = 1 : i64, tpu.core_type = #tpu.core_type<tc>} {
    %c0 = arith.constant 0 : index
    %c0_0 = arith.constant 0 : index
    %0 = vector.load %arg0[%c0, %c0_0] : memref<512x128xbf16, #tpu.memory_space<vmem>>, vector<512x128xbf16>
    %c0_1 = arith.constant 0 : index
    %c0_2 = arith.constant 0 : index
    %1 = vector.load %arg1[%c0_1, %c0_2] : memref<128x128xbf16, #tpu.memory_space<vmem>>, vector<128x128xbf16>
    %cst = arith.constant dense<0.000000e+00> : vector<512x128xf32>
    %2 = tpu.matmul %0, %1, %cst {dimension_numbers = #tpu.dot_dimension_numbers<[1], [0], [0], [1], [0, 0, 1, 1], [], []>} : vector<512x128xbf16>, vector<128x128xbf16>, vector<512x128xf32> -> vector<512x128xf32>
    %c0_3 = arith.constant 0 : index
    %c0_4 = arith.constant 0 : index
    %3 = vector.load %arg5[%c0_3, %c0_4] : memref<512x128xf32, #tpu.memory_space<vmem>>, vector<512x128xf32>
    tpu.vector_store %arg5[%c0_3, %c0_4], %2 {strides = array<i32>} : memref<512x128xf32, #tpu.memory_space<vmem>>, vector<512x128xf32>,
    %c0_5 = arith.constant 0 : index
    %c0_6 = arith.constant 0 : index
    %4 = vector.load %arg5[%c0_5, %c0_6] : memref<512x128xf32, #tpu.memory_space<vmem>>, vector<512x128xf32>
    %cst_7 = arith.constant dense<0.000000e+00> : vector<128xf32>
    %5 = vector.multi_reduction <add>, %4, %cst_7 [0] : vector<512x128xf32> to vector<128xf32>
    %6 = vector.shape_cast %5 : vector<128xf32> to vector<1x128xf32>
    %cst_8 = arith.constant 0.001953125 : f32
    %7 = vector.broadcast %cst_8 : f32 to vector<1x128xf32>
    %8 = arith.mulf %6, %7 : vector<1x128xf32>
    %c0_9 = arith.constant 0 : index
    %c0_10 = arith.constant 0 : index
    %9 = vector.load %arg5[%c0_9, %c0_10] : memref<512x128xf32, #tpu.memory_space<vmem>>, vector<512x128xf32>
    %10 = vector.broadcast %8 : vector<1x128xf32> to vector<512x128xf32>
    %11 = arith.subf %9, %10 : vector<512x128xf32>
    %12 = arith.mulf %11, %11 : vector<512x128xf32>
    %cst_11 = arith.constant dense<0.000000e+00> : vector<128xf32>
    %13 = vector.multi_reduction <add>, %12, %cst_11 [0] : vector<512x128xf32> to vector<128xf32>
    %14 = vector.shape_cast %13 : vector<128xf32> to vector<1x128xf32>
    %cst_12 = arith.constant 0.001953125 : f32
    %15 = vector.broadcast %cst_12 : f32 to vector<1x128xf32>
    %16 = arith.mulf %14, %15 : vector<1x128xf32>
    %c0_13 = arith.constant 0 : index
    %c0_14 = arith.constant 0 : index
    %17 = vector.load %arg2[%c0_13, %c0_14] : memref<1x128xf32, #tpu.memory_space<vmem>>, vector<1x128xf32>
    %cst_15 = arith.constant 9.99999974E-6 : f32
    %18 = vector.broadcast %cst_15 : f32 to vector<1x128xf32>
    %19 = arith.addf %16, %18 : vector<1x128xf32>
    %20 = math.rsqrt %19 : vector<1x128xf32>
    %21 = arith.mulf %17, %20 : vector<1x128xf32>
    %c0_16 = arith.constant 0 : index
    %c0_17 = arith.constant 0 : index
    %22 = vector.load %arg3[%c0_16, %c0_17] : memref<1x128xf32, #tpu.memory_space<vmem>>, vector<1x128xf32>
    %23 = arith.mulf %21, %8 : vector<1x128xf32>
    %24 = arith.subf %22, %23 : vector<1x128xf32>
    %c0_18 = arith.constant 0 : index
    %c0_19 = arith.constant 0 : index
    %25 = vector.load %arg5[%c0_18, %c0_19] : memref<512x128xf32, #tpu.memory_space<vmem>>, vector<512x128xf32>
    %26 = vector.broadcast %21 : vector<1x128xf32> to vector<512x128xf32>
    %27 = arith.mulf %25, %26 : vector<512x128xf32>
    %28 = vector.broadcast %24 : vector<1x128xf32> to vector<512x128xf32>
    %29 = arith.addf %27, %28 : vector<512x128xf32>
    %cst_20 = arith.constant 2.000000e-01 : f32
    %30 = vector.broadcast %cst_20 : f32 to vector<512x128xf32>
    %31 = arith.mulf %30, %29 : vector<512x128xf32>
    %32 = arith.maximumf %29, %31 : vector<512x128xf32>
    %33 = arith.truncf %32 : vector<512x128xf32> to vector<512x128xbf16>
    %c0_21 = arith.constant 0 : index
    %c0_22 = arith.constant 0 : index
    %34 = vector.load %arg4[%c0_21, %c0_22] : memref<512x128xbf16, #tpu.memory_space<vmem>>, vector<512x128xbf16>
    tpu.vector_store %arg4[%c0_21, %c0_22], %33 {strides = array<i32>} : memref<512x128xbf16, #tpu.memory_space<vmem>>, vector<512x128xbf16>,
    return
  }
}

module attributes {stable_mosaic.version = 11 : i64} {
  func.func @conv_bn_lrelu_kernel(%arg0: memref<128x256xbf16, #tpu.memory_space<vmem>>, %arg1: memref<256x128xbf16, #tpu.memory_space<vmem>>, %arg2: memref<1x128xf32, #tpu.memory_space<vmem>>, %arg3: memref<1x128xf32, #tpu.memory_space<vmem>>, %arg4: memref<128x128xbf16, #tpu.memory_space<vmem>>, %arg5: memref<128x128xf32, #tpu.memory_space<vmem>>) attributes {dimension_semantics = [], scalar_prefetch = 0 : i64, scratch_operands = 1 : i64, tpu.core_type = #tpu.core_type<tc>} {
    %c0 = arith.constant 0 : index
    %c0_0 = arith.constant 0 : index
    %0 = vector.load %arg0[%c0, %c0_0] : memref<128x256xbf16, #tpu.memory_space<vmem>>, vector<128x256xbf16>
    %c0_1 = arith.constant 0 : index
    %c0_2 = arith.constant 0 : index
    %1 = vector.load %arg1[%c0_1, %c0_2] : memref<256x128xbf16, #tpu.memory_space<vmem>>, vector<256x128xbf16>
    %cst = arith.constant dense<0.000000e+00> : vector<128x128xf32>
    %2 = tpu.matmul %0, %1, %cst {dimension_numbers = #tpu.dot_dimension_numbers<[1], [0], [0], [1], [0, 0, 1, 1], [], []>} : vector<128x256xbf16>, vector<256x128xbf16>, vector<128x128xf32> -> vector<128x128xf32>
    %c0_3 = arith.constant 0 : index
    %c0_4 = arith.constant 0 : index
    %3 = vector.load %arg5[%c0_3, %c0_4] : memref<128x128xf32, #tpu.memory_space<vmem>>, vector<128x128xf32>
    tpu.vector_store %arg5[%c0_3, %c0_4], %2 {strides = array<i32>} : memref<128x128xf32, #tpu.memory_space<vmem>>, vector<128x128xf32>,
    %c0_5 = arith.constant 0 : index
    %c0_6 = arith.constant 0 : index
    %4 = vector.load %arg5[%c0_5, %c0_6] : memref<128x128xf32, #tpu.memory_space<vmem>>, vector<128x128xf32>
    %cst_7 = arith.constant dense<0.000000e+00> : vector<128xf32>
    %5 = vector.multi_reduction <add>, %4, %cst_7 [0] : vector<128x128xf32> to vector<128xf32>
    %6 = vector.shape_cast %5 : vector<128xf32> to vector<1x128xf32>
    %cst_8 = arith.constant 7.812500e-03 : f32
    %7 = vector.broadcast %cst_8 : f32 to vector<1x128xf32>
    %8 = arith.mulf %6, %7 : vector<1x128xf32>
    %c0_9 = arith.constant 0 : index
    %c0_10 = arith.constant 0 : index
    %9 = vector.load %arg5[%c0_9, %c0_10] : memref<128x128xf32, #tpu.memory_space<vmem>>, vector<128x128xf32>
    %10 = vector.broadcast %8 : vector<1x128xf32> to vector<128x128xf32>
    %11 = arith.subf %9, %10 : vector<128x128xf32>
    %12 = arith.mulf %11, %11 : vector<128x128xf32>
    %cst_11 = arith.constant dense<0.000000e+00> : vector<128xf32>
    %13 = vector.multi_reduction <add>, %12, %cst_11 [0] : vector<128x128xf32> to vector<128xf32>
    %14 = vector.shape_cast %13 : vector<128xf32> to vector<1x128xf32>
    %cst_12 = arith.constant 7.812500e-03 : f32
    %15 = vector.broadcast %cst_12 : f32 to vector<1x128xf32>
    %16 = arith.mulf %14, %15 : vector<1x128xf32>
    %c0_13 = arith.constant 0 : index
    %c0_14 = arith.constant 0 : index
    %17 = vector.load %arg2[%c0_13, %c0_14] : memref<1x128xf32, #tpu.memory_space<vmem>>, vector<1x128xf32>
    %cst_15 = arith.constant 9.99999974E-6 : f32
    %18 = vector.broadcast %cst_15 : f32 to vector<1x128xf32>
    %19 = arith.addf %16, %18 : vector<1x128xf32>
    %20 = math.rsqrt %19 : vector<1x128xf32>
    %21 = arith.mulf %17, %20 : vector<1x128xf32>
    %c0_16 = arith.constant 0 : index
    %c0_17 = arith.constant 0 : index
    %22 = vector.load %arg3[%c0_16, %c0_17] : memref<1x128xf32, #tpu.memory_space<vmem>>, vector<1x128xf32>
    %23 = arith.mulf %21, %8 : vector<1x128xf32>
    %24 = arith.subf %22, %23 : vector<1x128xf32>
    %c0_18 = arith.constant 0 : index
    %c0_19 = arith.constant 0 : index
    %25 = vector.load %arg5[%c0_18, %c0_19] : memref<128x128xf32, #tpu.memory_space<vmem>>, vector<128x128xf32>
    %26 = vector.broadcast %21 : vector<1x128xf32> to vector<128x128xf32>
    %27 = arith.mulf %25, %26 : vector<128x128xf32>
    %28 = vector.broadcast %24 : vector<1x128xf32> to vector<128x128xf32>
    %29 = arith.addf %27, %28 : vector<128x128xf32>
    %cst_20 = arith.constant 2.000000e-01 : f32
    %30 = vector.broadcast %cst_20 : f32 to vector<128x128xf32>
    %31 = arith.mulf %30, %29 : vector<128x128xf32>
    %32 = arith.maximumf %29, %31 : vector<128x128xf32>
    %33 = arith.truncf %32 : vector<128x128xf32> to vector<128x128xbf16>
    %c0_21 = arith.constant 0 : index
    %c0_22 = arith.constant 0 : index
    %34 = vector.load %arg4[%c0_21, %c0_22] : memref<128x128xbf16, #tpu.memory_space<vmem>>, vector<128x128xbf16>
    tpu.vector_store %arg4[%c0_21, %c0_22], %33 {strides = array<i32>} : memref<128x128xbf16, #tpu.memory_space<vmem>>, vector<128x128xbf16>,
    return
  }
}

module attributes {stable_mosaic.version = 11 : i64} {
  func.func @conv_bn_lrelu_kernel(%arg0: memref<32x512xbf16, #tpu.memory_space<vmem>>, %arg1: memref<512x128xbf16, #tpu.memory_space<vmem>>, %arg2: memref<1x128xf32, #tpu.memory_space<vmem>>, %arg3: memref<1x128xf32, #tpu.memory_space<vmem>>, %arg4: memref<32x128xbf16, #tpu.memory_space<vmem>>, %arg5: memref<32x128xf32, #tpu.memory_space<vmem>>) attributes {dimension_semantics = [], scalar_prefetch = 0 : i64, scratch_operands = 1 : i64, tpu.core_type = #tpu.core_type<tc>} {
    %c0 = arith.constant 0 : index
    %c0_0 = arith.constant 0 : index
    %0 = vector.load %arg0[%c0, %c0_0] : memref<32x512xbf16, #tpu.memory_space<vmem>>, vector<32x512xbf16>
    %c0_1 = arith.constant 0 : index
    %c0_2 = arith.constant 0 : index
    %1 = vector.load %arg1[%c0_1, %c0_2] : memref<512x128xbf16, #tpu.memory_space<vmem>>, vector<512x128xbf16>
    %cst = arith.constant dense<0.000000e+00> : vector<32x128xf32>
    %2 = tpu.matmul %0, %1, %cst {dimension_numbers = #tpu.dot_dimension_numbers<[1], [0], [0], [1], [0, 0, 1, 1], [], []>} : vector<32x512xbf16>, vector<512x128xbf16>, vector<32x128xf32> -> vector<32x128xf32>
    %c0_3 = arith.constant 0 : index
    %c0_4 = arith.constant 0 : index
    %3 = vector.load %arg5[%c0_3, %c0_4] : memref<32x128xf32, #tpu.memory_space<vmem>>, vector<32x128xf32>
    tpu.vector_store %arg5[%c0_3, %c0_4], %2 {strides = array<i32>} : memref<32x128xf32, #tpu.memory_space<vmem>>, vector<32x128xf32>,
    %c0_5 = arith.constant 0 : index
    %c0_6 = arith.constant 0 : index
    %4 = vector.load %arg5[%c0_5, %c0_6] : memref<32x128xf32, #tpu.memory_space<vmem>>, vector<32x128xf32>
    %cst_7 = arith.constant dense<0.000000e+00> : vector<128xf32>
    %5 = vector.multi_reduction <add>, %4, %cst_7 [0] : vector<32x128xf32> to vector<128xf32>
    %6 = vector.shape_cast %5 : vector<128xf32> to vector<1x128xf32>
    %cst_8 = arith.constant 3.125000e-02 : f32
    %7 = vector.broadcast %cst_8 : f32 to vector<1x128xf32>
    %8 = arith.mulf %6, %7 : vector<1x128xf32>
    %c0_9 = arith.constant 0 : index
    %c0_10 = arith.constant 0 : index
    %9 = vector.load %arg5[%c0_9, %c0_10] : memref<32x128xf32, #tpu.memory_space<vmem>>, vector<32x128xf32>
    %10 = vector.broadcast %8 : vector<1x128xf32> to vector<32x128xf32>
    %11 = arith.subf %9, %10 : vector<32x128xf32>
    %12 = arith.mulf %11, %11 : vector<32x128xf32>
    %cst_11 = arith.constant dense<0.000000e+00> : vector<128xf32>
    %13 = vector.multi_reduction <add>, %12, %cst_11 [0] : vector<32x128xf32> to vector<128xf32>
    %14 = vector.shape_cast %13 : vector<128xf32> to vector<1x128xf32>
    %cst_12 = arith.constant 3.125000e-02 : f32
    %15 = vector.broadcast %cst_12 : f32 to vector<1x128xf32>
    %16 = arith.mulf %14, %15 : vector<1x128xf32>
    %c0_13 = arith.constant 0 : index
    %c0_14 = arith.constant 0 : index
    %17 = vector.load %arg2[%c0_13, %c0_14] : memref<1x128xf32, #tpu.memory_space<vmem>>, vector<1x128xf32>
    %cst_15 = arith.constant 9.99999974E-6 : f32
    %18 = vector.broadcast %cst_15 : f32 to vector<1x128xf32>
    %19 = arith.addf %16, %18 : vector<1x128xf32>
    %20 = math.rsqrt %19 : vector<1x128xf32>
    %21 = arith.mulf %17, %20 : vector<1x128xf32>
    %c0_16 = arith.constant 0 : index
    %c0_17 = arith.constant 0 : index
    %22 = vector.load %arg3[%c0_16, %c0_17] : memref<1x128xf32, #tpu.memory_space<vmem>>, vector<1x128xf32>
    %23 = arith.mulf %21, %8 : vector<1x128xf32>
    %24 = arith.subf %22, %23 : vector<1x128xf32>
    %c0_18 = arith.constant 0 : index
    %c0_19 = arith.constant 0 : index
    %25 = vector.load %arg5[%c0_18, %c0_19] : memref<32x128xf32, #tpu.memory_space<vmem>>, vector<32x128xf32>
    %26 = vector.broadcast %21 : vector<1x128xf32> to vector<32x128xf32>
    %27 = arith.mulf %25, %26 : vector<32x128xf32>
    %28 = vector.broadcast %24 : vector<1x128xf32> to vector<32x128xf32>
    %29 = arith.addf %27, %28 : vector<32x128xf32>
    %cst_20 = arith.constant 2.000000e-01 : f32
    %30 = vector.broadcast %cst_20 : f32 to vector<32x128xf32>
    %31 = arith.mulf %30, %29 : vector<32x128xf32>
    %32 = arith.maximumf %29, %31 : vector<32x128xf32>
    %33 = arith.truncf %32 : vector<32x128xf32> to vector<32x128xbf16>
    %c0_21 = arith.constant 0 : index
    %c0_22 = arith.constant 0 : index
    %34 = vector.load %arg4[%c0_21, %c0_22] : memref<32x128xbf16, #tpu.memory_space<vmem>>, vector<32x128xbf16>
    tpu.vector_store %arg4[%c0_21, %c0_22], %33 {strides = array<i32>} : memref<32x128xbf16, #tpu.memory_space<vmem>>, vector<32x128xbf16>,
    return
  }
}

module attributes {stable_mosaic.version = 11 : i64} {
  func.func @final_heads_kernel(%arg0: memref<8x1024xbf16, #tpu.memory_space<vmem>>, %arg1: memref<1024x128xbf16, #tpu.memory_space<vmem>>, %arg2: memref<1x128xf32, #tpu.memory_space<vmem>>, %arg3: memref<128x128xbf16, #tpu.memory_space<vmem>>, %arg4: memref<1x128xf32, #tpu.memory_space<vmem>>, %arg5: memref<8x128xf32, #tpu.memory_space<vmem>>) attributes {dimension_semantics = [], scalar_prefetch = 0 : i64, scratch_operands = 0 : i64, tpu.core_type = #tpu.core_type<tc>} {
    %c0 = arith.constant 0 : index
    %c0_0 = arith.constant 0 : index
    %0 = vector.load %arg0[%c0, %c0_0] : memref<8x1024xbf16, #tpu.memory_space<vmem>>, vector<8x1024xbf16>
    %c0_1 = arith.constant 0 : index
    %c0_2 = arith.constant 0 : index
    %1 = vector.load %arg1[%c0_1, %c0_2] : memref<1024x128xbf16, #tpu.memory_space<vmem>>, vector<1024x128xbf16>
    %cst = arith.constant dense<0.000000e+00> : vector<8x128xf32>
    %2 = tpu.matmul %0, %1, %cst {dimension_numbers = #tpu.dot_dimension_numbers<[1], [0], [0], [1], [0, 0, 1, 1], [], []>} : vector<8x1024xbf16>, vector<1024x128xbf16>, vector<8x128xf32> -> vector<8x128xf32>
    %c0_3 = arith.constant 0 : index
    %c0_4 = arith.constant 0 : index
    %3 = vector.load %arg2[%c0_3, %c0_4] : memref<1x128xf32, #tpu.memory_space<vmem>>, vector<1x128xf32>
    %4 = vector.broadcast %3 : vector<1x128xf32> to vector<8x128xf32>
    %5 = arith.addf %2, %4 : vector<8x128xf32>
    %6 = arith.truncf %5 : vector<8x128xf32> to vector<8x128xbf16>
    %c0_5 = arith.constant 0 : index
    %c0_6 = arith.constant 0 : index
    %7 = vector.load %arg3[%c0_5, %c0_6] : memref<128x128xbf16, #tpu.memory_space<vmem>>, vector<128x128xbf16>
    %cst_7 = arith.constant dense<0.000000e+00> : vector<8x128xf32>
    %8 = tpu.matmul %6, %7, %cst_7 {dimension_numbers = #tpu.dot_dimension_numbers<[1], [0], [0], [1], [0, 0, 1, 1], [], []>} : vector<8x128xbf16>, vector<128x128xbf16>, vector<8x128xf32> -> vector<8x128xf32>
    %c0_8 = arith.constant 0 : index
    %c0_9 = arith.constant 0 : index
    %9 = vector.load %arg4[%c0_8, %c0_9] : memref<1x128xf32, #tpu.memory_space<vmem>>, vector<1x128xf32>
    %10 = vector.broadcast %9 : vector<1x128xf32> to vector<8x128xf32>
    %11 = arith.addf %8, %10 : vector<8x128xf32>
    %c0_10 = arith.constant 0 : index
    %c0_11 = arith.constant 0 : index
    %12 = vector.load %arg5[%c0_10, %c0_11] : memref<8x128xf32, #tpu.memory_space<vmem>>, vector<8x128xf32>
    tpu.vector_store %arg5[%c0_10, %c0_11], %11 {strides = array<i32>} : memref<8x128xf32, #tpu.memory_space<vmem>>, vector<8x128xf32>,
    return
  }
}

</mosaic_0001>

<bundles_post_ra>
// kernel: forward.5
= control target key start
LH: loop header
LB: loop body
LE: loop exit
PB: predicated region body
PF: predicated region fallthrough
CT: control target
= control target key end

     0   :  { %s12294_s1 = inlined_call_operand.vmem [shape: bf16[128,128], index: 1, kind: input, shape index: {}]   ;;  %s12295_s0 = inlined_call_operand.vmem [shape: bf16[2048,128], index: 0, kind: input, shape index: {}]   ;;  %s12296_s2 = inlined_call_operand.vmem [shape: f32[1,128], index: 2, kind: input, shape index: {}]   ;;  %s12297_s3 = inlined_call_operand.vmem [shape: f32[1,128], index: 3, kind: input, shape index: {}]   ;;  %s12298_s4 = inlined_call_operand.vmem [shape: bf16[2048,128], index: 4, kind: output, shape index: {}]  }
   0x1   :  { %v5543_v0 = vld [vmem:[%s12294_s1 + $0x38] sm:$0xff]  ;;  %v5542_v1 = vld [vmem:[%s12294_s1 + $0x30] sm:$0xff]  ;;  %v5541_v2 = vld [vmem:[%s12294_s1 + $0x28] sm:$0xff] }
   0x2   :  { %1105 = vmatpush.bf16.msra.mxu0 %v5543_v0  ;;  %6311 = vmatpush.bf16.msra.mxu1 %v5543_v0  ;;  %v5540_v3 = vld [vmem:[%s12294_s1 + $0x20] sm:$0xff]  ;;  %v5539_v4 = vld [vmem:[%s12294_s1 + $0x18] sm:$0xff]  ;;  %v5538_v5 = vld [vmem:[%s12294_s1 + $0x10] sm:$0xff] }
   0x3   :  { %6312 = vmatpush.bf16.msra.mxu2 %v5543_v0  ;;  %6313 = vmatpush.bf16.msra.mxu3 %v5543_v0  ;;  %v5537_v6 = vld [vmem:[%s12294_s1 + $0x8] sm:$0xff]  ;;  %v5536_v7 = vld [vmem:[%s12294_s1] sm:$0xff]  ;;  %v5410_v10 = vld [vmem:[%s12295_s0 + $0x10] sm:$0xff] }
   0x4   :  { %v5408_v8 = vld [vmem:[%s12295_s0] sm:$0xff]  ;;  %v5409_v9 = vld [vmem:[%s12295_s0 + $0x8] sm:$0xff]  ;;  %v5411_v11 = vld [vmem:[%s12295_s0 + $0x18] sm:$0xff] }
   0x5   :  { %v5412_v12 = vld [vmem:[%s12295_s0 + $0x20] sm:$0xff]  ;;  %v5413_v13 = vld [vmem:[%s12295_s0 + $0x28] sm:$0xff]  ;;  %v5414_v15 = vld [vmem:[%s12295_s0 + $0x30] sm:$0xff] }
   0x6   :  { %1106 = vmatpush.bf16.msra.mxu0 %v5542_v1  ;;  %6314 = vmatpush.bf16.msra.mxu1 %v5542_v1  ;;  %v5440_v14 = vld [vmem:[%s12295_s0 + $0x100] sm:$0xff]  ;;  %v5441_v16 = vld [vmem:[%s12295_s0 + $0x108] sm:$0xff]  ;;  %v5415_v17 = vld [vmem:[%s12295_s0 + $0x38] sm:$0xff] }
   0x7   :  { %6315 = vmatpush.bf16.msra.mxu2 %v5542_v1  ;;  %6316 = vmatpush.bf16.msra.mxu3 %v5542_v1  ;;  %v5442_v18 = vld [vmem:[%s12295_s0 + $0x110] sm:$0xff]  ;;  %v5416_v19 = vld [vmem:[%s12295_s0 + $0x40] sm:$0xff]  ;;  %v5443_v22 = vld [vmem:[%s12295_s0 + $0x118] sm:$0xff] }
   0x8   :  { %v5417_v23 = vld [vmem:[%s12295_s0 + $0x48] sm:$0xff]  ;;  %v5444_v26 = vld [vmem:[%s12295_s0 + $0x120] sm:$0xff]  ;;  %v5418_v27 = vld [vmem:[%s12295_s0 + $0x50] sm:$0xff] }
   0x9   :  { %v5445_v30 = vld [vmem:[%s12295_s0 + $0x128] sm:$0xff]  ;;  %v5419_v31 = vld [vmem:[%s12295_s0 + $0x58] sm:$0xff]  ;;  %v5446_v34 = vld [vmem:[%s12295_s0 + $0x130] sm:$0xff] }
   0xa   :  { %1107 = vmatpush.bf16.msra.mxu0 %v5541_v2  ;;  %6317 = vmatpush.bf16.msra.mxu1 %v5541_v2  ;;  %v5420_v35 = vld [vmem:[%s12295_s0 + $0x60] sm:$0xff]  ;;  %v5447_v38 = vld [vmem:[%s12295_s0 + $0x138] sm:$0xff]  ;;  %v5421_v39 = vld [vmem:[%s12295_s0 + $0x68] sm:$0xff] }
   0xb   :  { %6318 = vmatpush.bf16.msra.mxu2 %v5541_v2  ;;  %6319 = vmatpush.bf16.msra.mxu3 %v5541_v2  ;;  %v5472_v41 = vld [vmem:[%s12295_s0 + $0x200] sm:$0xff]  ;;  %v5422_v45 = vld [vmem:[%s12295_s0 + $0x70] sm:$0xff]  ;;  %v5473_v48 = vld [vmem:[%s12295_s0 + $0x208] sm:$0xff] }
   0xc   :  { %v5448_v44 = vld [vmem:[%s12295_s0 + $0x140] sm:$0xff]  ;;  %v5449_v51 = vld [vmem:[%s12295_s0 + $0x148] sm:$0xff]  ;;  %v5423_v52 = vld [vmem:[%s12295_s0 + $0x78] sm:$0xff] }
   0xd   :  { %v5474_v55 = vld [vmem:[%s12295_s0 + $0x210] sm:$0xff]  ;;  %v5424_v59 = vld [vmem:[%s12295_s0 + $0x80] sm:$0xff]  ;;  %v5475_v62 = vld [vmem:[%s12295_s0 + $0x218] sm:$0xff] }
   0xe   :  { %1108 = vmatpush.bf16.msra.mxu0 %v5540_v3  ;;  %6320 = vmatpush.bf16.msra.mxu1 %v5540_v3  ;;  %v5450_v58 = vld [vmem:[%s12295_s0 + $0x150] sm:$0xff]  ;;  %v5451_v1 = vld [vmem:[%s12295_s0 + $0x158] sm:$0xff]  ;;  %v5425_v2 = vld [vmem:[%s12295_s0 + $0x88] sm:$0xff] }
   0xf   :  { %6321 = vmatpush.bf16.msra.mxu2 %v5540_v3  ;;  %6322 = vmatpush.bf16.msra.mxu3 %v5540_v3 }
  0x12   :  { %1109 = vmatpush.bf16.msra.mxu0 %v5539_v4  ;;  %6323 = vmatpush.bf16.msra.mxu1 %v5539_v4 }
  0x13   :  { %6324 = vmatpush.bf16.msra.mxu2 %v5539_v4  ;;  %6325 = vmatpush.bf16.msra.mxu3 %v5539_v4 }
  0x16   :  { %1110 = vmatpush.bf16.msra.mxu0 %v5538_v5  ;;  %6326 = vmatpush.bf16.msra.mxu1 %v5538_v5 }
  0x17   :  { %6327 = vmatpush.bf16.msra.mxu2 %v5538_v5  ;;  %6328 = vmatpush.bf16.msra.mxu3 %v5538_v5  ;;  %v5476_v5 = vld [vmem:[%s12295_s0 + $0x220] sm:$0xff] }
  0x1a   :  { %1111 = vmatpush.bf16.msra.mxu0 %v5537_v6  ;;  %6329 = vmatpush.bf16.msra.mxu1 %v5537_v6 }
  0x1b   :  { %6330 = vmatpush.bf16.msra.mxu2 %v5537_v6  ;;  %6331 = vmatpush.bf16.msra.mxu3 %v5537_v6 }
  0x1e   :  { %1112 = vmatpush.bf16.msra.mxu0 %v5536_v7  ;;  %6332 = vmatpush.bf16.msra.mxu1 %v5536_v7 }
  0x1f   :  { %6333 = vmatpush.bf16.msra.mxu2 %v5536_v7  ;;  %6334 = vmatpush.bf16.msra.mxu3 %v5536_v7 }
  0x21   :  { %1113 = vmatmul.bf16.vlgmr.msra.gmra.mxu0 %v5408_v8  ;;  %1273 = vmatmul.bf16.vlgmr.msra.gmra.mxu1 %v5440_v14  ;;  %v5452_v8 = vld [vmem:[%s12295_s0 + $0x160] sm:$0xff] }
  0x22   :  { %1433 = vmatmul.bf16.vlgmr.msra.gmra.mxu2 %v5472_v41  ;;  %v5429_v41 = vld [vmem:[%s12295_s0 + $0xa8] sm:$0xff] }
  0x31   :  { %1118 = vmatmul.bf16.gmra.mxu0 %v5409_v9  ;;  %1278 = vmatmul.bf16.gmra.mxu1 %v5441_v16  ;;  %v5426_v9 = vld [vmem:[%s12295_s0 + $0x90] sm:$0xff]  ;;  %v5427_v16 = vld [vmem:[%s12295_s0 + $0x98] sm:$0xff] }
  0x32   :  { %1438 = vmatmul.bf16.gmra.mxu2 %v5473_v48  ;;  %v5480_v48 = vld [vmem:[%s12295_s0 + $0x240] sm:$0xff] }
  0x41   :  { %1123 = vmatmul.bf16.gmra.mxu0 %v5410_v10  ;;  %1283 = vmatmul.bf16.gmra.mxu1 %v5442_v18 }
  0x42   :  { %1443 = vmatmul.bf16.gmra.mxu2 %v5474_v55 }
  0x51   :  { %1128 = vmatmul.bf16.gmra.mxu0 %v5411_v11  ;;  %1288 = vmatmul.bf16.gmra.mxu1 %v5443_v22 }
  0x52   :  { %1448 = vmatmul.bf16.gmra.mxu2 %v5475_v62  ;;  %v5430_v62 = vld [vmem:[%s12295_s0 + $0xb0] sm:$0xff] }
  0x61   :  { %1133 = vmatmul.bf16.gmra.mxu0 %v5412_v12  ;;  %1293 = vmatmul.bf16.gmra.mxu1 %v5444_v26  ;;  %v5477_v12 = vld [vmem:[%s12295_s0 + $0x228] sm:$0xff]  ;;  %v5454_v26 = vld [vmem:[%s12295_s0 + $0x170] sm:$0xff] }
  0x62   :  { %1453 = vmatmul.bf16.gmra.mxu2 %v5476_v5 }
  0x71   :  { %1138 = vmatmul.bf16.gmra.mxu0 %v5413_v13  ;;  %1298 = vmatmul.bf16.gmra.mxu1 %v5445_v30 }
  0x72   :  { %1458 = vmatmul.bf16.gmra.mxu2 %v5477_v12 }
  0x81   :  { %1143 = vmatmul.bf16.gmra.mxu0 %v5414_v15  ;;  %1303 = vmatmul.bf16.gmra.mxu1 %v5446_v34  ;;  %v5453_v15 = vld [vmem:[%s12295_s0 + $0x168] sm:$0xff]  ;;  %v5479_v34 = vld [vmem:[%s12295_s0 + $0x238] sm:$0xff] }
  0x91   :  { %1148 = vmatmul.bf16.gmra.mxu0 %v5415_v17  ;;  %1308 = vmatmul.bf16.gmra.mxu1 %v5447_v38 }
  0x9e   :  { %v6422_v20 = vpop.f32.mrf.mxu0  ;;  %v6479_v43 = vpop.f32.mrf.mxu1 }
  0x9f   :  { %13161 = vst [vmem:[#allocation3_spill] sm:$0xff] %v6422_v20 }
  0xa0   :  { %13173 = vst [vmem:[#allocation15_spill] sm:$0xff] %v6479_v43 }
  0xa1   :  { %1153 = vmatmul.bf16.gmra.mxu0 %v5416_v19  ;;  %1313 = vmatmul.bf16.gmra.mxu1 %v5448_v44  ;;  %v5478_v19 = vld [vmem:[%s12295_s0 + $0x230] sm:$0xff] }
  0xa2   :  { %1463 = vmatmul.bf16.gmra.mxu2 %v5478_v19  ;;  %v5457_v19 = vld [vmem:[%s12295_s0 + $0x188] sm:$0xff] }
  0xa6   :  { %v6424_v21 = vpop.f32.mrf.mxu0  ;;  %v6489_v47 = vpop.f32.mrf.mxu1 }
  0xa7   :  { %13162 = vst [vmem:[#allocation4_spill] sm:$0xff] %v6424_v21 }
  0xa8   :  { %13175 = vst [vmem:[#allocation17_spill] sm:$0xff] %v6489_v47 }
  0xae   :  { %v6432_v24 = vpop.f32.mrf.mxu0  ;;  %v6496_v50 = vpop.f32.mrf.mxu1 }
  0xaf   :  { %13163 = vst [vmem:[#allocation5_spill] sm:$0xff] %v6432_v24 }
  0xb0   :  { %13177 = vst [vmem:[#allocation19_spill] sm:$0xff] %v6496_v50 }
  0xb1   :  { %1158 = vmatmul.bf16.gmra.mxu0 %v5417_v23  ;;  %1318 = vmatmul.bf16.gmra.mxu1 %v5449_v51  ;;  %v5504_v51 = vld [vmem:[%s12295_s0 + $0x300] sm:$0xff] }
  0xb2   :  { %1468 = vmatmul.bf16.gmra.mxu2 %v5479_v34  ;;  %1593 = vmatmul.bf16.vlgmr.msra.gmra.mxu3 %v5504_v51 }
  0xb6   :  { %v6434_v25 = vpop.f32.mrf.mxu0  ;;  %v6506_v54 = vpop.f32.mrf.mxu1 }
  0xb7   :  { %13164 = vst [vmem:[#allocation6_spill] sm:$0xff] %v6434_v25 }
  0xb8   :  { %13179 = vst [vmem:[#allocation21_spill] sm:$0xff] %v6506_v54 }
  0xbe   :  { %v6442_v28 = vpop.f32.mrf.mxu0  ;;  %v6513_v57 = vpop.f32.mrf.mxu1 }
  0xbf   :  { %13165 = vst [vmem:[#allocation7_spill] sm:$0xff] %v6442_v28 }
  0xc0   :  { %13181 = vst [vmem:[#allocation23_spill] sm:$0xff] %v6513_v57 }
  0xc1   :  { %1163 = vmatmul.bf16.gmra.mxu0 %v5418_v27  ;;  %1323 = vmatmul.bf16.gmra.mxu1 %v5450_v58  ;;  %v5428_v27 = vld [vmem:[%s12295_s0 + $0xa0] sm:$0xff]  ;;  %v6620_v58 = vpop.f32.mrf.mxu2 }
  0xc2   :  { %1473 = vmatmul.bf16.gmra.mxu2 %v5480_v48  ;;  %13206 = vst [vmem:[#allocation48_spill] sm:$0xff] %v6620_v58  ;;  %v5506_v48 = vld [vmem:[%s12295_s0 + $0x310] sm:$0xff] }
  0xc6   :  { %v6444_v29 = vpop.f32.mrf.mxu0  ;;  %v6523_v61 = vpop.f32.mrf.mxu1 }
  0xc7   :  { %13166 = vst [vmem:[#allocation8_spill] sm:$0xff] %v6444_v29 }
  0xc8   :  { %13183 = vst [vmem:[#allocation25_spill] sm:$0xff] %v6523_v61 }
  0xc9   :  { %v6632_v5 = vpop.f32.mrf.mxu2 }
  0xca   :  { %13209 = vst [vmem:[#allocation51_spill] sm:$0xff] %v6632_v5 }
  0xce   :  { %v6452_v32 = vpop.f32.mrf.mxu0  ;;  %v6530_v0 = vpop.f32.mrf.mxu1 }
  0xcf   :  { %13167 = vst [vmem:[#allocation9_spill] sm:$0xff] %v6452_v32 }
  0xd0   :  { %13185 = vst [vmem:[#allocation27_spill] sm:$0xff] %v6530_v0 }
  0xd1   :  { %1168 = vmatmul.bf16.gmra.mxu0 %v5419_v31  ;;  %1328 = vmatmul.bf16.gmra.mxu1 %v5451_v1 }
  0xd6   :  { %v6454_v33 = vpop.f32.mrf.mxu0  ;;  %v6540_v4 = vpop.f32.mrf.mxu1 }
  0xd7   :  { %13168 = vst [vmem:[#allocation10_spill] sm:$0xff] %v6454_v33 }
  0xd8   :  { %13187 = vst [vmem:[#allocation29_spill] sm:$0xff] %v6540_v4 }
  0xde   :  { %v6462_v36 = vpop.f32.mrf.mxu0  ;;  %v6547_v7 = vpop.f32.mrf.mxu1 }
  0xdf   :  { %13169 = vst [vmem:[#allocation11_spill] sm:$0xff] %v6462_v36 }
  0xe0   :  { %13189 = vst [vmem:[#allocation31_spill] sm:$0xff] %v6547_v7  ;;  %v2266_v7 = vadd.f32 %v6424_v21, %v6422_v20 }
  0xe1   :  { %1173 = vmatmul.bf16.gmra.mxu0 %v5420_v35  ;;  %1333 = vmatmul.bf16.gmra.mxu1 %v5452_v8  ;;  %v5481_v8 = vld [vmem:[%s12295_s0 + $0x248] sm:$0xff] }
  0xe2   :  { %1478 = vmatmul.bf16.gmra.mxu2 %v5481_v8 }
  0xe6   :  { %v6464_v37 = vpop.f32.mrf.mxu0  ;;  %v6557_v11 = vpop.f32.mrf.mxu1 }
  0xe7   :  { %13170 = vst [vmem:[#allocation12_spill] sm:$0xff] %v6464_v37 }
  0xe8   :  { %13191 = vst [vmem:[#allocation33_spill] sm:$0xff] %v6557_v11 }
  0xee   :  { %v6472_v40 = vpop.f32.mrf.mxu0  ;;  %v6564_v14 = vpop.f32.mrf.mxu1 }
  0xef   :  { %13171 = vst [vmem:[#allocation13_spill] sm:$0xff] %v6472_v40 }
  0xf0   :  { %13193 = vst [vmem:[#allocation35_spill] sm:$0xff] %v6564_v14  ;;  %v5439_v14 = vld [vmem:[%s12295_s0 + $0xf8] sm:$0xff] }
  0xf1   :  { %1178 = vmatmul.bf16.gmra.mxu0 %v5421_v39  ;;  %1338 = vmatmul.bf16.gmra.mxu1 %v5453_v15  ;;  %v5455_v39 = vld [vmem:[%s12295_s0 + $0x178] sm:$0xff] }
  0xf6   :  { %v6477_v42 = vpop.f32.mrf.mxu0  ;;  %v6574_v18 = vpop.f32.mrf.mxu1 }
  0xf7   :  { %13172 = vst [vmem:[#allocation14_spill] sm:$0xff] %v6477_v42 }
  0xf8   :  { %13195 = vst [vmem:[#allocation37_spill] sm:$0xff] %v6574_v18 }
  0xfe   :  { %v6487_v46 = vpop.f32.mrf.mxu0  ;;  %v6581_v23 = vpop.f32.mrf.mxu1 }
  0xff   :  { %13174 = vst [vmem:[#allocation16_spill] sm:$0xff] %v6487_v46 }
 0x100   :  { %13197 = vst [vmem:[#allocation39_spill] sm:$0xff] %v6581_v23 }
 0x101   :  { %1183 = vmatmul.bf16.gmra.mxu0 %v5422_v45  ;;  %1343 = vmatmul.bf16.gmra.mxu1 %v5454_v26  ;;  %v5431_v26 = vld [vmem:[%s12295_s0 + $0xb8] sm:$0xff] }
 0x106   :  { %v6494_v49 = vpop.f32.mrf.mxu0  ;;  %v6591_v31 = vpop.f32.mrf.mxu1 }
 0x107   :  { %13176 = vst [vmem:[#allocation18_spill] sm:$0xff] %v6494_v49 }
 0x108   :  { %13199 = vst [vmem:[#allocation41_spill] sm:$0xff] %v6591_v31 }
 0x10e   :  { %v6504_v53 = vpop.f32.mrf.mxu0  ;;  %v6598_v38 = vpop.f32.mrf.mxu1 }
 0x10f   :  { %13178 = vst [vmem:[#allocation20_spill] sm:$0xff] %v6504_v53 }
 0x110   :  { %13201 = vst [vmem:[#allocation43_spill] sm:$0xff] %v6598_v38 }
 0x111   :  { %1188 = vmatmul.bf16.gmra.mxu0 %v5423_v52  ;;  %1348 = vmatmul.bf16.gmra.mxu1 %v5455_v39 }
 0x116   :  { %v6511_v56 = vpop.f32.mrf.mxu0  ;;  %v6608_v45 = vpop.f32.mrf.mxu1 }
 0x117   :  { %13180 = vst [vmem:[#allocation22_spill] sm:$0xff] %v6511_v56 }
 0x118   :  { %13203 = vst [vmem:[#allocation45_spill] sm:$0xff] %v6608_v45 }
 0x11e   :  { %v6521_v60 = vpop.f32.mrf.mxu0  ;;  %v6618_v55 = vpop.f32.mrf.mxu1 }
 0x11f   :  { %13182 = vst [vmem:[#allocation24_spill] sm:$0xff] %v6521_v60 }
 0x120   :  { %13205 = vst [vmem:[#allocation47_spill] sm:$0xff] %v6618_v55 }
 0x121   :  { %1193 = vmatmul.bf16.gmra.mxu0 %v5424_v59  ;;  %v5456_v59 = vld [vmem:[%s12295_s0 + $0x180] sm:$0xff] }
 0x122   :  { %1353 = vmatmul.bf16.gmra.mxu1 %v5456_v59 }
 0x126   :  { %v6528_v63 = vpop.f32.mrf.mxu0 }
 0x127   :  { %13184 = vst [vmem:[#allocation26_spill] sm:$0xff] %v6528_v63 }
 0x12e   :  { %v6538_v3 = vpop.f32.mrf.mxu0 }
 0x12f   :  { %13186 = vst [vmem:[#allocation28_spill] sm:$0xff] %v6538_v3 }
 0x131   :  { %1198 = vmatmul.bf16.gmra.mxu0 %v5425_v2  ;;  %v6630_v2 = vpop.f32.mrf.mxu1 }
 0x132   :  { %13208 = vst [vmem:[#allocation50_spill] sm:$0xff] %v6630_v2  ;;  %1358 = vmatmul.bf16.gmra.mxu1 %v5457_v19 }
 0x136   :  { %v6545_v6 = vpop.f32.mrf.mxu0 }
 0x137   :  { %13188 = vst [vmem:[#allocation30_spill] sm:$0xff] %v6545_v6 }
 0x139   :  { %v6642_v15 = vpop.f32.mrf.mxu1 }
 0x13a   :  { %13211 = vst [vmem:[#allocation53_spill] sm:$0xff] %v6642_v15 }
 0x13e   :  { %v6555_v10 = vpop.f32.mrf.mxu0 }
 0x13f   :  { %13190 = vst [vmem:[#allocation32_spill] sm:$0xff] %v6555_v10 }
 0x141   :  { %1203 = vmatmul.bf16.gmra.mxu0 %v5426_v9  ;;  %v5505_v9 = vld [vmem:[%s12295_s0 + $0x308] sm:$0xff]  ;;  %v6654_v34 = vpop.f32.mrf.mxu1 }
 0x142   :  { %1598 = vmatmul.bf16.gmra.mxu3 %v5505_v9  ;;  %13214 = vst [vmem:[#allocation56_spill] sm:$0xff] %v6654_v34  ;;  %v5432_v9 = vld [vmem:[%s12295_s0 + $0xc0] sm:$0xff] }
 0x146   :  { %v6562_v13 = vpop.f32.mrf.mxu0 }
 0x147   :  { %13192 = vst [vmem:[#allocation34_spill] sm:$0xff] %v6562_v13 }
 0x149   :  { %v6666_v59 = vpop.f32.mrf.mxu1 }
 0x14a   :  { %13217 = vst [vmem:[#allocation59_spill] sm:$0xff] %v6666_v59 }
 0x14e   :  { %v6572_v17 = vpop.f32.mrf.mxu0 }
 0x14f   :  { %13194 = vst [vmem:[#allocation36_spill] sm:$0xff] %v6572_v17 }
 0x151   :  { %1208 = vmatmul.bf16.gmra.mxu0 %v5427_v16  ;;  %v6644_v16 = vpop.f32.mrf.mxu2 }
 0x152   :  { %13212 = vst [vmem:[#allocation54_spill] sm:$0xff] %v6644_v16  ;;  %1603 = vmatmul.bf16.gmra.mxu3 %v5506_v48  ;;  %v5483_v48 = vld [vmem:[%s12295_s0 + $0x258] sm:$0xff] }
 0x153   :  { %v5459_v16 = vld [vmem:[%s12295_s0 + $0x198] sm:$0xff] }
 0x156   :  { %v6579_v22 = vpop.f32.mrf.mxu0 }
 0x157   :  { %13196 = vst [vmem:[#allocation38_spill] sm:$0xff] %v6579_v22 }
 0x159   :  { %v6656_v39 = vpop.f32.mrf.mxu2 }
 0x15a   :  { %13215 = vst [vmem:[#allocation57_spill] sm:$0xff] %v6656_v39 }
 0x15e   :  { %v6589_v30 = vpop.f32.mrf.mxu0 }
 0x15f   :  { %13198 = vst [vmem:[#allocation40_spill] sm:$0xff] %v6589_v30 }
 0x161   :  { %1213 = vmatmul.bf16.gmra.mxu0 %v5428_v27  ;;  %v6671_v8 = vpop.f32.mrf.mxu2 }
 0x162   :  { %13218 = vst [vmem:[#allocation60_spill] sm:$0xff] %v6671_v8  ;;  %v5507_v8 = vld [vmem:[%s12295_s0 + $0x318] sm:$0xff] }
 0x163   :  { %1608 = vmatmul.bf16.gmra.mxu3 %v5507_v8 }
 0x166   :  { %v6596_v35 = vpop.f32.mrf.mxu0 }
 0x167   :  { %13200 = vst [vmem:[#allocation42_spill] sm:$0xff] %v6596_v35 }
 0x16e   :  { %v6606_v44 = vpop.f32.mrf.mxu0 }
 0x16f   :  { %13202 = vst [vmem:[#allocation44_spill] sm:$0xff] %v6606_v44 }
 0x171   :  { %1218 = vmatmul.bf16.gmra.mxu0 %v5429_v41  ;;  %v5482_v41 = vld [vmem:[%s12295_s0 + $0x250] sm:$0xff] }
 0x172   :  { %1483 = vmatmul.bf16.gmra.mxu2 %v5482_v41  ;;  %v6680_v41 = vpop.f32.mrf.mxu2 }
 0x173   :  { %13221 = vst [vmem:[#allocation63_spill] sm:$0xff] %v6680_v41 }
 0x176   :  { %v6616_v52 = vpop.f32.mrf.mxu0 }
 0x177   :  { %13204 = vst [vmem:[#allocation46_spill] sm:$0xff] %v6616_v52 }
 0x17a   :  { %v6695_v41 = vpop.f32.mrf.mxu2 }
 0x17b   :  { %13224 = vst [vmem:[#allocation66_spill] sm:$0xff] %v6695_v41  ;;  %v5508_v41 = vld [vmem:[%s12295_s0 + $0x320] sm:$0xff] }
 0x17c   :  { %1613 = vmatmul.bf16.gmra.mxu3 %v5508_v41 }
 0x17e   :  { %v6628_v1 = vpop.f32.mrf.mxu0 }
 0x17f   :  { %13207 = vst [vmem:[#allocation49_spill] sm:$0xff] %v6628_v1 }
 0x181   :  { %1223 = vmatmul.bf16.gmra.mxu0 %v5430_v62  ;;  %v5458_v62 = vld [vmem:[%s12295_s0 + $0x190] sm:$0xff] }
 0x182   :  { %1363 = vmatmul.bf16.gmra.mxu1 %v5458_v62  ;;  %1488 = vmatmul.bf16.gmra.mxu2 %v5483_v48  ;;  %v6704_v8 = vpop.f32.mrf.mxu2  ;;  %v5484_v48 = vld [vmem:[%s12295_s0 + $0x260] sm:$0xff] }
 0x183   :  { %13227 = vst [vmem:[#allocation69_spill] sm:$0xff] %v6704_v8 }
 0x186   :  { %v6640_v12 = vpop.f32.mrf.mxu0 }
 0x187   :  { %13210 = vst [vmem:[#allocation52_spill] sm:$0xff] %v6640_v12 }
 0x18a   :  { %v6719_v8 = vpop.f32.mrf.mxu2 }
 0x18b   :  { %13230 = vst [vmem:[#allocation72_spill] sm:$0xff] %v6719_v8  ;;  %v5509_v8 = vld [vmem:[%s12295_s0 + $0x328] sm:$0xff] }
 0x18c   :  { %1618 = vmatmul.bf16.gmra.mxu3 %v5509_v8 }
 0x18e   :  { %v6652_v27 = vpop.f32.mrf.mxu0 }
 0x18f   :  { %13213 = vst [vmem:[#allocation55_spill] sm:$0xff] %v6652_v27 }
 0x191   :  { %1228 = vmatmul.bf16.gmra.mxu0 %v5431_v26  ;;  %v6678_v26 = vpop.f32.mrf.mxu1 }
 0x192   :  { %13220 = vst [vmem:[#allocation62_spill] sm:$0xff] %v6678_v26  ;;  %1368 = vmatmul.bf16.gmra.mxu1 %v5459_v16  ;;  %1493 = vmatmul.bf16.gmra.mxu2 %v5484_v48  ;;  %v6728_v41 = vpop.f32.mrf.mxu2  ;;  %v5485_v48 = vld [vmem:[%s12295_s0 + $0x268] sm:$0xff] }
 0x193   :  { %13233 = vst [vmem:[#allocation75_spill] sm:$0xff] %v6728_v41  ;;  %v5435_v41 = vld [vmem:[%s12295_s0 + $0xd8] sm:$0xff] }
 0x196   :  { %v6664_v51 = vpop.f32.mrf.mxu0 }
 0x197   :  { %13216 = vst [vmem:[#allocation58_spill] sm:$0xff] %v6664_v51 }
 0x199   :  { %v6690_v39 = vpop.f32.mrf.mxu1 }
 0x19a   :  { %13223 = vst [vmem:[#allocation65_spill] sm:$0xff] %v6690_v39  ;;  %v6740_v34 = vpop.f32.mrf.mxu2 }
 0x19b   :  { %13236 = vst [vmem:[#allocation78_spill] sm:$0xff] %v6740_v34  ;;  %v5510_v34 = vld [vmem:[%s12295_s0 + $0x330] sm:$0xff] }
 0x19c   :  { %1623 = vmatmul.bf16.gmra.mxu3 %v5510_v34 }
 0x19e   :  { %v6676_v19 = vpop.f32.mrf.mxu0 }
 0x19f   :  { %13219 = vst [vmem:[#allocation61_spill] sm:$0xff] %v6676_v19 }
 0x1a1   :  { %1233 = vmatmul.bf16.gmra.mxu0 %v5432_v9  ;;  %v5433_v9 = vld [vmem:[%s12295_s0 + $0xc8] sm:$0xff]  ;;  %v6702_v58 = vpop.f32.mrf.mxu1 }
 0x1a2   :  { %13226 = vst [vmem:[#allocation68_spill] sm:$0xff] %v6702_v58  ;;  %v5460_v58 = vld [vmem:[%s12295_s0 + $0x1a0] sm:$0xff]  ;;  %1498 = vmatmul.bf16.gmra.mxu2 %v5485_v48  ;;  %v6752_v8 = vpop.f32.mrf.mxu2  ;;  %v5486_v48 = vld [vmem:[%s12295_s0 + $0x270] sm:$0xff] }
 0x1a3   :  { %1373 = vmatmul.bf16.gmra.mxu1 %v5460_v58  ;;  %13239 = vst [vmem:[#allocation81_spill] sm:$0xff] %v6752_v8  ;;  %v5436_v8 = vld [vmem:[%s12295_s0 + $0xe0] sm:$0xff] }
 0x1a6   :  { %v6688_v62 = vpop.f32.mrf.mxu0 }
 0x1a7   :  { %13222 = vst [vmem:[#allocation64_spill] sm:$0xff] %v6688_v62 }
 0x1a9   :  { %v6714_v39 = vpop.f32.mrf.mxu1 }
 0x1aa   :  { %13229 = vst [vmem:[#allocation71_spill] sm:$0xff] %v6714_v39  ;;  %v6764_v2 = vpop.f32.mrf.mxu2 }
 0x1ab   :  { %13242 = vst [vmem:[#allocation84_spill] sm:$0xff] %v6764_v2  ;;  %v5511_v2 = vld [vmem:[%s12295_s0 + $0x338] sm:$0xff] }
 0x1ac   :  { %1628 = vmatmul.bf16.gmra.mxu3 %v5511_v2 }
 0x1ae   :  { %v6700_v5 = vpop.f32.mrf.mxu0 }
 0x1af   :  { %13225 = vst [vmem:[#allocation67_spill] sm:$0xff] %v6700_v5 }
 0x1b1   :  { %1238 = vmatmul.bf16.gmra.mxu0 %v5433_v9  ;;  %v5434_v9 = vld [vmem:[%s12295_s0 + $0xd0] sm:$0xff]  ;;  %v6726_v59 = vpop.f32.mrf.mxu1 }
 0x1b2   :  { %13232 = vst [vmem:[#allocation74_spill] sm:$0xff] %v6726_v59  ;;  %1503 = vmatmul.bf16.gmra.mxu2 %v5486_v48  ;;  %v6776_v34 = vpop.f32.mrf.mxu2  ;;  %v5487_v48 = vld [vmem:[%s12295_s0 + $0x278] sm:$0xff] }
 0x1b3   :  { %13245 = vst [vmem:[#allocation87_spill] sm:$0xff] %v6776_v34  ;;  %v5437_v34 = vld [vmem:[%s12295_s0 + $0xe8] sm:$0xff] }
 0x1b6   :  { %v6712_v16 = vpop.f32.mrf.mxu0 }
 0x1b7   :  { %13228 = vst [vmem:[#allocation70_spill] sm:$0xff] %v6712_v16 }
 0x1b9   :  { %v6738_v39 = vpop.f32.mrf.mxu1 }
 0x1ba   :  { %13235 = vst [vmem:[#allocation77_spill] sm:$0xff] %v6738_v39  ;;  %v6788_v45 = vpop.f32.mrf.mxu2 }
 0x1bb   :  { %13248 = vst [vmem:[#allocation90_spill] sm:$0xff] %v6788_v45  ;;  %v5512_v45 = vld [vmem:[%s12295_s0 + $0x340] sm:$0xff] }
 0x1bc   :  { %1633 = vmatmul.bf16.gmra.mxu3 %v5512_v45 }
 0x1be   :  { %v6724_v26 = vpop.f32.mrf.mxu0 }
 0x1bf   :  { %13231 = vst [vmem:[#allocation73_spill] sm:$0xff] %v6724_v26 }
 0x1c1   :  { %1243 = vmatmul.bf16.gmra.mxu0 %v5434_v9  ;;  %v5461_v9 = vld [vmem:[%s12295_s0 + $0x1a8] sm:$0xff]  ;;  %v6750_v15 = vpop.f32.mrf.mxu1 }
 0x1c2   :  { %1378 = vmatmul.bf16.gmra.mxu1 %v5461_v9  ;;  %13238 = vst [vmem:[#allocation80_spill] sm:$0xff] %v6750_v15  ;;  %1508 = vmatmul.bf16.gmra.mxu2 %v5487_v48  ;;  %v6800_v2 = vpop.f32.mrf.mxu2  ;;  %v5488_v48 = vld [vmem:[%s12295_s0 + $0x280] sm:$0xff] }
 0x1c3   :  { %13251 = vst [vmem:[#allocation93_spill] sm:$0xff] %v6800_v2  ;;  %v5438_v2 = vld [vmem:[%s12295_s0 + $0xf0] sm:$0xff] }
 0x1c6   :  { %v6736_v58 = vpop.f32.mrf.mxu0 }
 0x1c7   :  { %13234 = vst [vmem:[#allocation76_spill] sm:$0xff] %v6736_v58 }
 0x1c9   :  { %v6762_v39 = vpop.f32.mrf.mxu1 }
 0x1ca   :  { %13241 = vst [vmem:[#allocation83_spill] sm:$0xff] %v6762_v39  ;;  %v6812_v31 = vpop.f32.mrf.mxu2 }
 0x1cb   :  { %13254 = vst [vmem:[#allocation96_spill] sm:$0xff] %v6812_v31 }
 0x1ce   :  { %v6748_v59 = vpop.f32.mrf.mxu0 }
 0x1cf   :  { %13237 = vst [vmem:[#allocation79_spill] sm:$0xff] %v6748_v59 }
 0x1d1   :  { %1248 = vmatmul.bf16.gmra.mxu0 %v5435_v41  ;;  %v5462_v41 = vld [vmem:[%s12295_s0 + $0x1b0] sm:$0xff]  ;;  %v6774_v55 = vpop.f32.mrf.mxu1 }
 0x1d2   :  { %1383 = vmatmul.bf16.gmra.mxu1 %v5462_v41  ;;  %13244 = vst [vmem:[#allocation86_spill] sm:$0xff] %v6774_v55  ;;  %1513 = vmatmul.bf16.gmra.mxu2 %v5488_v48  ;;  %v6826_v48 = vpop.f32.mrf.mxu2 }
 0x1d3   :  { %13258 = vst [vmem:[#allocation100_spill] sm:$0xff] %v6826_v48 }
 0x1d6   :  { %v6760_v9 = vpop.f32.mrf.mxu0 }
 0x1d7   :  { %13240 = vst [vmem:[#allocation82_spill] sm:$0xff] %v6760_v9 }
 0x1d9   :  { %v6786_v39 = vpop.f32.mrf.mxu1 }
 0x1da   :  { %13247 = vst [vmem:[#allocation89_spill] sm:$0xff] %v6786_v39 }
 0x1de   :  { %v6772_v15 = vpop.f32.mrf.mxu0 }
 0x1df   :  { %13243 = vst [vmem:[#allocation85_spill] sm:$0xff] %v6772_v15 }
 0x1e1   :  { %1253 = vmatmul.bf16.gmra.mxu0 %v5436_v8  ;;  %v5463_v8 = vld [vmem:[%s12295_s0 + $0x1b8] sm:$0xff]  ;;  %v6798_v38 = vpop.f32.mrf.mxu1 }
 0x1e2   :  { %1388 = vmatmul.bf16.gmra.mxu1 %v5463_v8  ;;  %13250 = vst [vmem:[#allocation92_spill] sm:$0xff] %v6798_v38  ;;  %v6814_v38 = vpop.f32.mrf.mxu3 }
 0x1e3   :  { %13255 = vst [vmem:[#allocation97_spill] sm:$0xff] %v6814_v38  ;;  %v5489_v38 = vld [vmem:[%s12295_s0 + $0x288] sm:$0xff] }
 0x1e4   :  { %1518 = vmatmul.bf16.gmra.mxu2 %v5489_v38 }
 0x1e6   :  { %v6784_v41 = vpop.f32.mrf.mxu0 }
 0x1e7   :  { %13246 = vst [vmem:[#allocation88_spill] sm:$0xff] %v6784_v41 }
 0x1e9   :  { %v6810_v39 = vpop.f32.mrf.mxu1 }
 0x1ea   :  { %13253 = vst [vmem:[#allocation95_spill] sm:$0xff] %v6810_v39  ;;  %v6828_v39 = vpop.f32.mrf.mxu3 }
 0x1eb   :  { %13259 = vst [vmem:[#allocation101_spill] sm:$0xff] %v6828_v39  ;;  %v5465_v39 = vld [vmem:[%s12295_s0 + $0x1c8] sm:$0xff] }
 0x1ee   :  { %v6796_v55 = vpop.f32.mrf.mxu0 }
 0x1ef   :  { %13249 = vst [vmem:[#allocation91_spill] sm:$0xff] %v6796_v55 }
 0x1f1   :  { %1258 = vmatmul.bf16.gmra.mxu0 %v5437_v34  ;;  %v5464_v34 = vld [vmem:[%s12295_s0 + $0x1c0] sm:$0xff]  ;;  %v6824_v45 = vpop.f32.mrf.mxu1 }
 0x1f2   :  { %1393 = vmatmul.bf16.gmra.mxu1 %v5464_v34  ;;  %13257 = vst [vmem:[#allocation99_spill] sm:$0xff] %v6824_v45  ;;  %v5513_v34 = vld [vmem:[%s12295_s0 + $0x348] sm:$0xff]  ;;  %v6840_v45 = vpop.f32.mrf.mxu2  ;;  %v6842_v48 = vpop.f32.mrf.mxu3 }
 0x1f3   :  { %1638 = vmatmul.bf16.gmra.mxu3 %v5513_v34  ;;  %13262 = vst [vmem:[#allocation104_spill] sm:$0xff] %v6840_v45 }
 0x1f4   :  { %13263 = vst [vmem:[#allocation105_spill] sm:$0xff] %v6842_v48  ;;  %v5490_v48 = vld [vmem:[%s12295_s0 + $0x290] sm:$0xff] }
 0x1f5   :  { %1523 = vmatmul.bf16.gmra.mxu2 %v5490_v48 }
 0x1f6   :  { %v6808_v8 = vpop.f32.mrf.mxu0 }
 0x1f7   :  { %13252 = vst [vmem:[#allocation94_spill] sm:$0xff] %v6808_v8 }
 0x1f9   :  { %v6838_v18 = vpop.f32.mrf.mxu1 }
 0x1fa   :  { %13261 = vst [vmem:[#allocation103_spill] sm:$0xff] %v6838_v18  ;;  %v6854_v34 = vpop.f32.mrf.mxu2  ;;  %v6856_v18 = vpop.f32.mrf.mxu3 }
 0x1fb   :  { %13266 = vst [vmem:[#allocation108_spill] sm:$0xff] %v6854_v34 }
 0x1fc   :  { %13267 = vst [vmem:[#allocation109_spill] sm:$0xff] %v6856_v18  ;;  %v5466_v18 = vld [vmem:[%s12295_s0 + $0x1d0] sm:$0xff] }
 0x1fe   :  { %v6822_v23 = vpop.f32.mrf.mxu0 }
 0x1ff   :  { %13256 = vst [vmem:[#allocation98_spill] sm:$0xff] %v6822_v23 }
 0x201   :  { %1263 = vmatmul.bf16.gmra.mxu0 %v5438_v2  ;;  %v6852_v38 = vpop.f32.mrf.mxu1 }
 0x202   :  { %1398 = vmatmul.bf16.gmra.mxu1 %v5465_v39  ;;  %13265 = vst [vmem:[#allocation107_spill] sm:$0xff] %v6852_v38  ;;  %v5514_v39 = vld [vmem:[%s12295_s0 + $0x350] sm:$0xff]  ;;  %v6868_v38 = vpop.f32.mrf.mxu2  ;;  %v6870_v34 = vpop.f32.mrf.mxu3 }
 0x203   :  { %1643 = vmatmul.bf16.gmra.mxu3 %v5514_v39  ;;  %13270 = vst [vmem:[#allocation112_spill] sm:$0xff] %v6868_v38 }
 0x204   :  { %13271 = vst [vmem:[#allocation113_spill] sm:$0xff] %v6870_v34  ;;  %v5491_v34 = vld [vmem:[%s12295_s0 + $0x298] sm:$0xff] }
 0x205   :  { %1528 = vmatmul.bf16.gmra.mxu2 %v5491_v34 }
 0x206   :  { %v6836_v31 = vpop.f32.mrf.mxu0 }
 0x207   :  { %13260 = vst [vmem:[#allocation102_spill] sm:$0xff] %v6836_v31 }
 0x209   :  { %v6866_v11 = vpop.f32.mrf.mxu1 }
 0x20a   :  { %13269 = vst [vmem:[#allocation111_spill] sm:$0xff] %v6866_v11  ;;  %v6883_v4 = vpop.f32.mrf.mxu2  ;;  %v6885_v38 = vpop.f32.mrf.mxu3 }
 0x20b   :  { %13274 = vst [vmem:[#allocation116_spill] sm:$0xff] %v6883_v4 }
 0x20c   :  { %13275 = vst [vmem:[#allocation117_spill] sm:$0xff] %v6885_v38 }
 0x20e   :  { %v6850_v2 = vpop.f32.mrf.mxu0 }
 0x20f   :  { %13264 = vst [vmem:[#allocation106_spill] sm:$0xff] %v6850_v2 }
 0x211   :  { %1268 = vmatmul.bf16.gmra.mxu0 %v5439_v14  ;;  %v2267_v14 = vadd.f32 %v2266_v7, %v6432_v24  ;;  %v6880_v39 = vpop.f32.mrf.mxu1 }
 0x212   :  { %1403 = vmatmul.bf16.gmra.mxu1 %v5466_v18  ;;  %13273 = vst [vmem:[#allocation115_spill] sm:$0xff] %v6880_v39  ;;  %v5515_v18 = vld [vmem:[%s12295_s0 + $0x358] sm:$0xff]  ;;  %v6901_v38 = vpop.f32.mrf.mxu2  ;;  %v6903_v4 = vpop.f32.mrf.mxu3 }
 0x213   :  { %v2268_v11 = vadd.f32 %v2267_v14, %v6434_v25  ;;  %1648 = vmatmul.bf16.gmra.mxu3 %v5515_v18  ;;  %13278 = vst [vmem:[#allocation120_spill] sm:$0xff] %v6901_v38 }
 0x214   :  { %13279 = vst [vmem:[#allocation121_spill] sm:$0xff] %v6903_v4 }
 0x215   :  { %v2269_v7 = vadd.f32 %v2268_v11, %v6442_v28  ;;  %v5467_v11 = vld [vmem:[%s12295_s0 + $0x1d8] sm:$0xff]  ;;  %v5492_v28 = vld [vmem:[%s12295_s0 + $0x2a0] sm:$0xff] }
 0x216   :  { %v6864_v45 = vpop.f32.mrf.mxu0  ;;  %1533 = vmatmul.bf16.gmra.mxu2 %v5492_v28 }
 0x217   :  { %13268 = vst [vmem:[#allocation110_spill] sm:$0xff] %v6864_v45  ;;  %v2270_v24 = vadd.f32 %v2269_v7, %v6444_v29 }
 0x219   :  { %v2271_v14 = vadd.f32 %v2270_v24, %v6452_v32  ;;  %v6898_v21 = vpop.f32.mrf.mxu1 }
 0x21a   :  { %13277 = vst [vmem:[#allocation119_spill] sm:$0xff] %v6898_v21  ;;  %v6918_v29 = vpop.f32.mrf.mxu3 }
 0x21b   :  { %v2272_v20 = vadd.f32 %v2271_v14, %v6454_v33  ;;  %v6916_v33 = vpop.f32.mrf.mxu2  ;;  %13283 = vst [vmem:[#allocation125_spill] sm:$0xff] %v6918_v29 }
 0x21c   :  { %13282 = vst [vmem:[#allocation124_spill] sm:$0xff] %v6916_v33 }
 0x21d   :  { %v2273_v7 = vadd.f32 %v2272_v20, %v6462_v36  ;;  %v5516_v20 = vld [vmem:[%s12295_s0 + $0x360] sm:$0xff] }
 0x21e   :  { %v6878_v48 = vpop.f32.mrf.mxu0 }
 0x21f   :  { %13272 = vst [vmem:[#allocation114_spill] sm:$0xff] %v6878_v48  ;;  %v2274_v34 = vadd.f32 %v2273_v7, %v6464_v37 }
 0x221   :  { %v2275_v24 = vadd.f32 %v2274_v34, %v6472_v40  ;;  %v6913_v32 = vpop.f32.mrf.mxu1 }
 0x222   :  { %1408 = vmatmul.bf16.gmra.mxu1 %v5467_v11  ;;  %13281 = vst [vmem:[#allocation123_spill] sm:$0xff] %v6913_v32  ;;  %v6936_v36 = vpop.f32.mrf.mxu3 }
 0x223   :  { %v2276_v14 = vadd.f32 %v2275_v24, %v6477_v42  ;;  %1653 = vmatmul.bf16.gmra.mxu3 %v5516_v20  ;;  %v6934_v37 = vpop.f32.mrf.mxu2  ;;  %13287 = vst [vmem:[#allocation129_spill] sm:$0xff] %v6936_v36 }
 0x224   :  { %13286 = vst [vmem:[#allocation128_spill] sm:$0xff] %v6934_v37 }
 0x225   :  { %v2277_v11 = vadd.f32 %v2276_v14, %v6487_v46  ;;  %v5468_v14 = vld [vmem:[%s12295_s0 + $0x1e0] sm:$0xff]  ;;  %v5493_v46 = vld [vmem:[%s12295_s0 + $0x2a8] sm:$0xff] }
 0x226   :  { %v6896_v25 = vpop.f32.mrf.mxu0  ;;  %1538 = vmatmul.bf16.gmra.mxu2 %v5493_v46 }
 0x227   :  { %13276 = vst [vmem:[#allocation118_spill] sm:$0xff] %v6896_v25  ;;  %v2278_v7 = vadd.f32 %v2277_v11, %v6494_v49 }
 0x229   :  { %v2279_v34 = vadd.f32 %v2278_v7, %v6504_v53  ;;  %v6931_v42 = vpop.f32.mrf.mxu1 }
 0x22a   :  { %13285 = vst [vmem:[#allocation127_spill] sm:$0xff] %v6931_v42  ;;  %v6951_v49 = vpop.f32.mrf.mxu3 }
 0x22b   :  { %v2280_v40 = vadd.f32 %v2279_v34, %v6511_v56  ;;  %v6949_v56 = vpop.f32.mrf.mxu2  ;;  %13291 = vst [vmem:[#allocation133_spill] sm:$0xff] %v6951_v49  ;;  %v13377_v49 = vld [vmem:[#allocation107_spill] sm:$0xff] }
 0x22c   :  { %13290 = vst [vmem:[#allocation132_spill] sm:$0xff] %v6949_v56 }
 0x22d   :  { %v2281_v11 = vadd.f32 %v2280_v40, %v6521_v60  ;;  %v5517_v40 = vld [vmem:[%s12295_s0 + $0x368] sm:$0xff] }
 0x22e   :  { %v6911_v18 = vpop.f32.mrf.mxu0 }
 0x22f   :  { %13280 = vst [vmem:[#allocation122_spill] sm:$0xff] %v6911_v18  ;;  %v2282_v28 = vadd.f32 %v2281_v11, %v6528_v63 }
 0x231   :  { %v2283_v20 = vadd.f32 %v2282_v28, %v6538_v3  ;;  %v6946_v53 = vpop.f32.mrf.mxu1 }
 0x232   :  { %1413 = vmatmul.bf16.gmra.mxu1 %v5468_v14  ;;  %13289 = vst [vmem:[#allocation131_spill] sm:$0xff] %v6946_v53  ;;  %v6969_v60 = vpop.f32.mrf.mxu3 }
 0x233   :  { %v2284_v34 = vadd.f32 %v2283_v20, %v6545_v6  ;;  %1658 = vmatmul.bf16.gmra.mxu3 %v5517_v40  ;;  %v6967_v63 = vpop.f32.mrf.mxu2  ;;  %13295 = vst [vmem:[#allocation137_spill] sm:$0xff] %v6969_v60 }
 0x234   :  { %13294 = vst [vmem:[#allocation136_spill] sm:$0xff] %v6967_v63 }
 0x235   :  { %v2285_v14 = vadd.f32 %v2284_v34, %v6555_v10  ;;  %v5469_v34 = vld [vmem:[%s12295_s0 + $0x1e8] sm:$0xff]  ;;  %v5494_v10 = vld [vmem:[%s12295_s0 + $0x2b0] sm:$0xff] }
 0x236   :  { %v6929_v24 = vpop.f32.mrf.mxu0  ;;  %1543 = vmatmul.bf16.gmra.mxu2 %v5494_v10 }
 0x237   :  { %13284 = vst [vmem:[#allocation126_spill] sm:$0xff] %v6929_v24  ;;  %v2286_v11 = vadd.f32 %v2285_v14, %v6562_v13 }
 0x239   :  { %v2287_v28 = vadd.f32 %v2286_v11, %v6572_v17 }
 0x23a   :  { %v6984_v13 = vpop.f32.mrf.mxu3 }
 0x23b   :  { %v2288_v3 = vadd.f32 %v2287_v28, %v6579_v22  ;;  %v6982_v22 = vpop.f32.mrf.mxu2  ;;  %13299 = vst [vmem:[#allocation141_spill] sm:$0xff] %v6984_v13 }
 0x23c   :  { %13298 = vst [vmem:[#allocation140_spill] sm:$0xff] %v6982_v22 }
 0x23d   :  { %v2289_v14 = vadd.f32 %v2288_v3, %v6589_v30  ;;  %v5518_v3 = vld [vmem:[%s12295_s0 + $0x370] sm:$0xff] }
 0x23e   :  { %v6944_v7 = vpop.f32.mrf.mxu0  ;;  %v5470_v30 = vld [vmem:[%s12295_s0 + $0x1f0] sm:$0xff] }
 0x23f   :  { %13288 = vst [vmem:[#allocation130_spill] sm:$0xff] %v6944_v7  ;;  %v6964_v6 = vpop.f32.mrf.mxu1  ;;  %v2290_v46 = vadd.f32 %v2289_v14, %v6596_v35 }
 0x240   :  { %13293 = vst [vmem:[#allocation135_spill] sm:$0xff] %v6964_v6 }
 0x241   :  { %v2291_v40 = vadd.f32 %v2290_v46, %v6606_v44 }
 0x242   :  { %1418 = vmatmul.bf16.gmra.mxu1 %v5469_v34  ;;  %v7000_v35 = vpop.f32.mrf.mxu3 }
 0x243   :  { %v2292_v28 = vadd.f32 %v2291_v40, %v6616_v52  ;;  %1663 = vmatmul.bf16.gmra.mxu3 %v5518_v3  ;;  %v6998_v44 = vpop.f32.mrf.mxu2  ;;  %13302 = vst [vmem:[#allocation144_spill] sm:$0xff] %v7000_v35  ;;  %v13376_v35 = vld [vmem:[#allocation103_spill] sm:$0xff] }
 0x244   :  { %13301 = vst [vmem:[#allocation143_spill] sm:$0xff] %v6998_v44 }
 0x245   :  { %v2293_v34 = vadd.f32 %v2292_v28, %v6628_v1  ;;  %v13350_v1 = vld [vmem:[#allocation50_spill] sm:$0xff] }
 0x246   :  { %v6962_v20 = vpop.f32.mrf.mxu0 }
 0x247   :  { %13292 = vst [vmem:[#allocation134_spill] sm:$0xff] %v6962_v20  ;;  %v6979_v17 = vpop.f32.mrf.mxu1  ;;  %v2294_v14 = vadd.f32 %v2293_v34, %v6640_v12  ;;  %v13340_v12 = vld [vmem:[#allocation37_spill] sm:$0xff] }
 0x248   :  { %13297 = vst [vmem:[#allocation139_spill] sm:$0xff] %v6979_v17 }
 0x249   :  { %v2295_v46 = vadd.f32 %v2294_v14, %v6652_v27  ;;  %v5495_v27 = vld [vmem:[%s12295_s0 + $0x2b8] sm:$0xff] }
 0x24a   :  { %1548 = vmatmul.bf16.gmra.mxu2 %v5495_v27 }
 0x24b   :  { %v2296_v52 = vadd.f32 %v2295_v46, %v6664_v51  ;;  %v7013_v46 = vpop.f32.mrf.mxu2  ;;  %v7015_v51 = vpop.f32.mrf.mxu3 }
 0x24c   :  { %13305 = vst [vmem:[#allocation147_spill] sm:$0xff] %v7015_v51 }
 0x24d   :  { %v2297_v28 = vadd.f32 %v2296_v52, %v6676_v19  ;;  %v5471_v19 = vld [vmem:[%s12295_s0 + $0x1f8] sm:$0xff] }
 0x24e   :  { %v6977_v11 = vpop.f32.mrf.mxu0 }
 0x24f   :  { %13296 = vst [vmem:[#allocation138_spill] sm:$0xff] %v6977_v11  ;;  %v7005_v13 = vpop.f32.mrf.mxu1  ;;  %v2298_v10 = vadd.f32 %v2297_v28, %v6688_v62 }
 0x250   :  { %13303 = vst [vmem:[#allocation145_spill] sm:$0xff] %v7005_v13 }
 0x251   :  { %v2299_v3 = vadd.f32 %v2298_v10, %v6700_v5 }
 0x252   :  { %1423 = vmatmul.bf16.gmra.mxu1 %v5470_v30  ;;  %v5519_v30 = vld [vmem:[%s12295_s0 + $0x378] sm:$0xff] }
 0x253   :  { %v2300_v14 = vadd.f32 %v2299_v3, %v6712_v16  ;;  %1668 = vmatmul.bf16.gmra.mxu3 %v5519_v30  ;;  %v7031_v62 = vpop.f32.mrf.mxu2 }
 0x255   :  { %v2301_v52 = vadd.f32 %v2300_v14, %v6724_v26  ;;  %v7037_v26 = vpop.f32.mrf.mxu3 }
 0x256   :  { %v6995_v40 = vpop.f32.mrf.mxu0  ;;  %13308 = vst [vmem:[#allocation150_spill] sm:$0xff] %v7037_v26 }
 0x257   :  { %13300 = vst [vmem:[#allocation142_spill] sm:$0xff] %v6995_v40  ;;  %v7024_v28 = vpop.f32.mrf.mxu1  ;;  %v2302_v10 = vadd.f32 %v2301_v52, %v6736_v58 }
 0x258   :  { %13306 = vst [vmem:[#allocation148_spill] sm:$0xff] %v7024_v28 }
 0x259   :  { %v2303_v3 = vadd.f32 %v2302_v10, %v6748_v59  ;;  %v5496_v59 = vld [vmem:[%s12295_s0 + $0x2c0] sm:$0xff] }
 0x25a   :  { %1553 = vmatmul.bf16.gmra.mxu2 %v5496_v59 }
 0x25b   :  { %v2304_v5 = vadd.f32 %v2303_v3, %v6760_v9  ;;  %v7046_v9 = vpop.f32.mrf.mxu2 }
 0x25c   :  { %13311 = vst [vmem:[#allocation153_spill] sm:$0xff] %v7046_v9 }
 0x25d   :  { %v2305_v14 = vadd.f32 %v2304_v5, %v6772_v15  ;;  %v5520_v5 = vld [vmem:[%s12295_s0 + $0x380] sm:$0xff] }
 0x25e   :  { %v7010_v34 = vpop.f32.mrf.mxu0 }
 0x25f   :  { %13304 = vst [vmem:[#allocation146_spill] sm:$0xff] %v7010_v34  ;;  %v2306_v27 = vadd.f32 %v2305_v14, %v6784_v41  ;;  %v7040_v30 = vpop.f32.mrf.mxu1  ;;  %v7056_v41 = vpop.f32.mrf.mxu3 }
 0x260   :  { %13309 = vst [vmem:[#allocation151_spill] sm:$0xff] %v7040_v30 }
 0x261   :  { %v2307_v52 = vadd.f32 %v2306_v27, %v6796_v55  ;;  %13312 = vst [vmem:[#allocation154_spill] sm:$0xff] %v7056_v41 }
 0x262   :  { %1428 = vmatmul.bf16.gmra.mxu1 %v5471_v19 }
 0x263   :  { %v2308_v3 = vadd.f32 %v2307_v52, %v6808_v8  ;;  %1673 = vmatmul.bf16.gmra.mxu3 %v5520_v5  ;;  %v7064_v15 = vpop.f32.mrf.mxu2 }
 0x264   :  { %13315 = vst [vmem:[#allocation157_spill] sm:$0xff] %v7064_v15 }
 0x265   :  { %v2309_v19 = vadd.f32 %v2308_v3, %v6822_v23 }
 0x266   :  { %v7028_v16 = vpop.f32.mrf.mxu0 }
 0x267   :  { %13307 = vst [vmem:[#allocation149_spill] sm:$0xff] %v7028_v16  ;;  %v2310_v14 = vadd.f32 %v2309_v19, %v6836_v31  ;;  %v7061_v8 = vpop.f32.mrf.mxu1  ;;  %v7069_v31 = vpop.f32.mrf.mxu3 }
 0x268   :  { %13314 = vst [vmem:[#allocation156_spill] sm:$0xff] %v7061_v8 }
 0x269   :  { %v2311_v27 = vadd.f32 %v2310_v14, %v6850_v2  ;;  %13316 = vst [vmem:[#allocation158_spill] sm:$0xff] %v7069_v31  ;;  %v13362_v31 = vld [vmem:[#allocation77_spill] sm:$0xff] }
 0x26b   :  { %v2312_v55 = vadd.f32 %v2311_v27, %v6864_v45  ;;  %v7074_v14 = vpop.f32.mrf.mxu2 }
 0x26c   :  { %13318 = vst [vmem:[#allocation160_spill] sm:$0xff] %v7074_v14 }
 0x26d   :  { %v2313_v58 = vadd.f32 %v2312_v55, %v6878_v48  ;;  %v5497_v55 = vld [vmem:[%s12295_s0 + $0x2c8] sm:$0xff] }
 0x26e   :  { %v7043_v10 = vpop.f32.mrf.mxu0  ;;  %1558 = vmatmul.bf16.gmra.mxu2 %v5497_v55 }
 0x26f   :  { %13310 = vst [vmem:[#allocation152_spill] sm:$0xff] %v7043_v10  ;;  %v2314_v3 = vadd.f32 %v2313_v58, %v6896_v25  ;;  %v7076_v2 = vpop.f32.mrf.mxu1  ;;  %v5521_v58 = vld [vmem:[%s12295_s0 + $0x388] sm:$0xff]  ;;  %v7090_v25 = vpop.f32.mrf.mxu3 }
 0x270   :  { %13319 = vst [vmem:[#allocation161_spill] sm:$0xff] %v7076_v2 }
 0x271   :  { %v2315_v19 = vadd.f32 %v2314_v3, %v6911_v18  ;;  %13321 = vst [vmem:[#allocation163_spill] sm:$0xff] %v7090_v25  ;;  %v13353_v25 = vld [vmem:[#allocation56_spill] sm:$0xff] }
 0x273   :  { %v2316_v5 = vadd.f32 %v2315_v19, %v6929_v24  ;;  %1678 = vmatmul.bf16.gmra.mxu3 %v5521_v58 }
 0x275   :  { %v2317_v27 = vadd.f32 %v2316_v5, %v6944_v7  ;;  %v7092_v5 = vpop.f32.mrf.mxu2 }
 0x276   :  { %v7059_v52 = vpop.f32.mrf.mxu0  ;;  %13322 = vst [vmem:[#allocation164_spill] sm:$0xff] %v7092_v5 }
 0x277   :  { %13313 = vst [vmem:[#allocation155_spill] sm:$0xff] %v7059_v52  ;;  %v2318_v3 = vadd.f32 %v2317_v27, %v6962_v20  ;;  %v7095_v48 = vpop.f32.mrf.mxu1  ;;  %v13339_v20 = vld [vmem:[#allocation35_spill] sm:$0xff] }
 0x278   :  { %13323 = vst [vmem:[#allocation165_spill] sm:$0xff] %v7095_v48 }
 0x279   :  { %v2319_v19 = vadd.f32 %v2318_v3, %v6977_v11 }
 0x27b   :  { %v2320_v18 = vadd.f32 %v2319_v19, %v6995_v40  ;;  %v7105_v40 = vpop.f32.mrf.mxu3 }
 0x27c   :  { %13326 = vst [vmem:[#allocation168_spill] sm:$0xff] %v7105_v40 }
 0x27d   :  { %v2321_v7 = vadd.f32 %v2320_v18, %v7010_v34  ;;  %v7102_v3 = vpop.f32.mrf.mxu2  ;;  %v5498_v18 = vld [vmem:[%s12295_s0 + $0x2d0] sm:$0xff] }
 0x27e   :  { %v7071_v59 = vpop.f32.mrf.mxu0  ;;  %13325 = vst [vmem:[#allocation167_spill] sm:$0xff] %v7102_v3  ;;  %1563 = vmatmul.bf16.gmra.mxu2 %v5498_v18 }
 0x27f   :  { %13317 = vst [vmem:[#allocation159_spill] sm:$0xff] %v7071_v59  ;;  %v2322_v45 = vadd.f32 %v2321_v7, %v7028_v16  ;;  %v5522_v7 = vld [vmem:[%s12295_s0 + $0x390] sm:$0xff] }
 0x281   :  { %v2323_v27 = vadd.f32 %v2322_v45, %v7043_v10  ;;  %v7114_v10 = vpop.f32.mrf.mxu1 }
 0x282   :  { %13327 = vst [vmem:[#allocation169_spill] sm:$0xff] %v7114_v10 }
 0x283   :  { %v2324_v58 = vadd.f32 %v2323_v27, %v7059_v52  ;;  %1683 = vmatmul.bf16.gmra.mxu3 %v5522_v7  ;;  %v7124_v11 = vpop.f32.mrf.mxu3 }
 0x284   :  { %13330 = vst [vmem:[#allocation172_spill] sm:$0xff] %v7124_v11  ;;  %v13352_v11 = vld [vmem:[#allocation53_spill] sm:$0xff] }
 0x285   :  { %v2325_v19 = vadd.f32 %v2324_v58, %v7071_v59  ;;  %v7120_v59 = vpop.f32.mrf.mxu2 }
 0x286   :  { %v7087_v24 = vpop.f32.mrf.mxu0  ;;  %13329 = vst [vmem:[#allocation171_spill] sm:$0xff] %v7120_v59 }
 0x287   :  { %13320 = vst [vmem:[#allocation162_spill] sm:$0xff] %v7087_v24  ;;  %v2326_v45 = vadd.f32 %v2325_v19, %v7087_v24 }
 0x289   :  { %v7127_v18 = vpop.f32.mrf.mxu1 }
 0x28a   :  { %13331 = vst [vmem:[#allocation173_spill] sm:$0xff] %v7127_v18 }
 0x28d   :  { %v7130_v24 = vpop.f32.mrf.mxu2 }
 0x28e   :  { %v7099_v55 = vpop.f32.mrf.mxu0  ;;  %13332 = vst [vmem:[#allocation174_spill] sm:$0xff] %v7130_v24 }
 0x28f   :  { %13324 = vst [vmem:[#allocation166_spill] sm:$0xff] %v7099_v55  ;;  %v2327_v27 = vadd.f32 %v2326_v45, %v7099_v55 }
 0x296   :  { %v7117_v52 = vpop.f32.mrf.mxu0 }
 0x297   :  { %13328 = vst [vmem:[#allocation170_spill] sm:$0xff] %v7117_v52  ;;  %v2328_v58 = vadd.f32 %v2327_v27, %v7117_v52  ;;  %v5499_v27 = vld [vmem:[%s12295_s0 + $0x2d8] sm:$0xff]  ;;  %v13338_v52 = vld [vmem:[#allocation33_spill] sm:$0xff] }
 0x298   :  { %1568 = vmatmul.bf16.gmra.mxu2 %v5499_v27 }
 0x299   :  { %v2329_v16 = vadd.f32 %v2328_v58, %v6479_v43 }
 0x29b   :  { %v2330_v34 = vadd.f32 %v2329_v16, %v6489_v47  ;;  %v5523_v16 = vld [vmem:[%s12295_s0 + $0x398] sm:$0xff]  ;;  %v7144_v47 = vpop.f32.mrf.mxu2 }
 0x29c   :  { %1688 = vmatmul.bf16.gmra.mxu3 %v5523_v16  ;;  %13335 = vst [vmem:[#allocation176_spill] sm:$0xff] %v7144_v47 }
 0x29d   :  { %v2331_v19 = vadd.f32 %v2330_v34, %v6496_v50  ;;  %v7141_v50 = vpop.f32.mrf.mxu3 }
 0x29e   :  { %13333 = vst [vmem:[#allocation175_spill] sm:$0xff] %v7141_v50 }
 0x29f   :  { %v2332_v7 = vadd.f32 %v2331_v19, %v6506_v54  ;;  %v13334_v19 = vld [vmem:[#allocation29_spill] sm:$0xff] }
 0x2a1   :  { %v2333_v45 = vadd.f32 %v2332_v7, %v6513_v57  ;;  %v7146_v7 = vpop.f32.mrf.mxu1  ;;  %v13337_v57 = vld [vmem:[#allocation31_spill] sm:$0xff] }
 0x2a2   :  { %13336 = vst [vmem:[#allocation177_spill] sm:$0xff] %v7146_v7 }
 0x2a3   :  { %v2334_v58 = vadd.f32 %v2333_v45, %v6523_v61  ;;  %v7154_v16 = vpop.f32.mrf.mxu2 }
 0x2a4   :  { %13342 = vst [vmem:[#allocation179_spill] sm:$0xff] %v7154_v16 }
 0x2a5   :  { %v2335_v34 = vadd.f32 %v2334_v58, %v6530_v0  ;;  %v7152_v27 = vpop.f32.mrf.mxu3  ;;  %v13343_v58 = vld [vmem:[#allocation39_spill] sm:$0xff] }
 0x2a6   :  { %13341 = vst [vmem:[#allocation178_spill] sm:$0xff] %v7152_v27 }
 0x2a7   :  { %v2336_v54 = vadd.f32 %v2335_v34, %v13334_v19  ;;  %v5500_v34 = vld [vmem:[%s12295_s0 + $0x2e0] sm:$0xff] }
 0x2a8   :  { %1573 = vmatmul.bf16.gmra.mxu2 %v5500_v34 }
 0x2a9   :  { %v2337_v43 = vadd.f32 %v2336_v54, %v13337_v57  ;;  %v5524_v54 = vld [vmem:[%s12295_s0 + $0x3a0] sm:$0xff]  ;;  %v7163_v57 = vpop.f32.mrf.mxu1 }
 0x2aa   :  { %13344 = vst [vmem:[#allocation180_spill] sm:$0xff] %v7163_v57 }
 0x2ab   :  { %v2338_v55 = vadd.f32 %v2337_v43, %v13338_v52  ;;  %v13345_v43 = vld [vmem:[#allocation41_spill] sm:$0xff]  ;;  %v7168_v19 = vpop.f32.mrf.mxu2 }
 0x2ac   :  { %1693 = vmatmul.bf16.gmra.mxu3 %v5524_v54  ;;  %v13354_v54 = vld [vmem:[#allocation59_spill] sm:$0xff] }
 0x2ad   :  { %v2339_v23 = vadd.f32 %v2338_v55, %v13339_v20  ;;  %v13347_v20 = vld [vmem:[#allocation45_spill] sm:$0xff]  ;;  %v7171_v61 = vpop.f32.mrf.mxu3 }
 0x2ae   :  { %13349 = vst [vmem:[#allocation181_spill] sm:$0xff] %v7171_v61 }
 0x2af   :  { %v2340_v45 = vadd.f32 %v2339_v23, %v13340_v12  ;;  %v13346_v23 = vld [vmem:[#allocation43_spill] sm:$0xff] }
 0x2b1   :  { %v2341_v0 = vadd.f32 %v2340_v45, %v13343_v58  ;;  %v13348_v45 = vld [vmem:[#allocation47_spill] sm:$0xff]  ;;  %v7174_v50 = vpop.f32.mrf.mxu1 }
 0x2b2   :  { %13351 = vst [vmem:[#allocation182_spill] sm:$0xff] %v7174_v50 }
 0x2b3   :  { %v2342_v55 = vadd.f32 %v2341_v0, %v13345_v43  ;;  %v7178_v34 = vpop.f32.mrf.mxu2  ;;  %v13361_v43 = vld [vmem:[#allocation74_spill] sm:$0xff] }
 0x2b5   :  { %v2343_v12 = vadd.f32 %v2342_v55, %v13346_v23 }
 0x2b7   :  { %v2344_v52 = vadd.f32 %v2343_v12, %v13347_v20  ;;  %v5501_v12 = vld [vmem:[%s12295_s0 + $0x2e8] sm:$0xff]  ;;  %v13360_v20 = vld [vmem:[#allocation71_spill] sm:$0xff] }
 0x2b8   :  { %1578 = vmatmul.bf16.gmra.mxu2 %v5501_v12 }
 0x2b9   :  { %v2345_v58 = vadd.f32 %v2344_v52, %v13348_v45  ;;  %v5525_v52 = vld [vmem:[%s12295_s0 + $0x3a8] sm:$0xff]  ;;  %v13355_v45 = vld [vmem:[#allocation62_spill] sm:$0xff] }
 0x2bb   :  { %v2346_v27 = vadd.f32 %v2345_v58, %v13350_v1  ;;  %v7188_v1 = vpop.f32.mrf.mxu3 }
 0x2bc   :  { %13356 = vst [vmem:[#allocation183_spill] sm:$0xff] %v7188_v1  ;;  %1698 = vmatmul.bf16.gmra.mxu3 %v5525_v52  ;;  %v13375_v1 = vld [vmem:[#allocation99_spill] sm:$0xff] }
 0x2bd   :  { %v2347_v40 = vadd.f32 %v2346_v27, %v13352_v11  ;;  %v13357_v27 = vld [vmem:[#allocation65_spill] sm:$0xff]  ;;  %v13359_v11 = vld [vmem:[#allocation68_spill] sm:$0xff] }
 0x2bf   :  { %v2348_v0 = vadd.f32 %v2347_v40, %v13353_v25  ;;  %v7191_v25 = vpop.f32.mrf.mxu1 }
 0x2c0   :  { %13358 = vst [vmem:[#allocation184_spill] sm:$0xff] %v7191_v25 }
 0x2c1   :  { %v2349_v55 = vadd.f32 %v2348_v0, %v13354_v54  ;;  %v7194_v54 = vpop.f32.mrf.mxu2 }
 0x2c3   :  { %v2350_v58 = vadd.f32 %v2349_v55, %v13355_v45  ;;  %v7199_v26 = vpop.f32.mrf.mxu3  ;;  %v13364_v55 = vld [vmem:[#allocation80_spill] sm:$0xff] }
 0x2c4   :  { %13363 = vst [vmem:[#allocation185_spill] sm:$0xff] %v7199_v26 }
 0x2c5   :  { %v2351_v40 = vadd.f32 %v2350_v58, %v13357_v27  ;;  %v13367_v58 = vld [vmem:[#allocation83_spill] sm:$0xff] }
 0x2c7   :  { %v2352_v0 = vadd.f32 %v2351_v40, %v13359_v11  ;;  %v7204_v52 = vpop.f32.mrf.mxu1  ;;  %v5502_v40 = vld [vmem:[%s12295_s0 + $0x2f0] sm:$0xff] }
 0x2c8   :  { %13366 = vst [vmem:[#allocation187_spill] sm:$0xff] %v7204_v52  ;;  %1583 = vmatmul.bf16.gmra.mxu2 %v5502_v40  ;;  %v13378_v40 = vld [vmem:[#allocation111_spill] sm:$0xff] }
 0x2c9   :  { %v2353_v23 = vadd.f32 %v2352_v0, %v13360_v20  ;;  %v7202_v12 = vpop.f32.mrf.mxu2  ;;  %v13368_v0 = vld [vmem:[#allocation86_spill] sm:$0xff] }
 0x2ca   :  { %13365 = vst [vmem:[#allocation186_spill] sm:$0xff] %v7202_v12 }
 0x2cb   :  { %v2354_v61 = vadd.f32 %v2353_v23, %v13361_v43  ;;  %v5526_v23 = vld [vmem:[%s12295_s0 + $0x3b0] sm:$0xff]  ;;  %v7216_v20 = vpop.f32.mrf.mxu3 }
 0x2cc   :  { %1703 = vmatmul.bf16.gmra.mxu3 %v5526_v23  ;;  %13371 = vst [vmem:[#allocation188_spill] sm:$0xff] %v7216_v20 }
 0x2cd   :  { %v2355_v41 = vadd.f32 %v2354_v61, %v13362_v31  ;;  %v13369_v31 = vld [vmem:[#allocation89_spill] sm:$0xff] }
 0x2cf   :  { %v2356_v45 = vadd.f32 %v2355_v41, %v13364_v55  ;;  %v13370_v55 = vld [vmem:[#allocation92_spill] sm:$0xff]  ;;  %v7221_v26 = vpop.f32.mrf.mxu1 }
 0x2d0   :  { %13374 = vst [vmem:[#allocation190_spill] sm:$0xff] %v7221_v26 }
 0x2d1   :  { %v2357_v27 = vadd.f32 %v2356_v45, %v13367_v58  ;;  %v7218_v11 = vpop.f32.mrf.mxu2  ;;  %v13373_v45 = vld [vmem:[#allocation95_spill] sm:$0xff] }
 0x2d2   :  { %13372 = vst [vmem:[#allocation189_spill] sm:$0xff] %v7218_v11 }
 0x2d3   :  { %v2358_v61 = vadd.f32 %v2357_v27, %v13368_v0  ;;  %v7227_v0 = vpop.f32.mrf.mxu3 }
 0x2d4   :  { %13379 = vst [vmem:[#allocation191_spill] sm:$0xff] %v7227_v0 }
 0x2d5   :  { %v2359_v41 = vadd.f32 %v2358_v61, %v13369_v31  ;;  %v5503_v61 = vld [vmem:[%s12295_s0 + $0x2f8] sm:$0xff]  ;;  %v13420_v31 = vld [vmem:[#allocation112_spill] sm:$0xff] }
 0x2d7   :  { %v2360_v43 = vadd.f32 %v2359_v41, %v13370_v55 }
 0x2d8   :  { %1588 = vmatmul.bf16.gmra.mxu2 %v5503_v61 }
 0x2d9   :  { %v2361_v58 = vadd.f32 %v2360_v43, %v13373_v45  ;;  %v5527_v43 = vld [vmem:[%s12295_s0 + $0x3b8] sm:$0xff]  ;;  %v7235_v41 = vpop.f32.mrf.mxu2 }
 0x2db   :  { %v2362_v51 = vadd.f32 %v2361_v58, %v13375_v1 }
 0x2dc   :  { %1708 = vmatmul.bf16.gmra.mxu3 %v5527_v43  ;;  %v5528_v43 = vld [vmem:[%s12295_s0 + $0x3c0] sm:$0xff] }
 0x2dd   :  { %v2363_v60 = vadd.f32 %v2362_v51, %v13376_v35  ;;  %v7238_v51 = vpop.f32.mrf.mxu1  ;;  %v7244_v35 = vpop.f32.mrf.mxu3 }
 0x2de   :  { %13380 = vst [vmem:[#allocation192_spill] sm:$0xff] %v7238_v51 }
 0x2df   :  { %v2364_v27 = vadd.f32 %v2363_v60, %v13377_v49  ;;  %13381 = vst [vmem:[#allocation193_spill] sm:$0xff] %v7244_v35 }
 0x2e1   :  { %v2365_v23 = vadd.f32 %v2364_v27, %v13378_v40  ;;  %v7246_v1 = vpop.f32.mrf.mxu2 }
 0x2e3   :  { %v2366_v58 = vadd.f32 %v2365_v23, %v6880_v39 }
 0x2e5   :  { %v2367_v60 = vadd.f32 %v2366_v58, %v6898_v21  ;;  %v7249_v55 = vpop.f32.mrf.mxu1  ;;  %v13419_v21 = vld [vmem:[#allocation108_spill] sm:$0xff] }
 0x2e6   :  { %13382 = vst [vmem:[#allocation194_spill] sm:$0xff] %v7249_v55 }
 0x2e7   :  { %v2368_v27 = vadd.f32 %v2367_v60, %v6913_v32  ;;  %v7258_v60 = vpop.f32.mrf.mxu3 }
 0x2e8   :  { %13383 = vst [vmem:[#allocation195_spill] sm:$0xff] %v7258_v60 }
 0x2e9   :  { %v2369_v40 = vadd.f32 %v2368_v27, %v6931_v42  ;;  %v7260_v27 = vpop.f32.mrf.mxu2  ;;  %v13409_v42 = vld [vmem:[#allocation84_spill] sm:$0xff] }
 0x2ea   :  { %13384 = vst [vmem:[#allocation196_spill] sm:$0xff] %v7260_v27 }
 0x2eb   :  { %v2370_v49 = vadd.f32 %v2369_v40, %v6946_v53 }
 0x2ec   :  { %1713 = vmatmul.bf16.gmra.mxu3 %v5528_v43 }
 0x2ed   :  { %v2371_v45 = vadd.f32 %v2370_v49, %v6964_v6  ;;  %v7263_v6 = vpop.f32.mrf.mxu1 }
 0x2ee   :  { %13385 = vst [vmem:[#allocation197_spill] sm:$0xff] %v7263_v6 }
 0x2ef   :  { %v2372_v23 = vadd.f32 %v2371_v45, %v6979_v17 }
 0x2f1   :  { %v2373_v61 = vadd.f32 %v2372_v23, %v7005_v13  ;;  %v7271_v43 = vpop.f32.mrf.mxu2 }
 0x2f2   :  { %13386 = vst [vmem:[#allocation198_spill] sm:$0xff] %v7271_v43 }
 0x2f3   :  { %v2374_v58 = vadd.f32 %v2373_v61, %v7024_v28  ;;  %v7269_v61 = vpop.f32.mrf.mxu3  ;;  %v13408_v28 = vld [vmem:[#allocation81_spill] sm:$0xff] }
 0x2f5   :  { %v2375_v40 = vadd.f32 %v2374_v58, %v7040_v30 }
 0x2f7   :  { %v2376_v49 = vadd.f32 %v2375_v40, %v7061_v8  ;;  %v5529_v40 = vld [vmem:[%s12295_s0 + $0x3c8] sm:$0xff]  ;;  %v7277_v8 = vpop.f32.mrf.mxu1 }
 0x2f8   :  { %13387 = vst [vmem:[#allocation199_spill] sm:$0xff] %v7277_v8 }
 0x2f9   :  { %v2377_v45 = vadd.f32 %v2376_v49, %v7076_v2 }
 0x2fb   :  { %v2378_v23 = vadd.f32 %v2377_v45, %v7095_v48 }
 0x2fc   :  { %1718 = vmatmul.bf16.gmra.mxu3 %v5529_v40  ;;  %v5530_v40 = vld [vmem:[%s12295_s0 + $0x3d0] sm:$0xff] }
 0x2fd   :  { %v2379_v13 = vadd.f32 %v2378_v23, %v7114_v10  ;;  %v7285_v10 = vpop.f32.mrf.mxu2 }
 0x2fe   :  { %13388 = vst [vmem:[#allocation200_spill] sm:$0xff] %v7285_v10 }
 0x2ff   :  { %v2380_v17 = vadd.f32 %v2379_v13, %v7127_v18  ;;  %v7283_v18 = vpop.f32.mrf.mxu3 }
 0x301   :  { %v2381_v58 = vadd.f32 %v2380_v17, %v7146_v7  ;;  %v7288_v7 = vpop.f32.mrf.mxu1 }
 0x302   :  { %13389 = vst [vmem:[#allocation201_spill] sm:$0xff] %v7288_v7 }
 0x303   :  { %v2382_v49 = vadd.f32 %v2381_v58, %v7163_v57 }
 0x305   :  { %v2383_v45 = vadd.f32 %v2382_v49, %v7174_v50  ;;  %v13399_v50 = vld [vmem:[#allocation60_spill] sm:$0xff] }
 0x307   :  { %v2384_v23 = vadd.f32 %v2383_v45, %v7191_v25  ;;  %v7297_v45 = vpop.f32.mrf.mxu3 }
 0x308   :  { %13390 = vst [vmem:[#allocation202_spill] sm:$0xff] %v7297_v45 }
 0x309   :  { %v2385_v13 = vadd.f32 %v2384_v23, %v7204_v52  ;;  %v7299_v23 = vpop.f32.mrf.mxu2 }
 0x30a   :  { %13391 = vst [vmem:[#allocation203_spill] sm:$0xff] %v7299_v23 }
 0x30b   :  { %v2386_v17 = vadd.f32 %v2385_v13, %v7221_v26  ;;  %v7302_v26 = vpop.f32.mrf.mxu1 }
 0x30c   :  { %1723 = vmatmul.bf16.gmra.mxu3 %v5530_v40  ;;  %13392 = vst [vmem:[#allocation204_spill] sm:$0xff] %v7302_v26 }
 0x30d   :  { %v2387_v48 = vadd.f32 %v2386_v17, %v7238_v51  ;;  %v13395_v51 = vld [vmem:[#allocation54_spill] sm:$0xff] }
 0x30f   :  { %v2388_v2 = vadd.f32 %v2387_v48, %v7249_v55  ;;  %v13393_v48 = vld [vmem:[#allocation48_spill] sm:$0xff]  ;;  %v7308_v25 = vpop.f32.mrf.mxu3 }
 0x310   :  { %13396 = vst [vmem:[#allocation205_spill] sm:$0xff] %v7308_v25 }
 0x311   :  { %v2389_v58 = vadd.f32 %v2388_v2, %v7263_v6  ;;  %v13394_v2 = vld [vmem:[#allocation51_spill] sm:$0xff] }
 0x313   :  { %v2390_v49 = vadd.f32 %v2389_v58, %v7277_v8  ;;  %v7310_v58 = vpop.f32.mrf.mxu2  ;;  %v13398_v8 = vld [vmem:[#allocation57_spill] sm:$0xff] }
 0x314   :  { %13397 = vst [vmem:[#allocation206_spill] sm:$0xff] %v7310_v58 }
 0x315   :  { %v2391_v13 = vadd.f32 %v2390_v49, %v7288_v7  ;;  %v5531_v49 = vld [vmem:[%s12295_s0 + $0x3d8] sm:$0xff]  ;;  %v13400_v7 = vld [vmem:[#allocation63_spill] sm:$0xff] }
 0x317   :  { %v2392_v17 = vadd.f32 %v2391_v13, %v7302_v26  ;;  %v13405_v26 = vld [vmem:[#allocation72_spill] sm:$0xff] }
 0x319   :  { %v2393_v55 = vadd.f32 %v2392_v17, %v13393_v48  ;;  %v13401_v17 = vld [vmem:[#allocation66_spill] sm:$0xff] }
 0x31b   :  { %v2394_v6 = vadd.f32 %v2393_v55, %v13394_v2  ;;  %v13402_v55 = vld [vmem:[#allocation69_spill] sm:$0xff] }
 0x31c   :  { %1728 = vmatmul.bf16.gmra.mxu3 %v5531_v49 }
 0x31d   :  { %v2395_v52 = vadd.f32 %v2394_v6, %v13395_v51  ;;  %v7320_v6 = vpop.f32.mrf.mxu3  ;;  %v7322_v51 = vpop.f32.mrf.mxu2 }
 0x31e   :  { %13403 = vst [vmem:[#allocation207_spill] sm:$0xff] %v7320_v6 }
 0x31f   :  { %v2396_v40 = vadd.f32 %v2395_v52, %v13398_v8  ;;  %13404 = vst [vmem:[#allocation208_spill] sm:$0xff] %v7322_v51  ;;  %v13406_v52 = vld [vmem:[#allocation75_spill] sm:$0xff] }
 0x321   :  { %v2397_v57 = vadd.f32 %v2396_v40, %v13399_v50  ;;  %v13407_v40 = vld [vmem:[#allocation78_spill] sm:$0xff] }
 0x323   :  { %v2398_v13 = vadd.f32 %v2397_v57, %v13400_v7 }
 0x325   :  { %v2399_v48 = vadd.f32 %v2398_v13, %v13401_v17  ;;  %v7329_v57 = vpop.f32.mrf.mxu3  ;;  %v7334_v49 = vpop.f32.mrf.mxu2  ;;  %v13412_v13 = vld [vmem:[#allocation87_spill] sm:$0xff]  ;;  %v13418_v17 = vld [vmem:[#allocation104_spill] sm:$0xff] }
 0x326   :  { %13410 = vst [vmem:[#allocation209_spill] sm:$0xff] %v7329_v57 }
 0x327   :  { %v2400_v2 = vadd.f32 %v2399_v48, %v13402_v55  ;;  %v5532_v48 = vld [vmem:[%s12295_s0 + $0x3e0] sm:$0xff]  ;;  %13411 = vst [vmem:[#allocation210_spill] sm:$0xff] %v7334_v49 }
 0x329   :  { %v2401_v30 = vadd.f32 %v2400_v2, %v13405_v26  ;;  %v13413_v2 = vld [vmem:[#allocation90_spill] sm:$0xff] }
 0x32b   :  { %v2402_v8 = vadd.f32 %v2401_v30, %v13406_v52  ;;  %v13414_v30 = vld [vmem:[#allocation93_spill] sm:$0xff] }
 0x32c   :  { %1733 = vmatmul.bf16.gmra.mxu3 %v5532_v48 }
 0x32d   :  { %v2403_v50 = vadd.f32 %v2402_v8, %v13407_v40  ;;  %v13415_v8 = vld [vmem:[#allocation96_spill] sm:$0xff] }
 0x32f   :  { %v2404_v53 = vadd.f32 %v2403_v50, %v13408_v28  ;;  %v13416_v50 = vld [vmem:[#allocation100_spill] sm:$0xff] }
 0x331   :  { %v2405_v32 = vadd.f32 %v2404_v53, %v13409_v42  ;;  %v7341_v53 = vpop.f32.mrf.mxu3  ;;  %v7343_v42 = vpop.f32.mrf.mxu2 }
 0x332   :  { %13417 = vst [vmem:[#allocation90_spill] sm:$0xff] %v7343_v42 }
 0x333   :  { %v2406_v55 = vadd.f32 %v2405_v32, %v13412_v13  ;;  %v5533_v32 = vld [vmem:[%s12295_s0 + $0x3e8] sm:$0xff] }
 0x335   :  { %v2407_v26 = vadd.f32 %v2406_v55, %v13413_v2  ;;  %v13421_v55 = vld [vmem:[#allocation116_spill] sm:$0xff] }
 0x337   :  { %v2408_v52 = vadd.f32 %v2407_v26, %v13414_v30 }
 0x339   :  { %v2409_v40 = vadd.f32 %v2408_v52, %v13415_v8  ;;  %v7355_v48 = vpop.f32.mrf.mxu2 }
 0x33a   :  { %13423 = vst [vmem:[#allocation211_spill] sm:$0xff] %v7355_v48 }
 0x33b   :  { %v2410_v28 = vadd.f32 %v2409_v40, %v13416_v50  ;;  %v7353_v40 = vpop.f32.mrf.mxu3 }
 0x33c   :  { %1738 = vmatmul.bf16.gmra.mxu3 %v5533_v32  ;;  %13422 = vst [vmem:[#allocation104_spill] sm:$0xff] %v7353_v40 }
 0x33d   :  { %v2411_v7 = vadd.f32 %v2410_v28, %v13418_v17 }
 0x33f   :  { %v2412_v39 = vadd.f32 %v2411_v7, %v13419_v21 }
 0x341   :  { %v2413_v57 = vadd.f32 %v2412_v39, %v13420_v31 }
 0x343   :  { %v2414_v26 = vadd.f32 %v2413_v57, %v13421_v55  ;;  %v7362_v21 = vpop.f32.mrf.mxu3  ;;  %v7364_v57 = vpop.f32.mrf.mxu2 }
 0x344   :  { %13424 = vst [vmem:[#allocation212_spill] sm:$0xff] %v7362_v21 }
 0x345   :  { %v2415_v52 = vadd.f32 %v2414_v26, %v6901_v38  ;;  %13425 = vst [vmem:[#allocation213_spill] sm:$0xff] %v7364_v57  ;;  %v5534_v26 = vld [vmem:[%s12295_s0 + $0x3f0] sm:$0xff] }
 0x347   :  { %v2416_v50 = vadd.f32 %v2415_v52, %v6916_v33 }
 0x349   :  { %v2417_v28 = vadd.f32 %v2416_v50, %v6934_v37 }
 0x34b   :  { %v2418_v7 = vadd.f32 %v2417_v28, %v6949_v56 }
 0x34c   :  { %1743 = vmatmul.bf16.gmra.mxu3 %v5534_v26 }
 0x34d   :  { %v2419_v39 = vadd.f32 %v2418_v7, %v6967_v63 }
 0x34f   :  { %v2420_v31 = vadd.f32 %v2419_v39, %v6982_v22  ;;  %v7374_v39 = vpop.f32.mrf.mxu3  ;;  %v7376_v22 = vpop.f32.mrf.mxu2 }
 0x350   :  { %13426 = vst [vmem:[#allocation214_spill] sm:$0xff] %v7374_v39 }
 0x351   :  { %v2421_v32 = vadd.f32 %v2420_v31, %v6998_v44  ;;  %13427 = vst [vmem:[#allocation215_spill] sm:$0xff] %v7376_v22 }
 0x353   :  { %v2422_v52 = vadd.f32 %v2421_v32, %v7013_v46  ;;  %v5535_v32 = vld [vmem:[%s12295_s0 + $0x3f8] sm:$0xff] }
 0x355   :  { %v2423_v50 = vadd.f32 %v2422_v52, %v7031_v62 }
 0x357   :  { %v2424_v28 = vadd.f32 %v2423_v50, %v7046_v9  ;;  %v7386_v52 = vpop.f32.mrf.mxu3  ;;  %v7388_v50 = vpop.f32.mrf.mxu2 }
 0x358   :  { %13428 = vst [vmem:[#allocation216_spill] sm:$0xff] %v7388_v50 }
 0x359   :  { %v2425_v7 = vadd.f32 %v2424_v28, %v7064_v15 }
 0x35b   :  { %v2426_v63 = vadd.f32 %v2425_v7, %v7074_v14 }
 0x35c   :  { %1748 = vmatmul.bf16.gmra.mxu3 %v5535_v32 }
 0x35d   :  { %v2427_v31 = vadd.f32 %v2426_v63, %v7092_v5 }
 0x35f   :  { %v2428_v44 = vadd.f32 %v2427_v31, %v7102_v3 }
 0x361   :  { %v2429_v56 = vadd.f32 %v2428_v44, %v7120_v59  ;;  %v7395_v59 = vpop.f32.mrf.mxu2 }
 0x362   :  { %13429 = vst [vmem:[#allocation217_spill] sm:$0xff] %v7395_v59 }
 0x363   :  { %v2430_v26 = vadd.f32 %v2429_v56, %v7130_v24 }
 0x365   :  { %v2431_v28 = vadd.f32 %v2430_v26, %v7144_v47 }
 0x367   :  { %v2432_v7 = vadd.f32 %v2431_v28, %v7154_v16 }
 0x369   :  { %v2433_v63 = vadd.f32 %v2432_v7, %v7168_v19  ;;  %v7402_v47 = vpop.f32.mrf.mxu2 }
 0x36a   :  { %13430 = vst [vmem:[#allocation218_spill] sm:$0xff] %v7402_v47 }
 0x36b   :  { %v2434_v31 = vadd.f32 %v2433_v63, %v7178_v34 }
 0x36d   :  { %v2435_v44 = vadd.f32 %v2434_v31, %v7194_v54 }
 0x36f   :  { %v2436_v3 = vadd.f32 %v2435_v44, %v7202_v12 }
 0x371   :  { %v2437_v56 = vadd.f32 %v2436_v3, %v7218_v11  ;;  %v7409_v12 = vpop.f32.mrf.mxu2 }
 0x372   :  { %13431 = vst [vmem:[#allocation219_spill] sm:$0xff] %v7409_v12 }
 0x373   :  { %v2438_v32 = vadd.f32 %v2437_v56, %v7235_v41 }
 0x375   :  { %v2439_v24 = vadd.f32 %v2438_v32, %v7246_v1 }
 0x377   :  { %v2440_v26 = vadd.f32 %v2439_v24, %v7260_v27 }
 0x379   :  { %v2441_v28 = vadd.f32 %v2440_v26, %v7271_v43  ;;  %v7416_v43 = vpop.f32.mrf.mxu2 }
 0x37a   :  { %13432 = vst [vmem:[#allocation220_spill] sm:$0xff] %v7416_v43 }
 0x37b   :  { %v2442_v7 = vadd.f32 %v2441_v28, %v7285_v10 }
 0x37d   :  { %v2443_v63 = vadd.f32 %v2442_v7, %v7299_v23 }
 0x37f   :  { %v2444_v31 = vadd.f32 %v2443_v63, %v7310_v58 }
 0x381   :  { %v2445_v44 = vadd.f32 %v2444_v31, %v7322_v51 }
 0x383   :  { %v2446_v3 = vadd.f32 %v2445_v44, %v7334_v49  ;;  %v7423_v49 = vpop.f32.mrf.mxu2 }
 0x384   :  { %13433 = vst [vmem:[#allocation221_spill] sm:$0xff] %v7423_v49 }
 0x385   :  { %v2447_v56 = vadd.f32 %v2446_v3, %v7343_v42 }
 0x387   :  { %v2448_v24 = vadd.f32 %v2447_v56, %v7355_v48  ;;  %v7426_v56 = vpop.f32.mrf.mxu3  ;;  %v13436_v48 = vld [vmem:[#allocation105_spill] sm:$0xff] }
 0x389   :  { %v2449_v32 = vadd.f32 %v2448_v24, %v7364_v57  ;;  %v13434_v24 = vld [vmem:[#allocation97_spill] sm:$0xff] }
 0x38b   :  { %v2450_v26 = vadd.f32 %v2449_v32, %v7376_v22  ;;  %v13435_v22 = vld [vmem:[#allocation101_spill] sm:$0xff] }
 0x38d   :  { %v2451_v28 = vadd.f32 %v2450_v26, %v7388_v50  ;;  %v13437_v50 = vld [vmem:[#allocation109_spill] sm:$0xff] }
 0x38f   :  { %v2452_v7 = vadd.f32 %v2451_v28, %v7395_v59  ;;  %v13438_v59 = vld [vmem:[#allocation113_spill] sm:$0xff] }
 0x391   :  { %v2453_v63 = vadd.f32 %v2452_v7, %v7402_v47  ;;  %v7433_v47 = vpop.f32.mrf.mxu3 }
 0x392   :  { %13439 = vst [vmem:[#allocation222_spill] sm:$0xff] %v7433_v47 }
 0x393   :  { %v2454_v31 = vadd.f32 %v2453_v63, %v7409_v12  ;;  %v13440_v63 = vld [vmem:[#allocation117_spill] sm:$0xff] }
 0x394   :  { %v13441_v12 = vld [vmem:[#allocation133_spill] sm:$0xff] }
 0x395   :  { %v2455_v44 = vadd.f32 %v2454_v31, %v7416_v43 }
 0x397   :  { %v2456_v3 = vadd.f32 %v2455_v44, %v7423_v49 }
 0x399   :  { %v2457_v32 = vadd.f32 %v2456_v3, %v13434_v24  ;;  %v7440_v24 = vpop.f32.mrf.mxu3 }
 0x39a   :  { %13442 = vst [vmem:[#allocation223_spill] sm:$0xff] %v7440_v24 }
 0x39b   :  { %v2458_v57 = vadd.f32 %v2457_v32, %v13435_v22  ;;  %v13443_v32 = vld [vmem:[#allocation137_spill] sm:$0xff]  ;;  %v13447_v22 = vld [vmem:[#allocation147_spill] sm:$0xff] }
 0x39d   :  { %v2459_v26 = vadd.f32 %v2458_v57, %v13436_v48  ;;  %v13444_v48 = vld [vmem:[#allocation141_spill] sm:$0xff] }
 0x39f   :  { %v2460_v28 = vadd.f32 %v2459_v26, %v13437_v50  ;;  %v13445_v50 = vld [vmem:[#allocation144_spill] sm:$0xff] }
 0x3a1   :  { %v2461_v7 = vadd.f32 %v2460_v28, %v13438_v59  ;;  %v7445_v59 = vpop.f32.mrf.mxu3 }
 0x3a2   :  { %13446 = vst [vmem:[#allocation224_spill] sm:$0xff] %v7445_v59 }
 0x3a3   :  { %v2462_v31 = vadd.f32 %v2461_v7, %v13440_v63  ;;  %v13448_v63 = vld [vmem:[#allocation150_spill] sm:$0xff] }
 0x3a5   :  { %v2463_v43 = vadd.f32 %v2462_v31, %v6903_v4  ;;  %v13449_v4 = vld [vmem:[#allocation154_spill] sm:$0xff] }
 0x3a7   :  { %v2464_v44 = vadd.f32 %v2463_v43, %v6918_v29 }
 0x3a9   :  { %v2465_v49 = vadd.f32 %v2464_v44, %v6936_v36  ;;  %v7450_v29 = vpop.f32.mrf.mxu3  ;;  %v13451_v44 = vld [vmem:[#allocation158_spill] sm:$0xff] }
 0x3aa   :  { %13450 = vst [vmem:[#allocation225_spill] sm:$0xff] %v7450_v29 }
 0x3ab   :  { %v2466_v3 = vadd.f32 %v2465_v49, %v13441_v12  ;;  %v13452_v12 = vld [vmem:[#allocation163_spill] sm:$0xff] }
 0x3ad   :  { %v2467_v57 = vadd.f32 %v2466_v3, %v13443_v32  ;;  %v13454_v3 = vld [vmem:[#allocation168_spill] sm:$0xff] }
 0x3af   :  { %v2468_v26 = vadd.f32 %v2467_v57, %v13444_v48  ;;  %v13455_v48 = vld [vmem:[#allocation172_spill] sm:$0xff] }
 0x3b1   :  { %v2469_v28 = vadd.f32 %v2468_v26, %v13445_v50  ;;  %v7454_v42 = vpop.f32.mrf.mxu3  ;;  %v13456_v50 = vld [vmem:[#allocation175_spill] sm:$0xff] }
 0x3b2   :  { %13453 = vst [vmem:[#allocation226_spill] sm:$0xff] %v7454_v42 }
 0x3b3   :  { %v2470_v7 = vadd.f32 %v2469_v28, %v13447_v22  ;;  %v13458_v28 = vld [vmem:[#allocation178_spill] sm:$0xff]  ;;  %v13461_v22 = vld [vmem:[#allocation183_spill] sm:$0xff] }
 0x3b5   :  { %v2471_v31 = vadd.f32 %v2470_v7, %v13448_v63  ;;  %v13459_v63 = vld [vmem:[#allocation181_spill] sm:$0xff] }
 0x3b7   :  { %v2472_v43 = vadd.f32 %v2471_v31, %v13449_v4 }
 0x3b9   :  { %v2473_v49 = vadd.f32 %v2472_v43, %v13451_v44  ;;  %v7459_v51 = vpop.f32.mrf.mxu3  ;;  %v13462_v44 = vld [vmem:[#allocation185_spill] sm:$0xff] }
 0x3ba   :  { %13457 = vst [vmem:[#allocation172_spill] sm:$0xff] %v7459_v51 }
 0x3bb   :  { %v2474_v36 = vadd.f32 %v2473_v49, %v13452_v12 }
 0x3bd   :  { %v2475_v57 = vadd.f32 %v2474_v36, %v13454_v3 }
 0x3bf   :  { %v2476_v26 = vadd.f32 %v2475_v57, %v13455_v48 }
 0x3c1   :  { %v2477_v32 = vadd.f32 %v2476_v26, %v13456_v50  ;;  %v7463_v4 = vpop.f32.mrf.mxu3 }
 0x3c2   :  { %13460 = vst [vmem:[#allocation175_spill] sm:$0xff] %v7463_v4 }
 0x3c3   :  { %v2478_v7 = vadd.f32 %v2477_v32, %v13458_v28 }
 0x3c5   :  { %v2479_v31 = vadd.f32 %v2478_v7, %v13459_v63 }
 0x3c7   :  { %v2480_v43 = vadd.f32 %v2479_v31, %v13461_v22 }
 0x3c9   :  { %v2481_v49 = vadd.f32 %v2480_v43, %v13462_v44  ;;  %v7468_v58 = vpop.f32.mrf.mxu3 }
 0x3ca   :  { %13463 = vst [vmem:[#allocation185_spill] sm:$0xff] %v7468_v58 }
 0x3cb   :  { %v2482_v12 = vadd.f32 %v2481_v49, %v7216_v20 }
 0x3cd   :  { %v2483_v36 = vadd.f32 %v2482_v12, %v7227_v0  ;;  %v13467_v0 = vld [vmem:[#allocation209_spill] sm:$0xff] }
 0x3cf   :  { %v2484_v57 = vadd.f32 %v2483_v36, %v7244_v35 }
 0x3d1   :  { %v7472_v26 = vpop.f32.mrf.mxu3  ;;  %v2485_v32 = vadd.f32 %v2484_v57, %v7258_v60 }
 0x3d2   :  { %13464 = vst [vmem:[#allocation227_spill] sm:$0xff] %v7472_v26 }
 0x3d3   :  { %v2486_v7 = vadd.f32 %v2485_v32, %v7269_v61 }
 0x3d5   :  { %v2487_v63 = vadd.f32 %v2486_v7, %v7283_v18 }
 0x3d7   :  { %v2488_v31 = vadd.f32 %v2487_v63, %v7297_v45 }
 0x3d9   :  { %v7477_v28 = vpop.f32.mrf.mxu3  ;;  %v2489_v43 = vadd.f32 %v2488_v31, %v7308_v25 }
 0x3da   :  { %13465 = vst [vmem:[#allocation228_spill] sm:$0xff] %v7477_v28 }
 0x3db   :  { %v2490_v12 = vadd.f32 %v2489_v43, %v7320_v6 }
 0x3dd   :  { %v2491_v36 = vadd.f32 %v2490_v12, %v13467_v0 }
 0x3df   :  { %v2492_v35 = vadd.f32 %v2491_v36, %v7341_v53 }
 0x3e1   :  { %v7481_v49 = vpop.f32.mrf.mxu3  ;;  %v2493_v57 = vadd.f32 %v2492_v35, %v7353_v40 }
 0x3e2   :  { %13466 = vst [vmem:[#allocation229_spill] sm:$0xff] %v7481_v49 }
 0x3e3   :  { %v2494_v32 = vadd.f32 %v2493_v57, %v7362_v21 }
 0x3e5   :  { %v2495_v63 = vadd.f32 %v2494_v32, %v7374_v39 }
 0x3e7   :  { %v2496_v31 = vadd.f32 %v2495_v63, %v7386_v52 }
 0x3e9   :  { %v7486_v20 = vpop.f32.mrf.mxu3  ;;  %v2497_v25 = vadd.f32 %v2496_v31, %v7426_v56 }
 0x3ea   :  { %13468 = vst [vmem:[#allocation209_spill] sm:$0xff] %v7486_v20 }
 0x3eb   :  { %v2498_v43 = vadd.f32 %v2497_v25, %v7433_v47 }
 0x3ed   :  { %v2499_v12 = vadd.f32 %v2498_v43, %v7440_v24 }
 0x3ef   :  { %v2500_v35 = vadd.f32 %v2499_v12, %v7445_v59 }
 0x3f1   :  { %v7490_v7 = vpop.f32.mrf.mxu3  ;;  %v2501_v57 = vadd.f32 %v2500_v35, %v7450_v29 }
 0x3f2   :  { %13469 = vst [vmem:[#allocation230_spill] sm:$0xff] %v7490_v7 }
 0x3f3   :  { %v2502_v21 = vadd.f32 %v2501_v57, %v7454_v42 }
 0x3f5   :  { %v2503_v32 = vadd.f32 %v2502_v21, %v7459_v51 }
 0x3f7   :  { %v2504_v63 = vadd.f32 %v2503_v32, %v7463_v4 }
 0x3f9   :  { %v7495_v45 = vpop.f32.mrf.mxu3  ;;  %v2505_v25 = vadd.f32 %v2504_v63, %v7468_v58  ;;  %v13488_v58 = vld [vmem:[#allocation11_spill] sm:$0xff] }
 0x3fa   :  { %13470 = vst [vmem:[#allocation231_spill] sm:$0xff] %v7495_v45 }
 0x3fb   :  { %v2506_v43 = vadd.f32 %v2505_v25, %v7472_v26 }
 0x3fd   :  { %v2507_v24 = vadd.f32 %v2506_v43, %v7477_v28 }
 0x3ff   :  { %v2508_v12 = vadd.f32 %v2507_v24, %v7481_v49 }
 0x401   :  { %v7499_v36 = vpop.f32.mrf.mxu3  ;;  %v2509_v35 = vadd.f32 %v2508_v12, %v7486_v20 }
 0x402   :  { %13471 = vst [vmem:[#allocation232_spill] sm:$0xff] %v7499_v36 }
 0x403   :  { %v2510_v21 = vadd.f32 %v2509_v35, %v7490_v7 }
 0x405   :  { %v2511_v32 = vadd.f32 %v2510_v21, %v7495_v45 }
 0x407   :  { %v2512_v4 = vadd.f32 %v2511_v32, %v7499_v36 }
 0x409   :  { %v7504_v40 = vpop.f32.mrf.mxu3 }
 0x40a   :  { %13472 = vst [vmem:[#allocation233_spill] sm:$0xff] %v7504_v40  ;;  %v2513_v63 = vadd.f32 %v2512_v4, %v7504_v40 }
 0x411   :  { %v7508_v31 = vpop.f32.mrf.mxu3 }
 0x412   :  { %13473 = vst [vmem:[#allocation234_spill] sm:$0xff] %v7508_v31  ;;  %v2514_v25 = vadd.f32 %v2513_v63, %v7508_v31 }
 0x419   :  { %v7513_v47 = vpop.f32.mrf.mxu3 }
 0x41a   :  { %13474 = vst [vmem:[#allocation235_spill] sm:$0xff] %v7513_v47  ;;  %v2515_v24 = vadd.f32 %v2514_v25, %v7513_v47 }
 0x421   :  { %v7517_v57 = vpop.f32.mrf.mxu3 }
 0x422   :  { %13475 = vst [vmem:[#allocation236_spill] sm:$0xff] %v7517_v57  ;;  %v2516_v12 = vadd.f32 %v2515_v24, %v7517_v57  ;;  %v13480_v24 = vld [vmem:[#allocation3_spill] sm:$0xff] }
 0x429   :  { %v7522_v51 = vpop.f32.mrf.mxu3 }
 0x42a   :  { %13476 = vst [vmem:[#allocation237_spill] sm:$0xff] %v7522_v51  ;;  %v2517_v20 = vadd.f32 %v2516_v12, %v7522_v51  ;;  %v13481_v51 = vld [vmem:[#allocation4_spill] sm:$0xff] }
 0x431   :  { %v7526_v43 = vpop.f32.mrf.mxu3 }
 0x432   :  { %13477 = vst [vmem:[#allocation238_spill] sm:$0xff] %v7526_v43  ;;  %v2518_v35 = vadd.f32 %v2517_v20, %v7526_v43 }
 0x439   :  { %v7531_v49 = vpop.f32.mrf.mxu3 }
 0x43a   :  { %13478 = vst [vmem:[#allocation239_spill] sm:$0xff] %v7531_v49  ;;  %v2519_v21 = vadd.f32 %v2518_v35, %v7531_v49  ;;  %v13482_v35 = vld [vmem:[#allocation5_spill] sm:$0xff] }
 0x441   :  { %v7535_v32 = vpop.f32.mrf.mxu3 }
 0x442   :  { %13479 = vst [vmem:[#allocation240_spill] sm:$0xff] %v7535_v32  ;;  %v2520_v4 = vadd.f32 %v2519_v21, %v7535_v32  ;;  %v13483_v21 = vld [vmem:[#allocation6_spill] sm:$0xff] }
 0x444   :  { %v2521_v40 = vrot.slane %v2520_v4, 4 }
 0x446   :  { %v2522_v63 = vadd.f32 %v2521_v40, %v2520_v4 }
 0x448   :  { %v2523_v31 = vrot.slane %v2522_v63, 2 }
 0x44a   :  { %v2524_v36 = vadd.f32 %v2523_v31, %v2522_v63  ;;  %v13484_v31 = vld [vmem:[#allocation7_spill] sm:$0xff]  ;;  %v13485_v63 = vld [vmem:[#allocation8_spill] sm:$0xff] }
 0x44c   :  { %v2525_v45 = vrot.slane %v2524_v36, 1 }
 0x44e   :  { %v2526_v25 = vadd.f32 %v2525_v45, %v2524_v36 }
 0x450   :  { %v7538_v47 = vmul.f32 0.00048828125, %v2526_v25 }
 0x452   :  { %v2528_v12 = vsub.f32 %v13480_v24, %v7538_v47  ;;  %v2529_v20 = vsub.f32 %v13481_v51, %v7538_v47  ;;  %v2530_v49 = vsub.f32 %v13482_v35, %v7538_v47  ;;  %v2531_v40 = vsub.f32 %v13483_v21, %v7538_v47  ;;  %v13486_v51 = vld [vmem:[#allocation9_spill] sm:$0xff] }
 0x453   :  { %v2532_v4 = vsub.f32 %v13484_v31, %v7538_v47  ;;  %v2533_v25 = vsub.f32 %v13485_v63, %v7538_v47  ;;  %v2534_v7 = vsub.f32 %v13486_v51, %v7538_v47  ;;  %v2536_v31 = vsub.f32 %v13488_v58, %v7538_v47 }
 0x454   :  { %v2784_v43 = vmul.f32 %v2528_v12, %v2528_v12  ;;  %v2785_v57 = vmul.f32 %v2529_v20, %v2529_v20  ;;  %v2786_v45 = vmul.f32 %v2530_v49, %v2530_v49  ;;  %v2787_v24 = vmul.f32 %v2531_v40, %v2531_v40  ;;  %v13487_v12 = vld [vmem:[#allocation10_spill] sm:$0xff] }
 0x455   :  { %v2788_v28 = vmul.f32 %v2532_v4, %v2532_v4  ;;  %v2535_v20 = vsub.f32 %v13487_v12, %v7538_v47  ;;  %v2789_v26 = vmul.f32 %v2533_v25, %v2533_v25  ;;  %v2790_v49 = vmul.f32 %v2534_v7, %v2534_v7 }
 0x456   :  { %v3040_v36 = vadd.f32 %v2785_v57, %v2784_v43  ;;  %v13489_v43 = vld [vmem:[#allocation12_spill] sm:$0xff]  ;;  %v2792_v4 = vmul.f32 %v2536_v31, %v2536_v31 }
 0x457   :  { %v2537_v63 = vsub.f32 %v13489_v43, %v7538_v47  ;;  %v2791_v40 = vmul.f32 %v2535_v20, %v2535_v20 }
 0x458   :  { %v3041_v32 = vadd.f32 %v3040_v36, %v2786_v45  ;;  %v13490_v36 = vld [vmem:[#allocation13_spill] sm:$0xff] }
 0x459   :  { %v2538_v51 = vsub.f32 %v13490_v36, %v7538_v47  ;;  %v2793_v25 = vmul.f32 %v2537_v63, %v2537_v63 }
 0x45a   :  { %v3042_v35 = vadd.f32 %v3041_v32, %v2787_v24  ;;  %v13491_v24 = vld [vmem:[#allocation14_spill] sm:$0xff] }
 0x45b   :  { %v2539_v12 = vsub.f32 %v13491_v24, %v7538_v47  ;;  %v2794_v7 = vmul.f32 %v2538_v51, %v2538_v51 }
 0x45c   :  { %v3043_v21 = vadd.f32 %v3042_v35, %v2788_v28  ;;  %v13492_v35 = vld [vmem:[#allocation16_spill] sm:$0xff] }
 0x45d   :  { %v2540_v58 = vsub.f32 %v13492_v35, %v7538_v47  ;;  %v2795_v20 = vmul.f32 %v2539_v12, %v2539_v12 }
 0x45e   :  { %v3044_v57 = vadd.f32 %v3043_v21, %v2789_v26  ;;  %v13493_v21 = vld [vmem:[#allocation18_spill] sm:$0xff] }
 0x45f   :  { %v2541_v43 = vsub.f32 %v13493_v21, %v7538_v47  ;;  %v2796_v31 = vmul.f32 %v2540_v58, %v2540_v58 }
 0x460   :  { %v3045_v45 = vadd.f32 %v3044_v57, %v2790_v49  ;;  %v13494_v57 = vld [vmem:[#allocation20_spill] sm:$0xff] }
 0x461   :  { %v2542_v36 = vsub.f32 %v13494_v57, %v7538_v47  ;;  %v2797_v63 = vmul.f32 %v2541_v43, %v2541_v43 }
 0x462   :  { %v3046_v32 = vadd.f32 %v3045_v45, %v2791_v40  ;;  %v13495_v45 = vld [vmem:[#allocation22_spill] sm:$0xff] }
 0x463   :  { %v2543_v24 = vsub.f32 %v13495_v45, %v7538_v47  ;;  %v2798_v51 = vmul.f32 %v2542_v36, %v2542_v36 }
 0x464   :  { %v3047_v28 = vadd.f32 %v3046_v32, %v2792_v4  ;;  %v13496_v32 = vld [vmem:[#allocation24_spill] sm:$0xff] }
 0x465   :  { %v2544_v35 = vsub.f32 %v13496_v32, %v7538_v47  ;;  %v2799_v12 = vmul.f32 %v2543_v24, %v2543_v24 }
 0x466   :  { %v3048_v26 = vadd.f32 %v3047_v28, %v2793_v25  ;;  %v13497_v28 = vld [vmem:[#allocation26_spill] sm:$0xff] }
 0x467   :  { %v2545_v21 = vsub.f32 %v13497_v28, %v7538_v47  ;;  %v2800_v58 = vmul.f32 %v2544_v35, %v2544_v35 }
 0x468   :  { %v3049_v49 = vadd.f32 %v3048_v26, %v2794_v7  ;;  %v13498_v26 = vld [vmem:[#allocation28_spill] sm:$0xff] }
 0x469   :  { %v2546_v57 = vsub.f32 %v13498_v26, %v7538_v47  ;;  %v2801_v43 = vmul.f32 %v2545_v21, %v2545_v21 }
 0x46a   :  { %v3050_v40 = vadd.f32 %v3049_v49, %v2795_v20  ;;  %v13499_v49 = vld [vmem:[#allocation30_spill] sm:$0xff] }
 0x46b   :  { %v2547_v45 = vsub.f32 %v13499_v49, %v7538_v47  ;;  %v2802_v36 = vmul.f32 %v2546_v57, %v2546_v57 }
 0x46c   :  { %v3051_v4 = vadd.f32 %v3050_v40, %v2796_v31  ;;  %v13500_v40 = vld [vmem:[#allocation32_spill] sm:$0xff] }
 0x46d   :  { %v2548_v32 = vsub.f32 %v13500_v40, %v7538_v47  ;;  %v2803_v24 = vmul.f32 %v2547_v45, %v2547_v45 }
 0x46e   :  { %v3052_v25 = vadd.f32 %v3051_v4, %v2797_v63  ;;  %v13501_v4 = vld [vmem:[#allocation34_spill] sm:$0xff] }
 0x46f   :  { %v2549_v28 = vsub.f32 %v13501_v4, %v7538_v47  ;;  %v2804_v35 = vmul.f32 %v2548_v32, %v2548_v32 }
 0x470   :  { %v3053_v7 = vadd.f32 %v3052_v25, %v2798_v51  ;;  %v13502_v25 = vld [vmem:[#allocation36_spill] sm:$0xff] }
 0x471   :  { %v2550_v26 = vsub.f32 %v13502_v25, %v7538_v47  ;;  %v2805_v21 = vmul.f32 %v2549_v28, %v2549_v28 }
 0x472   :  { %v3054_v20 = vadd.f32 %v3053_v7, %v2799_v12  ;;  %v13503_v7 = vld [vmem:[#allocation38_spill] sm:$0xff] }
 0x473   :  { %v2551_v49 = vsub.f32 %v13503_v7, %v7538_v47  ;;  %v2806_v57 = vmul.f32 %v2550_v26, %v2550_v26 }
 0x474   :  { %v3055_v31 = vadd.f32 %v3054_v20, %v2800_v58  ;;  %v13504_v20 = vld [vmem:[#allocation40_spill] sm:$0xff] }
 0x475   :  { %v2552_v40 = vsub.f32 %v13504_v20, %v7538_v47  ;;  %v2807_v45 = vmul.f32 %v2551_v49, %v2551_v49 }
 0x476   :  { %v3056_v63 = vadd.f32 %v3055_v31, %v2801_v43  ;;  %v13505_v31 = vld [vmem:[#allocation42_spill] sm:$0xff] }
 0x477   :  { %v2553_v4 = vsub.f32 %v13505_v31, %v7538_v47  ;;  %v2808_v32 = vmul.f32 %v2552_v40, %v2552_v40 }
 0x478   :  { %v3057_v51 = vadd.f32 %v3056_v63, %v2802_v36  ;;  %v13506_v63 = vld [vmem:[#allocation44_spill] sm:$0xff] }
 0x479   :  { %v2554_v25 = vsub.f32 %v13506_v63, %v7538_v47  ;;  %v2809_v28 = vmul.f32 %v2553_v4, %v2553_v4 }
 0x47a   :  { %v3058_v12 = vadd.f32 %v3057_v51, %v2803_v24  ;;  %v13507_v51 = vld [vmem:[#allocation46_spill] sm:$0xff] }
 0x47b   :  { %v2555_v7 = vsub.f32 %v13507_v51, %v7538_v47  ;;  %v2810_v26 = vmul.f32 %v2554_v25, %v2554_v25 }
 0x47c   :  { %v3059_v58 = vadd.f32 %v3058_v12, %v2804_v35  ;;  %v13508_v12 = vld [vmem:[#allocation49_spill] sm:$0xff] }
 0x47d   :  { %v2556_v20 = vsub.f32 %v13508_v12, %v7538_v47  ;;  %v2811_v49 = vmul.f32 %v2555_v7, %v2555_v7 }
 0x47e   :  { %v3060_v43 = vadd.f32 %v3059_v58, %v2805_v21  ;;  %v13509_v58 = vld [vmem:[#allocation52_spill] sm:$0xff] }
 0x47f   :  { %v2557_v31 = vsub.f32 %v13509_v58, %v7538_v47  ;;  %v2812_v40 = vmul.f32 %v2556_v20, %v2556_v20 }
 0x480   :  { %v3061_v36 = vadd.f32 %v3060_v43, %v2806_v57  ;;  %v13510_v43 = vld [vmem:[#allocation55_spill] sm:$0xff] }
 0x481   :  { %v2558_v63 = vsub.f32 %v13510_v43, %v7538_v47  ;;  %v2813_v4 = vmul.f32 %v2557_v31, %v2557_v31 }
 0x482   :  { %v3062_v24 = vadd.f32 %v3061_v36, %v2807_v45  ;;  %v13511_v36 = vld [vmem:[#allocation58_spill] sm:$0xff] }
 0x483   :  { %v2559_v51 = vsub.f32 %v13511_v36, %v7538_v47  ;;  %v2814_v25 = vmul.f32 %v2558_v63, %v2558_v63 }
 0x484   :  { %v3063_v35 = vadd.f32 %v3062_v24, %v2808_v32  ;;  %v13512_v24 = vld [vmem:[#allocation61_spill] sm:$0xff] }
 0x485   :  { %v2560_v12 = vsub.f32 %v13512_v24, %v7538_v47  ;;  %v2815_v7 = vmul.f32 %v2559_v51, %v2559_v51 }
 0x486   :  { %v3064_v21 = vadd.f32 %v3063_v35, %v2809_v28  ;;  %v13513_v35 = vld [vmem:[#allocation64_spill] sm:$0xff] }
 0x487   :  { %v2561_v58 = vsub.f32 %v13513_v35, %v7538_v47  ;;  %v2816_v20 = vmul.f32 %v2560_v12, %v2560_v12 }
 0x488   :  { %v3065_v57 = vadd.f32 %v3064_v21, %v2810_v26  ;;  %v13514_v21 = vld [vmem:[#allocation67_spill] sm:$0xff] }
 0x489   :  { %v2562_v43 = vsub.f32 %v13514_v21, %v7538_v47  ;;  %v2817_v31 = vmul.f32 %v2561_v58, %v2561_v58 }
 0x48a   :  { %v3066_v45 = vadd.f32 %v3065_v57, %v2811_v49  ;;  %v13515_v57 = vld [vmem:[#allocation70_spill] sm:$0xff] }
 0x48b   :  { %v2563_v36 = vsub.f32 %v13515_v57, %v7538_v47  ;;  %v2818_v63 = vmul.f32 %v2562_v43, %v2562_v43 }
 0x48c   :  { %v3067_v32 = vadd.f32 %v3066_v45, %v2812_v40  ;;  %v13516_v45 = vld [vmem:[#allocation73_spill] sm:$0xff] }
 0x48d   :  { %v2564_v24 = vsub.f32 %v13516_v45, %v7538_v47  ;;  %v2819_v51 = vmul.f32 %v2563_v36, %v2563_v36 }
 0x48e   :  { %v3068_v28 = vadd.f32 %v3067_v32, %v2813_v4  ;;  %v13517_v32 = vld [vmem:[#allocation76_spill] sm:$0xff] }
 0x48f   :  { %v2565_v35 = vsub.f32 %v13517_v32, %v7538_v47  ;;  %v2820_v12 = vmul.f32 %v2564_v24, %v2564_v24 }
 0x490   :  { %v3069_v26 = vadd.f32 %v3068_v28, %v2814_v25  ;;  %v13518_v28 = vld [vmem:[#allocation79_spill] sm:$0xff] }
 0x491   :  { %v2566_v21 = vsub.f32 %v13518_v28, %v7538_v47  ;;  %v2821_v58 = vmul.f32 %v2565_v35, %v2565_v35 }
 0x492   :  { %v3070_v49 = vadd.f32 %v3069_v26, %v2815_v7  ;;  %v13519_v26 = vld [vmem:[#allocation82_spill] sm:$0xff] }
 0x493   :  { %v2567_v57 = vsub.f32 %v13519_v26, %v7538_v47  ;;  %v2822_v43 = vmul.f32 %v2566_v21, %v2566_v21 }
 0x494   :  { %v3071_v40 = vadd.f32 %v3070_v49, %v2816_v20  ;;  %v13520_v49 = vld [vmem:[#allocation85_spill] sm:$0xff] }
 0x495   :  { %v2568_v45 = vsub.f32 %v13520_v49, %v7538_v47  ;;  %v2823_v36 = vmul.f32 %v2567_v57, %v2567_v57 }
 0x496   :  { %v3072_v4 = vadd.f32 %v3071_v40, %v2817_v31  ;;  %v13521_v40 = vld [vmem:[#allocation88_spill] sm:$0xff] }
 0x497   :  { %v2569_v32 = vsub.f32 %v13521_v40, %v7538_v47  ;;  %v2824_v24 = vmul.f32 %v2568_v45, %v2568_v45 }
 0x498   :  { %v3073_v25 = vadd.f32 %v3072_v4, %v2818_v63  ;;  %v13522_v4 = vld [vmem:[#allocation91_spill] sm:$0xff] }
 0x499   :  { %v2570_v28 = vsub.f32 %v13522_v4, %v7538_v47  ;;  %v2825_v35 = vmul.f32 %v2569_v32, %v2569_v32 }
 0x49a   :  { %v3074_v7 = vadd.f32 %v3073_v25, %v2819_v51  ;;  %v13523_v25 = vld [vmem:[#allocation94_spill] sm:$0xff] }
 0x49b   :  { %v2571_v26 = vsub.f32 %v13523_v25, %v7538_v47  ;;  %v2826_v21 = vmul.f32 %v2570_v28, %v2570_v28 }
 0x49c   :  { %v3075_v20 = vadd.f32 %v3074_v7, %v2820_v12  ;;  %v13524_v7 = vld [vmem:[#allocation98_spill] sm:$0xff] }
 0x49d   :  { %v2572_v49 = vsub.f32 %v13524_v7, %v7538_v47  ;;  %v2827_v57 = vmul.f32 %v2571_v26, %v2571_v26 }
 0x49e   :  { %v3076_v31 = vadd.f32 %v3075_v20, %v2821_v58  ;;  %v13525_v20 = vld [vmem:[#allocation102_spill] sm:$0xff] }
 0x49f   :  { %v2573_v40 = vsub.f32 %v13525_v20, %v7538_v47  ;;  %v2828_v45 = vmul.f32 %v2572_v49, %v2572_v49 }
 0x4a0   :  { %v3077_v63 = vadd.f32 %v3076_v31, %v2822_v43  ;;  %v13526_v31 = vld [vmem:[#allocation106_spill] sm:$0xff] }
 0x4a1   :  { %v2574_v4 = vsub.f32 %v13526_v31, %v7538_v47  ;;  %v2829_v32 = vmul.f32 %v2573_v40, %v2573_v40 }
 0x4a2   :  { %v3078_v51 = vadd.f32 %v3077_v63, %v2823_v36  ;;  %v13527_v63 = vld [vmem:[#allocation110_spill] sm:$0xff] }
 0x4a3   :  { %v2575_v25 = vsub.f32 %v13527_v63, %v7538_v47  ;;  %v2830_v28 = vmul.f32 %v2574_v4, %v2574_v4 }
 0x4a4   :  { %v3079_v12 = vadd.f32 %v3078_v51, %v2824_v24  ;;  %v13528_v51 = vld [vmem:[#allocation114_spill] sm:$0xff] }
 0x4a5   :  { %v2576_v7 = vsub.f32 %v13528_v51, %v7538_v47  ;;  %v2831_v26 = vmul.f32 %v2575_v25, %v2575_v25 }
 0x4a6   :  { %v3080_v58 = vadd.f32 %v3079_v12, %v2825_v35  ;;  %v13529_v12 = vld [vmem:[#allocation118_spill] sm:$0xff] }
 0x4a7   :  { %v2577_v20 = vsub.f32 %v13529_v12, %v7538_v47  ;;  %v2832_v49 = vmul.f32 %v2576_v7, %v2576_v7 }
 0x4a8   :  { %v3081_v43 = vadd.f32 %v3080_v58, %v2826_v21  ;;  %v13530_v58 = vld [vmem:[#allocation122_spill] sm:$0xff] }
 0x4a9   :  { %v2578_v31 = vsub.f32 %v13530_v58, %v7538_v47  ;;  %v2833_v40 = vmul.f32 %v2577_v20, %v2577_v20 }
 0x4aa   :  { %v3082_v36 = vadd.f32 %v3081_v43, %v2827_v57  ;;  %v13531_v43 = vld [vmem:[#allocation126_spill] sm:$0xff] }
 0x4ab   :  { %v2579_v63 = vsub.f32 %v13531_v43, %v7538_v47  ;;  %v2834_v4 = vmul.f32 %v2578_v31, %v2578_v31 }
 0x4ac   :  { %v3083_v24 = vadd.f32 %v3082_v36, %v2828_v45  ;;  %v13532_v36 = vld [vmem:[#allocation130_spill] sm:$0xff] }
 0x4ad   :  { %v2580_v51 = vsub.f32 %v13532_v36, %v7538_v47  ;;  %v2835_v25 = vmul.f32 %v2579_v63, %v2579_v63 }
 0x4ae   :  { %v3084_v35 = vadd.f32 %v3083_v24, %v2829_v32  ;;  %v13533_v24 = vld [vmem:[#allocation134_spill] sm:$0xff] }
 0x4af   :  { %v2581_v12 = vsub.f32 %v13533_v24, %v7538_v47  ;;  %v2836_v7 = vmul.f32 %v2580_v51, %v2580_v51 }
 0x4b0   :  { %v3085_v21 = vadd.f32 %v3084_v35, %v2830_v28  ;;  %v13534_v35 = vld [vmem:[#allocation138_spill] sm:$0xff] }
 0x4b1   :  { %v2582_v58 = vsub.f32 %v13534_v35, %v7538_v47  ;;  %v2837_v20 = vmul.f32 %v2581_v12, %v2581_v12 }
 0x4b2   :  { %v3086_v57 = vadd.f32 %v3085_v21, %v2831_v26  ;;  %v13535_v21 = vld [vmem:[#allocation142_spill] sm:$0xff] }
 0x4b3   :  { %v2583_v43 = vsub.f32 %v13535_v21, %v7538_v47  ;;  %v2838_v31 = vmul.f32 %v2582_v58, %v2582_v58 }
 0x4b4   :  { %v3087_v45 = vadd.f32 %v3086_v57, %v2832_v49  ;;  %v13536_v57 = vld [vmem:[#allocation146_spill] sm:$0xff] }
 0x4b5   :  { %v2584_v36 = vsub.f32 %v13536_v57, %v7538_v47  ;;  %v2839_v63 = vmul.f32 %v2583_v43, %v2583_v43 }
 0x4b6   :  { %v3088_v32 = vadd.f32 %v3087_v45, %v2833_v40  ;;  %v13537_v45 = vld [vmem:[#allocation149_spill] sm:$0xff] }
 0x4b7   :  { %v2585_v24 = vsub.f32 %v13537_v45, %v7538_v47  ;;  %v2840_v51 = vmul.f32 %v2584_v36, %v2584_v36 }
 0x4b8   :  { %v3089_v28 = vadd.f32 %v3088_v32, %v2834_v4  ;;  %v13538_v32 = vld [vmem:[#allocation152_spill] sm:$0xff] }
 0x4b9   :  { %v2586_v35 = vsub.f32 %v13538_v32, %v7538_v47  ;;  %v2841_v12 = vmul.f32 %v2585_v24, %v2585_v24 }
 0x4ba   :  { %v3090_v26 = vadd.f32 %v3089_v28, %v2835_v25  ;;  %v13539_v28 = vld [vmem:[#allocation155_spill] sm:$0xff] }
 0x4bb   :  { %v2587_v21 = vsub.f32 %v13539_v28, %v7538_v47  ;;  %v2842_v58 = vmul.f32 %v2586_v35, %v2586_v35 }
 0x4bc   :  { %v3091_v49 = vadd.f32 %v3090_v26, %v2836_v7  ;;  %v13540_v26 = vld [vmem:[#allocation159_spill] sm:$0xff] }
 0x4bd   :  { %v2588_v57 = vsub.f32 %v13540_v26, %v7538_v47  ;;  %v2843_v43 = vmul.f32 %v2587_v21, %v2587_v21 }
 0x4be   :  { %v3092_v40 = vadd.f32 %v3091_v49, %v2837_v20  ;;  %v13541_v49 = vld [vmem:[#allocation162_spill] sm:$0xff] }
 0x4bf   :  { %v2589_v45 = vsub.f32 %v13541_v49, %v7538_v47  ;;  %v2844_v36 = vmul.f32 %v2588_v57, %v2588_v57 }
 0x4c0   :  { %v3093_v4 = vadd.f32 %v3092_v40, %v2838_v31  ;;  %v13542_v40 = vld [vmem:[#allocation166_spill] sm:$0xff] }
 0x4c1   :  { %v2590_v32 = vsub.f32 %v13542_v40, %v7538_v47  ;;  %v2845_v24 = vmul.f32 %v2589_v45, %v2589_v45 }
 0x4c2   :  { %v3094_v25 = vadd.f32 %v3093_v4, %v2839_v63  ;;  %v13543_v4 = vld [vmem:[#allocation170_spill] sm:$0xff] }
 0x4c3   :  { %v2591_v28 = vsub.f32 %v13543_v4, %v7538_v47  ;;  %v2846_v35 = vmul.f32 %v2590_v32, %v2590_v32 }
 0x4c4   :  { %v3095_v7 = vadd.f32 %v3094_v25, %v2840_v51  ;;  %v13544_v25 = vld [vmem:[#allocation15_spill] sm:$0xff] }
 0x4c5   :  { %v2592_v26 = vsub.f32 %v13544_v25, %v7538_v47  ;;  %v2847_v21 = vmul.f32 %v2591_v28, %v2591_v28 }
 0x4c6   :  { %v3096_v20 = vadd.f32 %v3095_v7, %v2841_v12  ;;  %v13545_v7 = vld [vmem:[#allocation17_spill] sm:$0xff] }
 0x4c7   :  { %v2593_v49 = vsub.f32 %v13545_v7, %v7538_v47  ;;  %v2848_v57 = vmul.f32 %v2592_v26, %v2592_v26 }
 0x4c8   :  { %v3097_v31 = vadd.f32 %v3096_v20, %v2842_v58  ;;  %v13546_v20 = vld [vmem:[#allocation19_spill] sm:$0xff] }
 0x4c9   :  { %v2594_v40 = vsub.f32 %v13546_v20, %v7538_v47  ;;  %v2849_v45 = vmul.f32 %v2593_v49, %v2593_v49 }
 0x4ca   :  { %v3098_v63 = vadd.f32 %v3097_v31, %v2843_v43  ;;  %v13547_v31 = vld [vmem:[#allocation21_spill] sm:$0xff] }
 0x4cb   :  { %v2595_v4 = vsub.f32 %v13547_v31, %v7538_v47  ;;  %v2850_v32 = vmul.f32 %v2594_v40, %v2594_v40 }
 0x4cc   :  { %v3099_v51 = vadd.f32 %v3098_v63, %v2844_v36  ;;  %v13548_v63 = vld [vmem:[#allocation23_spill] sm:$0xff] }
 0x4cd   :  { %v2596_v25 = vsub.f32 %v13548_v63, %v7538_v47  ;;  %v2851_v28 = vmul.f32 %v2595_v4, %v2595_v4 }
 0x4ce   :  { %v3100_v12 = vadd.f32 %v3099_v51, %v2845_v24  ;;  %v13549_v51 = vld [vmem:[#allocation25_spill] sm:$0xff] }
 0x4cf   :  { %v2597_v7 = vsub.f32 %v13549_v51, %v7538_v47  ;;  %v2852_v26 = vmul.f32 %v2596_v25, %v2596_v25 }
 0x4d0   :  { %v3101_v58 = vadd.f32 %v3100_v12, %v2846_v35  ;;  %v13550_v12 = vld [vmem:[#allocation27_spill] sm:$0xff] }
 0x4d1   :  { %v2598_v20 = vsub.f32 %v13550_v12, %v7538_v47  ;;  %v2853_v49 = vmul.f32 %v2597_v7, %v2597_v7 }
 0x4d2   :  { %v3102_v43 = vadd.f32 %v3101_v58, %v2847_v21  ;;  %v13551_v58 = vld [vmem:[#allocation29_spill] sm:$0xff] }
 0x4d3   :  { %v2599_v31 = vsub.f32 %v13551_v58, %v7538_v47  ;;  %v2854_v40 = vmul.f32 %v2598_v20, %v2598_v20 }
 0x4d4   :  { %v3103_v36 = vadd.f32 %v3102_v43, %v2848_v57  ;;  %v13552_v43 = vld [vmem:[#allocation31_spill] sm:$0xff] }
 0x4d5   :  { %v2600_v63 = vsub.f32 %v13552_v43, %v7538_v47  ;;  %v2855_v4 = vmul.f32 %v2599_v31, %v2599_v31 }
 0x4d6   :  { %v3104_v24 = vadd.f32 %v3103_v36, %v2849_v45  ;;  %v13553_v36 = vld [vmem:[#allocation33_spill] sm:$0xff] }
 0x4d7   :  { %v2601_v51 = vsub.f32 %v13553_v36, %v7538_v47  ;;  %v2856_v25 = vmul.f32 %v2600_v63, %v2600_v63 }
 0x4d8   :  { %v3105_v35 = vadd.f32 %v3104_v24, %v2850_v32  ;;  %v13554_v24 = vld [vmem:[#allocation35_spill] sm:$0xff] }
 0x4d9   :  { %v2602_v12 = vsub.f32 %v13554_v24, %v7538_v47  ;;  %v2857_v7 = vmul.f32 %v2601_v51, %v2601_v51 }
 0x4da   :  { %v3106_v21 = vadd.f32 %v3105_v35, %v2851_v28  ;;  %v13555_v35 = vld [vmem:[#allocation37_spill] sm:$0xff] }
 0x4db   :  { %v2603_v58 = vsub.f32 %v13555_v35, %v7538_v47  ;;  %v2858_v20 = vmul.f32 %v2602_v12, %v2602_v12 }
 0x4dc   :  { %v3107_v57 = vadd.f32 %v3106_v21, %v2852_v26  ;;  %v13556_v21 = vld [vmem:[#allocation39_spill] sm:$0xff] }
 0x4dd   :  { %v2604_v43 = vsub.f32 %v13556_v21, %v7538_v47  ;;  %v2859_v31 = vmul.f32 %v2603_v58, %v2603_v58 }
 0x4de   :  { %v3108_v45 = vadd.f32 %v3107_v57, %v2853_v49  ;;  %v13557_v57 = vld [vmem:[#allocation41_spill] sm:$0xff] }
 0x4df   :  { %v2605_v36 = vsub.f32 %v13557_v57, %v7538_v47  ;;  %v2860_v63 = vmul.f32 %v2604_v43, %v2604_v43 }
 0x4e0   :  { %v3109_v32 = vadd.f32 %v3108_v45, %v2854_v40  ;;  %v13558_v45 = vld [vmem:[#allocation43_spill] sm:$0xff] }
 0x4e1   :  { %v2606_v24 = vsub.f32 %v13558_v45, %v7538_v47  ;;  %v2861_v51 = vmul.f32 %v2605_v36, %v2605_v36 }
 0x4e2   :  { %v3110_v28 = vadd.f32 %v3109_v32, %v2855_v4  ;;  %v13559_v32 = vld [vmem:[#allocation45_spill] sm:$0xff] }
 0x4e3   :  { %v2607_v35 = vsub.f32 %v13559_v32, %v7538_v47  ;;  %v2862_v12 = vmul.f32 %v2606_v24, %v2606_v24 }
 0x4e4   :  { %v3111_v26 = vadd.f32 %v3110_v28, %v2856_v25  ;;  %v13560_v28 = vld [vmem:[#allocation47_spill] sm:$0xff] }
 0x4e5   :  { %v2608_v21 = vsub.f32 %v13560_v28, %v7538_v47  ;;  %v2863_v58 = vmul.f32 %v2607_v35, %v2607_v35 }
 0x4e6   :  { %v3112_v49 = vadd.f32 %v3111_v26, %v2857_v7  ;;  %v13561_v26 = vld [vmem:[#allocation50_spill] sm:$0xff] }
 0x4e7   :  { %v2609_v57 = vsub.f32 %v13561_v26, %v7538_v47  ;;  %v2864_v43 = vmul.f32 %v2608_v21, %v2608_v21 }
 0x4e8   :  { %v3113_v40 = vadd.f32 %v3112_v49, %v2858_v20  ;;  %v13562_v49 = vld [vmem:[#allocation53_spill] sm:$0xff] }
 0x4e9   :  { %v2610_v45 = vsub.f32 %v13562_v49, %v7538_v47  ;;  %v2865_v36 = vmul.f32 %v2609_v57, %v2609_v57 }
 0x4ea   :  { %v3114_v4 = vadd.f32 %v3113_v40, %v2859_v31  ;;  %v13563_v40 = vld [vmem:[#allocation56_spill] sm:$0xff] }
 0x4eb   :  { %v2611_v32 = vsub.f32 %v13563_v40, %v7538_v47  ;;  %v2866_v24 = vmul.f32 %v2610_v45, %v2610_v45 }
 0x4ec   :  { %v3115_v25 = vadd.f32 %v3114_v4, %v2860_v63  ;;  %v13564_v4 = vld [vmem:[#allocation59_spill] sm:$0xff] }
 0x4ed   :  { %v2612_v28 = vsub.f32 %v13564_v4, %v7538_v47  ;;  %v2867_v35 = vmul.f32 %v2611_v32, %v2611_v32 }
 0x4ee   :  { %v3116_v7 = vadd.f32 %v3115_v25, %v2861_v51  ;;  %v13565_v25 = vld [vmem:[#allocation62_spill] sm:$0xff] }
 0x4ef   :  { %v2613_v26 = vsub.f32 %v13565_v25, %v7538_v47  ;;  %v2868_v21 = vmul.f32 %v2612_v28, %v2612_v28 }
 0x4f0   :  { %v3117_v20 = vadd.f32 %v3116_v7, %v2862_v12  ;;  %v13566_v7 = vld [vmem:[#allocation65_spill] sm:$0xff] }
 0x4f1   :  { %v2614_v49 = vsub.f32 %v13566_v7, %v7538_v47  ;;  %v2869_v57 = vmul.f32 %v2613_v26, %v2613_v26 }
 0x4f2   :  { %v3118_v31 = vadd.f32 %v3117_v20, %v2863_v58  ;;  %v13567_v20 = vld [vmem:[#allocation68_spill] sm:$0xff] }
 0x4f3   :  { %v2615_v40 = vsub.f32 %v13567_v20, %v7538_v47  ;;  %v2870_v45 = vmul.f32 %v2614_v49, %v2614_v49 }
 0x4f4   :  { %v3119_v63 = vadd.f32 %v3118_v31, %v2864_v43  ;;  %v13568_v31 = vld [vmem:[#allocation71_spill] sm:$0xff] }
 0x4f5   :  { %v2616_v4 = vsub.f32 %v13568_v31, %v7538_v47  ;;  %v2871_v32 = vmul.f32 %v2615_v40, %v2615_v40 }
 0x4f6   :  { %v3120_v51 = vadd.f32 %v3119_v63, %v2865_v36  ;;  %v13569_v63 = vld [vmem:[#allocation74_spill] sm:$0xff] }
 0x4f7   :  { %v2617_v25 = vsub.f32 %v13569_v63, %v7538_v47  ;;  %v2872_v28 = vmul.f32 %v2616_v4, %v2616_v4 }
 0x4f8   :  { %v3121_v12 = vadd.f32 %v3120_v51, %v2866_v24  ;;  %v13570_v51 = vld [vmem:[#allocation77_spill] sm:$0xff] }
 0x4f9   :  { %v2618_v7 = vsub.f32 %v13570_v51, %v7538_v47  ;;  %v2873_v26 = vmul.f32 %v2617_v25, %v2617_v25 }
 0x4fa   :  { %v3122_v58 = vadd.f32 %v3121_v12, %v2867_v35  ;;  %v13571_v12 = vld [vmem:[#allocation80_spill] sm:$0xff] }
 0x4fb   :  { %v2619_v20 = vsub.f32 %v13571_v12, %v7538_v47  ;;  %v2874_v49 = vmul.f32 %v2618_v7, %v2618_v7 }
 0x4fc   :  { %v3123_v43 = vadd.f32 %v3122_v58, %v2868_v21  ;;  %v13572_v58 = vld [vmem:[#allocation83_spill] sm:$0xff] }
 0x4fd   :  { %v2620_v31 = vsub.f32 %v13572_v58, %v7538_v47  ;;  %v2875_v40 = vmul.f32 %v2619_v20, %v2619_v20 }
 0x4fe   :  { %v3124_v36 = vadd.f32 %v3123_v43, %v2869_v57  ;;  %v13573_v43 = vld [vmem:[#allocation86_spill] sm:$0xff] }
 0x4ff   :  { %v2621_v63 = vsub.f32 %v13573_v43, %v7538_v47  ;;  %v2876_v4 = vmul.f32 %v2620_v31, %v2620_v31 }
 0x500   :  { %v3125_v24 = vadd.f32 %v3124_v36, %v2870_v45  ;;  %v13574_v36 = vld [vmem:[#allocation89_spill] sm:$0xff] }
 0x501   :  { %v2622_v51 = vsub.f32 %v13574_v36, %v7538_v47  ;;  %v2877_v25 = vmul.f32 %v2621_v63, %v2621_v63 }
 0x502   :  { %v3126_v35 = vadd.f32 %v3125_v24, %v2871_v32  ;;  %v13575_v24 = vld [vmem:[#allocation92_spill] sm:$0xff] }
 0x503   :  { %v2623_v12 = vsub.f32 %v13575_v24, %v7538_v47  ;;  %v2878_v7 = vmul.f32 %v2622_v51, %v2622_v51 }
 0x504   :  { %v3127_v21 = vadd.f32 %v3126_v35, %v2872_v28  ;;  %v13576_v35 = vld [vmem:[#allocation95_spill] sm:$0xff] }
 0x505   :  { %v2624_v58 = vsub.f32 %v13576_v35, %v7538_v47  ;;  %v2879_v20 = vmul.f32 %v2623_v12, %v2623_v12 }
 0x506   :  { %v3128_v57 = vadd.f32 %v3127_v21, %v2873_v26  ;;  %v13577_v21 = vld [vmem:[#allocation99_spill] sm:$0xff] }
 0x507   :  { %v2625_v43 = vsub.f32 %v13577_v21, %v7538_v47  ;;  %v2880_v31 = vmul.f32 %v2624_v58, %v2624_v58 }
 0x508   :  { %v3129_v45 = vadd.f32 %v3128_v57, %v2874_v49  ;;  %v13578_v57 = vld [vmem:[#allocation103_spill] sm:$0xff] }
 0x509   :  { %v2626_v36 = vsub.f32 %v13578_v57, %v7538_v47  ;;  %v2881_v63 = vmul.f32 %v2625_v43, %v2625_v43 }
 0x50a   :  { %v3130_v32 = vadd.f32 %v3129_v45, %v2875_v40  ;;  %v13579_v45 = vld [vmem:[#allocation107_spill] sm:$0xff] }
 0x50b   :  { %v2627_v24 = vsub.f32 %v13579_v45, %v7538_v47  ;;  %v2882_v51 = vmul.f32 %v2626_v36, %v2626_v36 }
 0x50c   :  { %v3131_v28 = vadd.f32 %v3130_v32, %v2876_v4  ;;  %v13580_v32 = vld [vmem:[#allocation111_spill] sm:$0xff] }
 0x50d   :  { %v2628_v35 = vsub.f32 %v13580_v32, %v7538_v47  ;;  %v2883_v12 = vmul.f32 %v2627_v24, %v2627_v24 }
 0x50e   :  { %v3132_v26 = vadd.f32 %v3131_v28, %v2877_v25  ;;  %v13581_v28 = vld [vmem:[#allocation115_spill] sm:$0xff] }
 0x50f   :  { %v2629_v21 = vsub.f32 %v13581_v28, %v7538_v47  ;;  %v2884_v58 = vmul.f32 %v2628_v35, %v2628_v35 }
 0x510   :  { %v3133_v49 = vadd.f32 %v3132_v26, %v2878_v7  ;;  %v13582_v26 = vld [vmem:[#allocation119_spill] sm:$0xff] }
 0x511   :  { %v2630_v57 = vsub.f32 %v13582_v26, %v7538_v47  ;;  %v2885_v43 = vmul.f32 %v2629_v21, %v2629_v21 }
 0x512   :  { %v3134_v40 = vadd.f32 %v3133_v49, %v2879_v20  ;;  %v13583_v49 = vld [vmem:[#allocation123_spill] sm:$0xff] }
 0x513   :  { %v2631_v45 = vsub.f32 %v13583_v49, %v7538_v47  ;;  %v2886_v36 = vmul.f32 %v2630_v57, %v2630_v57 }
 0x514   :  { %v3135_v4 = vadd.f32 %v3134_v40, %v2880_v31  ;;  %v13584_v40 = vld [vmem:[#allocation127_spill] sm:$0xff] }
 0x515   :  { %v2632_v32 = vsub.f32 %v13584_v40, %v7538_v47  ;;  %v2887_v24 = vmul.f32 %v2631_v45, %v2631_v45 }
 0x516   :  { %v3136_v25 = vadd.f32 %v3135_v4, %v2881_v63  ;;  %v13585_v4 = vld [vmem:[#allocation131_spill] sm:$0xff] }
 0x517   :  { %v2633_v28 = vsub.f32 %v13585_v4, %v7538_v47  ;;  %v2888_v35 = vmul.f32 %v2632_v32, %v2632_v32 }
 0x518   :  { %v3137_v7 = vadd.f32 %v3136_v25, %v2882_v51  ;;  %v13586_v25 = vld [vmem:[#allocation135_spill] sm:$0xff] }
 0x519   :  { %v2634_v26 = vsub.f32 %v13586_v25, %v7538_v47  ;;  %v2889_v21 = vmul.f32 %v2633_v28, %v2633_v28 }
 0x51a   :  { %v3138_v20 = vadd.f32 %v3137_v7, %v2883_v12  ;;  %v13587_v7 = vld [vmem:[#allocation139_spill] sm:$0xff] }
 0x51b   :  { %v2635_v49 = vsub.f32 %v13587_v7, %v7538_v47  ;;  %v2890_v57 = vmul.f32 %v2634_v26, %v2634_v26 }
 0x51c   :  { %v3139_v31 = vadd.f32 %v3138_v20, %v2884_v58  ;;  %v13588_v20 = vld [vmem:[#allocation145_spill] sm:$0xff] }
 0x51d   :  { %v2636_v40 = vsub.f32 %v13588_v20, %v7538_v47  ;;  %v2891_v45 = vmul.f32 %v2635_v49, %v2635_v49 }
 0x51e   :  { %v3140_v63 = vadd.f32 %v3139_v31, %v2885_v43  ;;  %v13589_v31 = vld [vmem:[#allocation148_spill] sm:$0xff] }
 0x51f   :  { %v2637_v4 = vsub.f32 %v13589_v31, %v7538_v47  ;;  %v2892_v32 = vmul.f32 %v2636_v40, %v2636_v40 }
 0x520   :  { %v3141_v51 = vadd.f32 %v3140_v63, %v2886_v36  ;;  %v13590_v63 = vld [vmem:[#allocation151_spill] sm:$0xff] }
 0x521   :  { %v2638_v25 = vsub.f32 %v13590_v63, %v7538_v47  ;;  %v2893_v28 = vmul.f32 %v2637_v4, %v2637_v4 }
 0x522   :  { %v3142_v12 = vadd.f32 %v3141_v51, %v2887_v24  ;;  %v13591_v51 = vld [vmem:[#allocation156_spill] sm:$0xff] }
 0x523   :  { %v2639_v7 = vsub.f32 %v13591_v51, %v7538_v47  ;;  %v2894_v26 = vmul.f32 %v2638_v25, %v2638_v25 }
 0x524   :  { %v3143_v58 = vadd.f32 %v3142_v12, %v2888_v35  ;;  %v13592_v12 = vld [vmem:[#allocation161_spill] sm:$0xff] }
 0x525   :  { %v2640_v20 = vsub.f32 %v13592_v12, %v7538_v47  ;;  %v2895_v49 = vmul.f32 %v2639_v7, %v2639_v7 }
 0x526   :  { %v3144_v43 = vadd.f32 %v3143_v58, %v2889_v21  ;;  %v13593_v58 = vld [vmem:[#allocation165_spill] sm:$0xff] }
 0x527   :  { %v2641_v31 = vsub.f32 %v13593_v58, %v7538_v47  ;;  %v2896_v40 = vmul.f32 %v2640_v20, %v2640_v20 }
 0x528   :  { %v3145_v36 = vadd.f32 %v3144_v43, %v2890_v57  ;;  %v13594_v43 = vld [vmem:[#allocation169_spill] sm:$0xff] }
 0x529   :  { %v2642_v63 = vsub.f32 %v13594_v43, %v7538_v47  ;;  %v2897_v4 = vmul.f32 %v2641_v31, %v2641_v31 }
 0x52a   :  { %v3146_v24 = vadd.f32 %v3145_v36, %v2891_v45  ;;  %v13595_v36 = vld [vmem:[#allocation173_spill] sm:$0xff] }
 0x52b   :  { %v2643_v51 = vsub.f32 %v13595_v36, %v7538_v47  ;;  %v2898_v25 = vmul.f32 %v2642_v63, %v2642_v63 }
 0x52c   :  { %v3147_v35 = vadd.f32 %v3146_v24, %v2892_v32  ;;  %v13596_v24 = vld [vmem:[#allocation177_spill] sm:$0xff] }
 0x52d   :  { %v2644_v12 = vsub.f32 %v13596_v24, %v7538_v47  ;;  %v2899_v7 = vmul.f32 %v2643_v51, %v2643_v51 }
 0x52e   :  { %v3148_v21 = vadd.f32 %v3147_v35, %v2893_v28  ;;  %v13597_v35 = vld [vmem:[#allocation180_spill] sm:$0xff] }
 0x52f   :  { %v2645_v58 = vsub.f32 %v13597_v35, %v7538_v47  ;;  %v2900_v20 = vmul.f32 %v2644_v12, %v2644_v12 }
 0x530   :  { %v3149_v57 = vadd.f32 %v3148_v21, %v2894_v26  ;;  %v13598_v21 = vld [vmem:[#allocation182_spill] sm:$0xff] }
 0x531   :  { %v2646_v43 = vsub.f32 %v13598_v21, %v7538_v47  ;;  %v2901_v31 = vmul.f32 %v2645_v58, %v2645_v58 }
 0x532   :  { %v3150_v45 = vadd.f32 %v3149_v57, %v2895_v49  ;;  %v13599_v57 = vld [vmem:[#allocation184_spill] sm:$0xff] }
 0x533   :  { %v2647_v36 = vsub.f32 %v13599_v57, %v7538_v47  ;;  %v2902_v63 = vmul.f32 %v2646_v43, %v2646_v43 }
 0x534   :  { %v3151_v32 = vadd.f32 %v3150_v45, %v2896_v40  ;;  %v13600_v45 = vld [vmem:[#allocation187_spill] sm:$0xff] }
 0x535   :  { %v2648_v24 = vsub.f32 %v13600_v45, %v7538_v47  ;;  %v2903_v51 = vmul.f32 %v2647_v36, %v2647_v36 }
 0x536   :  { %v3152_v28 = vadd.f32 %v3151_v32, %v2897_v4  ;;  %v13601_v32 = vld [vmem:[#allocation190_spill] sm:$0xff] }
 0x537   :  { %v2649_v35 = vsub.f32 %v13601_v32, %v7538_v47  ;;  %v2904_v12 = vmul.f32 %v2648_v24, %v2648_v24 }
 0x538   :  { %v3153_v26 = vadd.f32 %v3152_v28, %v2898_v25  ;;  %v13602_v28 = vld [vmem:[#allocation192_spill] sm:$0xff] }
 0x539   :  { %v2650_v21 = vsub.f32 %v13602_v28, %v7538_v47  ;;  %v2905_v58 = vmul.f32 %v2649_v35, %v2649_v35 }
 0x53a   :  { %v3154_v49 = vadd.f32 %v3153_v26, %v2899_v7  ;;  %v13603_v26 = vld [vmem:[#allocation194_spill] sm:$0xff] }
 0x53b   :  { %v2651_v57 = vsub.f32 %v13603_v26, %v7538_v47  ;;  %v2906_v43 = vmul.f32 %v2650_v21, %v2650_v21 }
 0x53c   :  { %v3155_v40 = vadd.f32 %v3154_v49, %v2900_v20  ;;  %v13604_v49 = vld [vmem:[#allocation197_spill] sm:$0xff] }
 0x53d   :  { %v2652_v45 = vsub.f32 %v13604_v49, %v7538_v47  ;;  %v2907_v36 = vmul.f32 %v2651_v57, %v2651_v57 }
 0x53e   :  { %v3156_v4 = vadd.f32 %v3155_v40, %v2901_v31  ;;  %v13605_v40 = vld [vmem:[#allocation199_spill] sm:$0xff] }
 0x53f   :  { %v2653_v32 = vsub.f32 %v13605_v40, %v7538_v47  ;;  %v2908_v24 = vmul.f32 %v2652_v45, %v2652_v45 }
 0x540   :  { %v3157_v25 = vadd.f32 %v3156_v4, %v2902_v63  ;;  %v13606_v4 = vld [vmem:[#allocation201_spill] sm:$0xff] }
 0x541   :  { %v2654_v28 = vsub.f32 %v13606_v4, %v7538_v47  ;;  %v2909_v35 = vmul.f32 %v2653_v32, %v2653_v32 }
 0x542   :  { %v3158_v7 = vadd.f32 %v3157_v25, %v2903_v51  ;;  %v13607_v25 = vld [vmem:[#allocation204_spill] sm:$0xff] }
 0x543   :  { %v2655_v26 = vsub.f32 %v13607_v25, %v7538_v47  ;;  %v2910_v21 = vmul.f32 %v2654_v28, %v2654_v28 }
 0x544   :  { %v3159_v20 = vadd.f32 %v3158_v7, %v2904_v12  ;;  %v13608_v7 = vld [vmem:[#allocation48_spill] sm:$0xff] }
 0x545   :  { %v2656_v49 = vsub.f32 %v13608_v7, %v7538_v47  ;;  %v2911_v57 = vmul.f32 %v2655_v26, %v2655_v26 }
 0x546   :  { %v3160_v31 = vadd.f32 %v3159_v20, %v2905_v58  ;;  %v13609_v20 = vld [vmem:[#allocation51_spill] sm:$0xff] }
 0x547   :  { %v2657_v40 = vsub.f32 %v13609_v20, %v7538_v47  ;;  %v2912_v45 = vmul.f32 %v2656_v49, %v2656_v49 }
 0x548   :  { %v3161_v63 = vadd.f32 %v3160_v31, %v2906_v43  ;;  %v13610_v31 = vld [vmem:[#allocation54_spill] sm:$0xff] }
 0x549   :  { %v2658_v4 = vsub.f32 %v13610_v31, %v7538_v47  ;;  %v2913_v32 = vmul.f32 %v2657_v40, %v2657_v40 }
 0x54a   :  { %v3162_v51 = vadd.f32 %v3161_v63, %v2907_v36  ;;  %v13611_v63 = vld [vmem:[#allocation57_spill] sm:$0xff] }
 0x54b   :  { %v2659_v25 = vsub.f32 %v13611_v63, %v7538_v47  ;;  %v2914_v28 = vmul.f32 %v2658_v4, %v2658_v4 }
 0x54c   :  { %v3163_v12 = vadd.f32 %v3162_v51, %v2908_v24  ;;  %v13612_v51 = vld [vmem:[#allocation60_spill] sm:$0xff] }
 0x54d   :  { %v2660_v7 = vsub.f32 %v13612_v51, %v7538_v47  ;;  %v2915_v26 = vmul.f32 %v2659_v25, %v2659_v25 }
 0x54e   :  { %v3164_v58 = vadd.f32 %v3163_v12, %v2909_v35  ;;  %v13613_v12 = vld [vmem:[#allocation63_spill] sm:$0xff] }
 0x54f   :  { %v2661_v20 = vsub.f32 %v13613_v12, %v7538_v47  ;;  %v2916_v49 = vmul.f32 %v2660_v7, %v2660_v7 }
 0x550   :  { %v3165_v43 = vadd.f32 %v3164_v58, %v2910_v21  ;;  %v13614_v58 = vld [vmem:[#allocation66_spill] sm:$0xff] }
 0x551   :  { %v2662_v31 = vsub.f32 %v13614_v58, %v7538_v47  ;;  %v2917_v40 = vmul.f32 %v2661_v20, %v2661_v20 }
 0x552   :  { %v3166_v36 = vadd.f32 %v3165_v43, %v2911_v57  ;;  %v13615_v43 = vld [vmem:[#allocation69_spill] sm:$0xff] }
 0x553   :  { %v2663_v63 = vsub.f32 %v13615_v43, %v7538_v47  ;;  %v2918_v4 = vmul.f32 %v2662_v31, %v2662_v31 }
 0x554   :  { %v3167_v24 = vadd.f32 %v3166_v36, %v2912_v45  ;;  %v13616_v36 = vld [vmem:[#allocation72_spill] sm:$0xff] }
 0x555   :  { %v2664_v51 = vsub.f32 %v13616_v36, %v7538_v47  ;;  %v2919_v25 = vmul.f32 %v2663_v63, %v2663_v63 }
 0x556   :  { %v3168_v35 = vadd.f32 %v3167_v24, %v2913_v32  ;;  %v13617_v24 = vld [vmem:[#allocation75_spill] sm:$0xff] }
 0x557   :  { %v2665_v12 = vsub.f32 %v13617_v24, %v7538_v47  ;;  %v2920_v7 = vmul.f32 %v2664_v51, %v2664_v51 }
 0x558   :  { %v3169_v21 = vadd.f32 %v3168_v35, %v2914_v28  ;;  %v13618_v35 = vld [vmem:[#allocation78_spill] sm:$0xff] }
 0x559   :  { %v2666_v58 = vsub.f32 %v13618_v35, %v7538_v47  ;;  %v2921_v20 = vmul.f32 %v2665_v12, %v2665_v12 }
 0x55a   :  { %v3170_v57 = vadd.f32 %v3169_v21, %v2915_v26  ;;  %v13619_v21 = vld [vmem:[#allocation81_spill] sm:$0xff] }
 0x55b   :  { %v2667_v43 = vsub.f32 %v13619_v21, %v7538_v47  ;;  %v2922_v31 = vmul.f32 %v2666_v58, %v2666_v58 }
 0x55c   :  { %v3171_v45 = vadd.f32 %v3170_v57, %v2916_v49  ;;  %v13620_v57 = vld [vmem:[#allocation84_spill] sm:$0xff] }
 0x55d   :  { %v2668_v36 = vsub.f32 %v13620_v57, %v7538_v47  ;;  %v2923_v63 = vmul.f32 %v2667_v43, %v2667_v43 }
 0x55e   :  { %v3172_v32 = vadd.f32 %v3171_v45, %v2917_v40  ;;  %v2669_v45 = vsub.f32 %v13412_v13, %v7538_v47 }
 0x55f   :  { %v2924_v51 = vmul.f32 %v2668_v36, %v2668_v36 }
 0x560   :  { %v3173_v28 = vadd.f32 %v3172_v32, %v2918_v4  ;;  %v2670_v32 = vsub.f32 %v13413_v2, %v7538_v47  ;;  %v2925_v12 = vmul.f32 %v2669_v45, %v2669_v45 }
 0x562   :  { %v3174_v26 = vadd.f32 %v3173_v28, %v2919_v25  ;;  %v2671_v28 = vsub.f32 %v13414_v30, %v7538_v47  ;;  %v2926_v58 = vmul.f32 %v2670_v32, %v2670_v32 }
 0x564   :  { %v3175_v49 = vadd.f32 %v3174_v26, %v2920_v7  ;;  %v2672_v26 = vsub.f32 %v13415_v8, %v7538_v47  ;;  %v2927_v43 = vmul.f32 %v2671_v28, %v2671_v28 }
 0x566   :  { %v3176_v40 = vadd.f32 %v3175_v49, %v2921_v20  ;;  %v13621_v49 = vld [vmem:[#allocation100_spill] sm:$0xff]  ;;  %v2928_v36 = vmul.f32 %v2672_v26, %v2672_v26 }
 0x567   :  { %v2673_v13 = vsub.f32 %v13621_v49, %v7538_v47 }
 0x568   :  { %v3177_v4 = vadd.f32 %v3176_v40, %v2922_v31  ;;  %v2674_v40 = vsub.f32 %v13418_v17, %v7538_v47 }
 0x569   :  { %v2929_v45 = vmul.f32 %v2673_v13, %v2673_v13 }
 0x56a   :  { %v3178_v25 = vadd.f32 %v3177_v4, %v2923_v63  ;;  %v13622_v4 = vld [vmem:[#allocation108_spill] sm:$0xff]  ;;  %v2930_v32 = vmul.f32 %v2674_v40, %v2674_v40 }
 0x56b   :  { %v2675_v30 = vsub.f32 %v13622_v4, %v7538_v47 }
 0x56c   :  { %v3179_v7 = vadd.f32 %v3178_v25, %v2924_v51  ;;  %v13623_v25 = vld [vmem:[#allocation112_spill] sm:$0xff] }
 0x56d   :  { %v2676_v8 = vsub.f32 %v13623_v25, %v7538_v47  ;;  %v2931_v28 = vmul.f32 %v2675_v30, %v2675_v30 }
 0x56e   :  { %v3180_v20 = vadd.f32 %v3179_v7, %v2925_v12  ;;  %v2677_v7 = vsub.f32 %v13421_v55, %v7538_v47 }
 0x56f   :  { %v2932_v26 = vmul.f32 %v2676_v8, %v2676_v8 }
 0x570   :  { %v3181_v31 = vadd.f32 %v3180_v20, %v2926_v58  ;;  %v2678_v20 = vsub.f32 %v6901_v38, %v7538_v47  ;;  %v2933_v13 = vmul.f32 %v2677_v7, %v2677_v7 }
 0x572   :  { %v3182_v63 = vadd.f32 %v3181_v31, %v2927_v43  ;;  %v2679_v31 = vsub.f32 %v6916_v33, %v7538_v47  ;;  %v2934_v40 = vmul.f32 %v2678_v20, %v2678_v20 }
 0x574   :  { %v3183_v51 = vadd.f32 %v3182_v63, %v2928_v36  ;;  %v2680_v63 = vsub.f32 %v6934_v37, %v7538_v47  ;;  %v2935_v30 = vmul.f32 %v2679_v31, %v2679_v31 }
 0x576   :  { %v3184_v12 = vadd.f32 %v3183_v51, %v2929_v45  ;;  %v13624_v51 = vld [vmem:[#allocation132_spill] sm:$0xff]  ;;  %v2936_v8 = vmul.f32 %v2680_v63, %v2680_v63 }
 0x577   :  { %v2681_v55 = vsub.f32 %v13624_v51, %v7538_v47 }
 0x578   :  { %v3185_v58 = vadd.f32 %v3184_v12, %v2930_v32  ;;  %v13625_v12 = vld [vmem:[#allocation136_spill] sm:$0xff] }
 0x579   :  { %v2682_v38 = vsub.f32 %v13625_v12, %v7538_v47  ;;  %v2937_v7 = vmul.f32 %v2681_v55, %v2681_v55 }
 0x57a   :  { %v3186_v43 = vadd.f32 %v3185_v58, %v2931_v28  ;;  %v13626_v58 = vld [vmem:[#allocation140_spill] sm:$0xff] }
 0x57b   :  { %v2683_v33 = vsub.f32 %v13626_v58, %v7538_v47  ;;  %v2938_v20 = vmul.f32 %v2682_v38, %v2682_v38 }
 0x57c   :  { %v3187_v36 = vadd.f32 %v3186_v43, %v2932_v26  ;;  %v13627_v43 = vld [vmem:[#allocation143_spill] sm:$0xff] }
 0x57d   :  { %v2684_v37 = vsub.f32 %v13627_v43, %v7538_v47  ;;  %v2939_v31 = vmul.f32 %v2683_v33, %v2683_v33 }
 0x57e   :  { %v3188_v45 = vadd.f32 %v3187_v36, %v2933_v13  ;;  %v2685_v36 = vsub.f32 %v7013_v46, %v7538_v47 }
 0x57f   :  { %v2940_v63 = vmul.f32 %v2684_v37, %v2684_v37 }
 0x580   :  { %v3189_v32 = vadd.f32 %v3188_v45, %v2934_v40  ;;  %v2686_v45 = vsub.f32 %v7031_v62, %v7538_v47  ;;  %v2941_v55 = vmul.f32 %v2685_v36, %v2685_v36 }
 0x582   :  { %v3190_v28 = vadd.f32 %v3189_v32, %v2935_v30  ;;  %v2687_v32 = vsub.f32 %v7046_v9, %v7538_v47  ;;  %v2942_v38 = vmul.f32 %v2686_v45, %v2686_v45 }
 0x584   :  { %v3191_v26 = vadd.f32 %v3190_v28, %v2936_v8  ;;  %v2688_v28 = vsub.f32 %v7064_v15, %v7538_v47  ;;  %v2943_v33 = vmul.f32 %v2687_v32, %v2687_v32 }
 0x586   :  { %v3192_v13 = vadd.f32 %v3191_v26, %v2937_v7  ;;  %v2689_v26 = vsub.f32 %v7074_v14, %v7538_v47  ;;  %v2944_v37 = vmul.f32 %v2688_v28, %v2688_v28 }
 0x588   :  { %v3193_v40 = vadd.f32 %v3192_v13, %v2938_v20  ;;  %v2690_v13 = vsub.f32 %v7092_v5, %v7538_v47  ;;  %v2945_v36 = vmul.f32 %v2689_v26, %v2689_v26 }
 0x58a   :  { %v3194_v30 = vadd.f32 %v3193_v40, %v2939_v31  ;;  %v13628_v40 = vld [vmem:[#allocation167_spill] sm:$0xff]  ;;  %v2946_v45 = vmul.f32 %v2690_v13, %v2690_v13 }
 0x58b   :  { %v2691_v9 = vsub.f32 %v13628_v40, %v7538_v47 }
 0x58c   :  { %v3195_v8 = vadd.f32 %v3194_v30, %v2940_v63  ;;  %v13629_v30 = vld [vmem:[#allocation171_spill] sm:$0xff] }
 0x58d   :  { %v2692_v15 = vsub.f32 %v13629_v30, %v7538_v47  ;;  %v2947_v32 = vmul.f32 %v2691_v9, %v2691_v9 }
 0x58e   :  { %v3196_v7 = vadd.f32 %v3195_v8, %v2941_v55  ;;  %v13630_v8 = vld [vmem:[#allocation174_spill] sm:$0xff] }
 0x58f   :  { %v2693_v14 = vsub.f32 %v13630_v8, %v7538_v47  ;;  %v2948_v28 = vmul.f32 %v2692_v15, %v2692_v15 }
 0x590   :  { %v3197_v20 = vadd.f32 %v3196_v7, %v2942_v38  ;;  %v13631_v7 = vld [vmem:[#allocation176_spill] sm:$0xff] }
 0x591   :  { %v2694_v5 = vsub.f32 %v13631_v7, %v7538_v47  ;;  %v2949_v26 = vmul.f32 %v2693_v14, %v2693_v14 }
 0x592   :  { %v3198_v31 = vadd.f32 %v3197_v20, %v2943_v33  ;;  %v2695_v20 = vsub.f32 %v7154_v16, %v7538_v47 }
 0x593   :  { %v2950_v13 = vmul.f32 %v2694_v5, %v2694_v5 }
 0x594   :  { %v3199_v63 = vadd.f32 %v3198_v31, %v2944_v37  ;;  %v2696_v31 = vsub.f32 %v7168_v19, %v7538_v47  ;;  %v2951_v9 = vmul.f32 %v2695_v20, %v2695_v20 }
 0x596   :  { %v3200_v55 = vadd.f32 %v3199_v63, %v2945_v36  ;;  %v2697_v63 = vsub.f32 %v7178_v34, %v7538_v47  ;;  %v2952_v15 = vmul.f32 %v2696_v31, %v2696_v31 }
 0x598   :  { %v3201_v38 = vadd.f32 %v3200_v55, %v2946_v45  ;;  %v2698_v55 = vsub.f32 %v7194_v54, %v7538_v47  ;;  %v2953_v14 = vmul.f32 %v2697_v63, %v2697_v63 }
 0x59a   :  { %v3202_v33 = vadd.f32 %v3201_v38, %v2947_v32  ;;  %v13632_v38 = vld [vmem:[#allocation186_spill] sm:$0xff]  ;;  %v2954_v5 = vmul.f32 %v2698_v55, %v2698_v55 }
 0x59b   :  { %v2699_v16 = vsub.f32 %v13632_v38, %v7538_v47 }
 0x59c   :  { %v3203_v37 = vadd.f32 %v3202_v33, %v2948_v28  ;;  %v2700_v33 = vsub.f32 %v7218_v11, %v7538_v47 }
 0x59d   :  { %v2955_v20 = vmul.f32 %v2699_v16, %v2699_v16 }
 0x59e   :  { %v3204_v36 = vadd.f32 %v3203_v37, %v2949_v26  ;;  %v2701_v37 = vsub.f32 %v7235_v41, %v7538_v47  ;;  %v2956_v31 = vmul.f32 %v2700_v33, %v2700_v33 }
 0x5a0   :  { %v3205_v45 = vadd.f32 %v3204_v36, %v2950_v13  ;;  %v2702_v36 = vsub.f32 %v7246_v1, %v7538_v47  ;;  %v2957_v63 = vmul.f32 %v2701_v37, %v2701_v37 }
 0x5a2   :  { %v3206_v32 = vadd.f32 %v3205_v45, %v2951_v9  ;;  %v2703_v45 = vsub.f32 %v7260_v27, %v7538_v47  ;;  %v2958_v55 = vmul.f32 %v2702_v36, %v2702_v36 }
 0x5a4   :  { %v3207_v28 = vadd.f32 %v3206_v32, %v2952_v15  ;;  %v13633_v32 = vld [vmem:[#allocation198_spill] sm:$0xff]  ;;  %v2959_v16 = vmul.f32 %v2703_v45, %v2703_v45 }
 0x5a5   :  { %v2704_v11 = vsub.f32 %v13633_v32, %v7538_v47 }
 0x5a6   :  { %v3208_v26 = vadd.f32 %v3207_v28, %v2953_v14  ;;  %v2705_v28 = vsub.f32 %v7285_v10, %v7538_v47 }
 0x5a7   :  { %v2960_v33 = vmul.f32 %v2704_v11, %v2704_v11 }
 0x5a8   :  { %v3209_v13 = vadd.f32 %v3208_v26, %v2954_v5  ;;  %v2706_v26 = vsub.f32 %v7299_v23, %v7538_v47  ;;  %v2961_v37 = vmul.f32 %v2705_v28, %v2705_v28 }
 0x5aa   :  { %v3210_v9 = vadd.f32 %v3209_v13, %v2955_v20  ;;  %v13634_v13 = vld [vmem:[#allocation206_spill] sm:$0xff]  ;;  %v2962_v36 = vmul.f32 %v2706_v26, %v2706_v26 }
 0x5ab   :  { %v2707_v27 = vsub.f32 %v13634_v13, %v7538_v47 }
 0x5ac   :  { %v3211_v15 = vadd.f32 %v3210_v9, %v2956_v31  ;;  %v13635_v9 = vld [vmem:[#allocation208_spill] sm:$0xff] }
 0x5ad   :  { %v2708_v32 = vsub.f32 %v13635_v9, %v7538_v47  ;;  %v2963_v45 = vmul.f32 %v2707_v27, %v2707_v27 }
 0x5ae   :  { %v3212_v14 = vadd.f32 %v3211_v15, %v2957_v63  ;;  %v13636_v15 = vld [vmem:[#allocation210_spill] sm:$0xff] }
 0x5af   :  { %v2709_v10 = vsub.f32 %v13636_v15, %v7538_v47  ;;  %v2964_v11 = vmul.f32 %v2708_v32, %v2708_v32 }
 0x5b0   :  { %v3213_v5 = vadd.f32 %v3212_v14, %v2958_v55  ;;  %v13637_v14 = vld [vmem:[#allocation90_spill] sm:$0xff] }
 0x5b1   :  { %v2710_v23 = vsub.f32 %v13637_v14, %v7538_v47  ;;  %v2965_v28 = vmul.f32 %v2709_v10, %v2709_v10 }
 0x5b2   :  { %v3214_v20 = vadd.f32 %v3213_v5, %v2959_v16  ;;  %v13638_v5 = vld [vmem:[#allocation211_spill] sm:$0xff] }
 0x5b3   :  { %v2711_v13 = vsub.f32 %v13638_v5, %v7538_v47  ;;  %v2966_v26 = vmul.f32 %v2710_v23, %v2710_v23 }
 0x5b4   :  { %v3215_v31 = vadd.f32 %v3214_v20, %v2960_v33  ;;  %v13639_v20 = vld [vmem:[#allocation213_spill] sm:$0xff] }
 0x5b5   :  { %v2712_v9 = vsub.f32 %v13639_v20, %v7538_v47  ;;  %v2967_v27 = vmul.f32 %v2711_v13, %v2711_v13 }
 0x5b6   :  { %v3216_v63 = vadd.f32 %v3215_v31, %v2961_v37  ;;  %v13640_v31 = vld [vmem:[#allocation215_spill] sm:$0xff] }
 0x5b7   :  { %v2713_v15 = vsub.f32 %v13640_v31, %v7538_v47  ;;  %v2968_v32 = vmul.f32 %v2712_v9, %v2712_v9 }
 0x5b8   :  { %v3217_v55 = vadd.f32 %v3216_v63, %v2962_v36  ;;  %v13641_v63 = vld [vmem:[#allocation216_spill] sm:$0xff] }
 0x5b9   :  { %v2714_v14 = vsub.f32 %v13641_v63, %v7538_v47  ;;  %v2969_v10 = vmul.f32 %v2713_v15, %v2713_v15 }
 0x5ba   :  { %v3218_v16 = vadd.f32 %v3217_v55, %v2963_v45  ;;  %v13642_v55 = vld [vmem:[#allocation217_spill] sm:$0xff] }
 0x5bb   :  { %v2715_v5 = vsub.f32 %v13642_v55, %v7538_v47  ;;  %v2970_v23 = vmul.f32 %v2714_v14, %v2714_v14 }
 0x5bc   :  { %v3219_v33 = vadd.f32 %v3218_v16, %v2964_v11  ;;  %v13643_v16 = vld [vmem:[#allocation218_spill] sm:$0xff] }
 0x5bd   :  { %v2716_v20 = vsub.f32 %v13643_v16, %v7538_v47  ;;  %v2971_v13 = vmul.f32 %v2715_v5, %v2715_v5 }
 0x5be   :  { %v3220_v37 = vadd.f32 %v3219_v33, %v2965_v28  ;;  %v13644_v33 = vld [vmem:[#allocation219_spill] sm:$0xff] }
 0x5bf   :  { %v2717_v31 = vsub.f32 %v13644_v33, %v7538_v47  ;;  %v2972_v9 = vmul.f32 %v2716_v20, %v2716_v20 }
 0x5c0   :  { %v3221_v36 = vadd.f32 %v3220_v37, %v2966_v26  ;;  %v13645_v37 = vld [vmem:[#allocation220_spill] sm:$0xff] }
 0x5c1   :  { %v2718_v63 = vsub.f32 %v13645_v37, %v7538_v47  ;;  %v2973_v15 = vmul.f32 %v2717_v31, %v2717_v31 }
 0x5c2   :  { %v3222_v45 = vadd.f32 %v3221_v36, %v2967_v27  ;;  %v13646_v36 = vld [vmem:[#allocation221_spill] sm:$0xff] }
 0x5c3   :  { %v2719_v55 = vsub.f32 %v13646_v36, %v7538_v47  ;;  %v2974_v14 = vmul.f32 %v2718_v63, %v2718_v63 }
 0x5c4   :  { %v3223_v11 = vadd.f32 %v3222_v45, %v2968_v32  ;;  %v13647_v45 = vld [vmem:[#allocation97_spill] sm:$0xff] }
 0x5c5   :  { %v2720_v16 = vsub.f32 %v13647_v45, %v7538_v47  ;;  %v2975_v5 = vmul.f32 %v2719_v55, %v2719_v55 }
 0x5c6   :  { %v3224_v28 = vadd.f32 %v3223_v11, %v2969_v10  ;;  %v13648_v11 = vld [vmem:[#allocation101_spill] sm:$0xff] }
 0x5c7   :  { %v2721_v33 = vsub.f32 %v13648_v11, %v7538_v47  ;;  %v2976_v20 = vmul.f32 %v2720_v16, %v2720_v16 }
 0x5c8   :  { %v3225_v26 = vadd.f32 %v3224_v28, %v2970_v23  ;;  %v13649_v28 = vld [vmem:[#allocation105_spill] sm:$0xff] }
 0x5c9   :  { %v2722_v37 = vsub.f32 %v13649_v28, %v7538_v47  ;;  %v2977_v31 = vmul.f32 %v2721_v33, %v2721_v33 }
 0x5ca   :  { %v3226_v27 = vadd.f32 %v3225_v26, %v2971_v13  ;;  %v13650_v26 = vld [vmem:[#allocation109_spill] sm:$0xff] }
 0x5cb   :  { %v2723_v36 = vsub.f32 %v13650_v26, %v7538_v47  ;;  %v2978_v63 = vmul.f32 %v2722_v37, %v2722_v37 }
 0x5cc   :  { %v3227_v32 = vadd.f32 %v3226_v27, %v2972_v9  ;;  %v13651_v27 = vld [vmem:[#allocation113_spill] sm:$0xff] }
 0x5cd   :  { %v2724_v45 = vsub.f32 %v13651_v27, %v7538_v47  ;;  %v2979_v55 = vmul.f32 %v2723_v36, %v2723_v36 }
 0x5ce   :  { %v3228_v10 = vadd.f32 %v3227_v32, %v2973_v15  ;;  %v13652_v32 = vld [vmem:[#allocation117_spill] sm:$0xff] }
 0x5cf   :  { %v2725_v11 = vsub.f32 %v13652_v32, %v7538_v47  ;;  %v2980_v16 = vmul.f32 %v2724_v45, %v2724_v45 }
 0x5d0   :  { %v3229_v23 = vadd.f32 %v3228_v10, %v2974_v14  ;;  %v13653_v10 = vld [vmem:[#allocation121_spill] sm:$0xff] }
 0x5d1   :  { %v2726_v28 = vsub.f32 %v13653_v10, %v7538_v47  ;;  %v2981_v33 = vmul.f32 %v2725_v11, %v2725_v11 }
 0x5d2   :  { %v3230_v13 = vadd.f32 %v3229_v23, %v2975_v5  ;;  %v13654_v23 = vld [vmem:[#allocation125_spill] sm:$0xff] }
 0x5d3   :  { %v2727_v26 = vsub.f32 %v13654_v23, %v7538_v47  ;;  %v2982_v37 = vmul.f32 %v2726_v28, %v2726_v28 }
 0x5d4   :  { %v3231_v9 = vadd.f32 %v3230_v13, %v2976_v20  ;;  %v13655_v13 = vld [vmem:[#allocation129_spill] sm:$0xff] }
 0x5d5   :  { %v2728_v27 = vsub.f32 %v13655_v13, %v7538_v47  ;;  %v2983_v36 = vmul.f32 %v2727_v26, %v2727_v26 }
 0x5d6   :  { %v3232_v15 = vadd.f32 %v3231_v9, %v2977_v31  ;;  %v13656_v9 = vld [vmem:[#allocation133_spill] sm:$0xff] }
 0x5d7   :  { %v2729_v32 = vsub.f32 %v13656_v9, %v7538_v47  ;;  %v2984_v45 = vmul.f32 %v2728_v27, %v2728_v27 }
 0x5d8   :  { %v3233_v14 = vadd.f32 %v3232_v15, %v2978_v63  ;;  %v13657_v15 = vld [vmem:[#allocation137_spill] sm:$0xff] }
 0x5d9   :  { %v2730_v10 = vsub.f32 %v13657_v15, %v7538_v47  ;;  %v2985_v11 = vmul.f32 %v2729_v32, %v2729_v32 }
 0x5da   :  { %v3234_v5 = vadd.f32 %v3233_v14, %v2979_v55  ;;  %v13658_v14 = vld [vmem:[#allocation141_spill] sm:$0xff] }
 0x5db   :  { %v2731_v23 = vsub.f32 %v13658_v14, %v7538_v47  ;;  %v2986_v28 = vmul.f32 %v2730_v10, %v2730_v10 }
 0x5dc   :  { %v3235_v20 = vadd.f32 %v3234_v5, %v2980_v16  ;;  %v13659_v5 = vld [vmem:[#allocation144_spill] sm:$0xff] }
 0x5dd   :  { %v2732_v13 = vsub.f32 %v13659_v5, %v7538_v47  ;;  %v2987_v26 = vmul.f32 %v2731_v23, %v2731_v23 }
 0x5de   :  { %v3236_v31 = vadd.f32 %v3235_v20, %v2981_v33  ;;  %v13660_v20 = vld [vmem:[#allocation147_spill] sm:$0xff] }
 0x5df   :  { %v2733_v9 = vsub.f32 %v13660_v20, %v7538_v47  ;;  %v2988_v27 = vmul.f32 %v2732_v13, %v2732_v13 }
 0x5e0   :  { %v3237_v63 = vadd.f32 %v3236_v31, %v2982_v37  ;;  %v13661_v31 = vld [vmem:[#allocation150_spill] sm:$0xff] }
 0x5e1   :  { %v2734_v15 = vsub.f32 %v13661_v31, %v7538_v47  ;;  %v2989_v32 = vmul.f32 %v2733_v9, %v2733_v9 }
 0x5e2   :  { %v3238_v55 = vadd.f32 %v3237_v63, %v2983_v36  ;;  %v13662_v63 = vld [vmem:[#allocation154_spill] sm:$0xff] }
 0x5e3   :  { %v2735_v14 = vsub.f32 %v13662_v63, %v7538_v47  ;;  %v2990_v10 = vmul.f32 %v2734_v15, %v2734_v15 }
 0x5e4   :  { %v3239_v16 = vadd.f32 %v3238_v55, %v2984_v45  ;;  %v13663_v55 = vld [vmem:[#allocation158_spill] sm:$0xff] }
 0x5e5   :  { %v2736_v5 = vsub.f32 %v13663_v55, %v7538_v47  ;;  %v2991_v23 = vmul.f32 %v2735_v14, %v2735_v14 }
 0x5e6   :  { %v3240_v33 = vadd.f32 %v3239_v16, %v2985_v11  ;;  %v13664_v16 = vld [vmem:[#allocation163_spill] sm:$0xff] }
 0x5e7   :  { %v2737_v20 = vsub.f32 %v13664_v16, %v7538_v47  ;;  %v2992_v13 = vmul.f32 %v2736_v5, %v2736_v5 }
 0x5e8   :  { %v3241_v37 = vadd.f32 %v3240_v33, %v2986_v28  ;;  %v2738_v33 = vsub.f32 %v13454_v3, %v7538_v47 }
 0x5e9   :  { %v2993_v9 = vmul.f32 %v2737_v20, %v2737_v20 }
 0x5ea   :  { %v3242_v36 = vadd.f32 %v3241_v37, %v2987_v26  ;;  %v2739_v37 = vsub.f32 %v13455_v48, %v7538_v47  ;;  %v2994_v15 = vmul.f32 %v2738_v33, %v2738_v33 }
 0x5ec   :  { %v3243_v45 = vadd.f32 %v3242_v36, %v2988_v27  ;;  %v2740_v36 = vsub.f32 %v13456_v50, %v7538_v47  ;;  %v2995_v14 = vmul.f32 %v2739_v37, %v2739_v37 }
 0x5ee   :  { %v3244_v11 = vadd.f32 %v3243_v45, %v2989_v32  ;;  %v13665_v45 = vld [vmem:[#allocation178_spill] sm:$0xff]  ;;  %v2996_v5 = vmul.f32 %v2740_v36, %v2740_v36 }
 0x5ef   :  { %v2741_v16 = vsub.f32 %v13665_v45, %v7538_v47 }
 0x5f0   :  { %v3245_v28 = vadd.f32 %v3244_v11, %v2990_v10  ;;  %v13666_v11 = vld [vmem:[#allocation181_spill] sm:$0xff] }
 0x5f1   :  { %v2742_v3 = vsub.f32 %v13666_v11, %v7538_v47  ;;  %v2997_v20 = vmul.f32 %v2741_v16, %v2741_v16 }
 0x5f2   :  { %v3246_v26 = vadd.f32 %v3245_v28, %v2991_v23  ;;  %v2743_v28 = vsub.f32 %v13461_v22, %v7538_v47 }
 0x5f3   :  { %v2998_v33 = vmul.f32 %v2742_v3, %v2742_v3 }
 0x5f4   :  { %v3247_v27 = vadd.f32 %v3246_v26, %v2992_v13  ;;  %v2744_v26 = vsub.f32 %v13462_v44, %v7538_v47  ;;  %v2999_v37 = vmul.f32 %v2743_v28, %v2743_v28 }
 0x5f6   :  { %v3248_v32 = vadd.f32 %v3247_v27, %v2993_v9  ;;  %v13667_v27 = vld [vmem:[#allocation188_spill] sm:$0xff]  ;;  %v3000_v36 = vmul.f32 %v2744_v26, %v2744_v26 }
 0x5f7   :  { %v2745_v45 = vsub.f32 %v13667_v27, %v7538_v47 }
 0x5f8   :  { %v3249_v10 = vadd.f32 %v3248_v32, %v2994_v15  ;;  %v13668_v32 = vld [vmem:[#allocation191_spill] sm:$0xff] }
 0x5f9   :  { %v2746_v11 = vsub.f32 %v13668_v32, %v7538_v47  ;;  %v3001_v16 = vmul.f32 %v2745_v45, %v2745_v45 }
 0x5fa   :  { %v3250_v23 = vadd.f32 %v3249_v10, %v2995_v14  ;;  %v13669_v10 = vld [vmem:[#allocation193_spill] sm:$0xff] }
 0x5fb   :  { %v2747_v22 = vsub.f32 %v13669_v10, %v7538_v47  ;;  %v3002_v3 = vmul.f32 %v2746_v11, %v2746_v11 }
 0x5fc   :  { %v3251_v13 = vadd.f32 %v3250_v23, %v2996_v5  ;;  %v2748_v23 = vsub.f32 %v7258_v60, %v7538_v47 }
 0x5fd   :  { %v3003_v28 = vmul.f32 %v2747_v22, %v2747_v22 }
 0x5fe   :  { %v3252_v9 = vadd.f32 %v3251_v13, %v2997_v20  ;;  %v2749_v13 = vsub.f32 %v7269_v61, %v7538_v47  ;;  %v3004_v26 = vmul.f32 %v2748_v23, %v2748_v23 }
 0x600   :  { %v3253_v15 = vadd.f32 %v3252_v9, %v2998_v33  ;;  %v2750_v9 = vsub.f32 %v7283_v18, %v7538_v47  ;;  %v3005_v45 = vmul.f32 %v2749_v13, %v2749_v13 }
 0x602   :  { %v3254_v14 = vadd.f32 %v3253_v15, %v2999_v37  ;;  %v13670_v15 = vld [vmem:[#allocation202_spill] sm:$0xff]  ;;  %v3006_v11 = vmul.f32 %v2750_v9, %v2750_v9 }
 0x603   :  { %v2751_v10 = vsub.f32 %v13670_v15, %v7538_v47 }
 0x604   :  { %v3255_v5 = vadd.f32 %v3254_v14, %v3000_v36  ;;  %v13671_v14 = vld [vmem:[#allocation205_spill] sm:$0xff] }
 0x605   :  { %v2752_v60 = vsub.f32 %v13671_v14, %v7538_v47  ;;  %v3007_v22 = vmul.f32 %v2751_v10, %v2751_v10 }
 0x606   :  { %v3256_v20 = vadd.f32 %v3255_v5, %v3001_v16  ;;  %v2753_v5 = vsub.f32 %v7320_v6, %v7538_v47 }
 0x607   :  { %v3008_v23 = vmul.f32 %v2752_v60, %v2752_v60 }
 0x608   :  { %v3257_v33 = vadd.f32 %v3256_v20, %v3002_v3  ;;  %v2754_v20 = vsub.f32 %v13467_v0, %v7538_v47  ;;  %v3009_v13 = vmul.f32 %v2753_v5, %v2753_v5 }
 0x60a   :  { %v3258_v37 = vadd.f32 %v3257_v33, %v3003_v28  ;;  %v2755_v33 = vsub.f32 %v7341_v53, %v7538_v47  ;;  %v3010_v9 = vmul.f32 %v2754_v20, %v2754_v20 }
 0x60c   :  { %v3259_v36 = vadd.f32 %v3258_v37, %v3004_v26  ;;  %v13672_v37 = vld [vmem:[#allocation104_spill] sm:$0xff]  ;;  %v3011_v10 = vmul.f32 %v2755_v33, %v2755_v33 }
 0x60d   :  { %v2756_v14 = vsub.f32 %v13672_v37, %v7538_v47 }
 0x60e   :  { %v3260_v16 = vadd.f32 %v3259_v36, %v3005_v45  ;;  %v13673_v36 = vld [vmem:[#allocation212_spill] sm:$0xff] }
 0x60f   :  { %v2757_v6 = vsub.f32 %v13673_v36, %v7538_v47  ;;  %v3012_v60 = vmul.f32 %v2756_v14, %v2756_v14 }
 0x610   :  { %v3261_v3 = vadd.f32 %v3260_v16, %v3006_v11  ;;  %v2758_v16 = vsub.f32 %v7374_v39, %v7538_v47 }
 0x611   :  { %v3013_v5 = vmul.f32 %v2757_v6, %v2757_v6 }
 0x612   :  { %v3262_v28 = vadd.f32 %v3261_v3, %v3007_v22  ;;  %v2759_v3 = vsub.f32 %v7386_v52, %v7538_v47  ;;  %v3014_v20 = vmul.f32 %v2758_v16, %v2758_v16 }
 0x614   :  { %v3263_v26 = vadd.f32 %v3262_v28, %v3008_v23  ;;  %v2760_v28 = vsub.f32 %v7426_v56, %v7538_v47  ;;  %v3015_v33 = vmul.f32 %v2759_v3, %v2759_v3 }
 0x616   :  { %v3264_v45 = vadd.f32 %v3263_v26, %v3009_v13  ;;  %v13674_v26 = vld [vmem:[#allocation222_spill] sm:$0xff]  ;;  %v3016_v14 = vmul.f32 %v2760_v28, %v2760_v28 }
 0x617   :  { %v2761_v36 = vsub.f32 %v13674_v26, %v7538_v47 }
 0x618   :  { %v3265_v11 = vadd.f32 %v3264_v45, %v3010_v9  ;;  %v13675_v45 = vld [vmem:[#allocation223_spill] sm:$0xff] }
 0x619   :  { %v2762_v39 = vsub.f32 %v13675_v45, %v7538_v47  ;;  %v3017_v6 = vmul.f32 %v2761_v36, %v2761_v36 }
 0x61a   :  { %v3266_v22 = vadd.f32 %v3265_v11, %v3011_v10  ;;  %v2763_v11 = vsub.f32 %v7445_v59, %v7538_v47 }
 0x61b   :  { %v3018_v16 = vmul.f32 %v2762_v39, %v2762_v39 }
 0x61c   :  { %v3267_v23 = vadd.f32 %v3266_v22, %v3012_v60  ;;  %v2764_v22 = vsub.f32 %v7450_v29, %v7538_v47  ;;  %v3019_v3 = vmul.f32 %v2763_v11, %v2763_v11 }
 0x61e   :  { %v3268_v13 = vadd.f32 %v3267_v23, %v3013_v5  ;;  %v2765_v23 = vsub.f32 %v7454_v42, %v7538_v47  ;;  %v3020_v28 = vmul.f32 %v2764_v22, %v2764_v22  ;;  %v13680_v22 = vld [vmem:[#allocation228_spill] sm:$0xff] }
 0x620   :  { %v3269_v9 = vadd.f32 %v3268_v13, %v3014_v20  ;;  %v13676_v13 = vld [vmem:[#allocation172_spill] sm:$0xff]  ;;  %v3021_v36 = vmul.f32 %v2765_v23, %v2765_v23  ;;  %v13681_v23 = vld [vmem:[#allocation229_spill] sm:$0xff] }
 0x621   :  { %v2766_v45 = vsub.f32 %v13676_v13, %v7538_v47 }
 0x622   :  { %v3270_v10 = vadd.f32 %v3269_v9, %v3015_v33  ;;  %v13677_v9 = vld [vmem:[#allocation175_spill] sm:$0xff] }
 0x623   :  { %v2767_v59 = vsub.f32 %v13677_v9, %v7538_v47  ;;  %v3022_v39 = vmul.f32 %v2766_v45, %v2766_v45  ;;  %v13682_v45 = vld [vmem:[#allocation209_spill] sm:$0xff] }
 0x624   :  { %v3271_v60 = vadd.f32 %v3270_v10, %v3016_v14  ;;  %v13678_v10 = vld [vmem:[#allocation185_spill] sm:$0xff] }
 0x625   :  { %v2768_v29 = vsub.f32 %v13678_v10, %v7538_v47  ;;  %v3023_v11 = vmul.f32 %v2767_v59, %v2767_v59  ;;  %v13683_v59 = vld [vmem:[#allocation230_spill] sm:$0xff] }
 0x626   :  { %v3272_v5 = vadd.f32 %v3271_v60, %v3017_v6  ;;  %v13679_v60 = vld [vmem:[#allocation227_spill] sm:$0xff] }
 0x627   :  { %v2769_v42 = vsub.f32 %v13679_v60, %v7538_v47 }
 0x628   :  { %v3273_v20 = vadd.f32 %v3272_v5, %v3018_v16  ;;  %v3024_v5 = vmul.f32 %v2768_v29, %v2768_v29  ;;  %v2773_v29 = vsub.f32 %v13683_v59, %v7538_v47 }
 0x62a   :  { %v3274_v33 = vadd.f32 %v3273_v20, %v3019_v3  ;;  %v2770_v3 = vsub.f32 %v13680_v22, %v7538_v47  ;;  %v3025_v20 = vmul.f32 %v2769_v42, %v2769_v42 }
 0x62c   :  { %v3275_v14 = vadd.f32 %v3274_v33, %v3020_v28  ;;  %v2771_v28 = vsub.f32 %v13681_v23, %v7538_v47  ;;  %v3026_v33 = vmul.f32 %v2770_v3, %v2770_v3 }
 0x62e   :  { %v3276_v6 = vadd.f32 %v3275_v14, %v3021_v36  ;;  %v2772_v36 = vsub.f32 %v13682_v45, %v7538_v47  ;;  %v3027_v14 = vmul.f32 %v2771_v28, %v2771_v28 }
 0x630   :  { %v3277_v16 = vadd.f32 %v3276_v6, %v3022_v39  ;;  %v3028_v39 = vmul.f32 %v2772_v36, %v2772_v36 }
 0x632   :  { %v3278_v26 = vadd.f32 %v3277_v16, %v3023_v11  ;;  %v13684_v11 = vld [vmem:[#allocation231_spill] sm:$0xff]  ;;  %v13685_v16 = vld [vmem:[#allocation232_spill] sm:$0xff] }
 0x633   :  { %v2774_v42 = vsub.f32 %v13684_v11, %v7538_v47 }
 0x634   :  { %v3279_v13 = vadd.f32 %v3278_v26, %v3024_v5  ;;  %v3029_v26 = vmul.f32 %v2773_v29, %v2773_v29  ;;  %v2775_v5 = vsub.f32 %v13685_v16, %v7538_v47 }
 0x635   :  { %v3030_v3 = vmul.f32 %v2774_v42, %v2774_v42 }
 0x636   :  { %v3280_v9 = vadd.f32 %v3279_v13, %v3025_v20  ;;  %v13686_v20 = vld [vmem:[#allocation233_spill] sm:$0xff]  ;;  %v3031_v28 = vmul.f32 %v2775_v5, %v2775_v5 }
 0x638   :  { %v3281_v10 = vadd.f32 %v3280_v9, %v3026_v33  ;;  %v2776_v33 = vsub.f32 %v13686_v20, %v7538_v47 }
 0x63a   :  { %v3282_v60 = vadd.f32 %v3281_v10, %v3027_v14  ;;  %v13687_v14 = vld [vmem:[#allocation234_spill] sm:$0xff]  ;;  %v3032_v36 = vmul.f32 %v2776_v33, %v2776_v33 }
 0x63b   :  { %v2777_v59 = vsub.f32 %v13687_v14, %v7538_v47 }
 0x63c   :  { %v3283_v6 = vadd.f32 %v3282_v60, %v3028_v39  ;;  %v13688_v39 = vld [vmem:[#allocation235_spill] sm:$0xff] }
 0x63d   :  { %v2778_v11 = vsub.f32 %v13688_v39, %v7538_v47  ;;  %v3033_v29 = vmul.f32 %v2777_v59, %v2777_v59 }
 0x63e   :  { %v3284_v13 = vadd.f32 %v3283_v6, %v3029_v26  ;;  %v13689_v26 = vld [vmem:[#allocation236_spill] sm:$0xff] }
 0x63f   :  { %v2779_v16 = vsub.f32 %v13689_v26, %v7538_v47  ;;  %v3034_v42 = vmul.f32 %v2778_v11, %v2778_v11 }
 0x640   :  { %v3285_v9 = vadd.f32 %v3284_v13, %v3030_v3  ;;  %v13690_v3 = vld [vmem:[#allocation237_spill] sm:$0xff] }
 0x641   :  { %v2780_v20 = vsub.f32 %v13690_v3, %v7538_v47  ;;  %v3035_v5 = vmul.f32 %v2779_v16, %v2779_v16 }
 0x642   :  { %v3286_v10 = vadd.f32 %v3285_v9, %v3031_v28  ;;  %v13691_v28 = vld [vmem:[#allocation238_spill] sm:$0xff] }
 0x643   :  { %v2781_v14 = vsub.f32 %v13691_v28, %v7538_v47  ;;  %v3036_v33 = vmul.f32 %v2780_v20, %v2780_v20 }
 0x644   :  { %v3287_v60 = vadd.f32 %v3286_v10, %v3032_v36  ;;  %v13692_v36 = vld [vmem:[#allocation239_spill] sm:$0xff] }
 0x645   :  { %v2782_v39 = vsub.f32 %v13692_v36, %v7538_v47  ;;  %v3037_v59 = vmul.f32 %v2781_v14, %v2781_v14 }
 0x646   :  { %v3288_v6 = vadd.f32 %v3287_v60, %v3033_v29  ;;  %v13693_v29 = vld [vmem:[#allocation240_spill] sm:$0xff] }
 0x647   :  { %v2783_v26 = vsub.f32 %v13693_v29, %v7538_v47  ;;  %v3038_v11 = vmul.f32 %v2782_v39, %v2782_v39 }
 0x648   :  { %v3289_v13 = vadd.f32 %v3288_v6, %v3034_v42 }
 0x649   :  { %v3039_v42 = vmul.f32 %v2783_v26, %v2783_v26 }
 0x64a   :  { %v3290_v9 = vadd.f32 %v3289_v13, %v3035_v5 }
 0x64c   :  { %v3291_v10 = vadd.f32 %v3290_v9, %v3036_v33 }
 0x64e   :  { %v3292_v60 = vadd.f32 %v3291_v10, %v3037_v59 }
 0x650   :  { %v3293_v6 = vadd.f32 %v3292_v60, %v3038_v11  ;;  %v13694_v60 = vld [vmem:[#allocation201_spill] sm:$0xff] }
 0x652   :  { %v3294_v45 = vadd.f32 %v3293_v6, %v3039_v42  ;;  %v13695_v6 = vld [vmem:[#allocation204_spill] sm:$0xff] }
 0x654   :  { %v3295_v3 = vrot.slane %v3294_v45, 4 }
 0x656   :  { %v3296_v16 = vadd.f32 %v3295_v3, %v3294_v45  ;;  %v3302_v45 = vld [vmem:[%s12296_s2] sm:$0x1] }
 0x658   :  { %v3297_v13 = vrot.slane %v3296_v16, 2 }
 0x65a   :  { %v3298_v5 = vadd.f32 %v3297_v13, %v3296_v16  ;;  %v13697_v16 = vld [vmem:[#allocation51_spill] sm:$0xff] }
 0x65c   :  { %v3299_v23 = vrot.slane %v3298_v5, 1 }
 0x65e   :  { %v3300_v28 = vadd.f32 %v3299_v23, %v3298_v5  ;;  %v13698_v5 = vld [vmem:[#allocation54_spill] sm:$0xff] }
 0x660   :  { %v3301_v20 = vmul.f32 0.00048828125, %v3300_v28  ;;  %v8063_v28 = vld [vmem:[%s12297_s3] sm:$0x1] }
 0x662   :  { %v3303_v9 = vadd.f32 1e-05, %v3301_v20 }
 0x664   :  { %6335 = vrsqrt.f32 %v3303_v9  ;;  %vm3310_vm1 = vweird.f32 %v3303_v9 }
 0x66a   :  { %v6336_v33 = vpop.eup %6335 }
 0x66b   :  { %v3305_v36 = vmul.f32 %v6336_v33, %v3303_v9  ;;  %vm3311_vm0 = vweird.f32 %v6336_v33  ;;  %v13699_v9 = vld [vmem:[#allocation57_spill] sm:$0xff] }
 0x66c   :  { %vm3312_vm2 = vmor %vm3310_vm1, %vm3311_vm0 }
 0x66d   :  { %v3306_v14 = vmul.f32 %v6336_v33, %v3305_v36  ;;  %v13708_v36 = vld [vmem:[#allocation96_spill] sm:$0xff] }
 0x66f   :  { %v3307_v10 = vmul.f32 0.5, %v3306_v14  ;;  %v13700_v14 = vld [vmem:[#allocation60_spill] sm:$0xff] }
 0x671   :  { %v3308_v59 = vsub.f32 1.5, %v3307_v10 }
 0x673   :  { %v3309_v22 = vmul.f32 %v6336_v33, %v3308_v59  ;;  %v13701_v59 = vld [vmem:[#allocation63_spill] sm:$0xff] }
 0x675   :  { %v3313_v39 = vsel %vm3312_vm2, %v6336_v33, %v3309_v22 }
 0x676   :  { %v3314_v26 = vmul.f32 %v3313_v39, %v3302_v45  ;;  %v13702_v39 = vld [vmem:[#allocation66_spill] sm:$0xff] }
 0x678   :  { %v8056_v23 = vmul.f32 %v3314_v26, %v7538_v47  ;;  %v8058_v3 = vperm.slane %v3314_v26, 0  ;;  %v13696_v47 = vld [vmem:[#allocation48_spill] sm:$0xff] }
 0x67a   :  { %v8069_v11 = vmul.f32 %v8058_v3, %v13694_v60  ;;  %v8073_v22 = vmul.f32 %v8058_v3, %v13695_v6  ;;  %v8077_v42 = vmul.f32 %v8058_v3, %v13696_v47  ;;  %v8081_v13 = vmul.f32 %v8058_v3, %v13697_v16  ;;  %v13703_v60 = vld [vmem:[#allocation69_spill] sm:$0xff]  ;;  %v13704_v47 = vld [vmem:[#allocation72_spill] sm:$0xff] }
 0x67b   :  { %v8085_v20 = vmul.f32 %v8058_v3, %v13698_v5  ;;  %v8089_v33 = vmul.f32 %v8058_v3, %v13699_v9  ;;  %v8093_v10 = vmul.f32 %v8058_v3, %v13700_v14  ;;  %v8097_v45 = vmul.f32 %v8058_v3, %v13701_v59 }
 0x67c   :  { %v8101_v26 = vmul.f32 %v8058_v3, %v13702_v39  ;;  %v8105_v6 = vmul.f32 %v8058_v3, %v13703_v60  ;;  %v8109_v16 = vmul.f32 %v8058_v3, %v13704_v47  ;;  %v8113_v5 = vmul.f32 %v8058_v3, %v13617_v24  ;;  %v13705_v39 = vld [vmem:[#allocation87_spill] sm:$0xff]  ;;  %v13706_v47 = vld [vmem:[#allocation93_spill] sm:$0xff] }
 0x67d   :  { %v8117_v9 = vmul.f32 %v8058_v3, %v13618_v35  ;;  %v8121_v14 = vmul.f32 %v8058_v3, %v13619_v21  ;;  %v8125_v59 = vmul.f32 %v8058_v3, %v13620_v57  ;;  %v8129_v60 = vmul.f32 %v8058_v3, %v13705_v39 }
 0x67e   :  { %v8133_v24 = vmul.f32 %v8058_v3, %v13413_v2  ;;  %v8137_v35 = vmul.f32 %v8058_v3, %v13706_v47  ;;  %v8141_v21 = vmul.f32 %v8058_v3, %v13708_v36  ;;  %v8145_v57 = vmul.f32 %v8058_v3, %v13621_v49 }
 0x67f   :  { %v8149_v39 = vmul.f32 %v8058_v3, %v13418_v17  ;;  %v8153_v2 = vmul.f32 %v8058_v3, %v13622_v4  ;;  %v8157_v47 = vmul.f32 %v8058_v3, %v13623_v25  ;;  %v8177_v25 = vmul.f32 %v8058_v3, %v13624_v51 }
 0x680   :  { %13707 = vst [vmem:[#allocation75_spill] sm:$0xff] %v8137_v35  ;;  %v13712_v35 = vld [vmem:[#allocation116_spill] sm:$0xff]  ;;  %v8197_v51 = vmul.f32 %v8058_v3, %v7031_v62  ;;  %v8217_v62 = vmul.f32 %v8058_v3, %v13628_v40  ;;  %v8237_v40 = vmul.f32 %v8058_v3, %v7168_v19  ;;  %v8257_v19 = vmul.f32 %v8058_v3, %v7235_v41 }
 0x681   :  { %13709 = vst [vmem:[#allocation78_spill] sm:$0xff] %v8141_v21  ;;  %v8161_v36 = vmul.f32 %v8058_v3, %v13712_v35  ;;  %v13713_v21 = vld [vmem:[#allocation120_spill] sm:$0xff]  ;;  %v8181_v35 = vmul.f32 %v8058_v3, %v13625_v12 }
 0x682   :  { %13710 = vst [vmem:[#allocation81_spill] sm:$0xff] %v8145_v57  ;;  %v8165_v49 = vmul.f32 %v8058_v3, %v13713_v21  ;;  %v13714_v57 = vld [vmem:[#allocation124_spill] sm:$0xff]  ;;  %v8185_v21 = vmul.f32 %v8058_v3, %v13626_v58 }
 0x683   :  { %13711 = vst [vmem:[#allocation84_spill] sm:$0xff] %v8149_v39  ;;  %v8169_v17 = vmul.f32 %v8058_v3, %v13714_v57  ;;  %v13715_v39 = vld [vmem:[#allocation128_spill] sm:$0xff]  ;;  %v8189_v57 = vmul.f32 %v8058_v3, %v13627_v43 }
 0x684   :  { %v8173_v4 = vmul.f32 %v8058_v3, %v13715_v39  ;;  %13716 = vst [vmem:[#allocation100_spill] sm:$0xff] %v8177_v25  ;;  %v8193_v39 = vmul.f32 %v8058_v3, %v7013_v46  ;;  %v13720_v25 = vld [vmem:[#allocation153_spill] sm:$0xff] }
 0x685   :  { %13717 = vst [vmem:[#allocation108_spill] sm:$0xff] %v8181_v35  ;;  %v8201_v12 = vmul.f32 %v8058_v3, %v13720_v25  ;;  %v13721_v35 = vld [vmem:[#allocation157_spill] sm:$0xff]  ;;  %v8221_v25 = vmul.f32 %v8058_v3, %v13629_v30  ;;  %v8241_v30 = vmul.f32 %v8058_v3, %v7178_v34  ;;  %v8261_v34 = vmul.f32 %v8058_v3, %v7246_v1 }
 0x686   :  { %13718 = vst [vmem:[#allocation112_spill] sm:$0xff] %v8185_v21  ;;  %v8205_v58 = vmul.f32 %v8058_v3, %v13721_v35  ;;  %v13722_v21 = vld [vmem:[#allocation160_spill] sm:$0xff]  ;;  %v8225_v35 = vmul.f32 %v8058_v3, %v13630_v8  ;;  %v8245_v8 = vmul.f32 %v8058_v3, %v7194_v54 }
 0x687   :  { %13719 = vst [vmem:[#allocation132_spill] sm:$0xff] %v8189_v57  ;;  %v8209_v43 = vmul.f32 %v8058_v3, %v13722_v21  ;;  %v13724_v57 = vld [vmem:[#allocation164_spill] sm:$0xff]  ;;  %v8229_v21 = vmul.f32 %v8058_v3, %v13631_v7  ;;  %v8249_v7 = vmul.f32 %v8058_v3, %v13632_v38 }
 0x688   :  { %v8213_v46 = vmul.f32 %v8058_v3, %v13724_v57  ;;  %13727 = vst [vmem:[#allocation143_spill] sm:$0xff] %v8241_v30  ;;  %v13734_v30 = vld [vmem:[#allocation196_spill] sm:$0xff] }
 0x689   :  { %13723 = vst [vmem:[#allocation136_spill] sm:$0xff] %v8209_v43  ;;  %v13726_v43 = vld [vmem:[#allocation179_spill] sm:$0xff]  ;;  %v8265_v54 = vmul.f32 %v8058_v3, %v13734_v30 }
 0x68a   :  { %13725 = vst [vmem:[#allocation140_spill] sm:$0xff] %v8229_v21  ;;  %v8233_v57 = vmul.f32 %v8058_v3, %v13726_v43  ;;  %v13730_v21 = vld [vmem:[#allocation189_spill] sm:$0xff] }
 0x68b   :  { %13728 = vst [vmem:[#allocation167_spill] sm:$0xff] %v8245_v8  ;;  %v8253_v43 = vmul.f32 %v8058_v3, %v13730_v21  ;;  %v13736_v8 = vld [vmem:[#allocation198_spill] sm:$0xff] }
 0x68c   :  { %13729 = vst [vmem:[#allocation171_spill] sm:$0xff] %v8249_v7  ;;  %v8269_v38 = vmul.f32 %v8058_v3, %v13736_v8  ;;  %v13738_v7 = vld [vmem:[#allocation200_spill] sm:$0xff] }
 0x68d   :  { %13731 = vst [vmem:[#allocation174_spill] sm:$0xff] %v8253_v43  ;;  %v8273_v21 = vmul.f32 %v8058_v3, %v13738_v7  ;;  %v13740_v43 = vld [vmem:[#allocation203_spill] sm:$0xff] }
 0x68e   :  { %13732 = vst [vmem:[#allocation176_spill] sm:$0xff] %v8257_v19  ;;  %v8277_v41 = vmul.f32 %v8058_v3, %v13740_v43  ;;  %v13742_v19 = vld [vmem:[#allocation206_spill] sm:$0xff] }
 0x68f   :  { %13733 = vst [vmem:[#allocation186_spill] sm:$0xff] %v8261_v34  ;;  %v8281_v1 = vmul.f32 %v8058_v3, %v13742_v19  ;;  %v13744_v34 = vld [vmem:[#allocation208_spill] sm:$0xff] }
 0x690   :  { %13735 = vst [vmem:[#allocation150_spill] sm:$0xff] %v8265_v54  ;;  %v8285_v30 = vmul.f32 %v8058_v3, %v13744_v34  ;;  %v13746_v54 = vld [vmem:[#allocation210_spill] sm:$0xff] }
 0x691   :  { %13737 = vst [vmem:[#allocation154_spill] sm:$0xff] %v8269_v38  ;;  %v8289_v8 = vmul.f32 %v8058_v3, %v13746_v54  ;;  %v13748_v38 = vld [vmem:[#allocation90_spill] sm:$0xff] }
 0x692   :  { %13739 = vst [vmem:[#allocation158_spill] sm:$0xff] %v8273_v21  ;;  %v8293_v7 = vmul.f32 %v8058_v3, %v13748_v38  ;;  %v13750_v21 = vld [vmem:[#allocation211_spill] sm:$0xff] }
 0x693   :  { %13741 = vst [vmem:[#allocation188_spill] sm:$0xff] %v8277_v41  ;;  %v8297_v43 = vmul.f32 %v8058_v3, %v13750_v21  ;;  %v13752_v41 = vld [vmem:[#allocation213_spill] sm:$0xff] }
 0x694   :  { %13743 = vst [vmem:[#allocation191_spill] sm:$0xff] %v8281_v1  ;;  %v8301_v19 = vmul.f32 %v8058_v3, %v13752_v41  ;;  %v13754_v1 = vld [vmem:[#allocation215_spill] sm:$0xff] }
 0x695   :  { %13745 = vst [vmem:[#allocation202_spill] sm:$0xff] %v8285_v30  ;;  %v8305_v34 = vmul.f32 %v8058_v3, %v13754_v1  ;;  %v13756_v30 = vld [vmem:[#allocation216_spill] sm:$0xff] }
 0x696   :  { %13747 = vst [vmem:[#allocation104_spill] sm:$0xff] %v8289_v8  ;;  %v8309_v54 = vmul.f32 %v8058_v3, %v13756_v30  ;;  %v13758_v8 = vld [vmem:[#allocation217_spill] sm:$0xff] }
 0x697   :  { %13749 = vst [vmem:[#allocation240_spill] sm:$0xff] %v8293_v7  ;;  %v8313_v38 = vmul.f32 %v8058_v3, %v13758_v8  ;;  %v13760_v7 = vld [vmem:[#allocation218_spill] sm:$0xff] }
 0x698   :  { %13751 = vst [vmem:[#allocation201_spill] sm:$0xff] %v8297_v43  ;;  %v8317_v21 = vmul.f32 %v8058_v3, %v13760_v7  ;;  %v13762_v43 = vld [vmem:[#allocation219_spill] sm:$0xff] }
 0x699   :  { %13753 = vst [vmem:[#allocation204_spill] sm:$0xff] %v8301_v19  ;;  %v8321_v41 = vmul.f32 %v8058_v3, %v13762_v43  ;;  %v13764_v19 = vld [vmem:[#allocation220_spill] sm:$0xff] }
 0x69a   :  { %13755 = vst [vmem:[#allocation48_spill] sm:$0xff] %v8305_v34  ;;  %v8325_v1 = vmul.f32 %v8058_v3, %v13764_v19  ;;  %v13766_v34 = vld [vmem:[#allocation221_spill] sm:$0xff] }
 0x69b   :  { %13757 = vst [vmem:[#allocation51_spill] sm:$0xff] %v8309_v54  ;;  %v8329_v30 = vmul.f32 %v8058_v3, %v13766_v34  ;;  %v13768_v54 = vld [vmem:[#allocation97_spill] sm:$0xff] }
 0x69c   :  { %13759 = vst [vmem:[#allocation54_spill] sm:$0xff] %v8313_v38  ;;  %v8333_v8 = vmul.f32 %v8058_v3, %v13768_v54  ;;  %v13770_v38 = vld [vmem:[#allocation101_spill] sm:$0xff] }
 0x69d   :  { %13761 = vst [vmem:[#allocation57_spill] sm:$0xff] %v8317_v21  ;;  %v8337_v7 = vmul.f32 %v8058_v3, %v13770_v38  ;;  %v13772_v21 = vld [vmem:[#allocation105_spill] sm:$0xff] }
 0x69e   :  { %13763 = vst [vmem:[#allocation60_spill] sm:$0xff] %v8321_v41  ;;  %v8341_v43 = vmul.f32 %v8058_v3, %v13772_v21  ;;  %v13774_v41 = vld [vmem:[#allocation109_spill] sm:$0xff] }
 0x69f   :  { %13765 = vst [vmem:[#allocation63_spill] sm:$0xff] %v8325_v1  ;;  %v8345_v19 = vmul.f32 %v8058_v3, %v13774_v41  ;;  %v13776_v1 = vld [vmem:[#allocation113_spill] sm:$0xff] }
 0x6a0   :  { %13767 = vst [vmem:[#allocation66_spill] sm:$0xff] %v8329_v30  ;;  %v8349_v34 = vmul.f32 %v8058_v3, %v13776_v1  ;;  %v13778_v30 = vld [vmem:[#allocation117_spill] sm:$0xff] }
 0x6a1   :  { %13769 = vst [vmem:[#allocation69_spill] sm:$0xff] %v8333_v8  ;;  %v8353_v54 = vmul.f32 %v8058_v3, %v13778_v30  ;;  %v13780_v8 = vld [vmem:[#allocation121_spill] sm:$0xff] }
 0x6a2   :  { %13771 = vst [vmem:[#allocation72_spill] sm:$0xff] %v8337_v7  ;;  %v8357_v38 = vmul.f32 %v8058_v3, %v13780_v8  ;;  %v13782_v7 = vld [vmem:[#allocation125_spill] sm:$0xff] }
 0x6a3   :  { %13773 = vst [vmem:[#allocation87_spill] sm:$0xff] %v8341_v43  ;;  %v8361_v21 = vmul.f32 %v8058_v3, %v13782_v7  ;;  %v13784_v43 = vld [vmem:[#allocation129_spill] sm:$0xff] }
 0x6a4   :  { %13775 = vst [vmem:[#allocation93_spill] sm:$0xff] %v8345_v19  ;;  %v8365_v41 = vmul.f32 %v8058_v3, %v13784_v43  ;;  %v13785_v19 = vld [vmem:[#allocation133_spill] sm:$0xff] }
 0x6a5   :  { %13777 = vst [vmem:[#allocation96_spill] sm:$0xff] %v8349_v34  ;;  %v8369_v1 = vmul.f32 %v8058_v3, %v13785_v19  ;;  %v13786_v34 = vld [vmem:[#allocation137_spill] sm:$0xff]  ;;  %v8389_v19 = vmul.f32 %v8058_v3, %v13661_v31  ;;  %v8409_v31 = vmul.f32 %v8058_v3, %v13455_v48  ;;  %v8429_v48 = vmul.f32 %v8058_v3, %v13462_v44 }
 0x6a6   :  { %13779 = vst [vmem:[#allocation116_spill] sm:$0xff] %v8353_v54  ;;  %v8373_v30 = vmul.f32 %v8058_v3, %v13786_v34  ;;  %v13787_v54 = vld [vmem:[#allocation141_spill] sm:$0xff]  ;;  %v8393_v34 = vmul.f32 %v8058_v3, %v13662_v63  ;;  %v8413_v63 = vmul.f32 %v8058_v3, %v13456_v50  ;;  %v8433_v50 = vmul.f32 %v8058_v3, %v13667_v27 }
 0x6a7   :  { %13781 = vst [vmem:[#allocation120_spill] sm:$0xff] %v8357_v38  ;;  %v8377_v8 = vmul.f32 %v8058_v3, %v13787_v54  ;;  %v13789_v38 = vld [vmem:[#allocation144_spill] sm:$0xff]  ;;  %v8397_v54 = vmul.f32 %v8058_v3, %v13663_v55  ;;  %v8449_v44 = vmul.f32 %v8058_v3, %v7269_v61  ;;  %v8453_v27 = vmul.f32 %v8058_v3, %v7283_v18 }
 0x6a8   :  { %13783 = vst [vmem:[#allocation124_spill] sm:$0xff] %v8361_v21  ;;  %v8381_v7 = vmul.f32 %v8058_v3, %v13789_v38  ;;  %v13791_v21 = vld [vmem:[#allocation147_spill] sm:$0xff]  ;;  %v8469_v61 = vmul.f32 %v8058_v3, %v13467_v0  ;;  %v8473_v18 = vmul.f32 %v8058_v3, %v7341_v53  ;;  %v8489_v0 = vmul.f32 %v8058_v3, %v7386_v52 }
 0x6a9   :  { %13788 = vst [vmem:[#allocation128_spill] sm:$0xff] %v8377_v8  ;;  %v8385_v43 = vmul.f32 %v8058_v3, %v13791_v21  ;;  %v13794_v8 = vld [vmem:[#allocation163_spill] sm:$0xff]  ;;  %v8493_v53 = vmul.f32 %v8058_v3, %v7426_v56 }
 0x6aa   :  { %13790 = vst [vmem:[#allocation153_spill] sm:$0xff] %v8381_v7  ;;  %v8401_v38 = vmul.f32 %v8058_v3, %v13794_v8  ;;  %v13796_v7 = vld [vmem:[#allocation168_spill] sm:$0xff] }
 0x6ab   :  { %13792 = vst [vmem:[#allocation157_spill] sm:$0xff] %v8393_v34  ;;  %v8405_v21 = vmul.f32 %v8058_v3, %v13796_v7  ;;  %v13797_v34 = vld [vmem:[#allocation178_spill] sm:$0xff] }
 0x6ac   :  { %13793 = vst [vmem:[#allocation160_spill] sm:$0xff] %v8397_v54  ;;  %v8417_v55 = vmul.f32 %v8058_v3, %v13797_v34  ;;  %v13799_v54 = vld [vmem:[#allocation181_spill] sm:$0xff]  ;;  %v8437_v34 = vmul.f32 %v8058_v3, %v13668_v32  ;;  %v8457_v32 = vmul.f32 %v8058_v3, %v13670_v15  ;;  %v8477_v15 = vmul.f32 %v8058_v3, %v13672_v37 }
 0x6ad   :  { %13795 = vst [vmem:[#allocation164_spill] sm:$0xff] %v8401_v38  ;;  %v8421_v8 = vmul.f32 %v8058_v3, %v13799_v54  ;;  %v13801_v38 = vld [vmem:[#allocation183_spill] sm:$0xff] }
 0x6ae   :  { %13798 = vst [vmem:[#allocation179_spill] sm:$0xff] %v8417_v55  ;;  %v8425_v7 = vmul.f32 %v8058_v3, %v13801_v38  ;;  %v13803_v55 = vld [vmem:[#allocation193_spill] sm:$0xff] }
 0x6af   :  { %13800 = vst [vmem:[#allocation189_spill] sm:$0xff] %v8421_v8  ;;  %v8441_v54 = vmul.f32 %v8058_v3, %v13803_v55  ;;  %v13805_v8 = vld [vmem:[#allocation195_spill] sm:$0xff] }
 0x6b0   :  { %13802 = vst [vmem:[#allocation196_spill] sm:$0xff] %v8437_v34  ;;  %v8445_v38 = vmul.f32 %v8058_v3, %v13805_v8  ;;  %v13807_v34 = vld [vmem:[#allocation205_spill] sm:$0xff] }
 0x6b1   :  { %13804 = vst [vmem:[#allocation198_spill] sm:$0xff] %v8441_v54  ;;  %v8461_v55 = vmul.f32 %v8058_v3, %v13807_v34  ;;  %v13809_v54 = vld [vmem:[#allocation207_spill] sm:$0xff] }
 0x6b2   :  { %13806 = vst [vmem:[#allocation200_spill] sm:$0xff] %v8457_v32  ;;  %v8465_v8 = vmul.f32 %v8058_v3, %v13809_v54  ;;  %v13812_v32 = vld [vmem:[#allocation212_spill] sm:$0xff] }
 0x6b3   :  { %13808 = vst [vmem:[#allocation203_spill] sm:$0xff] %v8461_v55  ;;  %v8481_v34 = vmul.f32 %v8058_v3, %v13812_v32  ;;  %v13814_v55 = vld [vmem:[#allocation214_spill] sm:$0xff] }
 0x6b4   :  { %13810 = vst [vmem:[#allocation206_spill] sm:$0xff] %v8473_v18  ;;  %v8485_v54 = vmul.f32 %v8058_v3, %v13814_v55  ;;  %v13818_v18 = vld [vmem:[#allocation222_spill] sm:$0xff] }
 0x6b5   :  { %13811 = vst [vmem:[#allocation208_spill] sm:$0xff] %v8477_v15  ;;  %v8497_v37 = vmul.f32 %v8058_v3, %v13818_v18  ;;  %v13820_v15 = vld [vmem:[#allocation223_spill] sm:$0xff] }
 0x6b6   :  { %13813 = vst [vmem:[#allocation210_spill] sm:$0xff] %v8481_v34  ;;  %v8501_v32 = vmul.f32 %v8058_v3, %v13820_v15  ;;  %v13822_v34 = vld [vmem:[#allocation224_spill] sm:$0xff] }
 0x6b7   :  { %13815 = vst [vmem:[#allocation90_spill] sm:$0xff] %v8485_v54  ;;  %v8505_v55 = vmul.f32 %v8058_v3, %v13822_v34  ;;  %v13824_v54 = vld [vmem:[#allocation225_spill] sm:$0xff] }
 0x6b8   :  { %13816 = vst [vmem:[#allocation211_spill] sm:$0xff] %v8489_v0  ;;  %v8509_v52 = vmul.f32 %v8058_v3, %v13824_v54  ;;  %v13826_v0 = vld [vmem:[#allocation226_spill] sm:$0xff] }
 0x6b9   :  { %13817 = vst [vmem:[#allocation213_spill] sm:$0xff] %v8493_v53  ;;  %v8513_v56 = vmul.f32 %v8058_v3, %v13826_v0  ;;  %v13828_v53 = vld [vmem:[#allocation172_spill] sm:$0xff]  ;;  %v13836_v0 = vsub.f32 %v8063_v28, %v8056_v23 }
 0x6ba   :  { %13819 = vst [vmem:[#allocation215_spill] sm:$0xff] %v8497_v37  ;;  %v8517_v18 = vmul.f32 %v8058_v3, %v13828_v53  ;;  %v13830_v37 = vld [vmem:[#allocation175_spill] sm:$0xff]  ;;  %v13846_v28 = vld [vmem:[#allocation232_spill] sm:$0xff] }
 0x6bb   :  { %13821 = vst [vmem:[#allocation216_spill] sm:$0xff] %v8501_v32  ;;  %v8521_v15 = vmul.f32 %v8058_v3, %v13830_v37  ;;  %v13832_v32 = vld [vmem:[#allocation185_spill] sm:$0xff] }
 0x6bc   :  { %13823 = vst [vmem:[#allocation217_spill] sm:$0xff] %v8505_v55  ;;  %v8525_v34 = vmul.f32 %v8058_v3, %v13832_v32  ;;  %v13834_v55 = vld [vmem:[#allocation227_spill] sm:$0xff] }
 0x6bd   :  { %13825 = vst [vmem:[#allocation218_spill] sm:$0xff] %v8509_v52  ;;  %v8529_v54 = vmul.f32 %v8058_v3, %v13834_v55  ;;  %v13837_v52 = vld [vmem:[#allocation228_spill] sm:$0xff] }
 0x6be   :  { %13827 = vst [vmem:[#allocation219_spill] sm:$0xff] %v8513_v56  ;;  %v8534_v56 = vperm.slane %v13836_v0, 0  ;;  %v8538_v53 = vmul.f32 %v8058_v3, %v13837_v52  ;;  %v8558_v52 = vmul.f32 %v8058_v3, %v13846_v28  ;;  %v13848_v0 = vld [vmem:[#allocation233_spill] sm:$0xff] }
 0x6bf   :  { %13829 = vst [vmem:[#allocation220_spill] sm:$0xff] %v8517_v18  ;;  %v13838_v18 = vld [vmem:[#allocation229_spill] sm:$0xff] }
 0x6c0   :  { %13831 = vst [vmem:[#allocation221_spill] sm:$0xff] %v8521_v15  ;;  %v8542_v37 = vmul.f32 %v8058_v3, %v13838_v18  ;;  %v13840_v15 = vld [vmem:[#allocation209_spill] sm:$0xff]  ;;  %v8562_v18 = vmul.f32 %v8058_v3, %v13848_v0 }
 0x6c1   :  { %13833 = vst [vmem:[#allocation97_spill] sm:$0xff] %v8525_v34  ;;  %v8546_v32 = vmul.f32 %v8058_v3, %v13840_v15  ;;  %v13842_v34 = vld [vmem:[#allocation230_spill] sm:$0xff] }
 0x6c2   :  { %13835 = vst [vmem:[#allocation101_spill] sm:$0xff] %v8529_v54  ;;  %v8550_v55 = vmul.f32 %v8058_v3, %v13842_v34  ;;  %v13844_v54 = vld [vmem:[#allocation231_spill] sm:$0xff] }
 0x6c3   :  { %13839 = vst [vmem:[#allocation105_spill] sm:$0xff] %v8542_v37  ;;  %v8554_v23 = vmul.f32 %v8058_v3, %v13844_v54  ;;  %v13850_v37 = vld [vmem:[#allocation234_spill] sm:$0xff] }
 0x6c4   :  { %13841 = vst [vmem:[#allocation109_spill] sm:$0xff] %v8546_v32  ;;  %v8566_v15 = vmul.f32 %v8058_v3, %v13850_v37  ;;  %v13851_v32 = vld [vmem:[#allocation235_spill] sm:$0xff] }
 0x6c5   :  { %13843 = vst [vmem:[#allocation113_spill] sm:$0xff] %v8550_v55  ;;  %v8570_v34 = vmul.f32 %v8058_v3, %v13851_v32  ;;  %v13852_v55 = vld [vmem:[#allocation236_spill] sm:$0xff]  ;;  %v8590_v32 = vmul.f32 %v8058_v3, %v13693_v29  ;;  %v8610_v29 = vadd.f32 %v8534_v56, %v8085_v20  ;;  %v8630_v20 = vadd.f32 %v8534_v56, %v8105_v6 }
 0x6c6   :  { %13845 = vst [vmem:[#allocation117_spill] sm:$0xff] %v8554_v23  ;;  %v8574_v54 = vmul.f32 %v8058_v3, %v13852_v55  ;;  %v13853_v23 = vld [vmem:[#allocation237_spill] sm:$0xff]  ;;  %v8594_v55 = vadd.f32 %v8534_v56, %v8069_v11  ;;  %v8614_v11 = vadd.f32 %v8534_v56, %v8089_v33  ;;  %v8634_v33 = vadd.f32 %v8534_v56, %v8109_v16 }
 0x6c7   :  { %13847 = vst [vmem:[#allocation121_spill] sm:$0xff] %v8558_v52  ;;  %v8578_v28 = vmul.f32 %v8058_v3, %v13853_v23  ;;  %v13854_v52 = vld [vmem:[#allocation238_spill] sm:$0xff]  ;;  %v8598_v23 = vadd.f32 %v8534_v56, %v8073_v22  ;;  %v8618_v22 = vadd.f32 %v8534_v56, %v8093_v10  ;;  %v8638_v10 = vadd.f32 %v8534_v56, %v8113_v5 }
 0x6c8   :  { %13849 = vst [vmem:[#allocation125_spill] sm:$0xff] %v8562_v18  ;;  %v8582_v0 = vmul.f32 %v8058_v3, %v13854_v52  ;;  %v13855_v18 = vld [vmem:[#allocation239_spill] sm:$0xff]  ;;  %v8602_v52 = vadd.f32 %v8534_v56, %v8077_v42  ;;  %v8622_v42 = vadd.f32 %v8534_v56, %v8097_v45  ;;  %v8642_v45 = vadd.f32 %v8534_v56, %v8117_v9 }
 0x6c9   :  { %v8586_v37 = vmul.f32 %v8058_v3, %v13855_v18  ;;  %13856 = vst [vmem:[#allocation129_spill] sm:$0xff] %v8594_v55  ;;  %v8606_v18 = vadd.f32 %v8534_v56, %v8081_v13  ;;  %v8626_v13 = vadd.f32 %v8534_v56, %v8101_v26  ;;  %v8646_v26 = vadd.f32 %v8534_v56, %v8121_v14  ;;  %v14120_v55 = vld [vmem:[#allocation146_spill] sm:$0xff] }
 0x6ca   :  { %13857 = vst [vmem:[#allocation133_spill] sm:$0xff] %v8598_v23  ;;  %v8650_v6 = vadd.f32 %v8534_v56, %v8125_v59  ;;  %v8654_v16 = vadd.f32 %v8534_v56, %v8129_v60  ;;  %v8658_v5 = vadd.f32 %v8534_v56, %v8133_v24  ;;  %v8678_v24 = vadd.f32 %v8534_v56, %v8153_v2  ;;  %v14118_v23 = vld [vmem:[#allocation142_spill] sm:$0xff] }
 0x6cb   :  { %13858 = vst [vmem:[#allocation137_spill] sm:$0xff] %v8602_v52  ;;  %v8698_v2 = vadd.f32 %v8534_v56, %v8173_v4  ;;  %v8718_v4 = vadd.f32 %v8534_v56, %v8193_v39  ;;  %v8738_v39 = vadd.f32 %v8534_v56, %v8213_v46  ;;  %v8758_v46 = vadd.f32 %v8534_v56, %v8233_v57  ;;  %v14116_v52 = vld [vmem:[#allocation138_spill] sm:$0xff] }
 0x6cc   :  { %13859 = vst [vmem:[#allocation141_spill] sm:$0xff] %v8606_v18  ;;  %v14114_v18 = vld [vmem:[#allocation134_spill] sm:$0xff] }
 0x6cd   :  { %13860 = vst [vmem:[#allocation144_spill] sm:$0xff] %v8610_v29  ;;  %v14112_v29 = vld [vmem:[#allocation130_spill] sm:$0xff] }
 0x6ce   :  { %13861 = vst [vmem:[#allocation147_spill] sm:$0xff] %v8614_v11  ;;  %v14110_v11 = vld [vmem:[#allocation126_spill] sm:$0xff] }
 0x6cf   :  { %13862 = vst [vmem:[#allocation163_spill] sm:$0xff] %v8618_v22  ;;  %v14109_v22 = vld [vmem:[#allocation122_spill] sm:$0xff] }
 0x6d0   :  { %13863 = vst [vmem:[#allocation168_spill] sm:$0xff] %v8622_v42  ;;  %v14108_v42 = vld [vmem:[#allocation118_spill] sm:$0xff] }
 0x6d1   :  { %13864 = vst [vmem:[#allocation178_spill] sm:$0xff] %v8626_v13  ;;  %v14107_v13 = vld [vmem:[#allocation114_spill] sm:$0xff] }
 0x6d2   :  { %13865 = vst [vmem:[#allocation181_spill] sm:$0xff] %v8630_v20  ;;  %v14106_v20 = vld [vmem:[#allocation110_spill] sm:$0xff] }
 0x6d3   :  { %13866 = vst [vmem:[#allocation183_spill] sm:$0xff] %v8634_v33  ;;  %v14105_v33 = vld [vmem:[#allocation106_spill] sm:$0xff] }
 0x6d4   :  { %13867 = vst [vmem:[#allocation193_spill] sm:$0xff] %v8638_v10  ;;  %v13873_v10 = vld [vmem:[#allocation75_spill] sm:$0xff] }
 0x6d5   :  { %13868 = vst [vmem:[#allocation195_spill] sm:$0xff] %v8642_v45  ;;  %v8662_v9 = vadd.f32 %v8534_v56, %v13873_v10  ;;  %v13875_v45 = vld [vmem:[#allocation78_spill] sm:$0xff]  ;;  %v8682_v10 = vadd.f32 %v8534_v56, %v8157_v47 }
 0x6d6   :  { %13869 = vst [vmem:[#allocation205_spill] sm:$0xff] %v8646_v26  ;;  %v8666_v14 = vadd.f32 %v8534_v56, %v13875_v45  ;;  %v13877_v26 = vld [vmem:[#allocation81_spill] sm:$0xff]  ;;  %v8686_v45 = vadd.f32 %v8534_v56, %v8161_v36 }
 0x6d7   :  { %13870 = vst [vmem:[#allocation207_spill] sm:$0xff] %v8650_v6  ;;  %v8670_v59 = vadd.f32 %v8534_v56, %v13877_v26  ;;  %v13879_v6 = vld [vmem:[#allocation84_spill] sm:$0xff]  ;;  %v8690_v26 = vadd.f32 %v8534_v56, %v8165_v49 }
 0x6d8   :  { %13871 = vst [vmem:[#allocation212_spill] sm:$0xff] %v8654_v16  ;;  %v8674_v60 = vadd.f32 %v8534_v56, %v13879_v6  ;;  %v8694_v6 = vadd.f32 %v8534_v56, %v8169_v17  ;;  %v14104_v16 = vld [vmem:[#allocation102_spill] sm:$0xff] }
 0x6d9   :  { %13872 = vst [vmem:[#allocation214_spill] sm:$0xff] %v8658_v5  ;;  %v14103_v5 = vld [vmem:[#allocation98_spill] sm:$0xff] }
 0x6da   :  { %13874 = vst [vmem:[#allocation222_spill] sm:$0xff] %v8662_v9  ;;  %v14102_v9 = vld [vmem:[#allocation94_spill] sm:$0xff] }
 0x6db   :  { %13876 = vst [vmem:[#allocation223_spill] sm:$0xff] %v8666_v14  ;;  %v14101_v14 = vld [vmem:[#allocation91_spill] sm:$0xff] }
 0x6dc   :  { %13878 = vst [vmem:[#allocation224_spill] sm:$0xff] %v8670_v59  ;;  %v14100_v59 = vld [vmem:[#allocation88_spill] sm:$0xff] }
 0x6dd   :  { %13880 = vst [vmem:[#allocation225_spill] sm:$0xff] %v8674_v60  ;;  %v14099_v60 = vld [vmem:[#allocation85_spill] sm:$0xff] }
 0x6de   :  { %13881 = vst [vmem:[#allocation226_spill] sm:$0xff] %v8678_v24  ;;  %v13887_v24 = vld [vmem:[#allocation100_spill] sm:$0xff] }
 0x6df   :  { %13882 = vst [vmem:[#allocation172_spill] sm:$0xff] %v8682_v10  ;;  %v8702_v47 = vadd.f32 %v8534_v56, %v13887_v24  ;;  %v13889_v10 = vld [vmem:[#allocation108_spill] sm:$0xff]  ;;  %v8722_v24 = vadd.f32 %v8534_v56, %v8197_v51  ;;  %v8742_v51 = vadd.f32 %v8534_v56, %v8217_v62  ;;  %v8762_v62 = vadd.f32 %v8534_v56, %v8237_v40 }
 0x6e0   :  { %13883 = vst [vmem:[#allocation175_spill] sm:$0xff] %v8686_v45  ;;  %v8706_v36 = vadd.f32 %v8534_v56, %v13889_v10  ;;  %v13891_v45 = vld [vmem:[#allocation112_spill] sm:$0xff]  ;;  %v8726_v10 = vadd.f32 %v8534_v56, %v8201_v12  ;;  %v8746_v12 = vadd.f32 %v8534_v56, %v8221_v25 }
 0x6e1   :  { %13884 = vst [vmem:[#allocation185_spill] sm:$0xff] %v8690_v26  ;;  %v8710_v49 = vadd.f32 %v8534_v56, %v13891_v45  ;;  %v13893_v26 = vld [vmem:[#allocation132_spill] sm:$0xff]  ;;  %v8730_v45 = vadd.f32 %v8534_v56, %v8205_v58  ;;  %v8750_v58 = vadd.f32 %v8534_v56, %v8225_v35 }
 0x6e2   :  { %13885 = vst [vmem:[#allocation227_spill] sm:$0xff] %v8694_v6  ;;  %v8714_v17 = vadd.f32 %v8534_v56, %v13893_v26  ;;  %v14098_v6 = vld [vmem:[#allocation82_spill] sm:$0xff] }
 0x6e3   :  { %13886 = vst [vmem:[#allocation228_spill] sm:$0xff] %v8698_v2  ;;  %v14097_v2 = vld [vmem:[#allocation79_spill] sm:$0xff] }
 0x6e4   :  { %13888 = vst [vmem:[#allocation229_spill] sm:$0xff] %v8702_v47  ;;  %v14096_v47 = vld [vmem:[#allocation76_spill] sm:$0xff] }
 0x6e5   :  { %13890 = vst [vmem:[#allocation209_spill] sm:$0xff] %v8706_v36  ;;  %v14095_v36 = vld [vmem:[#allocation73_spill] sm:$0xff] }
 0x6e6   :  { %13892 = vst [vmem:[#allocation230_spill] sm:$0xff] %v8710_v49  ;;  %v13899_v49 = vld [vmem:[#allocation136_spill] sm:$0xff] }
 0x6e7   :  { %13894 = vst [vmem:[#allocation231_spill] sm:$0xff] %v8714_v17  ;;  %v8734_v26 = vadd.f32 %v8534_v56, %v13899_v49  ;;  %v14094_v17 = vld [vmem:[#allocation70_spill] sm:$0xff] }
 0x6e8   :  { %13895 = vst [vmem:[#allocation232_spill] sm:$0xff] %v8718_v4  ;;  %v14093_v4 = vld [vmem:[#allocation67_spill] sm:$0xff] }
 0x6e9   :  { %13896 = vst [vmem:[#allocation233_spill] sm:$0xff] %v8722_v24  ;;  %v14092_v24 = vld [vmem:[#allocation64_spill] sm:$0xff] }
 0x6ea   :  { %13897 = vst [vmem:[#allocation234_spill] sm:$0xff] %v8726_v10  ;;  %v14091_v10 = vld [vmem:[#allocation61_spill] sm:$0xff] }
 0x6eb   :  { %13898 = vst [vmem:[#allocation235_spill] sm:$0xff] %v8730_v45  ;;  %v13905_v45 = vld [vmem:[#allocation140_spill] sm:$0xff] }
 0x6ec   :  { %13900 = vst [vmem:[#allocation236_spill] sm:$0xff] %v8734_v26  ;;  %v8754_v49 = vadd.f32 %v8534_v56, %v13905_v45  ;;  %v14090_v26 = vld [vmem:[#allocation58_spill] sm:$0xff] }
 0x6ed   :  { %13901 = vst [vmem:[#allocation237_spill] sm:$0xff] %v8738_v39  ;;  %v14089_v39 = vld [vmem:[#allocation55_spill] sm:$0xff] }
 0x6ee   :  { %13902 = vst [vmem:[#allocation238_spill] sm:$0xff] %v8742_v51  ;;  %v13909_v51 = vld [vmem:[#allocation143_spill] sm:$0xff] }
 0x6ef   :  { %13903 = vst [vmem:[#allocation239_spill] sm:$0xff] %v8746_v12  ;;  %v8766_v25 = vadd.f32 %v8534_v56, %v13909_v51  ;;  %v13911_v12 = vld [vmem:[#allocation167_spill] sm:$0xff] }
 0x6f0   :  { %13904 = vst [vmem:[#allocation75_spill] sm:$0xff] %v8750_v58  ;;  %v8770_v35 = vadd.f32 %v8534_v56, %v13911_v12  ;;  %v13913_v58 = vld [vmem:[#allocation171_spill] sm:$0xff] }
 0x6f1   :  { %13906 = vst [vmem:[#allocation78_spill] sm:$0xff] %v8754_v49  ;;  %v8774_v45 = vadd.f32 %v8534_v56, %v13913_v58  ;;  %v13915_v49 = vld [vmem:[#allocation174_spill] sm:$0xff] }
 0x6f2   :  { %13907 = vst [vmem:[#allocation81_spill] sm:$0xff] %v8758_v46  ;;  %v8778_v57 = vadd.f32 %v8534_v56, %v13915_v49  ;;  %v13917_v46 = vld [vmem:[#allocation176_spill] sm:$0xff] }
 0x6f3   :  { %13908 = vst [vmem:[#allocation84_spill] sm:$0xff] %v8762_v62  ;;  %v8782_v40 = vadd.f32 %v8534_v56, %v13917_v46  ;;  %v13919_v62 = vld [vmem:[#allocation186_spill] sm:$0xff] }
 0x6f4   :  { %13910 = vst [vmem:[#allocation100_spill] sm:$0xff] %v8766_v25  ;;  %v8786_v51 = vadd.f32 %v8534_v56, %v13919_v62  ;;  %v13921_v25 = vld [vmem:[#allocation150_spill] sm:$0xff] }
 0x6f5   :  { %13912 = vst [vmem:[#allocation108_spill] sm:$0xff] %v8770_v35  ;;  %v8790_v12 = vadd.f32 %v8534_v56, %v13921_v25  ;;  %v13923_v35 = vld [vmem:[#allocation154_spill] sm:$0xff] }
 0x6f6   :  { %13914 = vst [vmem:[#allocation112_spill] sm:$0xff] %v8774_v45  ;;  %v8794_v58 = vadd.f32 %v8534_v56, %v13923_v35  ;;  %v13925_v45 = vld [vmem:[#allocation158_spill] sm:$0xff] }
 0x6f7   :  { %13916 = vst [vmem:[#allocation132_spill] sm:$0xff] %v8778_v57  ;;  %v8798_v49 = vadd.f32 %v8534_v56, %v13925_v45  ;;  %v13927_v57 = vld [vmem:[#allocation188_spill] sm:$0xff] }
 0x6f8   :  { %13918 = vst [vmem:[#allocation136_spill] sm:$0xff] %v8782_v40  ;;  %v8802_v46 = vadd.f32 %v8534_v56, %v13927_v57  ;;  %v13929_v40 = vld [vmem:[#allocation191_spill] sm:$0xff] }
 0x6f9   :  { %13920 = vst [vmem:[#allocation140_spill] sm:$0xff] %v8786_v51  ;;  %v8806_v62 = vadd.f32 %v8534_v56, %v13929_v40  ;;  %v13931_v51 = vld [vmem:[#allocation202_spill] sm:$0xff] }
 0x6fa   :  { %13922 = vst [vmem:[#allocation143_spill] sm:$0xff] %v8790_v12  ;;  %v8810_v25 = vadd.f32 %v8534_v56, %v13931_v51  ;;  %v13933_v12 = vld [vmem:[#allocation104_spill] sm:$0xff] }
 0x6fb   :  { %13924 = vst [vmem:[#allocation167_spill] sm:$0xff] %v8794_v58  ;;  %v8814_v35 = vadd.f32 %v8534_v56, %v13933_v12  ;;  %v13935_v58 = vld [vmem:[#allocation240_spill] sm:$0xff] }
 0x6fc   :  { %13926 = vst [vmem:[#allocation171_spill] sm:$0xff] %v8798_v49  ;;  %v8818_v45 = vadd.f32 %v8534_v56, %v13935_v58  ;;  %v13937_v49 = vld [vmem:[#allocation201_spill] sm:$0xff] }
 0x6fd   :  { %13928 = vst [vmem:[#allocation174_spill] sm:$0xff] %v8802_v46  ;;  %v8822_v57 = vadd.f32 %v8534_v56, %v13937_v49  ;;  %v13939_v46 = vld [vmem:[#allocation204_spill] sm:$0xff] }
 0x6fe   :  { %13930 = vst [vmem:[#allocation176_spill] sm:$0xff] %v8806_v62  ;;  %v8826_v40 = vadd.f32 %v8534_v56, %v13939_v46  ;;  %v13941_v62 = vld [vmem:[#allocation48_spill] sm:$0xff] }
 0x6ff   :  { %13932 = vst [vmem:[#allocation186_spill] sm:$0xff] %v8810_v25  ;;  %v8830_v51 = vadd.f32 %v8534_v56, %v13941_v62  ;;  %v13943_v25 = vld [vmem:[#allocation51_spill] sm:$0xff] }
 0x700   :  { %13934 = vst [vmem:[#allocation150_spill] sm:$0xff] %v8814_v35  ;;  %v8834_v12 = vadd.f32 %v8534_v56, %v13943_v25  ;;  %v13945_v35 = vld [vmem:[#allocation54_spill] sm:$0xff] }
 0x701   :  { %13936 = vst [vmem:[#allocation154_spill] sm:$0xff] %v8818_v45  ;;  %v8838_v58 = vadd.f32 %v8534_v56, %v13945_v35  ;;  %v13947_v45 = vld [vmem:[#allocation57_spill] sm:$0xff] }
 0x702   :  { %13938 = vst [vmem:[#allocation158_spill] sm:$0xff] %v8822_v57  ;;  %v8842_v49 = vadd.f32 %v8534_v56, %v13947_v45  ;;  %v13949_v57 = vld [vmem:[#allocation60_spill] sm:$0xff] }
 0x703   :  { %13940 = vst [vmem:[#allocation188_spill] sm:$0xff] %v8826_v40  ;;  %v8846_v46 = vadd.f32 %v8534_v56, %v13949_v57  ;;  %v13951_v40 = vld [vmem:[#allocation63_spill] sm:$0xff] }
 0x704   :  { %13942 = vst [vmem:[#allocation191_spill] sm:$0xff] %v8830_v51  ;;  %v8850_v62 = vadd.f32 %v8534_v56, %v13951_v40  ;;  %v13953_v51 = vld [vmem:[#allocation66_spill] sm:$0xff] }
 0x705   :  { %13944 = vst [vmem:[#allocation202_spill] sm:$0xff] %v8834_v12  ;;  %v8854_v25 = vadd.f32 %v8534_v56, %v13953_v51  ;;  %v13955_v12 = vld [vmem:[#allocation69_spill] sm:$0xff] }
 0x706   :  { %13946 = vst [vmem:[#allocation104_spill] sm:$0xff] %v8838_v58  ;;  %v8858_v35 = vadd.f32 %v8534_v56, %v13955_v12  ;;  %v13957_v58 = vld [vmem:[#allocation72_spill] sm:$0xff] }
 0x707   :  { %13948 = vst [vmem:[#allocation240_spill] sm:$0xff] %v8842_v49  ;;  %v8862_v45 = vadd.f32 %v8534_v56, %v13957_v58  ;;  %v13959_v49 = vld [vmem:[#allocation87_spill] sm:$0xff] }
 0x708   :  { %13950 = vst [vmem:[#allocation201_spill] sm:$0xff] %v8846_v46  ;;  %v8866_v57 = vadd.f32 %v8534_v56, %v13959_v49  ;;  %v13961_v46 = vld [vmem:[#allocation93_spill] sm:$0xff] }
 0x709   :  { %13952 = vst [vmem:[#allocation204_spill] sm:$0xff] %v8850_v62  ;;  %v8870_v40 = vadd.f32 %v8534_v56, %v13961_v46  ;;  %v13963_v62 = vld [vmem:[#allocation96_spill] sm:$0xff]  ;;  %v8890_v46 = vadd.f32 %v8534_v56, %v8365_v41  ;;  %v8910_v41 = vadd.f32 %v8534_v56, %v8385_v43  ;;  %v8930_v43 = vadd.f32 %v8534_v56, %v8405_v21 }
 0x70a   :  { %13954 = vst [vmem:[#allocation48_spill] sm:$0xff] %v8854_v25  ;;  %v8874_v51 = vadd.f32 %v8534_v56, %v13963_v62  ;;  %v13965_v25 = vld [vmem:[#allocation116_spill] sm:$0xff]  ;;  %v8894_v62 = vadd.f32 %v8534_v56, %v8369_v1  ;;  %v8914_v1 = vadd.f32 %v8534_v56, %v8389_v19  ;;  %v8934_v19 = vadd.f32 %v8534_v56, %v8409_v31 }
 0x70b   :  { %13956 = vst [vmem:[#allocation51_spill] sm:$0xff] %v8858_v35  ;;  %v8878_v12 = vadd.f32 %v8534_v56, %v13965_v25  ;;  %v13967_v35 = vld [vmem:[#allocation120_spill] sm:$0xff]  ;;  %v8898_v25 = vadd.f32 %v8534_v56, %v8373_v30  ;;  %v8950_v21 = vadd.f32 %v8534_v56, %v8425_v7  ;;  %v8954_v31 = vadd.f32 %v8534_v56, %v8429_v48 }
 0x70c   :  { %13958 = vst [vmem:[#allocation54_spill] sm:$0xff] %v8862_v45  ;;  %v8882_v58 = vadd.f32 %v8534_v56, %v13967_v35  ;;  %v13969_v45 = vld [vmem:[#allocation124_spill] sm:$0xff]  ;;  %v8970_v7 = vadd.f32 %v8534_v56, %v8445_v38  ;;  %v8974_v48 = vadd.f32 %v8534_v56, %v8449_v44  ;;  %v8990_v38 = vadd.f32 %v8534_v56, %v8465_v8 }
 0x70d   :  { %13960 = vst [vmem:[#allocation57_spill] sm:$0xff] %v8866_v57  ;;  %v8886_v49 = vadd.f32 %v8534_v56, %v13969_v45  ;;  %v8994_v44 = vadd.f32 %v8534_v56, %v8469_v61  ;;  %v14088_v57 = vld [vmem:[#allocation52_spill] sm:$0xff] }
 0x70e   :  { %13962 = vst [vmem:[#allocation60_spill] sm:$0xff] %v8870_v40  ;;  %v14087_v40 = vld [vmem:[#allocation49_spill] sm:$0xff] }
 0x70f   :  { %13964 = vst [vmem:[#allocation63_spill] sm:$0xff] %v8874_v51  ;;  %v14086_v51 = vld [vmem:[#allocation46_spill] sm:$0xff] }
 0x710   :  { %13966 = vst [vmem:[#allocation66_spill] sm:$0xff] %v8878_v12  ;;  %v13974_v12 = vld [vmem:[#allocation128_spill] sm:$0xff] }
 0x711   :  { %13968 = vst [vmem:[#allocation69_spill] sm:$0xff] %v8882_v58  ;;  %v8902_v35 = vadd.f32 %v8534_v56, %v13974_v12  ;;  %v13976_v58 = vld [vmem:[#allocation153_spill] sm:$0xff] }
 0x712   :  { %13970 = vst [vmem:[#allocation72_spill] sm:$0xff] %v8886_v49  ;;  %v8906_v45 = vadd.f32 %v8534_v56, %v13976_v58  ;;  %v14085_v49 = vld [vmem:[#allocation44_spill] sm:$0xff] }
 0x713   :  { %13971 = vst [vmem:[#allocation87_spill] sm:$0xff] %v8890_v46  ;;  %v14084_v46 = vld [vmem:[#allocation42_spill] sm:$0xff] }
 0x714   :  { %13972 = vst [vmem:[#allocation93_spill] sm:$0xff] %v8894_v62  ;;  %v13980_v62 = vld [vmem:[#allocation157_spill] sm:$0xff] }
 0x715   :  { %13973 = vst [vmem:[#allocation96_spill] sm:$0xff] %v8898_v25  ;;  %v8918_v30 = vadd.f32 %v8534_v56, %v13980_v62  ;;  %v13982_v25 = vld [vmem:[#allocation160_spill] sm:$0xff]  ;;  %v8938_v62 = vadd.f32 %v8534_v56, %v8413_v63  ;;  %v8958_v63 = vadd.f32 %v8534_v56, %v8433_v50  ;;  %v8978_v50 = vadd.f32 %v8534_v56, %v8453_v27 }
 0x716   :  { %13975 = vst [vmem:[#allocation116_spill] sm:$0xff] %v8902_v35  ;;  %v8922_v12 = vadd.f32 %v8534_v56, %v13982_v25  ;;  %v13984_v35 = vld [vmem:[#allocation164_spill] sm:$0xff] }
 0x717   :  { %13977 = vst [vmem:[#allocation120_spill] sm:$0xff] %v8906_v45  ;;  %v8926_v58 = vadd.f32 %v8534_v56, %v13984_v35  ;;  %v14083_v45 = vld [vmem:[#allocation40_spill] sm:$0xff] }
 0x718   :  { %13978 = vst [vmem:[#allocation124_spill] sm:$0xff] %v8910_v41  ;;  %v14082_v41 = vld [vmem:[#allocation38_spill] sm:$0xff] }
 0x719   :  { %13979 = vst [vmem:[#allocation128_spill] sm:$0xff] %v8914_v1  ;;  %v14081_v1 = vld [vmem:[#allocation36_spill] sm:$0xff] }
 0x71a   :  { %13981 = vst [vmem:[#allocation153_spill] sm:$0xff] %v8918_v30  ;;  %v13989_v30 = vld [vmem:[#allocation179_spill] sm:$0xff] }
 0x71b   :  { %13983 = vst [vmem:[#allocation157_spill] sm:$0xff] %v8922_v12  ;;  %v8942_v25 = vadd.f32 %v8534_v56, %v13989_v30  ;;  %v13991_v12 = vld [vmem:[#allocation189_spill] sm:$0xff] }
 0x71c   :  { %13985 = vst [vmem:[#allocation160_spill] sm:$0xff] %v8926_v58  ;;  %v8946_v35 = vadd.f32 %v8534_v56, %v13991_v12  ;;  %v14080_v58 = vld [vmem:[#allocation34_spill] sm:$0xff] }
 0x71d   :  { %13986 = vst [vmem:[#allocation164_spill] sm:$0xff] %v8930_v43  ;;  %v14079_v43 = vld [vmem:[#allocation32_spill] sm:$0xff] }
 0x71e   :  { %13987 = vst [vmem:[#allocation241_spill] sm:$0xff] %v8934_v19  ;;  %v14078_v19 = vld [vmem:[#allocation30_spill] sm:$0xff] }
 0x71f   :  { %13988 = vst [vmem:[#allocation242_spill] sm:$0xff] %v8938_v62  ;;  %v13996_v62 = vld [vmem:[#allocation196_spill] sm:$0xff] }
 0x720   :  { %13990 = vst [vmem:[#allocation179_spill] sm:$0xff] %v8942_v25  ;;  %v8962_v30 = vadd.f32 %v8534_v56, %v13996_v62  ;;  %v13998_v25 = vld [vmem:[#allocation198_spill] sm:$0xff] }
 0x721   :  { %13992 = vst [vmem:[#allocation189_spill] sm:$0xff] %v8946_v35  ;;  %v8966_v12 = vadd.f32 %v8534_v56, %v13998_v25  ;;  %v14077_v35 = vld [vmem:[#allocation28_spill] sm:$0xff] }
 0x722   :  { %13993 = vst [vmem:[#allocation243_spill] sm:$0xff] %v8950_v21  ;;  %v14076_v21 = vld [vmem:[#allocation26_spill] sm:$0xff] }
 0x723   :  { %13994 = vst [vmem:[#allocation244_spill] sm:$0xff] %v8954_v31  ;;  %v14075_v31 = vld [vmem:[#allocation24_spill] sm:$0xff] }
 0x724   :  { %13995 = vst [vmem:[#allocation245_spill] sm:$0xff] %v8958_v63  ;;  %v14003_v63 = vld [vmem:[#allocation200_spill] sm:$0xff] }
 0x725   :  { %13997 = vst [vmem:[#allocation196_spill] sm:$0xff] %v8962_v30  ;;  %v8982_v62 = vadd.f32 %v8534_v56, %v14003_v63  ;;  %v14005_v30 = vld [vmem:[#allocation203_spill] sm:$0xff] }
 0x726   :  { %13999 = vst [vmem:[#allocation198_spill] sm:$0xff] %v8966_v12  ;;  %v8986_v25 = vadd.f32 %v8534_v56, %v14005_v30  ;;  %v14074_v12 = vld [vmem:[#allocation22_spill] sm:$0xff] }
 0x727   :  { %14000 = vst [vmem:[#allocation246_spill] sm:$0xff] %v8970_v7  ;;  %v14073_v7 = vld [vmem:[#allocation20_spill] sm:$0xff] }
 0x728   :  { %14001 = vst [vmem:[#allocation247_spill] sm:$0xff] %v8974_v48  ;;  %v14009_v48 = vld [vmem:[#allocation206_spill] sm:$0xff] }
 0x729   :  { %14002 = vst [vmem:[#allocation248_spill] sm:$0xff] %v8978_v50  ;;  %v8998_v27 = vadd.f32 %v8534_v56, %v14009_v48  ;;  %v14011_v50 = vld [vmem:[#allocation208_spill] sm:$0xff] }
 0x72a   :  { %14004 = vst [vmem:[#allocation200_spill] sm:$0xff] %v8982_v62  ;;  %v9002_v63 = vadd.f32 %v8534_v56, %v14011_v50  ;;  %v14013_v62 = vld [vmem:[#allocation210_spill] sm:$0xff] }
 0x72b   :  { %14006 = vst [vmem:[#allocation203_spill] sm:$0xff] %v8986_v25  ;;  %v9006_v30 = vadd.f32 %v8534_v56, %v14013_v62  ;;  %v14015_v25 = vld [vmem:[#allocation90_spill] sm:$0xff] }
 0x72c   :  { %14007 = vst [vmem:[#allocation249_spill] sm:$0xff] %v8990_v38  ;;  %v9010_v8 = vadd.f32 %v8534_v56, %v14015_v25  ;;  %v14017_v38 = vld [vmem:[#allocation211_spill] sm:$0xff] }
 0x72d   :  { %14008 = vst [vmem:[#allocation250_spill] sm:$0xff] %v8994_v44  ;;  %v9014_v61 = vadd.f32 %v8534_v56, %v14017_v38  ;;  %v14019_v44 = vld [vmem:[#allocation213_spill] sm:$0xff] }
 0x72e   :  { %14010 = vst [vmem:[#allocation206_spill] sm:$0xff] %v8998_v27  ;;  %v9018_v48 = vadd.f32 %v8534_v56, %v14019_v44  ;;  %v14021_v27 = vld [vmem:[#allocation215_spill] sm:$0xff] }
 0x72f   :  { %14012 = vst [vmem:[#allocation208_spill] sm:$0xff] %v9002_v63  ;;  %v9022_v50 = vadd.f32 %v8534_v56, %v14021_v27  ;;  %v14023_v63 = vld [vmem:[#allocation216_spill] sm:$0xff] }
 0x730   :  { %14014 = vst [vmem:[#allocation210_spill] sm:$0xff] %v9006_v30  ;;  %v9026_v62 = vadd.f32 %v8534_v56, %v14023_v63  ;;  %v14025_v30 = vld [vmem:[#allocation217_spill] sm:$0xff] }
 0x731   :  { %14016 = vst [vmem:[#allocation90_spill] sm:$0xff] %v9010_v8  ;;  %v9030_v25 = vadd.f32 %v8534_v56, %v14025_v30  ;;  %v14027_v8 = vld [vmem:[#allocation218_spill] sm:$0xff] }
 0x732   :  { %14018 = vst [vmem:[#allocation211_spill] sm:$0xff] %v9014_v61  ;;  %v9034_v38 = vadd.f32 %v8534_v56, %v14027_v8  ;;  %v14029_v61 = vld [vmem:[#allocation219_spill] sm:$0xff] }
 0x733   :  { %14020 = vst [vmem:[#allocation213_spill] sm:$0xff] %v9018_v48  ;;  %v9038_v44 = vadd.f32 %v8534_v56, %v14029_v61  ;;  %v14031_v48 = vld [vmem:[#allocation220_spill] sm:$0xff]  ;;  %v9058_v61 = vadd.f32 %v8534_v56, %v8538_v53 }
 0x734   :  { %14022 = vst [vmem:[#allocation215_spill] sm:$0xff] %v9022_v50  ;;  %v9042_v27 = vadd.f32 %v8534_v56, %v14031_v48  ;;  %v14033_v50 = vld [vmem:[#allocation221_spill] sm:$0xff] }
 0x735   :  { %14024 = vst [vmem:[#allocation216_spill] sm:$0xff] %v9026_v62  ;;  %v9046_v63 = vadd.f32 %v8534_v56, %v14033_v50  ;;  %v14035_v62 = vld [vmem:[#allocation97_spill] sm:$0xff] }
 0x736   :  { %14026 = vst [vmem:[#allocation217_spill] sm:$0xff] %v9030_v25  ;;  %v9050_v30 = vadd.f32 %v8534_v56, %v14035_v62  ;;  %v14037_v25 = vld [vmem:[#allocation101_spill] sm:$0xff] }
 0x737   :  { %14028 = vst [vmem:[#allocation218_spill] sm:$0xff] %v9034_v38  ;;  %v9054_v8 = vadd.f32 %v8534_v56, %v14037_v25  ;;  %v14072_v38 = vld [vmem:[#allocation18_spill] sm:$0xff] }
 0x738   :  { %14030 = vst [vmem:[#allocation219_spill] sm:$0xff] %v9038_v44  ;;  %v14040_v44 = vld [vmem:[#allocation105_spill] sm:$0xff] }
 0x739   :  { %14032 = vst [vmem:[#allocation220_spill] sm:$0xff] %v9042_v27  ;;  %v9062_v48 = vadd.f32 %v8534_v56, %v14040_v44  ;;  %v14042_v27 = vld [vmem:[#allocation109_spill] sm:$0xff] }
 0x73a   :  { %14034 = vst [vmem:[#allocation221_spill] sm:$0xff] %v9046_v63  ;;  %v9066_v50 = vadd.f32 %v8534_v56, %v14042_v27  ;;  %v14044_v63 = vld [vmem:[#allocation113_spill] sm:$0xff]  ;;  %v9086_v27 = vadd.f32 %v8534_v56, %v8566_v15  ;;  %v9106_v15 = vadd.f32 %v8534_v56, %v8586_v37 }
 0x73b   :  { %14036 = vst [vmem:[#allocation97_spill] sm:$0xff] %v9050_v30  ;;  %v9070_v62 = vadd.f32 %v8534_v56, %v14044_v63  ;;  %v14046_v30 = vld [vmem:[#allocation117_spill] sm:$0xff]  ;;  %v9090_v63 = vadd.f32 %v8534_v56, %v8570_v34  ;;  %v9110_v34 = vadd.f32 %v8534_v56, %v8590_v32 }
 0x73c   :  { %14038 = vst [vmem:[#allocation101_spill] sm:$0xff] %v9054_v8  ;;  %v9074_v25 = vadd.f32 %v8534_v56, %v14046_v30  ;;  %v14048_v8 = vld [vmem:[#allocation121_spill] sm:$0xff]  ;;  %v9094_v30 = vadd.f32 %v8534_v56, %v8574_v54 }
 0x73d   :  { %14039 = vst [vmem:[#allocation251_spill] sm:$0xff] %v9058_v61  ;;  %v9078_v53 = vadd.f32 %v8534_v56, %v14048_v8  ;;  %v14050_v61 = vld [vmem:[#allocation125_spill] sm:$0xff]  ;;  %v9098_v8 = vadd.f32 %v8534_v56, %v8578_v28 }
 0x73e   :  { %14041 = vst [vmem:[#allocation105_spill] sm:$0xff] %v9062_v48  ;;  %v9082_v44 = vadd.f32 %v8534_v56, %v14050_v61  ;;  %v9102_v61 = vadd.f32 %v8534_v56, %v8582_v0  ;;  %v14071_v48 = vld [vmem:[#allocation16_spill] sm:$0xff] }
 0x73f   :  { %14043 = vst [vmem:[#allocation109_spill] sm:$0xff] %v9066_v50  ;;  %v14070_v50 = vld [vmem:[#allocation14_spill] sm:$0xff] }
 0x740   :  { %14045 = vst [vmem:[#allocation113_spill] sm:$0xff] %v9070_v62  ;;  %v14069_v62 = vld [vmem:[#allocation13_spill] sm:$0xff] }
 0x741   :  { %14047 = vst [vmem:[#allocation117_spill] sm:$0xff] %v9074_v25  ;;  %v14068_v25 = vld [vmem:[#allocation12_spill] sm:$0xff] }
 0x742   :  { %14049 = vst [vmem:[#allocation121_spill] sm:$0xff] %v9078_v53  ;;  %v14067_v53 = vld [vmem:[#allocation11_spill] sm:$0xff] }
 0x743   :  { %14051 = vst [vmem:[#allocation125_spill] sm:$0xff] %v9082_v44  ;;  %v14066_v44 = vld [vmem:[#allocation10_spill] sm:$0xff] }
 0x744   :  { %14052 = vst [vmem:[#allocation252_spill] sm:$0xff] %v9086_v27  ;;  %v14065_v27 = vld [vmem:[#allocation9_spill] sm:$0xff] }
 0x745   :  { %14053 = vst [vmem:[#allocation253_spill] sm:$0xff] %v9090_v63  ;;  %v14059_v63 = vld [vmem:[#allocation3_spill] sm:$0xff] }
 0x746   :  { %14054 = vst [vmem:[#allocation254_spill] sm:$0xff] %v9094_v30  ;;  %v9114_v54 = vmul.f32 %v8058_v3, %v14059_v63  ;;  %v14060_v30 = vld [vmem:[#allocation4_spill] sm:$0xff] }
 0x747   :  { %14055 = vst [vmem:[#allocation255_spill] sm:$0xff] %v9098_v8  ;;  %v9118_v28 = vmul.f32 %v8058_v3, %v14060_v30  ;;  %v14061_v8 = vld [vmem:[#allocation5_spill] sm:$0xff]  ;;  %v9138_v30 = vmul.f32 %v8058_v3, %v14065_v27  ;;  %v9158_v27 = vmul.f32 %v8058_v3, %v14070_v50  ;;  %v9178_v50 = vmul.f32 %v8058_v3, %v14075_v31 }
 0x748   :  { %14056 = vst [vmem:[#allocation256_spill] sm:$0xff] %v9102_v61  ;;  %v9122_v0 = vmul.f32 %v8058_v3, %v14061_v8  ;;  %v14062_v61 = vld [vmem:[#allocation6_spill] sm:$0xff]  ;;  %v9142_v8 = vmul.f32 %v8058_v3, %v14066_v44  ;;  %v9162_v44 = vmul.f32 %v8058_v3, %v14071_v48  ;;  %v9182_v48 = vmul.f32 %v8058_v3, %v14076_v21 }
 0x749   :  { %14057 = vst [vmem:[#allocation257_spill] sm:$0xff] %v9106_v15  ;;  %v9126_v37 = vmul.f32 %v8058_v3, %v14062_v61  ;;  %v14063_v15 = vld [vmem:[#allocation7_spill] sm:$0xff]  ;;  %v9146_v61 = vmul.f32 %v8058_v3, %v14067_v53  ;;  %v9166_v53 = vmul.f32 %v8058_v3, %v14072_v38  ;;  %v9186_v38 = vmul.f32 %v8058_v3, %v14077_v35 }
 0x74a   :  { %14058 = vst [vmem:[#allocation258_spill] sm:$0xff] %v9110_v34  ;;  %v9130_v32 = vmul.f32 %v8058_v3, %v14063_v15  ;;  %v14064_v34 = vld [vmem:[#allocation8_spill] sm:$0xff]  ;;  %v9150_v15 = vmul.f32 %v8058_v3, %v14068_v25  ;;  %v9170_v25 = vmul.f32 %v8058_v3, %v14073_v7  ;;  %v9190_v7 = vmul.f32 %v8058_v3, %v14078_v19 }
 0x74b   :  { %v9134_v63 = vmul.f32 %v8058_v3, %v14064_v34  ;;  %v9154_v34 = vmul.f32 %v8058_v3, %v14069_v62  ;;  %v9174_v62 = vmul.f32 %v8058_v3, %v14074_v12  ;;  %v9194_v12 = vmul.f32 %v8058_v3, %v14079_v43 }
 0x74c   :  { %v9198_v31 = vmul.f32 %v8058_v3, %v14080_v58  ;;  %v9202_v21 = vmul.f32 %v8058_v3, %v14081_v1  ;;  %v9206_v35 = vmul.f32 %v8058_v3, %v14082_v41  ;;  %v9210_v19 = vmul.f32 %v8058_v3, %v14083_v45 }
 0x74d   :  { %v9214_v43 = vmul.f32 %v8058_v3, %v14084_v46  ;;  %v9218_v58 = vmul.f32 %v8058_v3, %v14085_v49  ;;  %v9222_v1 = vmul.f32 %v8058_v3, %v14086_v51  ;;  %v9226_v41 = vmul.f32 %v8058_v3, %v14087_v40 }
 0x74e   :  { %v9230_v45 = vmul.f32 %v8058_v3, %v14088_v57  ;;  %v9234_v46 = vmul.f32 %v8058_v3, %v14089_v39  ;;  %v9238_v49 = vmul.f32 %v8058_v3, %v14090_v26  ;;  %v9242_v51 = vmul.f32 %v8058_v3, %v14091_v10 }
 0x74f   :  { %v9246_v40 = vmul.f32 %v8058_v3, %v14092_v24  ;;  %v9250_v57 = vmul.f32 %v8058_v3, %v14093_v4  ;;  %v9254_v39 = vmul.f32 %v8058_v3, %v14094_v17  ;;  %v9258_v26 = vmul.f32 %v8058_v3, %v14095_v36 }
 0x750   :  { %v9262_v10 = vmul.f32 %v8058_v3, %v14096_v47  ;;  %v9266_v24 = vmul.f32 %v8058_v3, %v14097_v2  ;;  %v9270_v4 = vmul.f32 %v8058_v3, %v14098_v6  ;;  %v9274_v17 = vmul.f32 %v8058_v3, %v14099_v60 }
 0x751   :  { %v9278_v36 = vmul.f32 %v8058_v3, %v14100_v59  ;;  %v9282_v47 = vmul.f32 %v8058_v3, %v14101_v14  ;;  %v9286_v2 = vmul.f32 %v8058_v3, %v14102_v9  ;;  %v9290_v6 = vmul.f32 %v8058_v3, %v14103_v5 }
 0x752   :  { %v9294_v60 = vmul.f32 %v8058_v3, %v14104_v16  ;;  %v9298_v59 = vmul.f32 %v8058_v3, %v14105_v33  ;;  %v9302_v14 = vmul.f32 %v8058_v3, %v14106_v20  ;;  %v9306_v9 = vmul.f32 %v8058_v3, %v14107_v13 }
 0x753   :  { %v9310_v5 = vmul.f32 %v8058_v3, %v14108_v42  ;;  %v9314_v16 = vmul.f32 %v8058_v3, %v14109_v22  ;;  %v9318_v33 = vmul.f32 %v8058_v3, %v14110_v11  ;;  %v9322_v20 = vmul.f32 %v8058_v3, %v14112_v29 }
 0x754   :  { %v9326_v13 = vmul.f32 %v8058_v3, %v14114_v18  ;;  %v9330_v42 = vmul.f32 %v8058_v3, %v14116_v52  ;;  %v9334_v22 = vmul.f32 %v8058_v3, %v14118_v23  ;;  %v9338_v11 = vmul.f32 %v8058_v3, %v14120_v55 }
 0x755   :  { %14111 = vst [vmem:[#allocation3_spill] sm:$0xff] %v9318_v33  ;;  %v14122_v33 = vld [vmem:[#allocation149_spill] sm:$0xff] }
 0x756   :  { %14113 = vst [vmem:[#allocation4_spill] sm:$0xff] %v9322_v20  ;;  %v9342_v29 = vmul.f32 %v8058_v3, %v14122_v33  ;;  %v14124_v20 = vld [vmem:[#allocation152_spill] sm:$0xff] }
 0x757   :  { %14115 = vst [vmem:[#allocation5_spill] sm:$0xff] %v9326_v13  ;;  %v9346_v18 = vmul.f32 %v8058_v3, %v14124_v20  ;;  %v14126_v13 = vld [vmem:[#allocation155_spill] sm:$0xff] }
 0x758   :  { %14117 = vst [vmem:[#allocation6_spill] sm:$0xff] %v9330_v42  ;;  %v9350_v52 = vmul.f32 %v8058_v3, %v14126_v13  ;;  %v14128_v42 = vld [vmem:[#allocation159_spill] sm:$0xff] }
 0x759   :  { %14119 = vst [vmem:[#allocation7_spill] sm:$0xff] %v9334_v22  ;;  %v9354_v23 = vmul.f32 %v8058_v3, %v14128_v42  ;;  %v14130_v22 = vld [vmem:[#allocation162_spill] sm:$0xff] }
 0x75a   :  { %14121 = vst [vmem:[#allocation8_spill] sm:$0xff] %v9338_v11  ;;  %v9358_v55 = vmul.f32 %v8058_v3, %v14130_v22  ;;  %v14132_v11 = vld [vmem:[#allocation166_spill] sm:$0xff] }
 0x75b   :  { %14123 = vst [vmem:[#allocation9_spill] sm:$0xff] %v9342_v29  ;;  %v9362_v33 = vmul.f32 %v8058_v3, %v14132_v11  ;;  %v14134_v29 = vld [vmem:[#allocation170_spill] sm:$0xff] }
 0x75c   :  { %14125 = vst [vmem:[#allocation10_spill] sm:$0xff] %v9346_v18  ;;  %v9366_v20 = vmul.f32 %v8058_v3, %v14134_v29  ;;  %v14136_v18 = vld [vmem:[#allocation15_spill] sm:$0xff] }
 0x75d   :  { %14127 = vst [vmem:[#allocation11_spill] sm:$0xff] %v9350_v52  ;;  %v9370_v13 = vmul.f32 %v8058_v3, %v14136_v18  ;;  %v14138_v52 = vld [vmem:[#allocation17_spill] sm:$0xff] }
 0x75e   :  { %14129 = vst [vmem:[#allocation12_spill] sm:$0xff] %v9354_v23  ;;  %v9374_v42 = vmul.f32 %v8058_v3, %v14138_v52  ;;  %v14140_v23 = vld [vmem:[#allocation19_spill] sm:$0xff] }
 0x75f   :  { %14131 = vst [vmem:[#allocation13_spill] sm:$0xff] %v9358_v55  ;;  %v9378_v22 = vmul.f32 %v8058_v3, %v14140_v23  ;;  %v14142_v55 = vld [vmem:[#allocation21_spill] sm:$0xff] }
 0x760   :  { %14133 = vst [vmem:[#allocation14_spill] sm:$0xff] %v9362_v33  ;;  %v9382_v11 = vmul.f32 %v8058_v3, %v14142_v55  ;;  %v14144_v33 = vld [vmem:[#allocation23_spill] sm:$0xff] }
 0x761   :  { %14135 = vst [vmem:[#allocation16_spill] sm:$0xff] %v9366_v20  ;;  %v9386_v29 = vmul.f32 %v8058_v3, %v14144_v33  ;;  %v14146_v20 = vld [vmem:[#allocation25_spill] sm:$0xff] }
 0x762   :  { %14137 = vst [vmem:[#allocation18_spill] sm:$0xff] %v9370_v13  ;;  %v9390_v18 = vmul.f32 %v8058_v3, %v14146_v20  ;;  %v14148_v13 = vld [vmem:[#allocation27_spill] sm:$0xff] }
 0x763   :  { %14139 = vst [vmem:[#allocation20_spill] sm:$0xff] %v9374_v42  ;;  %v9394_v52 = vmul.f32 %v8058_v3, %v14148_v13  ;;  %v14150_v42 = vld [vmem:[#allocation29_spill] sm:$0xff] }
 0x764   :  { %14141 = vst [vmem:[#allocation22_spill] sm:$0xff] %v9378_v22  ;;  %v9398_v23 = vmul.f32 %v8058_v3, %v14150_v42  ;;  %v14152_v22 = vld [vmem:[#allocation31_spill] sm:$0xff] }
 0x765   :  { %14143 = vst [vmem:[#allocation24_spill] sm:$0xff] %v9382_v11  ;;  %v9402_v55 = vmul.f32 %v8058_v3, %v14152_v22  ;;  %v14154_v11 = vld [vmem:[#allocation33_spill] sm:$0xff] }
 0x766   :  { %14145 = vst [vmem:[#allocation26_spill] sm:$0xff] %v9386_v29  ;;  %v9406_v33 = vmul.f32 %v8058_v3, %v14154_v11  ;;  %v14156_v29 = vld [vmem:[#allocation35_spill] sm:$0xff] }
 0x767   :  { %14147 = vst [vmem:[#allocation28_spill] sm:$0xff] %v9390_v18  ;;  %v9410_v20 = vmul.f32 %v8058_v3, %v14156_v29  ;;  %v14158_v18 = vld [vmem:[#allocation37_spill] sm:$0xff] }
 0x768   :  { %14149 = vst [vmem:[#allocation30_spill] sm:$0xff] %v9394_v52  ;;  %v9414_v13 = vmul.f32 %v8058_v3, %v14158_v18  ;;  %v14160_v52 = vld [vmem:[#allocation39_spill] sm:$0xff] }
 0x769   :  { %14151 = vst [vmem:[#allocation32_spill] sm:$0xff] %v9398_v23  ;;  %v9418_v42 = vmul.f32 %v8058_v3, %v14160_v52  ;;  %v14162_v23 = vld [vmem:[#allocation41_spill] sm:$0xff] }
 0x76a   :  { %14153 = vst [vmem:[#allocation34_spill] sm:$0xff] %v9402_v55  ;;  %v9422_v22 = vmul.f32 %v8058_v3, %v14162_v23  ;;  %v14164_v55 = vld [vmem:[#allocation43_spill] sm:$0xff] }
 0x76b   :  { %14155 = vst [vmem:[#allocation36_spill] sm:$0xff] %v9406_v33  ;;  %v9426_v11 = vmul.f32 %v8058_v3, %v14164_v55  ;;  %v14166_v33 = vld [vmem:[#allocation45_spill] sm:$0xff] }
 0x76c   :  { %14157 = vst [vmem:[#allocation38_spill] sm:$0xff] %v9410_v20  ;;  %v9430_v29 = vmul.f32 %v8058_v3, %v14166_v33  ;;  %v14168_v20 = vld [vmem:[#allocation47_spill] sm:$0xff] }
 0x76d   :  { %14159 = vst [vmem:[#allocation40_spill] sm:$0xff] %v9414_v13  ;;  %v9434_v18 = vmul.f32 %v8058_v3, %v14168_v20  ;;  %v14170_v13 = vld [vmem:[#allocation50_spill] sm:$0xff] }
 0x76e   :  { %14161 = vst [vmem:[#allocation42_spill] sm:$0xff] %v9418_v42  ;;  %v9438_v52 = vmul.f32 %v8058_v3, %v14170_v13  ;;  %v14172_v42 = vld [vmem:[#allocation53_spill] sm:$0xff] }
 0x76f   :  { %14163 = vst [vmem:[#allocation44_spill] sm:$0xff] %v9422_v22  ;;  %v9442_v23 = vmul.f32 %v8058_v3, %v14172_v42  ;;  %v14174_v22 = vld [vmem:[#allocation56_spill] sm:$0xff] }
 0x770   :  { %14165 = vst [vmem:[#allocation46_spill] sm:$0xff] %v9426_v11  ;;  %v9446_v55 = vmul.f32 %v8058_v3, %v14174_v22  ;;  %v14176_v11 = vld [vmem:[#allocation59_spill] sm:$0xff] }
 0x771   :  { %14167 = vst [vmem:[#allocation49_spill] sm:$0xff] %v9430_v29  ;;  %v9450_v33 = vmul.f32 %v8058_v3, %v14176_v11  ;;  %v14178_v29 = vld [vmem:[#allocation62_spill] sm:$0xff] }
 0x772   :  { %14169 = vst [vmem:[#allocation52_spill] sm:$0xff] %v9434_v18  ;;  %v9454_v20 = vmul.f32 %v8058_v3, %v14178_v29  ;;  %v14180_v18 = vld [vmem:[#allocation65_spill] sm:$0xff] }
 0x773   :  { %14171 = vst [vmem:[#allocation55_spill] sm:$0xff] %v9438_v52  ;;  %v9458_v13 = vmul.f32 %v8058_v3, %v14180_v18  ;;  %v14182_v52 = vld [vmem:[#allocation68_spill] sm:$0xff] }
 0x774   :  { %14173 = vst [vmem:[#allocation58_spill] sm:$0xff] %v9442_v23  ;;  %v9462_v42 = vmul.f32 %v8058_v3, %v14182_v52  ;;  %v14184_v23 = vld [vmem:[#allocation71_spill] sm:$0xff] }
 0x775   :  { %14175 = vst [vmem:[#allocation61_spill] sm:$0xff] %v9446_v55  ;;  %v9466_v22 = vmul.f32 %v8058_v3, %v14184_v23  ;;  %v14186_v55 = vld [vmem:[#allocation74_spill] sm:$0xff] }
 0x776   :  { %14177 = vst [vmem:[#allocation64_spill] sm:$0xff] %v9450_v33  ;;  %v9470_v11 = vmul.f32 %v8058_v3, %v14186_v55  ;;  %v14188_v33 = vld [vmem:[#allocation77_spill] sm:$0xff] }
 0x777   :  { %14179 = vst [vmem:[#allocation67_spill] sm:$0xff] %v9454_v20  ;;  %v9474_v29 = vmul.f32 %v8058_v3, %v14188_v33  ;;  %v14190_v20 = vld [vmem:[#allocation80_spill] sm:$0xff] }
 0x778   :  { %14181 = vst [vmem:[#allocation70_spill] sm:$0xff] %v9458_v13  ;;  %v9478_v18 = vmul.f32 %v8058_v3, %v14190_v20  ;;  %v14192_v13 = vld [vmem:[#allocation83_spill] sm:$0xff] }
 0x779   :  { %14183 = vst [vmem:[#allocation73_spill] sm:$0xff] %v9462_v42  ;;  %v9482_v52 = vmul.f32 %v8058_v3, %v14192_v13  ;;  %v14194_v42 = vld [vmem:[#allocation86_spill] sm:$0xff] }
 0x77a   :  { %14185 = vst [vmem:[#allocation76_spill] sm:$0xff] %v9466_v22  ;;  %v9486_v23 = vmul.f32 %v8058_v3, %v14194_v42  ;;  %v14196_v22 = vld [vmem:[#allocation89_spill] sm:$0xff] }
 0x77b   :  { %14187 = vst [vmem:[#allocation79_spill] sm:$0xff] %v9470_v11  ;;  %v9490_v55 = vmul.f32 %v8058_v3, %v14196_v22  ;;  %v14198_v11 = vld [vmem:[#allocation92_spill] sm:$0xff] }
 0x77c   :  { %14189 = vst [vmem:[#allocation82_spill] sm:$0xff] %v9474_v29  ;;  %v9494_v33 = vmul.f32 %v8058_v3, %v14198_v11  ;;  %v14200_v29 = vld [vmem:[#allocation95_spill] sm:$0xff] }
 0x77d   :  { %14191 = vst [vmem:[#allocation85_spill] sm:$0xff] %v9478_v18  ;;  %v9498_v20 = vmul.f32 %v8058_v3, %v14200_v29  ;;  %v14202_v18 = vld [vmem:[#allocation99_spill] sm:$0xff] }
 0x77e   :  { %14193 = vst [vmem:[#allocation88_spill] sm:$0xff] %v9482_v52  ;;  %v9502_v13 = vmul.f32 %v8058_v3, %v14202_v18  ;;  %v14204_v52 = vld [vmem:[#allocation103_spill] sm:$0xff] }
 0x77f   :  { %14195 = vst [vmem:[#allocation91_spill] sm:$0xff] %v9486_v23  ;;  %v9506_v42 = vmul.f32 %v8058_v3, %v14204_v52  ;;  %v14206_v23 = vld [vmem:[#allocation107_spill] sm:$0xff] }
 0x780   :  { %14197 = vst [vmem:[#allocation94_spill] sm:$0xff] %v9490_v55  ;;  %v9510_v22 = vmul.f32 %v8058_v3, %v14206_v23  ;;  %v14208_v55 = vld [vmem:[#allocation111_spill] sm:$0xff] }
 0x781   :  { %14199 = vst [vmem:[#allocation98_spill] sm:$0xff] %v9494_v33  ;;  %v9514_v11 = vmul.f32 %v8058_v3, %v14208_v55  ;;  %v14210_v33 = vld [vmem:[#allocation115_spill] sm:$0xff] }
 0x782   :  { %14201 = vst [vmem:[#allocation102_spill] sm:$0xff] %v9498_v20  ;;  %v9518_v29 = vmul.f32 %v8058_v3, %v14210_v33  ;;  %v14212_v20 = vld [vmem:[#allocation119_spill] sm:$0xff] }
 0x783   :  { %14203 = vst [vmem:[#allocation106_spill] sm:$0xff] %v9502_v13  ;;  %v9522_v18 = vmul.f32 %v8058_v3, %v14212_v20  ;;  %v14214_v13 = vld [vmem:[#allocation123_spill] sm:$0xff] }
 0x784   :  { %14205 = vst [vmem:[#allocation110_spill] sm:$0xff] %v9506_v42  ;;  %v9526_v52 = vmul.f32 %v8058_v3, %v14214_v13  ;;  %v14216_v42 = vld [vmem:[#allocation127_spill] sm:$0xff] }
 0x785   :  { %14207 = vst [vmem:[#allocation114_spill] sm:$0xff] %v9510_v22  ;;  %v9530_v23 = vmul.f32 %v8058_v3, %v14216_v42  ;;  %v14218_v22 = vld [vmem:[#allocation131_spill] sm:$0xff] }
 0x786   :  { %14209 = vst [vmem:[#allocation118_spill] sm:$0xff] %v9514_v11  ;;  %v9534_v55 = vmul.f32 %v8058_v3, %v14218_v22  ;;  %v14220_v11 = vld [vmem:[#allocation135_spill] sm:$0xff] }
 0x787   :  { %14211 = vst [vmem:[#allocation122_spill] sm:$0xff] %v9518_v29  ;;  %v9538_v33 = vmul.f32 %v8058_v3, %v14220_v11  ;;  %v14222_v29 = vld [vmem:[#allocation139_spill] sm:$0xff] }
 0x788   :  { %14213 = vst [vmem:[#allocation126_spill] sm:$0xff] %v9522_v18  ;;  %v9542_v20 = vmul.f32 %v8058_v3, %v14222_v29  ;;  %v14224_v18 = vld [vmem:[#allocation145_spill] sm:$0xff] }
 0x789   :  { %14215 = vst [vmem:[#allocation130_spill] sm:$0xff] %v9526_v52  ;;  %v9546_v13 = vmul.f32 %v8058_v3, %v14224_v18  ;;  %v14226_v52 = vld [vmem:[#allocation148_spill] sm:$0xff] }
 0x78a   :  { %14217 = vst [vmem:[#allocation134_spill] sm:$0xff] %v9530_v23  ;;  %v9550_v42 = vmul.f32 %v8058_v3, %v14226_v52  ;;  %v14228_v23 = vld [vmem:[#allocation151_spill] sm:$0xff] }
 0x78b   :  { %14219 = vst [vmem:[#allocation138_spill] sm:$0xff] %v9534_v55  ;;  %v9554_v22 = vmul.f32 %v8058_v3, %v14228_v23  ;;  %v14230_v55 = vld [vmem:[#allocation156_spill] sm:$0xff] }
 0x78c   :  { %14221 = vst [vmem:[#allocation142_spill] sm:$0xff] %v9538_v33  ;;  %v9558_v11 = vmul.f32 %v8058_v3, %v14230_v55  ;;  %v14232_v33 = vld [vmem:[#allocation161_spill] sm:$0xff] }
 0x78d   :  { %14223 = vst [vmem:[#allocation146_spill] sm:$0xff] %v9542_v20  ;;  %v9562_v29 = vmul.f32 %v8058_v3, %v14232_v33  ;;  %v14234_v20 = vld [vmem:[#allocation165_spill] sm:$0xff] }
 0x78e   :  { %14225 = vst [vmem:[#allocation149_spill] sm:$0xff] %v9546_v13  ;;  %v9566_v18 = vmul.f32 %v8058_v3, %v14234_v20  ;;  %v14236_v13 = vld [vmem:[#allocation169_spill] sm:$0xff] }
 0x78f   :  { %14227 = vst [vmem:[#allocation152_spill] sm:$0xff] %v9550_v42  ;;  %v9570_v52 = vmul.f32 %v8058_v3, %v14236_v13  ;;  %v14238_v42 = vld [vmem:[#allocation173_spill] sm:$0xff] }
 0x790   :  { %14229 = vst [vmem:[#allocation155_spill] sm:$0xff] %v9554_v22  ;;  %v9574_v23 = vmul.f32 %v8058_v3, %v14238_v42  ;;  %v14240_v22 = vld [vmem:[#allocation177_spill] sm:$0xff] }
 0x791   :  { %14231 = vst [vmem:[#allocation159_spill] sm:$0xff] %v9558_v11  ;;  %v9578_v55 = vmul.f32 %v8058_v3, %v14240_v22  ;;  %v14242_v11 = vld [vmem:[#allocation180_spill] sm:$0xff] }
 0x792   :  { %14233 = vst [vmem:[#allocation162_spill] sm:$0xff] %v9562_v29  ;;  %v9582_v33 = vmul.f32 %v8058_v3, %v14242_v11  ;;  %v14244_v29 = vld [vmem:[#allocation182_spill] sm:$0xff] }
 0x793   :  { %14235 = vst [vmem:[#allocation166_spill] sm:$0xff] %v9566_v18  ;;  %v9586_v20 = vmul.f32 %v8058_v3, %v14244_v29  ;;  %v14246_v18 = vld [vmem:[#allocation184_spill] sm:$0xff] }
 0x794   :  { %14237 = vst [vmem:[#allocation170_spill] sm:$0xff] %v9570_v52  ;;  %v9590_v13 = vmul.f32 %v8058_v3, %v14246_v18  ;;  %v14248_v52 = vld [vmem:[#allocation187_spill] sm:$0xff] }
 0x795   :  { %14239 = vst [vmem:[#allocation15_spill] sm:$0xff] %v9574_v23  ;;  %v9594_v42 = vmul.f32 %v8058_v3, %v14248_v52  ;;  %v14250_v23 = vld [vmem:[#allocation190_spill] sm:$0xff] }
 0x796   :  { %14241 = vst [vmem:[#allocation17_spill] sm:$0xff] %v9578_v55  ;;  %v9598_v22 = vmul.f32 %v8058_v3, %v14250_v23  ;;  %v14252_v55 = vld [vmem:[#allocation192_spill] sm:$0xff]  ;;  %v9618_v23 = vadd.f32 %v8534_v56, %v9114_v54  ;;  %v9638_v54 = vadd.f32 %v8534_v56, %v9134_v63  ;;  %v9658_v63 = vadd.f32 %v8534_v56, %v9154_v34 }
 0x797   :  { %14243 = vst [vmem:[#allocation19_spill] sm:$0xff] %v9582_v33  ;;  %v9602_v11 = vmul.f32 %v8058_v3, %v14252_v55  ;;  %v14254_v33 = vld [vmem:[#allocation194_spill] sm:$0xff]  ;;  %v9622_v55 = vadd.f32 %v8534_v56, %v9118_v28  ;;  %v9642_v28 = vadd.f32 %v8534_v56, %v9138_v30  ;;  %v9662_v30 = vadd.f32 %v8534_v56, %v9158_v27 }
 0x798   :  { %14245 = vst [vmem:[#allocation21_spill] sm:$0xff] %v9586_v20  ;;  %v9606_v29 = vmul.f32 %v8058_v3, %v14254_v33  ;;  %v14256_v20 = vld [vmem:[#allocation197_spill] sm:$0xff]  ;;  %v9626_v33 = vadd.f32 %v8534_v56, %v9122_v0  ;;  %v9646_v0 = vadd.f32 %v8534_v56, %v9142_v8  ;;  %v9666_v8 = vadd.f32 %v8534_v56, %v9162_v44 }
 0x799   :  { %14247 = vst [vmem:[#allocation23_spill] sm:$0xff] %v9590_v13  ;;  %v9610_v18 = vmul.f32 %v8058_v3, %v14256_v20  ;;  %v14258_v13 = vld [vmem:[#allocation199_spill] sm:$0xff]  ;;  %v9630_v20 = vadd.f32 %v8534_v56, %v9126_v37  ;;  %v9650_v37 = vadd.f32 %v8534_v56, %v9146_v61  ;;  %v9670_v61 = vadd.f32 %v8534_v56, %v9166_v53 }
 0x79a   :  { %14249 = vst [vmem:[#allocation25_spill] sm:$0xff] %v9594_v42  ;;  %v9614_v52 = vmul.f32 %v8058_v3, %v14258_v13  ;;  %v9634_v3 = vadd.f32 %v8534_v56, %v9130_v32  ;;  %v9654_v32 = vadd.f32 %v8534_v56, %v9150_v15  ;;  %v9674_v15 = vadd.f32 %v8534_v56, %v9170_v25  ;;  %v14311_v13 = vld [vmem:[#allocation3_spill] sm:$0xff]  ;;  %v14323_v42 = vld [vmem:[#allocation9_spill] sm:$0xff] }
 0x79b   :  { %14251 = vst [vmem:[#allocation27_spill] sm:$0xff] %v9598_v22  ;;  %v9678_v34 = vadd.f32 %v8534_v56, %v9174_v62  ;;  %v9682_v27 = vadd.f32 %v8534_v56, %v9178_v50  ;;  %v9686_v44 = vadd.f32 %v8534_v56, %v9182_v48  ;;  %v9690_v53 = vadd.f32 %v8534_v56, %v9186_v38  ;;  %v14321_v22 = vld [vmem:[#allocation8_spill] sm:$0xff] }
 0x79c   :  { %14253 = vst [vmem:[#allocation29_spill] sm:$0xff] %v9602_v11  ;;  %v9694_v25 = vadd.f32 %v8534_v56, %v9190_v7  ;;  %v9698_v62 = vadd.f32 %v8534_v56, %v9194_v12  ;;  %v9702_v50 = vadd.f32 %v8534_v56, %v9198_v31  ;;  %v9706_v48 = vadd.f32 %v8534_v56, %v9202_v21  ;;  %v14319_v11 = vld [vmem:[#allocation7_spill] sm:$0xff] }
 0x79d   :  { %14255 = vst [vmem:[#allocation31_spill] sm:$0xff] %v9606_v29  ;;  %v9710_v38 = vadd.f32 %v8534_v56, %v9206_v35  ;;  %v9714_v7 = vadd.f32 %v8534_v56, %v9210_v19  ;;  %v9718_v12 = vadd.f32 %v8534_v56, %v9214_v43  ;;  %v9722_v31 = vadd.f32 %v8534_v56, %v9218_v58  ;;  %v14317_v29 = vld [vmem:[#allocation6_spill] sm:$0xff] }
 0x79e   :  { %14257 = vst [vmem:[#allocation33_spill] sm:$0xff] %v9610_v18  ;;  %v9726_v21 = vadd.f32 %v8534_v56, %v9222_v1  ;;  %v9730_v35 = vadd.f32 %v8534_v56, %v9226_v41  ;;  %v9734_v19 = vadd.f32 %v8534_v56, %v9230_v45  ;;  %v9738_v43 = vadd.f32 %v8534_v56, %v9234_v46  ;;  %v14315_v18 = vld [vmem:[#allocation5_spill] sm:$0xff] }
 0x79f   :  { %14259 = vst [vmem:[#allocation35_spill] sm:$0xff] %v9614_v52  ;;  %v9742_v58 = vadd.f32 %v8534_v56, %v9238_v49  ;;  %v9746_v1 = vadd.f32 %v8534_v56, %v9242_v51  ;;  %v9750_v41 = vadd.f32 %v8534_v56, %v9246_v40  ;;  %v9754_v45 = vadd.f32 %v8534_v56, %v9250_v57  ;;  %v14313_v52 = vld [vmem:[#allocation4_spill] sm:$0xff] }
 0x7a0   :  { %14260 = vst [vmem:[#allocation37_spill] sm:$0xff] %v9618_v23  ;;  %v9758_v46 = vadd.f32 %v8534_v56, %v9254_v39  ;;  %v9762_v49 = vadd.f32 %v8534_v56, %v9258_v26  ;;  %v9766_v51 = vadd.f32 %v8534_v56, %v9262_v10  ;;  %v9770_v40 = vadd.f32 %v8534_v56, %v9266_v24 }
 0x7a1   :  { %14261 = vst [vmem:[#allocation39_spill] sm:$0xff] %v9622_v55  ;;  %v9774_v57 = vadd.f32 %v8534_v56, %v9270_v4  ;;  %v9778_v39 = vadd.f32 %v8534_v56, %v9274_v17  ;;  %v9782_v26 = vadd.f32 %v8534_v56, %v9278_v36  ;;  %v9786_v10 = vadd.f32 %v8534_v56, %v9282_v47 }
 0x7a2   :  { %14262 = vst [vmem:[#allocation41_spill] sm:$0xff] %v9626_v33  ;;  %v9790_v24 = vadd.f32 %v8534_v56, %v9286_v2  ;;  %v9794_v4 = vadd.f32 %v8534_v56, %v9290_v6  ;;  %v9798_v17 = vadd.f32 %v8534_v56, %v9294_v60  ;;  %v9802_v36 = vadd.f32 %v8534_v56, %v9298_v59 }
 0x7a3   :  { %14263 = vst [vmem:[#allocation43_spill] sm:$0xff] %v9630_v20  ;;  %v9806_v47 = vadd.f32 %v8534_v56, %v9302_v14  ;;  %v9810_v2 = vadd.f32 %v8534_v56, %v9306_v9  ;;  %v9814_v6 = vadd.f32 %v8534_v56, %v9310_v5  ;;  %v9818_v60 = vadd.f32 %v8534_v56, %v9314_v16 }
 0x7a4   :  { %14264 = vst [vmem:[#allocation45_spill] sm:$0xff] %v9634_v3  ;;  %v9822_v59 = vadd.f32 %v8534_v56, %v14311_v13  ;;  %v9826_v14 = vadd.f32 %v8534_v56, %v14313_v52  ;;  %v9830_v9 = vadd.f32 %v8534_v56, %v14315_v18  ;;  %v9834_v5 = vadd.f32 %v8534_v56, %v14317_v29 }
 0x7a5   :  { %14265 = vst [vmem:[#allocation47_spill] sm:$0xff] %v9638_v54  ;;  %v9838_v16 = vadd.f32 %v8534_v56, %v14319_v11  ;;  %v9842_v13 = vadd.f32 %v8534_v56, %v14321_v22  ;;  %v9846_v52 = vadd.f32 %v8534_v56, %v14323_v42 }
 0x7a6   :  { %14266 = vst [vmem:[#allocation50_spill] sm:$0xff] %v9642_v28 }
 0x7a7   :  { %14267 = vst [vmem:[#allocation53_spill] sm:$0xff] %v9646_v0 }
 0x7a8   :  { %14268 = vst [vmem:[#allocation56_spill] sm:$0xff] %v9650_v37 }
 0x7a9   :  { %14269 = vst [vmem:[#allocation59_spill] sm:$0xff] %v9654_v32 }
 0x7aa   :  { %14270 = vst [vmem:[#allocation62_spill] sm:$0xff] %v9658_v63 }
 0x7ab   :  { %14271 = vst [vmem:[#allocation65_spill] sm:$0xff] %v9662_v30 }
 0x7ac   :  { %14272 = vst [vmem:[#allocation68_spill] sm:$0xff] %v9666_v8 }
 0x7ad   :  { %14273 = vst [vmem:[#allocation71_spill] sm:$0xff] %v9670_v61 }
 0x7ae   :  { %14274 = vst [vmem:[#allocation74_spill] sm:$0xff] %v9674_v15 }
 0x7af   :  { %14275 = vst [vmem:[#allocation77_spill] sm:$0xff] %v9678_v34 }
 0x7b0   :  { %14276 = vst [vmem:[#allocation80_spill] sm:$0xff] %v9682_v27 }
 0x7b1   :  { %14277 = vst [vmem:[#allocation83_spill] sm:$0xff] %v9686_v44 }
 0x7b2   :  { %14278 = vst [vmem:[#allocation86_spill] sm:$0xff] %v9690_v53 }
 0x7b3   :  { %14279 = vst [vmem:[#allocation89_spill] sm:$0xff] %v9694_v25 }
 0x7b4   :  { %14280 = vst [vmem:[#allocation92_spill] sm:$0xff] %v9698_v62 }
 0x7b5   :  { %14281 = vst [vmem:[#allocation95_spill] sm:$0xff] %v9702_v50 }
 0x7b6   :  { %14282 = vst [vmem:[#allocation99_spill] sm:$0xff] %v9706_v48 }
 0x7b7   :  { %14283 = vst [vmem:[#allocation103_spill] sm:$0xff] %v9710_v38 }
 0x7b8   :  { %14284 = vst [vmem:[#allocation107_spill] sm:$0xff] %v9714_v7 }
 0x7b9   :  { %14285 = vst [vmem:[#allocation111_spill] sm:$0xff] %v9718_v12 }
 0x7ba   :  { %14286 = vst [vmem:[#allocation115_spill] sm:$0xff] %v9722_v31 }
 0x7bb   :  { %14287 = vst [vmem:[#allocation119_spill] sm:$0xff] %v9726_v21 }
 0x7bc   :  { %14288 = vst [vmem:[#allocation123_spill] sm:$0xff] %v9730_v35 }
 0x7bd   :  { %14289 = vst [vmem:[#allocation127_spill] sm:$0xff] %v9734_v19 }
 0x7be   :  { %14290 = vst [vmem:[#allocation131_spill] sm:$0xff] %v9738_v43 }
 0x7bf   :  { %14291 = vst [vmem:[#allocation135_spill] sm:$0xff] %v9742_v58 }
 0x7c0   :  { %14292 = vst [vmem:[#allocation139_spill] sm:$0xff] %v9746_v1 }
 0x7c1   :  { %14293 = vst [vmem:[#allocation145_spill] sm:$0xff] %v9750_v41 }
 0x7c2   :  { %14294 = vst [vmem:[#allocation148_spill] sm:$0xff] %v9754_v45 }
 0x7c3   :  { %14295 = vst [vmem:[#allocation151_spill] sm:$0xff] %v9758_v46 }
 0x7c4   :  { %14296 = vst [vmem:[#allocation156_spill] sm:$0xff] %v9762_v49 }
 0x7c5   :  { %14297 = vst [vmem:[#allocation161_spill] sm:$0xff] %v9766_v51 }
 0x7c6   :  { %14298 = vst [vmem:[#allocation165_spill] sm:$0xff] %v9770_v40 }
 0x7c7   :  { %14299 = vst [vmem:[#allocation169_spill] sm:$0xff] %v9774_v57 }
 0x7c8   :  { %14300 = vst [vmem:[#allocation173_spill] sm:$0xff] %v9778_v39 }
 0x7c9   :  { %14301 = vst [vmem:[#allocation177_spill] sm:$0xff] %v9782_v26 }
 0x7ca   :  { %14302 = vst [vmem:[#allocation180_spill] sm:$0xff] %v9786_v10 }
 0x7cb   :  { %14303 = vst [vmem:[#allocation182_spill] sm:$0xff] %v9790_v24 }
 0x7cc   :  { %14304 = vst [vmem:[#allocation184_spill] sm:$0xff] %v9794_v4 }
 0x7cd   :  { %14305 = vst [vmem:[#allocation187_spill] sm:$0xff] %v9798_v17 }
 0x7ce   :  { %14306 = vst [vmem:[#allocation190_spill] sm:$0xff] %v9802_v36 }
 0x7cf   :  { %14307 = vst [vmem:[#allocation192_spill] sm:$0xff] %v9806_v47 }
 0x7d0   :  { %14308 = vst [vmem:[#allocation194_spill] sm:$0xff] %v9810_v2 }
 0x7d1   :  { %14309 = vst [vmem:[#allocation197_spill] sm:$0xff] %v9814_v6 }
 0x7d2   :  { %14310 = vst [vmem:[#allocation199_spill] sm:$0xff] %v9818_v60 }
 0x7d3   :  { %14312 = vst [vmem:[#allocation3_spill] sm:$0xff] %v9822_v59 }
 0x7d4   :  { %14314 = vst [vmem:[#allocation4_spill] sm:$0xff] %v9826_v14  ;;  %v14325_v14 = vld [vmem:[#allocation10_spill] sm:$0xff] }
 0x7d5   :  { %14316 = vst [vmem:[#allocation5_spill] sm:$0xff] %v9830_v9  ;;  %v9850_v18 = vadd.f32 %v8534_v56, %v14325_v14  ;;  %v14327_v9 = vld [vmem:[#allocation11_spill] sm:$0xff] }
 0x7d6   :  { %14318 = vst [vmem:[#allocation6_spill] sm:$0xff] %v9834_v5  ;;  %v9854_v29 = vadd.f32 %v8534_v56, %v14327_v9  ;;  %v14329_v5 = vld [vmem:[#allocation12_spill] sm:$0xff] }
 0x7d7   :  { %14320 = vst [vmem:[#allocation7_spill] sm:$0xff] %v9838_v16  ;;  %v9858_v11 = vadd.f32 %v8534_v56, %v14329_v5  ;;  %v14331_v16 = vld [vmem:[#allocation13_spill] sm:$0xff] }
 0x7d8   :  { %14322 = vst [vmem:[#allocation8_spill] sm:$0xff] %v9842_v13  ;;  %v9862_v22 = vadd.f32 %v8534_v56, %v14331_v16  ;;  %v14333_v13 = vld [vmem:[#allocation14_spill] sm:$0xff] }
 0x7d9   :  { %14324 = vst [vmem:[#allocation9_spill] sm:$0xff] %v9846_v52  ;;  %v9866_v42 = vadd.f32 %v8534_v56, %v14333_v13  ;;  %v14335_v52 = vld [vmem:[#allocation16_spill] sm:$0xff] }
 0x7da   :  { %14326 = vst [vmem:[#allocation10_spill] sm:$0xff] %v9850_v18  ;;  %v9870_v14 = vadd.f32 %v8534_v56, %v14335_v52  ;;  %v14337_v18 = vld [vmem:[#allocation18_spill] sm:$0xff] }
 0x7db   :  { %14328 = vst [vmem:[#allocation11_spill] sm:$0xff] %v9854_v29  ;;  %v9874_v9 = vadd.f32 %v8534_v56, %v14337_v18  ;;  %v14339_v29 = vld [vmem:[#allocation20_spill] sm:$0xff] }
 0x7dc   :  { %14330 = vst [vmem:[#allocation12_spill] sm:$0xff] %v9858_v11  ;;  %v9878_v5 = vadd.f32 %v8534_v56, %v14339_v29  ;;  %v14341_v11 = vld [vmem:[#allocation22_spill] sm:$0xff] }
 0x7dd   :  { %14332 = vst [vmem:[#allocation13_spill] sm:$0xff] %v9862_v22  ;;  %v9882_v16 = vadd.f32 %v8534_v56, %v14341_v11  ;;  %v14343_v22 = vld [vmem:[#allocation24_spill] sm:$0xff] }
 0x7de   :  { %14334 = vst [vmem:[#allocation14_spill] sm:$0xff] %v9866_v42  ;;  %v9886_v13 = vadd.f32 %v8534_v56, %v14343_v22  ;;  %v14345_v42 = vld [vmem:[#allocation26_spill] sm:$0xff] }
 0x7df   :  { %14336 = vst [vmem:[#allocation16_spill] sm:$0xff] %v9870_v14  ;;  %v9890_v52 = vadd.f32 %v8534_v56, %v14345_v42  ;;  %v14347_v14 = vld [vmem:[#allocation28_spill] sm:$0xff] }
 0x7e0   :  { %14338 = vst [vmem:[#allocation18_spill] sm:$0xff] %v9874_v9  ;;  %v9894_v18 = vadd.f32 %v8534_v56, %v14347_v14  ;;  %v14349_v9 = vld [vmem:[#allocation30_spill] sm:$0xff] }
 0x7e1   :  { %14340 = vst [vmem:[#allocation20_spill] sm:$0xff] %v9878_v5  ;;  %v9898_v29 = vadd.f32 %v8534_v56, %v14349_v9  ;;  %v14351_v5 = vld [vmem:[#allocation32_spill] sm:$0xff] }
 0x7e2   :  { %14342 = vst [vmem:[#allocation22_spill] sm:$0xff] %v9882_v16  ;;  %v9902_v11 = vadd.f32 %v8534_v56, %v14351_v5  ;;  %v14353_v16 = vld [vmem:[#allocation34_spill] sm:$0xff] }
 0x7e3   :  { %14344 = vst [vmem:[#allocation24_spill] sm:$0xff] %v9886_v13  ;;  %v9906_v22 = vadd.f32 %v8534_v56, %v14353_v16  ;;  %v14355_v13 = vld [vmem:[#allocation36_spill] sm:$0xff] }
 0x7e4   :  { %14346 = vst [vmem:[#allocation26_spill] sm:$0xff] %v9890_v52  ;;  %v9910_v42 = vadd.f32 %v8534_v56, %v14355_v13  ;;  %v14357_v52 = vld [vmem:[#allocation38_spill] sm:$0xff] }
 0x7e5   :  { %14348 = vst [vmem:[#allocation28_spill] sm:$0xff] %v9894_v18  ;;  %v9914_v14 = vadd.f32 %v8534_v56, %v14357_v52  ;;  %v14359_v18 = vld [vmem:[#allocation40_spill] sm:$0xff] }
 0x7e6   :  { %14350 = vst [vmem:[#allocation30_spill] sm:$0xff] %v9898_v29  ;;  %v9918_v9 = vadd.f32 %v8534_v56, %v14359_v18  ;;  %v14361_v29 = vld [vmem:[#allocation42_spill] sm:$0xff] }
 0x7e7   :  { %14352 = vst [vmem:[#allocation32_spill] sm:$0xff] %v9902_v11  ;;  %v9922_v5 = vadd.f32 %v8534_v56, %v14361_v29  ;;  %v14363_v11 = vld [vmem:[#allocation44_spill] sm:$0xff] }
 0x7e8   :  { %14354 = vst [vmem:[#allocation34_spill] sm:$0xff] %v9906_v22  ;;  %v9926_v16 = vadd.f32 %v8534_v56, %v14363_v11  ;;  %v14365_v22 = vld [vmem:[#allocation46_spill] sm:$0xff] }
 0x7e9   :  { %14356 = vst [vmem:[#allocation36_spill] sm:$0xff] %v9910_v42  ;;  %v9930_v13 = vadd.f32 %v8534_v56, %v14365_v22  ;;  %v14367_v42 = vld [vmem:[#allocation49_spill] sm:$0xff] }
 0x7ea   :  { %14358 = vst [vmem:[#allocation38_spill] sm:$0xff] %v9914_v14  ;;  %v9934_v52 = vadd.f32 %v8534_v56, %v14367_v42  ;;  %v14369_v14 = vld [vmem:[#allocation52_spill] sm:$0xff] }
 0x7eb   :  { %14360 = vst [vmem:[#allocation40_spill] sm:$0xff] %v9918_v9  ;;  %v9938_v18 = vadd.f32 %v8534_v56, %v14369_v14  ;;  %v14371_v9 = vld [vmem:[#allocation55_spill] sm:$0xff] }
 0x7ec   :  { %14362 = vst [vmem:[#allocation42_spill] sm:$0xff] %v9922_v5  ;;  %v9942_v29 = vadd.f32 %v8534_v56, %v14371_v9  ;;  %v14373_v5 = vld [vmem:[#allocation58_spill] sm:$0xff] }
 0x7ed   :  { %14364 = vst [vmem:[#allocation44_spill] sm:$0xff] %v9926_v16  ;;  %v9946_v11 = vadd.f32 %v8534_v56, %v14373_v5  ;;  %v14375_v16 = vld [vmem:[#allocation61_spill] sm:$0xff] }
 0x7ee   :  { %14366 = vst [vmem:[#allocation46_spill] sm:$0xff] %v9930_v13  ;;  %v9950_v22 = vadd.f32 %v8534_v56, %v14375_v16  ;;  %v14377_v13 = vld [vmem:[#allocation64_spill] sm:$0xff] }
 0x7ef   :  { %14368 = vst [vmem:[#allocation49_spill] sm:$0xff] %v9934_v52  ;;  %v9954_v42 = vadd.f32 %v8534_v56, %v14377_v13  ;;  %v14379_v52 = vld [vmem:[#allocation67_spill] sm:$0xff]  ;;  %v14386_v16 = vld [vmem:[#allocation76_spill] sm:$0xff]  ;;  %v9976_v13 = vmul.f32 0.2, %v9622_v55  ;;  %v14392_v55 = vld [vmem:[#allocation82_spill] sm:$0xff] }
 0x7f0   :  { %14370 = vst [vmem:[#allocation52_spill] sm:$0xff] %v9938_v18  ;;  %v9958_v14 = vadd.f32 %v8534_v56, %v14379_v52  ;;  %v14381_v18 = vld [vmem:[#allocation70_spill] sm:$0xff]  ;;  %v9979_v52 = vmul.f32 0.2, %v9626_v33  ;;  %v9999_v33 = vadd.f32 %v8534_v56, %v14392_v55  ;;  %v10021_v55 = vmul.f32 0.2, %v9666_v8 }
 0x7f1   :  { %14372 = vst [vmem:[#allocation55_spill] sm:$0xff] %v9942_v29  ;;  %v9962_v9 = vadd.f32 %v8534_v56, %v14381_v18  ;;  %v14383_v29 = vld [vmem:[#allocation73_spill] sm:$0xff]  ;;  %v9982_v18 = vmul.f32 0.2, %v9630_v20  ;;  %v10002_v20 = vmul.f32 0.2, %v9646_v0 }
 0x7f2   :  { %14374 = vst [vmem:[#allocation58_spill] sm:$0xff] %v9946_v11  ;;  %v9966_v5 = vadd.f32 %v8534_v56, %v14383_v29  ;;  %v9969_v11 = vmul.f32 0.2, %v9618_v23  ;;  %v9989_v23 = vmul.f32 0.2, %v9634_v3  ;;  %v14395_v3 = vld [vmem:[#allocation85_spill] sm:$0xff] }
 0x7f3   :  { %14376 = vst [vmem:[#allocation61_spill] sm:$0xff] %v9950_v22  ;;  %v9973_v22 = vadd.f32 %v8534_v56, %v14386_v16  ;;  %v9995_v16 = vmul.f32 0.2, %v9642_v28  ;;  %v10015_v28 = vmul.f32 0.2, %v9658_v63  ;;  %v14398_v0 = vld [vmem:[#allocation88_spill] sm:$0xff] }
 0x7f4   :  { %14378 = vst [vmem:[#allocation64_spill] sm:$0xff] %v9954_v42  ;;  %v14401_v63 = vld [vmem:[#allocation91_spill] sm:$0xff]  ;;  %v10041_v8 = vmul.f32 0.2, %v9682_v27  ;;  %v14407_v27 = vld [vmem:[#allocation98_spill] sm:$0xff] }
 0x7f5   :  { %14380 = vst [vmem:[#allocation67_spill] sm:$0xff] %v9958_v14 }
 0x7f6   :  { %14382 = vst [vmem:[#allocation70_spill] sm:$0xff] %v9962_v9  ;;  %v14389_v9 = vld [vmem:[#allocation79_spill] sm:$0xff] }
 0x7f7   :  { %14384 = vst [vmem:[#allocation73_spill] sm:$0xff] %v9966_v5  ;;  %v9986_v29 = vadd.f32 %v8534_v56, %v14389_v9  ;;  %v10008_v9 = vmul.f32 0.2, %v9654_v32  ;;  %v10028_v32 = vmul.f32 0.2, %v9670_v61  ;;  %v14404_v61 = vld [vmem:[#allocation94_spill] sm:$0xff] }
 0x7f8   :  { %14385 = vst [vmem:[#allocation259_spill] sm:$0xff] %v9969_v11  ;;  %v9992_v11 = vmul.f32 0.2, %v9638_v54  ;;  %v10012_v54 = vadd.f32 %v8534_v56, %v14395_v3  ;;  %v10034_v3 = vmul.f32 0.2, %v9678_v34 }
 0x7f9   :  { %14387 = vst [vmem:[#allocation76_spill] sm:$0xff] %v9973_v22  ;;  %v10054_v34 = vmul.f32 0.2, %v9694_v25  ;;  %v14412_v25 = vld [vmem:[#allocation102_spill] sm:$0xff] }
 0x7fa   :  { %14388 = vst [vmem:[#allocation260_spill] sm:$0xff] %v9982_v18  ;;  %v10005_v18 = vmul.f32 0.2, %v9650_v37  ;;  %v10025_v37 = vadd.f32 %v8534_v56, %v14398_v0  ;;  %v10047_v0 = vmul.f32 0.2, %v9690_v53 }
 0x7fb   :  { %14390 = vst [vmem:[#allocation79_spill] sm:$0xff] %v9986_v29  ;;  %v10067_v53 = vmul.f32 0.2, %v9706_v48  ;;  %v14417_v48 = vld [vmem:[#allocation106_spill] sm:$0xff] }
 0x7fc   :  { %14391 = vst [vmem:[#allocation261_spill] sm:$0xff] %v9995_v16  ;;  %v10018_v16 = vmul.f32 0.2, %v9662_v30  ;;  %v10038_v30 = vadd.f32 %v8534_v56, %v14401_v63  ;;  %v10060_v63 = vmul.f32 0.2, %v9702_v50 }
 0x7fd   :  { %14393 = vst [vmem:[#allocation82_spill] sm:$0xff] %v9999_v33  ;;  %v10080_v50 = vmul.f32 0.2, %v9718_v12  ;;  %v14422_v12 = vld [vmem:[#allocation110_spill] sm:$0xff] }
 0x7fe   :  { %14394 = vst [vmem:[#allocation262_spill] sm:$0xff] %v10008_v9  ;;  %v10031_v9 = vmul.f32 0.2, %v9674_v15  ;;  %v10051_v15 = vadd.f32 %v8534_v56, %v14404_v61  ;;  %v10073_v61 = vmul.f32 0.2, %v9714_v7 }
 0x7ff   :  { %14396 = vst [vmem:[#allocation85_spill] sm:$0xff] %v10012_v54  ;;  %v10093_v7 = vmul.f32 0.2, %v9730_v35  ;;  %v14427_v35 = vld [vmem:[#allocation114_spill] sm:$0xff] }
 0x800   :  { %14397 = vst [vmem:[#allocation263_spill] sm:$0xff] %v10021_v55  ;;  %v10044_v55 = vmul.f32 0.2, %v9686_v44  ;;  %v10064_v44 = vadd.f32 %v8534_v56, %v14407_v27  ;;  %v10086_v27 = vmul.f32 0.2, %v9726_v21 }
 0x801   :  { %14399 = vst [vmem:[#allocation88_spill] sm:$0xff] %v10025_v37  ;;  %v10106_v21 = vmul.f32 0.2, %v9742_v58  ;;  %v14432_v58 = vld [vmem:[#allocation118_spill] sm:$0xff] }
 0x802   :  { %14400 = vst [vmem:[#allocation264_spill] sm:$0xff] %v10034_v3  ;;  %v10057_v3 = vmul.f32 0.2, %v9698_v62  ;;  %v10077_v62 = vadd.f32 %v8534_v56, %v14412_v25  ;;  %v10099_v25 = vmul.f32 0.2, %v9738_v43 }
 0x803   :  { %14402 = vst [vmem:[#allocation91_spill] sm:$0xff] %v10038_v30  ;;  %v10119_v43 = vmul.f32 0.2, %v9754_v45  ;;  %v14437_v45 = vld [vmem:[#allocation122_spill] sm:$0xff] }
 0x804   :  { %14403 = vst [vmem:[#allocation265_spill] sm:$0xff] %v10047_v0  ;;  %v10070_v0 = vmul.f32 0.2, %v9710_v38  ;;  %v10090_v38 = vadd.f32 %v8534_v56, %v14417_v48  ;;  %v10112_v48 = vmul.f32 0.2, %v9750_v41 }
 0x805   :  { %14405 = vst [vmem:[#allocation94_spill] sm:$0xff] %v10051_v15  ;;  %v10132_v41 = vmul.f32 0.2, %v9766_v51  ;;  %v14442_v51 = vld [vmem:[#allocation126_spill] sm:$0xff] }
 0x806   :  { %14406 = vst [vmem:[#allocation266_spill] sm:$0xff] %v10060_v63  ;;  %v10083_v63 = vmul.f32 0.2, %v9722_v31  ;;  %v10103_v31 = vadd.f32 %v8534_v56, %v14422_v12  ;;  %v10125_v12 = vmul.f32 0.2, %v9762_v49 }
 0x807   :  { %14408 = vst [vmem:[#allocation98_spill] sm:$0xff] %v10064_v44  ;;  %v10145_v49 = vmul.f32 0.2, %v9778_v39  ;;  %v14447_v39 = vld [vmem:[#allocation130_spill] sm:$0xff] }
 0x808   :  { %14409 = vst [vmem:[#allocation267_spill] sm:$0xff] %v10067_v53 }
 0x809   :  { %14410 = vst [vmem:[#allocation268_spill] sm:$0xff] %v10070_v0 }
 0x80a   :  { %14411 = vst [vmem:[#allocation269_spill] sm:$0xff] %v10073_v61  ;;  %v10096_v61 = vmul.f32 0.2, %v9734_v19  ;;  %v10116_v19 = vadd.f32 %v8534_v56, %v14427_v35  ;;  %v10138_v35 = vmul.f32 0.2, %v9774_v57 }
 0x80b   :  { %14413 = vst [vmem:[#allocation102_spill] sm:$0xff] %v10077_v62  ;;  %v10158_v57 = vmul.f32 0.2, %v9790_v24  ;;  %v14452_v24 = vld [vmem:[#allocation134_spill] sm:$0xff] }
 0x80c   :  { %14414 = vst [vmem:[#allocation270_spill] sm:$0xff] %v10080_v50  ;;  %v14873_v50 = vld [vmem:[#allocation169_spill] sm:$0xff] }
 0x80d   :  { %14415 = vst [vmem:[#allocation271_spill] sm:$0xff] %v10083_v63  ;;  %v14875_v63 = vld [vmem:[#allocation173_spill] sm:$0xff] }
 0x80e   :  { %14416 = vst [vmem:[#allocation272_spill] sm:$0xff] %v10086_v27  ;;  %v10109_v27 = vmul.f32 0.2, %v9746_v1  ;;  %v10129_v1 = vadd.f32 %v8534_v56, %v14432_v58  ;;  %v10151_v58 = vmul.f32 0.2, %v9786_v10 }
 0x80f   :  { %14418 = vst [vmem:[#allocation106_spill] sm:$0xff] %v10090_v38  ;;  %v10171_v10 = vmul.f32 0.2, %v9802_v36  ;;  %v14457_v36 = vld [vmem:[#allocation138_spill] sm:$0xff] }
 0x810   :  { %14419 = vst [vmem:[#allocation273_spill] sm:$0xff] %v10093_v7  ;;  %v14879_v7 = vld [vmem:[#allocation180_spill] sm:$0xff] }
 0x811   :  { %14420 = vst [vmem:[#allocation274_spill] sm:$0xff] %v10096_v61  ;;  %v14881_v61 = vld [vmem:[#allocation182_spill] sm:$0xff] }
 0x812   :  { %14421 = vst [vmem:[#allocation275_spill] sm:$0xff] %v10099_v25  ;;  %v10122_v25 = vmul.f32 0.2, %v9758_v46  ;;  %v10142_v46 = vadd.f32 %v8534_v56, %v14437_v45  ;;  %v10164_v45 = vmul.f32 0.2, %v9798_v17 }
 0x813   :  { %14423 = vst [vmem:[#allocation110_spill] sm:$0xff] %v10103_v31  ;;  %v10184_v17 = vmul.f32 0.2, %v9814_v6  ;;  %v14465_v6 = vld [vmem:[#allocation142_spill] sm:$0xff] }
 0x814   :  { %14424 = vst [vmem:[#allocation276_spill] sm:$0xff] %v10106_v21 }
 0x815   :  { %14425 = vst [vmem:[#allocation277_spill] sm:$0xff] %v10109_v27 }
 0x816   :  { %14426 = vst [vmem:[#allocation278_spill] sm:$0xff] %v10112_v48  ;;  %v10135_v48 = vmul.f32 0.2, %v9770_v40  ;;  %v10155_v40 = vadd.f32 %v8534_v56, %v14442_v51  ;;  %v10177_v51 = vmul.f32 0.2, %v9810_v2 }
 0x817   :  { %14428 = vst [vmem:[#allocation114_spill] sm:$0xff] %v10116_v19 }
 0x818   :  { %14429 = vst [vmem:[#allocation279_spill] sm:$0xff] %v10119_v43 }
 0x819   :  { %14430 = vst [vmem:[#allocation280_spill] sm:$0xff] %v10122_v25 }
 0x81a   :  { %14431 = vst [vmem:[#allocation281_spill] sm:$0xff] %v10125_v12  ;;  %v10148_v12 = vmul.f32 0.2, %v9782_v26  ;;  %v10168_v26 = vadd.f32 %v8534_v56, %v14447_v39  ;;  %v10190_v39 = vmul.f32 0.2, %v9822_v59 }
 0x81b   :  { %14433 = vst [vmem:[#allocation118_spill] sm:$0xff] %v10129_v1 }
 0x81c   :  { %14434 = vst [vmem:[#allocation282_spill] sm:$0xff] %v10132_v41 }
 0x81d   :  { %14435 = vst [vmem:[#allocation283_spill] sm:$0xff] %v10135_v48 }
 0x81e   :  { %14436 = vst [vmem:[#allocation284_spill] sm:$0xff] %v10138_v35  ;;  %v10161_v35 = vmul.f32 0.2, %v9794_v4  ;;  %v10181_v4 = vadd.f32 %v8534_v56, %v14452_v24  ;;  %v14463_v24 = vld [vmem:[#allocation6_spill] sm:$0xff] }
 0x81f   :  { %14438 = vst [vmem:[#allocation122_spill] sm:$0xff] %v10142_v46 }
 0x820   :  { %14439 = vst [vmem:[#allocation285_spill] sm:$0xff] %v10145_v49 }
 0x821   :  { %14440 = vst [vmem:[#allocation286_spill] sm:$0xff] %v10148_v12 }
 0x822   :  { %14441 = vst [vmem:[#allocation287_spill] sm:$0xff] %v10151_v58  ;;  %v10174_v58 = vmul.f32 0.2, %v9806_v47  ;;  %v10194_v47 = vadd.f32 %v8534_v56, %v14457_v36  ;;  %v14471_v36 = vld [vmem:[#allocation9_spill] sm:$0xff] }
 0x823   :  { %14443 = vst [vmem:[#allocation126_spill] sm:$0xff] %v10155_v40 }
 0x824   :  { %14444 = vst [vmem:[#allocation288_spill] sm:$0xff] %v10158_v57  ;;  %v10216_v57 = vmul.f32 0.2, %v14471_v36 }
 0x825   :  { %14445 = vst [vmem:[#allocation289_spill] sm:$0xff] %v10161_v35  ;;  %v10203_v35 = vmul.f32 0.2, %v14463_v24 }
 0x826   :  { %14446 = vst [vmem:[#allocation290_spill] sm:$0xff] %v10164_v45  ;;  %v10187_v45 = vmul.f32 0.2, %v9818_v60  ;;  %v10207_v60 = vadd.f32 %v8534_v56, %v14465_v6  ;;  %v14479_v6 = vld [vmem:[#allocation12_spill] sm:$0xff] }
 0x827   :  { %14448 = vst [vmem:[#allocation130_spill] sm:$0xff] %v10168_v26  ;;  %v10229_v12 = vmul.f32 0.2, %v14479_v6 }
 0x828   :  { %14449 = vst [vmem:[#allocation291_spill] sm:$0xff] %v10171_v10 }
 0x829   :  { %14450 = vst [vmem:[#allocation292_spill] sm:$0xff] %v10174_v58  ;;  %v14459_v58 = vld [vmem:[#allocation4_spill] sm:$0xff] }
 0x82a   :  { %14451 = vst [vmem:[#allocation293_spill] sm:$0xff] %v10177_v51  ;;  %v10197_v2 = vmul.f32 0.2, %v14459_v58  ;;  %v14461_v51 = vld [vmem:[#allocation5_spill] sm:$0xff]  ;;  %v14473_v58 = vld [vmem:[#allocation146_spill] sm:$0xff] }
 0x82b   :  { %14453 = vst [vmem:[#allocation134_spill] sm:$0xff] %v10181_v4  ;;  %v10200_v10 = vmul.f32 0.2, %v14461_v51  ;;  %v10220_v51 = vadd.f32 %v8534_v56, %v14473_v58  ;;  %v14487_v58 = vld [vmem:[#allocation16_spill] sm:$0xff] }
 0x82c   :  { %14454 = vst [vmem:[#allocation294_spill] sm:$0xff] %v10184_v17  ;;  %v10242_v49 = vmul.f32 0.2, %v14487_v58  ;;  %v14880_v53 = vld [vmem:[#allocation288_spill] sm:$0xff] }
 0x82d   :  { %14455 = vst [vmem:[#allocation295_spill] sm:$0xff] %v10187_v45  ;;  %v14467_v45 = vld [vmem:[#allocation7_spill] sm:$0xff] }
 0x82e   :  { %14456 = vst [vmem:[#allocation296_spill] sm:$0xff] %v10190_v39  ;;  %v10210_v59 = vmul.f32 0.2, %v14467_v45  ;;  %v14469_v39 = vld [vmem:[#allocation8_spill] sm:$0xff]  ;;  %v14481_v45 = vld [vmem:[#allocation149_spill] sm:$0xff] }
 0x82f   :  { %14458 = vst [vmem:[#allocation138_spill] sm:$0xff] %v10194_v47  ;;  %v10213_v17 = vmul.f32 0.2, %v14469_v39  ;;  %v10233_v39 = vadd.f32 %v8534_v56, %v14481_v45  ;;  %v14495_v45 = vld [vmem:[#allocation22_spill] sm:$0xff] }
 0x830   :  { %14460 = vst [vmem:[#allocation297_spill] sm:$0xff] %v10197_v2  ;;  %v10255_v48 = vmul.f32 0.2, %v14495_v45 }
 0x831   :  { %14462 = vst [vmem:[#allocation298_spill] sm:$0xff] %v10200_v10  ;;  %v14475_v10 = vld [vmem:[#allocation10_spill] sm:$0xff]  ;;  %v14896_v0 = vld [vmem:[#allocation293_spill] sm:$0xff] }
 0x832   :  { %14464 = vst [vmem:[#allocation299_spill] sm:$0xff] %v10203_v35  ;;  %v10223_v24 = vmul.f32 0.2, %v14475_v10  ;;  %v14477_v35 = vld [vmem:[#allocation11_spill] sm:$0xff]  ;;  %v14489_v10 = vld [vmem:[#allocation152_spill] sm:$0xff] }
 0x833   :  { %14466 = vst [vmem:[#allocation142_spill] sm:$0xff] %v10207_v60  ;;  %v10226_v2 = vmul.f32 0.2, %v14477_v35  ;;  %v10246_v35 = vadd.f32 %v8534_v56, %v14489_v10  ;;  %v14503_v10 = vld [vmem:[#allocation28_spill] sm:$0xff] }
 0x834   :  { %14468 = vst [vmem:[#allocation300_spill] sm:$0xff] %v10210_v59  ;;  %v10268_v41 = vmul.f32 0.2, %v14503_v10 }
 0x835   :  { %14470 = vst [vmem:[#allocation301_spill] sm:$0xff] %v10213_v17  ;;  %v14483_v17 = vld [vmem:[#allocation13_spill] sm:$0xff] }
 0x836   :  { %14472 = vst [vmem:[#allocation302_spill] sm:$0xff] %v10216_v57  ;;  %v10236_v36 = vmul.f32 0.2, %v14483_v17  ;;  %v14485_v57 = vld [vmem:[#allocation14_spill] sm:$0xff]  ;;  %v14497_v17 = vld [vmem:[#allocation155_spill] sm:$0xff] }
 0x837   :  { %14474 = vst [vmem:[#allocation146_spill] sm:$0xff] %v10220_v51  ;;  %v10239_v59 = vmul.f32 0.2, %v14485_v57  ;;  %v10259_v57 = vadd.f32 %v8534_v56, %v14497_v17  ;;  %v14511_v17 = vld [vmem:[#allocation34_spill] sm:$0xff] }
 0x838   :  { %14476 = vst [vmem:[#allocation303_spill] sm:$0xff] %v10223_v24  ;;  %v10281_v25 = vmul.f32 0.2, %v14511_v17 }
 0x839   :  { %14478 = vst [vmem:[#allocation304_spill] sm:$0xff] %v10226_v2  ;;  %v14491_v2 = vld [vmem:[#allocation18_spill] sm:$0xff] }
 0x83a   :  { %14480 = vst [vmem:[#allocation305_spill] sm:$0xff] %v10229_v12  ;;  %v10249_v6 = vmul.f32 0.2, %v14491_v2  ;;  %v14493_v12 = vld [vmem:[#allocation20_spill] sm:$0xff]  ;;  %v14505_v2 = vld [vmem:[#allocation159_spill] sm:$0xff] }
 0x83b   :  { %14482 = vst [vmem:[#allocation149_spill] sm:$0xff] %v10233_v39  ;;  %v10252_v24 = vmul.f32 0.2, %v14493_v12  ;;  %v10272_v12 = vadd.f32 %v8534_v56, %v14505_v2  ;;  %v14519_v2 = vld [vmem:[#allocation40_spill] sm:$0xff] }
 0x83c   :  { %14484 = vst [vmem:[#allocation306_spill] sm:$0xff] %v10236_v36  ;;  %v10294_v43 = vmul.f32 0.2, %v14519_v2 }
 0x83d   :  { %14486 = vst [vmem:[#allocation307_spill] sm:$0xff] %v10239_v59  ;;  %v14499_v59 = vld [vmem:[#allocation24_spill] sm:$0xff] }
 0x83e   :  { %14488 = vst [vmem:[#allocation308_spill] sm:$0xff] %v10242_v49  ;;  %v10262_v58 = vmul.f32 0.2, %v14499_v59  ;;  %v14501_v49 = vld [vmem:[#allocation26_spill] sm:$0xff] }
 0x83f   :  { %14490 = vst [vmem:[#allocation152_spill] sm:$0xff] %v10246_v35  ;;  %v10265_v36 = vmul.f32 0.2, %v14501_v49  ;;  %v14513_v59 = vld [vmem:[#allocation162_spill] sm:$0xff] }
 0x840   :  { %14492 = vst [vmem:[#allocation309_spill] sm:$0xff] %v10249_v6  ;;  %v10285_v49 = vadd.f32 %v8534_v56, %v14513_v59  ;;  %v14527_v59 = vld [vmem:[#allocation46_spill] sm:$0xff] }
 0x841   :  { %14494 = vst [vmem:[#allocation310_spill] sm:$0xff] %v10252_v24  ;;  %v14507_v24 = vld [vmem:[#allocation30_spill] sm:$0xff]  ;;  %v10307_v27 = vmul.f32 0.2, %v14527_v59 }
 0x842   :  { %14496 = vst [vmem:[#allocation311_spill] sm:$0xff] %v10255_v48  ;;  %v10275_v45 = vmul.f32 0.2, %v14507_v24  ;;  %v14509_v48 = vld [vmem:[#allocation32_spill] sm:$0xff]  ;;  %v14521_v24 = vld [vmem:[#allocation166_spill] sm:$0xff] }
 0x843   :  { %14498 = vst [vmem:[#allocation155_spill] sm:$0xff] %v10259_v57  ;;  %v10278_v6 = vmul.f32 0.2, %v14509_v48  ;;  %v10298_v48 = vadd.f32 %v8534_v56, %v14521_v24  ;;  %v14535_v24 = vld [vmem:[#allocation55_spill] sm:$0xff] }
 0x844   :  { %14500 = vst [vmem:[#allocation312_spill] sm:$0xff] %v10262_v58  ;;  %v10320_v21 = vmul.f32 0.2, %v14535_v24  ;;  %v10340_v24 = vmul.f32 0.2, %v9958_v14  ;;  %v14555_v14 = vld [vmem:[#allocation21_spill] sm:$0xff] }
 0x845   :  { %14502 = vst [vmem:[#allocation313_spill] sm:$0xff] %v10265_v36  ;;  %v14515_v36 = vld [vmem:[#allocation36_spill] sm:$0xff] }
 0x846   :  { %14504 = vst [vmem:[#allocation314_spill] sm:$0xff] %v10268_v41  ;;  %v10288_v10 = vmul.f32 0.2, %v14515_v36  ;;  %v14517_v41 = vld [vmem:[#allocation38_spill] sm:$0xff] }
 0x847   :  { %14506 = vst [vmem:[#allocation159_spill] sm:$0xff] %v10272_v12  ;;  %v10291_v58 = vmul.f32 0.2, %v14517_v41  ;;  %v14529_v36 = vld [vmem:[#allocation170_spill] sm:$0xff] }
 0x848   :  { %14508 = vst [vmem:[#allocation315_spill] sm:$0xff] %v10275_v45  ;;  %v10311_v41 = vadd.f32 %v8534_v56, %v14529_v36  ;;  %v10333_v36 = vmul.f32 0.2, %v9954_v42  ;;  %v10353_v42 = vmul.f32 0.2, %v9973_v22  ;;  %v14560_v22 = vld [vmem:[#allocation23_spill] sm:$0xff] }
 0x849   :  { %14510 = vst [vmem:[#allocation316_spill] sm:$0xff] %v10278_v6  ;;  %v14523_v6 = vld [vmem:[#allocation42_spill] sm:$0xff] }
 0x84a   :  { %14512 = vst [vmem:[#allocation317_spill] sm:$0xff] %v10281_v25  ;;  %v10301_v17 = vmul.f32 0.2, %v14523_v6  ;;  %v14525_v25 = vld [vmem:[#allocation44_spill] sm:$0xff]  ;;  %v14537_v6 = vld [vmem:[#allocation15_spill] sm:$0xff] }
 0x84b   :  { %14514 = vst [vmem:[#allocation162_spill] sm:$0xff] %v10285_v49  ;;  %v10304_v45 = vmul.f32 0.2, %v14525_v25  ;;  %v10324_v25 = vadd.f32 %v8534_v56, %v14537_v6  ;;  %v10346_v6 = vmul.f32 0.2, %v9966_v5 }
 0x84c   :  { %14516 = vst [vmem:[#allocation318_spill] sm:$0xff] %v10288_v10  ;;  %v10366_v5 = vmul.f32 0.2, %v10012_v54  ;;  %v14565_v54 = vld [vmem:[#allocation25_spill] sm:$0xff] }
 0x84d   :  { %14518 = vst [vmem:[#allocation319_spill] sm:$0xff] %v10291_v58  ;;  %v14531_v58 = vld [vmem:[#allocation49_spill] sm:$0xff] }
 0x84e   :  { %14520 = vst [vmem:[#allocation320_spill] sm:$0xff] %v10294_v43  ;;  %v10314_v2 = vmul.f32 0.2, %v14531_v58  ;;  %v14533_v43 = vld [vmem:[#allocation52_spill] sm:$0xff]  ;;  %v14544_v58 = vld [vmem:[#allocation17_spill] sm:$0xff] }
 0x84f   :  { %14522 = vst [vmem:[#allocation166_spill] sm:$0xff] %v10298_v48  ;;  %v10317_v10 = vmul.f32 0.2, %v14533_v43  ;;  %v10337_v43 = vadd.f32 %v8534_v56, %v14544_v58  ;;  %v10359_v58 = vmul.f32 0.2, %v9999_v33 }
 0x850   :  { %14524 = vst [vmem:[#allocation321_spill] sm:$0xff] %v10301_v17  ;;  %v10379_v33 = vmul.f32 0.2, %v10051_v15  ;;  %v14570_v15 = vld [vmem:[#allocation27_spill] sm:$0xff] }
 0x851   :  { %14526 = vst [vmem:[#allocation322_spill] sm:$0xff] %v10304_v45  ;;  %v14539_v45 = vld [vmem:[#allocation58_spill] sm:$0xff] }
 0x852   :  { %14528 = vst [vmem:[#allocation323_spill] sm:$0xff] %v10307_v27  ;;  %v10327_v59 = vmul.f32 0.2, %v14539_v45  ;;  %v14541_v27 = vld [vmem:[#allocation61_spill] sm:$0xff]  ;;  %v14550_v45 = vld [vmem:[#allocation19_spill] sm:$0xff] }
 0x853   :  { %14530 = vst [vmem:[#allocation170_spill] sm:$0xff] %v10311_v41  ;;  %v10330_v17 = vmul.f32 0.2, %v14541_v27  ;;  %v10350_v27 = vadd.f32 %v8534_v56, %v14550_v45  ;;  %v10372_v45 = vmul.f32 0.2, %v10038_v30 }
 0x854   :  { %14532 = vst [vmem:[#allocation324_spill] sm:$0xff] %v10314_v2  ;;  %v10392_v30 = vmul.f32 0.2, %v10090_v38  ;;  %v14575_v38 = vld [vmem:[#allocation29_spill] sm:$0xff] }
 0x855   :  { %14534 = vst [vmem:[#allocation325_spill] sm:$0xff] %v10317_v10 }
 0x856   :  { %14536 = vst [vmem:[#allocation326_spill] sm:$0xff] %v10320_v21  ;;  %v14547_v21 = vld [vmem:[#allocation70_spill] sm:$0xff] }
 0x857   :  { %14538 = vst [vmem:[#allocation15_spill] sm:$0xff] %v10324_v25  ;;  %v10343_v10 = vmul.f32 0.2, %v14547_v21  ;;  %v10363_v21 = vadd.f32 %v8534_v56, %v14555_v14  ;;  %v10385_v14 = vmul.f32 0.2, %v10077_v62 }
 0x858   :  { %14540 = vst [vmem:[#allocation327_spill] sm:$0xff] %v10327_v59  ;;  %v10405_v62 = vmul.f32 0.2, %v10129_v1  ;;  %v14580_v1 = vld [vmem:[#allocation31_spill] sm:$0xff]  ;;  %v14840_v59 = vld [vmem:[#allocation208_spill] sm:$0xff] }
 0x859   :  { %14542 = vst [vmem:[#allocation328_spill] sm:$0xff] %v10330_v17  ;;  %v14894_v17 = vld [vmem:[#allocation292_spill] sm:$0xff] }
 0x85a   :  { %14543 = vst [vmem:[#allocation329_spill] sm:$0xff] %v10333_v36  ;;  %v10356_v36 = vmul.f32 0.2, %v9986_v29  ;;  %v10376_v29 = vadd.f32 %v8534_v56, %v14560_v22  ;;  %v10398_v22 = vmul.f32 0.2, %v10116_v19 }
 0x85b   :  { %14545 = vst [vmem:[#allocation17_spill] sm:$0xff] %v10337_v43  ;;  %v10418_v19 = vmul.f32 0.2, %v10168_v26  ;;  %v14585_v26 = vld [vmem:[#allocation33_spill] sm:$0xff] }
 0x85c   :  { %14546 = vst [vmem:[#allocation330_spill] sm:$0xff] %v10340_v24  ;;  %v14832_v24 = vld [vmem:[#allocation249_spill] sm:$0xff] }
 0x85d   :  { %14548 = vst [vmem:[#allocation331_spill] sm:$0xff] %v10343_v10  ;;  %v14825_v10 = vld [vmem:[#allocation248_spill] sm:$0xff] }
 0x85e   :  { %14549 = vst [vmem:[#allocation332_spill] sm:$0xff] %v10346_v6  ;;  %v10369_v6 = vmul.f32 0.2, %v10025_v37  ;;  %v10389_v37 = vadd.f32 %v8534_v56, %v14565_v54  ;;  %v10411_v54 = vmul.f32 0.2, %v10155_v40 }
 0x85f   :  { %14551 = vst [vmem:[#allocation19_spill] sm:$0xff] %v10350_v27  ;;  %v10431_v40 = vmul.f32 0.2, %v10207_v60  ;;  %v14590_v60 = vld [vmem:[#allocation35_spill] sm:$0xff] }
 0x860   :  { %14552 = vst [vmem:[#allocation333_spill] sm:$0xff] %v10353_v42  ;;  %v14818_v42 = vld [vmem:[#allocation198_spill] sm:$0xff] }
 0x861   :  { %14553 = vst [vmem:[#allocation334_spill] sm:$0xff] %v10356_v36  ;;  %v10827_v36 = vmul.f32 0.2, %v14825_v10  ;;  %v14838_v10 = vld [vmem:[#allocation206_spill] sm:$0xff] }
 0x862   :  { %14554 = vst [vmem:[#allocation335_spill] sm:$0xff] %v10359_v58  ;;  %v10382_v58 = vmul.f32 0.2, %v10064_v44  ;;  %v10402_v44 = vadd.f32 %v8534_v56, %v14570_v15  ;;  %v10424_v15 = vmul.f32 0.2, %v10194_v47 }
 0x863   :  { %14556 = vst [vmem:[#allocation21_spill] sm:$0xff] %v10363_v21  ;;  %v10444_v47 = vmul.f32 0.2, %v10246_v35  ;;  %v10466_v35 = vmul.f32 0.2, %v10324_v25 }
 0x864   :  { %14557 = vst [vmem:[#allocation336_spill] sm:$0xff] %v10366_v5  ;;  %v14810_v5 = vld [vmem:[#allocation244_spill] sm:$0xff] }
 0x865   :  { %14558 = vst [vmem:[#allocation337_spill] sm:$0xff] %v10369_v6  ;;  %v14803_v6 = vld [vmem:[#allocation179_spill] sm:$0xff] }
 0x866   :  { %14559 = vst [vmem:[#allocation338_spill] sm:$0xff] %v10372_v45  ;;  %v10395_v45 = vmul.f32 0.2, %v10103_v31  ;;  %v10415_v31 = vadd.f32 %v8534_v56, %v14575_v38  ;;  %v10437_v38 = vmul.f32 0.2, %v10233_v39 }
 0x867   :  { %14561 = vst [vmem:[#allocation23_spill] sm:$0xff] %v10376_v29  ;;  %v10457_v39 = vmul.f32 0.2, %v10285_v49  ;;  %v14722_v49 = vld [vmem:[#allocation186_spill] sm:$0xff] }
 0x868   :  { %14562 = vst [vmem:[#allocation339_spill] sm:$0xff] %v10379_v33  ;;  %v10487_v25 = vmul.f32 0.2, %v10415_v31  ;;  %v14796_v33 = vld [vmem:[#allocation164_spill] sm:$0xff] }
 0x869   :  { %14563 = vst [vmem:[#allocation340_spill] sm:$0xff] %v10382_v58  ;;  %v10794_v58 = vmul.f32 0.2, %v14803_v6  ;;  %v14816_v6 = vld [vmem:[#allocation196_spill] sm:$0xff] }
 0x86a   :  { %14564 = vst [vmem:[#allocation341_spill] sm:$0xff] %v10385_v14  ;;  %v10408_v14 = vmul.f32 0.2, %v10142_v46  ;;  %v10428_v46 = vadd.f32 %v8534_v56, %v14580_v1  ;;  %v10450_v1 = vmul.f32 0.2, %v10272_v12 }
 0x86b   :  { %14566 = vst [vmem:[#allocation25_spill] sm:$0xff] %v10389_v37  ;;  %v10472_v12 = vmul.f32 0.2, %v10350_v27 }
 0x86c   :  { %14567 = vst [vmem:[#allocation342_spill] sm:$0xff] %v10392_v30  ;;  %v14788_v30 = vld [vmem:[#allocation153_spill] sm:$0xff] }
 0x86d   :  { %14568 = vst [vmem:[#allocation343_spill] sm:$0xff] %v10395_v45  ;;  %v14781_v45 = vld [vmem:[#allocation120_spill] sm:$0xff] }
 0x86e   :  { %14569 = vst [vmem:[#allocation344_spill] sm:$0xff] %v10398_v22  ;;  %v10421_v22 = vmul.f32 0.2, %v10181_v4  ;;  %v10441_v4 = vadd.f32 %v8534_v56, %v14585_v26  ;;  %v10463_v26 = vmul.f32 0.2, %v10311_v41 }
 0x86f   :  { %14571 = vst [vmem:[#allocation27_spill] sm:$0xff] %v10402_v44  ;;  %v10484_v41 = vmul.f32 0.2, %v10402_v44  ;;  %v14610_v44 = vld [vmem:[#allocation137_spill] sm:$0xff] }
 0x870   :  { %14572 = vst [vmem:[#allocation345_spill] sm:$0xff] %v10405_v62  ;;  %v10493_v27 = vmul.f32 0.2, %v10441_v4  ;;  %v14774_v62 = vld [vmem:[#allocation93_spill] sm:$0xff] }
 0x871   :  { %14573 = vst [vmem:[#allocation346_spill] sm:$0xff] %v10408_v14  ;;  %v10761_v14 = vmul.f32 0.2, %v14781_v45  ;;  %v14794_v45 = vld [vmem:[#allocation160_spill] sm:$0xff] }
 0x872   :  { %14574 = vst [vmem:[#allocation347_spill] sm:$0xff] %v10411_v54  ;;  %v10434_v54 = vmul.f32 0.2, %v10220_v51  ;;  %v10454_v51 = vadd.f32 %v8534_v56, %v14590_v60  ;;  %v10475_v56 = vmul.f32 0.2, %v10363_v21 }
 0x873   :  { %14576 = vst [vmem:[#allocation29_spill] sm:$0xff] %v10415_v31  ;;  %v10478_v60 = vmul.f32 0.2, %v10376_v29  ;;  %v14606_v29 = vld [vmem:[#allocation129_spill] sm:$0xff] }
 0x874   :  { %14577 = vst [vmem:[#allocation348_spill] sm:$0xff] %v10418_v19  ;;  %v10496_v21 = vmul.f32 0.2, %v10454_v51  ;;  %v14612_v31 = vld [vmem:[#allocation141_spill] sm:$0xff] }
 0x875   :  { %14578 = vst [vmem:[#allocation349_spill] sm:$0xff] %v10421_v22  ;;  %v14759_v22 = vld [vmem:[#allocation60_spill] sm:$0xff]  ;;  %v14766_v19 = vld [vmem:[#allocation69_spill] sm:$0xff] }
 0x876   :  { %14579 = vst [vmem:[#allocation350_spill] sm:$0xff] %v10424_v15  ;;  %v10447_v15 = vmul.f32 0.2, %v10259_v57  ;;  %v10469_v57 = vmul.f32 0.2, %v10337_v43 }
 0x877   :  { %14581 = vst [vmem:[#allocation31_spill] sm:$0xff] %v10428_v46  ;;  %v10490_v43 = vmul.f32 0.2, %v10428_v46  ;;  %v14614_v46 = vld [vmem:[#allocation144_spill] sm:$0xff] }
 0x878   :  { %14582 = vst [vmem:[#allocation351_spill] sm:$0xff] %v10431_v40  ;;  %v14752_v40 = vld [vmem:[#allocation51_spill] sm:$0xff] }
 0x879   :  { %14583 = vst [vmem:[#allocation352_spill] sm:$0xff] %v10434_v54  ;;  %v10728_v54 = vmul.f32 0.2, %v14759_v22  ;;  %v14772_v22 = vld [vmem:[#allocation87_spill] sm:$0xff] }
 0x87a   :  { %14584 = vst [vmem:[#allocation353_spill] sm:$0xff] %v10437_v38  ;;  %v10460_v38 = vmul.f32 0.2, %v10298_v48  ;;  %v10481_v48 = vmul.f32 0.2, %v10389_v37  ;;  %v14608_v37 = vld [vmem:[#allocation133_spill] sm:$0xff] }
 0x87b   :  { %14586 = vst [vmem:[#allocation33_spill] sm:$0xff] %v10441_v4  ;;  %v14616_v4 = vld [vmem:[#allocation147_spill] sm:$0xff] }
 0x87c   :  { %14587 = vst [vmem:[#allocation354_spill] sm:$0xff] %v10444_v47  ;;  %v14744_v47 = vld [vmem:[#allocation201_spill] sm:$0xff] }
 0x87d   :  { %14588 = vst [vmem:[#allocation355_spill] sm:$0xff] %v10447_v15  ;;  %v14737_v15 = vld [vmem:[#allocation202_spill] sm:$0xff] }
 0x87e   :  { %14589 = vst [vmem:[#allocation356_spill] sm:$0xff] %v10450_v1  ;;  %v14730_v1 = vld [vmem:[#allocation158_spill] sm:$0xff] }
 0x87f   :  { %14591 = vst [vmem:[#allocation35_spill] sm:$0xff] %v10454_v51  ;;  %v14618_v51 = vld [vmem:[#allocation163_spill] sm:$0xff] }
 0x880   :  { %14592 = vst [vmem:[#allocation357_spill] sm:$0xff] %v10457_v39  ;;  %v10695_v39 = vmul.f32 0.2, %v14737_v15  ;;  %v14750_v15 = vld [vmem:[#allocation48_spill] sm:$0xff] }
 0x881   :  { %14593 = vst [vmem:[#allocation358_spill] sm:$0xff] %v10460_v38  ;;  %v14715_v38 = vld [vmem:[#allocation171_spill] sm:$0xff] }
 0x882   :  { %14594 = vst [vmem:[#allocation359_spill] sm:$0xff] %v10463_v26  ;;  %v14708_v26 = vld [vmem:[#allocation140_spill] sm:$0xff] }
 0x883   :  { %14595 = vst [vmem:[#allocation360_spill] sm:$0xff] %v10466_v35  ;;  %v10662_v35 = vmul.f32 0.2, %v14715_v38  ;;  %v14728_v38 = vld [vmem:[#allocation154_spill] sm:$0xff] }
 0x884   :  { %14596 = vst [vmem:[#allocation361_spill] sm:$0xff] %v10469_v57  ;;  %v14700_v57 = vld [vmem:[#allocation112_spill] sm:$0xff] }
 0x885   :  { %14597 = vst [vmem:[#allocation362_spill] sm:$0xff] %v10472_v12  ;;  %v14693_v12 = vld [vmem:[#allocation84_spill] sm:$0xff] }
 0x886   :  { %14598 = vst [vmem:[#allocation363_spill] sm:$0xff] %v10475_v56  ;;  %v10629_v56 = vmul.f32 0.2, %v14693_v12  ;;  %v14706_v12 = vld [vmem:[#allocation136_spill] sm:$0xff] }
 0x887   :  { %14599 = vst [vmem:[#allocation364_spill] sm:$0xff] %v10478_v60  ;;  %v10499_v60 = vmul.f32 0.2, %v14606_v29  ;;  %v14620_v29 = vld [vmem:[#allocation168_spill] sm:$0xff] }
 0x888   :  { %14600 = vst [vmem:[#allocation365_spill] sm:$0xff] %v10481_v48  ;;  %v10502_v48 = vmul.f32 0.2, %v14608_v37  ;;  %v14622_v37 = vld [vmem:[#allocation178_spill] sm:$0xff] }
 0x889   :  { %14601 = vst [vmem:[#allocation366_spill] sm:$0xff] %v10484_v41  ;;  %v10505_v41 = vmul.f32 0.2, %v14610_v44  ;;  %v14624_v44 = vld [vmem:[#allocation181_spill] sm:$0xff] }
 0x88a   :  { %14602 = vst [vmem:[#allocation367_spill] sm:$0xff] %v10487_v25  ;;  %v10508_v25 = vmul.f32 0.2, %v14612_v31  ;;  %v14626_v31 = vld [vmem:[#allocation183_spill] sm:$0xff] }
 0x88b   :  { %14603 = vst [vmem:[#allocation368_spill] sm:$0xff] %v10490_v43  ;;  %v10511_v43 = vmul.f32 0.2, %v14614_v46  ;;  %v14628_v46 = vld [vmem:[#allocation193_spill] sm:$0xff] }
 0x88c   :  { %14604 = vst [vmem:[#allocation369_spill] sm:$0xff] %v10493_v27  ;;  %v10514_v27 = vmul.f32 0.2, %v14616_v4  ;;  %v14630_v4 = vld [vmem:[#allocation195_spill] sm:$0xff] }
 0x88d   :  { %14605 = vst [vmem:[#allocation370_spill] sm:$0xff] %v10496_v21  ;;  %v10517_v21 = vmul.f32 0.2, %v14618_v51  ;;  %v14632_v51 = vld [vmem:[#allocation205_spill] sm:$0xff] }
 0x88e   :  { %14607 = vst [vmem:[#allocation371_spill] sm:$0xff] %v10499_v60  ;;  %v10520_v60 = vmul.f32 0.2, %v14620_v29  ;;  %v14634_v29 = vld [vmem:[#allocation207_spill] sm:$0xff] }
 0x88f   :  { %14609 = vst [vmem:[#allocation372_spill] sm:$0xff] %v10502_v48  ;;  %v10523_v48 = vmul.f32 0.2, %v14622_v37  ;;  %v14636_v37 = vld [vmem:[#allocation212_spill] sm:$0xff] }
 0x890   :  { %14611 = vst [vmem:[#allocation373_spill] sm:$0xff] %v10505_v41  ;;  %v10526_v41 = vmul.f32 0.2, %v14624_v44  ;;  %v14638_v44 = vld [vmem:[#allocation214_spill] sm:$0xff] }
 0x891   :  { %14613 = vst [vmem:[#allocation374_spill] sm:$0xff] %v10508_v25  ;;  %v10529_v25 = vmul.f32 0.2, %v14626_v31  ;;  %v14640_v31 = vld [vmem:[#allocation222_spill] sm:$0xff] }
 0x892   :  { %14615 = vst [vmem:[#allocation375_spill] sm:$0xff] %v10511_v43  ;;  %v10532_v43 = vmul.f32 0.2, %v14628_v46  ;;  %v14642_v46 = vld [vmem:[#allocation223_spill] sm:$0xff] }
 0x893   :  { %14617 = vst [vmem:[#allocation376_spill] sm:$0xff] %v10514_v27  ;;  %v10535_v27 = vmul.f32 0.2, %v14630_v4  ;;  %v14644_v4 = vld [vmem:[#allocation224_spill] sm:$0xff] }
 0x894   :  { %14619 = vst [vmem:[#allocation377_spill] sm:$0xff] %v10517_v21  ;;  %v10538_v21 = vmul.f32 0.2, %v14632_v51  ;;  %v14646_v51 = vld [vmem:[#allocation225_spill] sm:$0xff] }
 0x895   :  { %14621 = vst [vmem:[#allocation378_spill] sm:$0xff] %v10520_v60  ;;  %v10541_v60 = vmul.f32 0.2, %v14634_v29  ;;  %v14648_v29 = vld [vmem:[#allocation226_spill] sm:$0xff] }
 0x896   :  { %14623 = vst [vmem:[#allocation379_spill] sm:$0xff] %v10523_v48  ;;  %v10544_v48 = vmul.f32 0.2, %v14636_v37  ;;  %v14650_v37 = vld [vmem:[#allocation172_spill] sm:$0xff] }
 0x897   :  { %14625 = vst [vmem:[#allocation380_spill] sm:$0xff] %v10526_v41  ;;  %v10547_v41 = vmul.f32 0.2, %v14638_v44  ;;  %v14652_v44 = vld [vmem:[#allocation175_spill] sm:$0xff] }
 0x898   :  { %14627 = vst [vmem:[#allocation381_spill] sm:$0xff] %v10529_v25  ;;  %v10550_v25 = vmul.f32 0.2, %v14640_v31  ;;  %v14654_v31 = vld [vmem:[#allocation185_spill] sm:$0xff] }
 0x899   :  { %14629 = vst [vmem:[#allocation382_spill] sm:$0xff] %v10532_v43  ;;  %v10553_v43 = vmul.f32 0.2, %v14642_v46  ;;  %v14656_v46 = vld [vmem:[#allocation227_spill] sm:$0xff] }
 0x89a   :  { %14631 = vst [vmem:[#allocation383_spill] sm:$0xff] %v10535_v27  ;;  %v10556_v27 = vmul.f32 0.2, %v14644_v4  ;;  %v14658_v4 = vld [vmem:[#allocation228_spill] sm:$0xff] }
 0x89b   :  { %14633 = vst [vmem:[#allocation384_spill] sm:$0xff] %v10538_v21  ;;  %v10559_v21 = vmul.f32 0.2, %v14646_v51  ;;  %v14660_v51 = vld [vmem:[#allocation229_spill] sm:$0xff] }
 0x89c   :  { %14635 = vst [vmem:[#allocation385_spill] sm:$0xff] %v10541_v60  ;;  %v10562_v60 = vmul.f32 0.2, %v14648_v29  ;;  %v14662_v29 = vld [vmem:[#allocation209_spill] sm:$0xff] }
 0x89d   :  { %14637 = vst [vmem:[#allocation386_spill] sm:$0xff] %v10544_v48  ;;  %v10565_v48 = vmul.f32 0.2, %v14650_v37  ;;  %v14664_v37 = vld [vmem:[#allocation230_spill] sm:$0xff] }
 0x89e   :  { %14639 = vst [vmem:[#allocation387_spill] sm:$0xff] %v10547_v41  ;;  %v10568_v41 = vmul.f32 0.2, %v14652_v44  ;;  %v14666_v44 = vld [vmem:[#allocation231_spill] sm:$0xff] }
 0x89f   :  { %14641 = vst [vmem:[#allocation388_spill] sm:$0xff] %v10550_v25  ;;  %v10571_v25 = vmul.f32 0.2, %v14654_v31  ;;  %v14668_v31 = vld [vmem:[#allocation232_spill] sm:$0xff] }
 0x8a0   :  { %14643 = vst [vmem:[#allocation389_spill] sm:$0xff] %v10553_v43  ;;  %v10574_v43 = vmul.f32 0.2, %v14656_v46  ;;  %v14670_v46 = vld [vmem:[#allocation233_spill] sm:$0xff] }
 0x8a1   :  { %14645 = vst [vmem:[#allocation390_spill] sm:$0xff] %v10556_v27  ;;  %v10577_v27 = vmul.f32 0.2, %v14658_v4  ;;  %v14672_v4 = vld [vmem:[#allocation234_spill] sm:$0xff] }
 0x8a2   :  { %14647 = vst [vmem:[#allocation391_spill] sm:$0xff] %v10559_v21  ;;  %v10580_v21 = vmul.f32 0.2, %v14660_v51  ;;  %v14674_v51 = vld [vmem:[#allocation235_spill] sm:$0xff] }
 0x8a3   :  { %14649 = vst [vmem:[#allocation392_spill] sm:$0xff] %v10562_v60  ;;  %v10583_v60 = vmul.f32 0.2, %v14662_v29  ;;  %v14676_v29 = vld [vmem:[#allocation236_spill] sm:$0xff] }
 0x8a4   :  { %14651 = vst [vmem:[#allocation393_spill] sm:$0xff] %v10565_v48  ;;  %v10586_v48 = vmul.f32 0.2, %v14664_v37  ;;  %v14678_v37 = vld [vmem:[#allocation237_spill] sm:$0xff] }
 0x8a5   :  { %14653 = vst [vmem:[#allocation394_spill] sm:$0xff] %v10568_v41  ;;  %v10589_v41 = vmul.f32 0.2, %v14666_v44  ;;  %v14680_v44 = vld [vmem:[#allocation259_spill] sm:$0xff] }
 0x8a6   :  { %14655 = vst [vmem:[#allocation395_spill] sm:$0xff] %v10571_v25  ;;  %v10592_v25 = vmul.f32 0.2, %v14668_v31  ;;  %v14682_v31 = vld [vmem:[#allocation238_spill] sm:$0xff] }
 0x8a7   :  { %14657 = vst [vmem:[#allocation396_spill] sm:$0xff] %v10574_v43  ;;  %v10595_v43 = vmul.f32 0.2, %v14670_v46  ;;  %v14684_v46 = vld [vmem:[#allocation239_spill] sm:$0xff] }
 0x8a8   :  { %14659 = vst [vmem:[#allocation397_spill] sm:$0xff] %v10577_v27  ;;  %v10598_v27 = vmul.f32 0.2, %v14672_v4  ;;  %v14686_v4 = vld [vmem:[#allocation75_spill] sm:$0xff] }
 0x8a9   :  { %14661 = vst [vmem:[#allocation398_spill] sm:$0xff] %v10580_v21  ;;  %v10601_v21 = vmul.f32 0.2, %v14674_v51  ;;  %v14688_v51 = vld [vmem:[#allocation39_spill] sm:$0xff] }
 0x8aa   :  { %14663 = vst [vmem:[#allocation399_spill] sm:$0xff] %v10583_v60  ;;  %v10604_v60 = vmul.f32 0.2, %v14676_v29  ;;  %v14689_v29 = vld [vmem:[#allocation78_spill] sm:$0xff] }
 0x8ab   :  { %14665 = vst [vmem:[#allocation400_spill] sm:$0xff] %v10586_v48  ;;  %v10607_v48 = vmul.f32 0.2, %v14678_v37  ;;  %v14691_v37 = vld [vmem:[#allocation81_spill] sm:$0xff] }
 0x8ac   :  { %14667 = vst [vmem:[#allocation401_spill] sm:$0xff] %v10589_v41  ;;  %v14681_v41 = vld [vmem:[#allocation37_spill] sm:$0xff] }
 0x8ad   :  { %14669 = vst [vmem:[#allocation402_spill] sm:$0xff] %v10592_v25  ;;  %v10612_v25 = vmul.f32 0.2, %v14682_v31  ;;  %v14695_v31 = vld [vmem:[#allocation41_spill] sm:$0xff] }
 0x8ae   :  { %14671 = vst [vmem:[#allocation403_spill] sm:$0xff] %v10595_v43  ;;  %v10615_v43 = vmul.f32 0.2, %v14684_v46  ;;  %v14696_v46 = vld [vmem:[#allocation100_spill] sm:$0xff] }
 0x8af   :  { %14673 = vst [vmem:[#allocation404_spill] sm:$0xff] %v10598_v27  ;;  %v10618_v27 = vmul.f32 0.2, %v14686_v4  ;;  %v14698_v4 = vld [vmem:[#allocation108_spill] sm:$0xff] }
 0x8b0   :  { %14675 = vst [vmem:[#allocation405_spill] sm:$0xff] %v10601_v21  ;;  %v10640_v21 = vmul.f32 0.2, %v14700_v57  ;;  %v14713_v57 = vld [vmem:[#allocation167_spill] sm:$0xff] }
 0x8b1   :  { %14677 = vst [vmem:[#allocation406_spill] sm:$0xff] %v10604_v60  ;;  %v10623_v60 = vmul.f32 0.2, %v14689_v29  ;;  %v14702_v29 = vld [vmem:[#allocation260_spill] sm:$0xff] }
 0x8b2   :  { %14679 = vst [vmem:[#allocation407_spill] sm:$0xff] %v10607_v48  ;;  %v10626_v48 = vmul.f32 0.2, %v14691_v37  ;;  %v14704_v37 = vld [vmem:[#allocation132_spill] sm:$0xff] }
 0x8b3   :  { %14683 = vst [vmem:[#allocation259_spill] sm:$0xff] %v10612_v25  ;;  %v10651_v25 = vmul.f32 0.2, %v14708_v26  ;;  %v14720_v26 = vld [vmem:[#allocation176_spill] sm:$0xff] }
 0x8b4   :  { %14685 = vst [vmem:[#allocation37_spill] sm:$0xff] %v10615_v43  ;;  %v10634_v43 = vmul.f32 0.2, %v14696_v46  ;;  %v14710_v46 = vld [vmem:[#allocation45_spill] sm:$0xff] }
 0x8b5   :  { %14687 = vst [vmem:[#allocation408_spill] sm:$0xff] %v10618_v27  ;;  %v10637_v27 = vmul.f32 0.2, %v14698_v4  ;;  %v14711_v4 = vld [vmem:[#allocation143_spill] sm:$0xff] }
 0x8b6   :  { %14690 = vst [vmem:[#allocation39_spill] sm:$0xff] %v10623_v60  ;;  %v14703_v60 = vld [vmem:[#allocation43_spill] sm:$0xff] }
 0x8b7   :  { %14692 = vst [vmem:[#allocation409_spill] sm:$0xff] %v10626_v48  ;;  %v10645_v48 = vmul.f32 0.2, %v14704_v37  ;;  %v14717_v37 = vld [vmem:[#allocation47_spill] sm:$0xff] }
 0x8b8   :  { %14694 = vst [vmem:[#allocation410_spill] sm:$0xff] %v10629_v56  ;;  %v10648_v56 = vmul.f32 0.2, %v14706_v12  ;;  %v14718_v12 = vld [vmem:[#allocation174_spill] sm:$0xff] }
 0x8b9   :  { %14697 = vst [vmem:[#allocation41_spill] sm:$0xff] %v10634_v43  ;;  %v10673_v43 = vmul.f32 0.2, %v14722_v49  ;;  %v14735_v49 = vld [vmem:[#allocation191_spill] sm:$0xff] }
 0x8ba   :  { %14699 = vst [vmem:[#allocation411_spill] sm:$0xff] %v10637_v27  ;;  %v10656_v27 = vmul.f32 0.2, %v14711_v4  ;;  %v14724_v4 = vld [vmem:[#allocation261_spill] sm:$0xff] }
 0x8bb   :  { %14701 = vst [vmem:[#allocation412_spill] sm:$0xff] %v10640_v21  ;;  %v10659_v21 = vmul.f32 0.2, %v14713_v57  ;;  %v14726_v57 = vld [vmem:[#allocation150_spill] sm:$0xff] }
 0x8bc   :  { %14705 = vst [vmem:[#allocation260_spill] sm:$0xff] %v10645_v48  ;;  %v10684_v48 = vmul.f32 0.2, %v14730_v1  ;;  %v14742_v1 = vld [vmem:[#allocation240_spill] sm:$0xff] }
 0x8bd   :  { %14707 = vst [vmem:[#allocation43_spill] sm:$0xff] %v10648_v56  ;;  %v10667_v56 = vmul.f32 0.2, %v14718_v12  ;;  %v14732_v12 = vld [vmem:[#allocation53_spill] sm:$0xff] }
 0x8be   :  { %14709 = vst [vmem:[#allocation413_spill] sm:$0xff] %v10651_v25  ;;  %v10670_v25 = vmul.f32 0.2, %v14720_v26  ;;  %v14733_v26 = vld [vmem:[#allocation188_spill] sm:$0xff] }
 0x8bf   :  { %14712 = vst [vmem:[#allocation45_spill] sm:$0xff] %v10656_v27  ;;  %v14725_v27 = vld [vmem:[#allocation50_spill] sm:$0xff] }
 0x8c0   :  { %14714 = vst [vmem:[#allocation414_spill] sm:$0xff] %v10659_v21  ;;  %v10678_v21 = vmul.f32 0.2, %v14726_v57  ;;  %v14739_v57 = vld [vmem:[#allocation56_spill] sm:$0xff] }
 0x8c1   :  { %14716 = vst [vmem:[#allocation415_spill] sm:$0xff] %v10662_v35  ;;  %v10681_v35 = vmul.f32 0.2, %v14728_v38  ;;  %v14740_v38 = vld [vmem:[#allocation104_spill] sm:$0xff] }
 0x8c2   :  { %14719 = vst [vmem:[#allocation47_spill] sm:$0xff] %v10667_v56  ;;  %v10706_v56 = vmul.f32 0.2, %v14744_v47  ;;  %v14757_v47 = vld [vmem:[#allocation57_spill] sm:$0xff] }
 0x8c3   :  { %14721 = vst [vmem:[#allocation416_spill] sm:$0xff] %v10670_v25  ;;  %v10689_v25 = vmul.f32 0.2, %v14733_v26  ;;  %v14746_v26 = vld [vmem:[#allocation262_spill] sm:$0xff] }
 0x8c4   :  { %14723 = vst [vmem:[#allocation417_spill] sm:$0xff] %v10673_v43  ;;  %v10692_v43 = vmul.f32 0.2, %v14735_v49  ;;  %v14748_v49 = vld [vmem:[#allocation204_spill] sm:$0xff] }
 0x8c5   :  { %14727 = vst [vmem:[#allocation261_spill] sm:$0xff] %v10678_v21  ;;  %v10717_v21 = vmul.f32 0.2, %v14752_v40  ;;  %v14764_v40 = vld [vmem:[#allocation66_spill] sm:$0xff] }
 0x8c6   :  { %14729 = vst [vmem:[#allocation50_spill] sm:$0xff] %v10681_v35  ;;  %v10700_v35 = vmul.f32 0.2, %v14740_v38  ;;  %v14754_v38 = vld [vmem:[#allocation62_spill] sm:$0xff] }
 0x8c7   :  { %14731 = vst [vmem:[#allocation418_spill] sm:$0xff] %v10684_v48  ;;  %v10703_v48 = vmul.f32 0.2, %v14742_v1  ;;  %v14755_v1 = vld [vmem:[#allocation54_spill] sm:$0xff] }
 0x8c8   :  { %14734 = vst [vmem:[#allocation53_spill] sm:$0xff] %v10689_v25  ;;  %v14747_v25 = vld [vmem:[#allocation59_spill] sm:$0xff] }
 0x8c9   :  { %14736 = vst [vmem:[#allocation419_spill] sm:$0xff] %v10692_v43  ;;  %v10711_v43 = vmul.f32 0.2, %v14748_v49  ;;  %v14761_v49 = vld [vmem:[#allocation65_spill] sm:$0xff] }
 0x8ca   :  { %14738 = vst [vmem:[#allocation420_spill] sm:$0xff] %v10695_v39  ;;  %v10714_v39 = vmul.f32 0.2, %v14750_v15  ;;  %v14762_v15 = vld [vmem:[#allocation63_spill] sm:$0xff] }
 0x8cb   :  { %14741 = vst [vmem:[#allocation56_spill] sm:$0xff] %v10700_v35  ;;  %v10739_v35 = vmul.f32 0.2, %v14766_v19  ;;  %v14779_v19 = vld [vmem:[#allocation116_spill] sm:$0xff] }
 0x8cc   :  { %14743 = vst [vmem:[#allocation421_spill] sm:$0xff] %v10703_v48  ;;  %v10722_v48 = vmul.f32 0.2, %v14755_v1  ;;  %v14768_v1 = vld [vmem:[#allocation263_spill] sm:$0xff] }
 0x8cd   :  { %14745 = vst [vmem:[#allocation422_spill] sm:$0xff] %v10706_v56  ;;  %v10725_v56 = vmul.f32 0.2, %v14757_v47  ;;  %v14770_v47 = vld [vmem:[#allocation72_spill] sm:$0xff] }
 0x8ce   :  { %14749 = vst [vmem:[#allocation262_spill] sm:$0xff] %v10711_v43  ;;  %v10750_v43 = vmul.f32 0.2, %v14774_v62  ;;  %v14786_v62 = vld [vmem:[#allocation128_spill] sm:$0xff] }
 0x8cf   :  { %14751 = vst [vmem:[#allocation59_spill] sm:$0xff] %v10714_v39  ;;  %v10733_v39 = vmul.f32 0.2, %v14762_v15  ;;  %v14776_v15 = vld [vmem:[#allocation71_spill] sm:$0xff] }
 0x8d0   :  { %14753 = vst [vmem:[#allocation423_spill] sm:$0xff] %v10717_v21  ;;  %v10736_v21 = vmul.f32 0.2, %v14764_v40  ;;  %v14777_v40 = vld [vmem:[#allocation96_spill] sm:$0xff] }
 0x8d1   :  { %14756 = vst [vmem:[#allocation62_spill] sm:$0xff] %v10722_v48  ;;  %v14769_v48 = vld [vmem:[#allocation68_spill] sm:$0xff] }
 0x8d2   :  { %14758 = vst [vmem:[#allocation424_spill] sm:$0xff] %v10725_v56  ;;  %v10744_v56 = vmul.f32 0.2, %v14770_v47  ;;  %v14783_v47 = vld [vmem:[#allocation74_spill] sm:$0xff] }
 0x8d3   :  { %14760 = vst [vmem:[#allocation425_spill] sm:$0xff] %v10728_v54  ;;  %v10747_v54 = vmul.f32 0.2, %v14772_v22  ;;  %v14784_v22 = vld [vmem:[#allocation124_spill] sm:$0xff] }
 0x8d4   :  { %14763 = vst [vmem:[#allocation65_spill] sm:$0xff] %v10733_v39  ;;  %v10772_v39 = vmul.f32 0.2, %v14788_v30  ;;  %v14801_v30 = vld [vmem:[#allocation242_spill] sm:$0xff] }
 0x8d5   :  { %14765 = vst [vmem:[#allocation426_spill] sm:$0xff] %v10736_v21  ;;  %v10755_v21 = vmul.f32 0.2, %v14777_v40  ;;  %v14790_v40 = vld [vmem:[#allocation264_spill] sm:$0xff] }
 0x8d6   :  { %14767 = vst [vmem:[#allocation427_spill] sm:$0xff] %v10739_v35  ;;  %v10758_v35 = vmul.f32 0.2, %v14779_v19  ;;  %v14792_v19 = vld [vmem:[#allocation157_spill] sm:$0xff] }
 0x8d7   :  { %14771 = vst [vmem:[#allocation263_spill] sm:$0xff] %v10744_v56  ;;  %v10783_v56 = vmul.f32 0.2, %v14796_v33  ;;  %v14808_v33 = vld [vmem:[#allocation243_spill] sm:$0xff] }
 0x8d8   :  { %14773 = vst [vmem:[#allocation68_spill] sm:$0xff] %v10747_v54  ;;  %v10766_v54 = vmul.f32 0.2, %v14784_v22  ;;  %v14798_v22 = vld [vmem:[#allocation80_spill] sm:$0xff] }
 0x8d9   :  { %14775 = vst [vmem:[#allocation428_spill] sm:$0xff] %v10750_v43  ;;  %v10769_v43 = vmul.f32 0.2, %v14786_v62  ;;  %v14799_v62 = vld [vmem:[#allocation241_spill] sm:$0xff] }
 0x8da   :  { %14778 = vst [vmem:[#allocation71_spill] sm:$0xff] %v10755_v21  ;;  %v14791_v21 = vld [vmem:[#allocation77_spill] sm:$0xff] }
 0x8db   :  { %14780 = vst [vmem:[#allocation429_spill] sm:$0xff] %v10758_v35  ;;  %v10777_v35 = vmul.f32 0.2, %v14792_v19  ;;  %v14805_v19 = vld [vmem:[#allocation83_spill] sm:$0xff] }
 0x8dc   :  { %14782 = vst [vmem:[#allocation430_spill] sm:$0xff] %v10761_v14  ;;  %v10780_v14 = vmul.f32 0.2, %v14794_v45  ;;  %v14806_v45 = vld [vmem:[#allocation189_spill] sm:$0xff] }
 0x8dd   :  { %14785 = vst [vmem:[#allocation74_spill] sm:$0xff] %v10766_v54  ;;  %v10805_v54 = vmul.f32 0.2, %v14810_v5  ;;  %v14823_v5 = vld [vmem:[#allocation247_spill] sm:$0xff] }
 0x8de   :  { %14787 = vst [vmem:[#allocation431_spill] sm:$0xff] %v10769_v43  ;;  %v10788_v43 = vmul.f32 0.2, %v14799_v62  ;;  %v14812_v62 = vld [vmem:[#allocation265_spill] sm:$0xff] }
 0x8df   :  { %14789 = vst [vmem:[#allocation432_spill] sm:$0xff] %v10772_v39  ;;  %v10791_v39 = vmul.f32 0.2, %v14801_v30  ;;  %v14814_v30 = vld [vmem:[#allocation245_spill] sm:$0xff] }
 0x8e0   :  { %14793 = vst [vmem:[#allocation264_spill] sm:$0xff] %v10777_v35  ;;  %v10816_v35 = vmul.f32 0.2, %v14818_v42  ;;  %v14830_v42 = vld [vmem:[#allocation203_spill] sm:$0xff] }
 0x8e1   :  { %14795 = vst [vmem:[#allocation77_spill] sm:$0xff] %v10780_v14  ;;  %v10799_v14 = vmul.f32 0.2, %v14806_v45  ;;  %v14820_v45 = vld [vmem:[#allocation89_spill] sm:$0xff] }
 0x8e2   :  { %14797 = vst [vmem:[#allocation433_spill] sm:$0xff] %v10783_v56  ;;  %v10802_v56 = vmul.f32 0.2, %v14808_v33  ;;  %v14821_v33 = vld [vmem:[#allocation246_spill] sm:$0xff] }
 0x8e3   :  { %14800 = vst [vmem:[#allocation80_spill] sm:$0xff] %v10788_v43  ;;  %v14813_v43 = vld [vmem:[#allocation86_spill] sm:$0xff] }
 0x8e4   :  { %14802 = vst [vmem:[#allocation434_spill] sm:$0xff] %v10791_v39  ;;  %v10810_v39 = vmul.f32 0.2, %v14814_v30  ;;  %v14827_v30 = vld [vmem:[#allocation92_spill] sm:$0xff] }
 0x8e5   :  { %14804 = vst [vmem:[#allocation435_spill] sm:$0xff] %v10794_v58  ;;  %v10813_v58 = vmul.f32 0.2, %v14816_v6  ;;  %v14828_v6 = vld [vmem:[#allocation200_spill] sm:$0xff] }
 0x8e6   :  { %14807 = vst [vmem:[#allocation83_spill] sm:$0xff] %v10799_v14  ;;  %v10838_v14 = vmul.f32 0.2, %v14832_v24  ;;  %v14885_v24 = vld [vmem:[#allocation187_spill] sm:$0xff] }
 0x8e7   :  { %14809 = vst [vmem:[#allocation436_spill] sm:$0xff] %v10802_v56  ;;  %v10821_v56 = vmul.f32 0.2, %v14821_v33  ;;  %v14893_v33 = vmax.f32 %v14717_v37, %v9992_v11  ;;  %v14905_v11 = vld [vmem:[#allocation3_spill] sm:$0xff] }
 0x8e8   :  { %14811 = vst [vmem:[#allocation437_spill] sm:$0xff] %v10805_v54  ;;  %v10824_v54 = vmul.f32 0.2, %v14823_v5  ;;  %v14836_v5 = vld [vmem:[#allocation250_spill] sm:$0xff]  ;;  %v14922_v37 = vld [vmem:[#allocation303_spill] sm:$0xff] }
 0x8e9   :  { %14815 = vst [vmem:[#allocation265_spill] sm:$0xff] %v10810_v39  ;;  %v10849_v39 = vmul.f32 0.2, %v14840_v59  ;;  %v14877_v59 = vld [vmem:[#allocation177_spill] sm:$0xff] }
 0x8ea   :  { %14817 = vst [vmem:[#allocation86_spill] sm:$0xff] %v10813_v58  ;;  %v10832_v58 = vmul.f32 0.2, %v14828_v6  ;;  %v14883_v6 = vld [vmem:[#allocation184_spill] sm:$0xff] }
 0x8eb   :  { %14819 = vst [vmem:[#allocation438_spill] sm:$0xff] %v10816_v35  ;;  %v10835_v35 = vmul.f32 0.2, %v14830_v42  ;;  %v14843_v42 = vld [vmem:[#allocation210_spill] sm:$0xff] }
 0x8ec   :  { %14822 = vst [vmem:[#allocation89_spill] sm:$0xff] %v10821_v56  ;;  %v14878_v56 = vld [vmem:[#allocation287_spill] sm:$0xff] }
 0x8ed   :  { %14824 = vst [vmem:[#allocation439_spill] sm:$0xff] %v10824_v54  ;;  %v10843_v54 = vmul.f32 0.2, %v14836_v5  ;;  %v14888_v5 = vmax.f32 %v14681_v41, %v14680_v44  ;;  %v14895_v44 = vld [vmem:[#allocation192_spill] sm:$0xff] }
 0x8ee   :  { %14826 = vst [vmem:[#allocation440_spill] sm:$0xff] %v10827_v36  ;;  %v10846_v36 = vmul.f32 0.2, %v14838_v10  ;;  %v14889_v10 = vmax.f32 %v14688_v51, %v9976_v13  ;;  %v14897_v13 = vld [vmem:[#allocation194_spill] sm:$0xff] }
 0x8ef   :  { %14829 = vst [vmem:[#allocation92_spill] sm:$0xff] %v10832_v58  ;;  %v14891_v58 = vmax.f32 %v14703_v60, %v14702_v29  ;;  %v14898_v51 = vld [vmem:[#allocation294_spill] sm:$0xff]  ;;  %v14901_v29 = vmax.f32 %v14732_v12, %v10002_v20  ;;  %v14907_v60 = vld [vmem:[#allocation4_spill] sm:$0xff]  ;;  %v14909_v20 = vmax.f32 %v14747_v25, %v14746_v26 }
 0x8f0   :  { %14831 = vst [vmem:[#allocation441_spill] sm:$0xff] %v10835_v35  ;;  %v10854_v35 = vmul.f32 0.2, %v14843_v42  ;;  %v14910_v12 = vld [vmem:[#allocation298_spill] sm:$0xff]  ;;  %v14919_v26 = vld [vmem:[#allocation8_spill] sm:$0xff] }
 0x8f1   :  { %14833 = vst [vmem:[#allocation442_spill] sm:$0xff] %v10838_v14  ;;  %v14892_v14 = vmax.f32 %v14710_v46, %v9989_v23  ;;  %v14902_v46 = vld [vmem:[#allocation295_spill] sm:$0xff] }
 0x8f2   :  { %14837 = vst [vmem:[#allocation443_spill] sm:$0xff] %v10843_v54  ;;  %v14874_v54 = vld [vmem:[#allocation285_spill] sm:$0xff] }
 0x8f3   :  { %14839 = vst [vmem:[#allocation444_spill] sm:$0xff] %v10846_v36  ;;  %v5547_v36 = vpack.c.bf16 %v14889_v10, %v14888_v5  ;;  %v5557_v2 = vpack.c.bf16 %v14893_v33, %v14892_v14  ;;  %v14899_v10 = vld [vmem:[#allocation197_spill] sm:$0xff]  ;;  %v14914_v5 = vld [vmem:[#allocation300_spill] sm:$0xff]  ;;  %v14915_v33 = vld [vmem:[#allocation7_spill] sm:$0xff] }
 0x8f4   :  { %14841 = vst [vmem:[#allocation445_spill] sm:$0xff] %v10849_v39  ;;  %v14890_v39 = vmax.f32 %v14695_v31, %v9979_v52  ;;  %v14900_v52 = vmax.f32 %v14725_v27, %v14724_v4  ;;  %v14906_v14 = vld [vmem:[#allocation297_spill] sm:$0xff]  ;;  %v14908_v4 = vmax.f32 %v14739_v57, %v10005_v18  ;;  %v14916_v57 = vmax.f32 %v14754_v38, %v10015_v28  ;;  %v14923_v31 = vld [vmem:[#allocation10_spill] sm:$0xff]  ;;  %v14927_v38 = vld [vmem:[#allocation11_spill] sm:$0xff] }
 0x8f5   :  { %14844 = vst [vmem:[#allocation446_spill] sm:$0xff] %v10854_v35  ;;  %v14882_v35 = vld [vmem:[#allocation289_spill] sm:$0xff]  ;;  %v14917_v18 = vmax.f32 %v14761_v49, %v10018_v16  ;;  %v14924_v28 = vmax.f32 %v14769_v48, %v14768_v1  ;;  %v14925_v49 = vmax.f32 %v14776_v15, %v10028_v32  ;;  %v14926_v16 = vld [vmem:[#allocation304_spill] sm:$0xff]  ;;  %v14932_v48 = vmax.f32 %v14783_v47, %v10031_v9  ;;  %v14934_v15 = vld [vmem:[#allocation307_spill] sm:$0xff] }
 0x8f6   :  { %v5552_v42 = vpack.c.bf16 %v14891_v58, %v14890_v39  ;;  %v5562_v23 = vpack.c.bf16 %v14901_v29, %v14900_v52  ;;  %v14903_v39 = vld [vmem:[#allocation199_spill] sm:$0xff]  ;;  %5548 = vst [vmem:[%s12298_s4] sm:$0xff] %v5547_v36   ;;  %v5567_v27 = vpack.c.bf16 %v14909_v20, %v14908_v4  ;;  %v14911_v52 = vld [vmem:[#allocation5_spill] sm:$0xff]  ;;  %v14930_v20 = vld [vmem:[#allocation306_spill] sm:$0xff]  ;;  %v14933_v32 = vmax.f32 %v14791_v21, %v14790_v40 }
 0x8f7   :  { %v5572_v25 = vpack.c.bf16 %v14917_v18, %v14916_v57  ;;  %v14918_v36 = vld [vmem:[#allocation301_spill] sm:$0xff]  ;;  %6185 = vst [vmem:[%s12298_s4 + $0x10] sm:$0xff] %v5557_v2   ;;  %v14935_v1 = vld [vmem:[#allocation14_spill] sm:$0xff]  ;;  %v14940_v47 = vmax.f32 %v14798_v22, %v10041_v8  ;;  %v14941_v21 = vmax.f32 %v14805_v19, %v10044_v55  ;;  %v14947_v57 = vld [vmem:[#allocation24_spill] sm:$0xff]  ;;  %v14948_v8 = vmax.f32 %v14813_v43, %v14812_v62 }
 0x8f8   :  { %6184 = vst [vmem:[%s12298_s4 + $0x8] sm:$0xff] %v5552_v42   ;;  %v5577_v42 = vpack.c.bf16 %v14925_v49, %v14924_v28  ;;  %v14931_v29 = vld [vmem:[#allocation13_spill] sm:$0xff]  ;;  %v5582_v2 = vpack.c.bf16 %v14933_v32, %v14932_v48  ;;  %v14939_v4 = vld [vmem:[#allocation18_spill] sm:$0xff]  ;;  %v14946_v49 = vld [vmem:[#allocation312_spill] sm:$0xff]  ;;  %v14949_v19 = vmax.f32 %v14820_v45, %v10054_v34  ;;  %v14956_v62 = vmax.f32 %v14827_v30, %v10057_v3 }
 0x8f9   :  { %6186 = vst [vmem:[%s12298_s4 + $0x18] sm:$0xff] %v5562_v23   ;;  %v14938_v18 = vld [vmem:[#allocation309_spill] sm:$0xff]  ;;  %v5587_v40 = vpack.c.bf16 %v14941_v21, %v14940_v47  ;;  %v14942_v9 = vld [vmem:[#allocation310_spill] sm:$0xff]  ;;  %v14943_v23 = vld [vmem:[#allocation20_spill] sm:$0xff] }
 0x8fa   :  { %6187 = vst [vmem:[%s12298_s4 + $0x20] sm:$0xff] %v5567_v27   ;;  %v5592_v55 = vpack.c.bf16 %v14949_v19, %v14948_v8  ;;  %v14957_v43 = vld [vmem:[#allocation95_spill] sm:$0xff]  ;;  %v14970_v28 = vld [vmem:[#allocation268_spill] sm:$0xff]  ;;  %v14979_v21 = vld [vmem:[#allocation269_spill] sm:$0xff] }
 0x8fb   :  { %6188 = vst [vmem:[%s12298_s4 + $0x28] sm:$0xff] %v5572_v25   ;;  %v14958_v25 = vld [vmem:[#allocation266_spill] sm:$0xff]  ;;  %v14967_v32 = vld [vmem:[#allocation267_spill] sm:$0xff]  ;;  %v14994_v27 = vld [vmem:[#allocation272_spill] sm:$0xff] }
 0x8fc   :  { %6189 = vst [vmem:[%s12298_s4 + $0x30] sm:$0xff] %v5577_v42   ;;  %v14959_v34 = vmax.f32 %v14957_v43, %v14958_v25  ;;  %v14966_v42 = vld [vmem:[#allocation99_spill] sm:$0xff]  ;;  %v14982_v48 = vld [vmem:[#allocation270_spill] sm:$0xff]  ;;  %v15003_v8 = vld [vmem:[#allocation273_spill] sm:$0xff] }
 0x8fd   :  { %6190 = vst [vmem:[%s12298_s4 + $0x38] sm:$0xff] %v5582_v2   ;;  %v14968_v30 = vmax.f32 %v14966_v42, %v14967_v32  ;;  %v14969_v3 = vld [vmem:[#allocation103_spill] sm:$0xff]  ;;  %v15006_v19 = vld [vmem:[#allocation274_spill] sm:$0xff] }
 0x8fe   :  { %v5597_v45 = vpack.c.bf16 %v14959_v34, %v14956_v62  ;;  %v14971_v43 = vmax.f32 %v14969_v3, %v14970_v28  ;;  %6191 = vst [vmem:[%s12298_s4 + $0x40] sm:$0xff] %v5587_v40   ;;  %v14978_v2 = vld [vmem:[#allocation107_spill] sm:$0xff]  ;;  %v15018_v34 = vld [vmem:[#allocation276_spill] sm:$0xff]  ;;  %v15027_v3 = vld [vmem:[#allocation277_spill] sm:$0xff] }
 0x8ff   :  { %v14980_v32 = vmax.f32 %v14978_v2, %v14979_v21  ;;  %v14981_v42 = vld [vmem:[#allocation111_spill] sm:$0xff]  ;;  %6192 = vst [vmem:[%s12298_s4 + $0x48] sm:$0xff] %v5592_v55  }
 0x900   :  { %v5602_v62 = vpack.c.bf16 %v14971_v43, %v14968_v30  ;;  %v14983_v28 = vmax.f32 %v14981_v42, %v14982_v48  ;;  %v14990_v40 = vld [vmem:[#allocation115_spill] sm:$0xff]  ;;  %6193 = vst [vmem:[%s12298_s4 + $0x50] sm:$0xff] %v5597_v45   ;;  %v15030_v43 = vld [vmem:[#allocation278_spill] sm:$0xff] }
 0x901   :  { %v14991_v22 = vld [vmem:[#allocation271_spill] sm:$0xff] }
 0x902   :  { %v5607_v30 = vpack.c.bf16 %v14983_v28, %v14980_v32  ;;  %v14992_v21 = vmax.f32 %v14990_v40, %v14991_v22  ;;  %v14993_v2 = vld [vmem:[#allocation119_spill] sm:$0xff]  ;;  %6194 = vst [vmem:[%s12298_s4 + $0x58] sm:$0xff] %v5602_v62   ;;  %v15042_v28 = vld [vmem:[#allocation280_spill] sm:$0xff] }
 0x903   :  { %v14995_v48 = vmax.f32 %v14993_v2, %v14994_v27  ;;  %v15002_v55 = vld [vmem:[#allocation123_spill] sm:$0xff]  ;;  %v15051_v2 = vld [vmem:[#allocation281_spill] sm:$0xff] }
 0x904   :  { %v15004_v22 = vmax.f32 %v15002_v55, %v15003_v8  ;;  %v15005_v40 = vld [vmem:[#allocation127_spill] sm:$0xff]  ;;  %6195 = vst [vmem:[%s12298_s4 + $0x60] sm:$0xff] %v5607_v30   ;;  %v15038_v30 = vld [vmem:[#allocation148_spill] sm:$0xff] }
 0x905   :  { %v5612_v32 = vpack.c.bf16 %v14995_v48, %v14992_v21  ;;  %v15007_v27 = vmax.f32 %v15005_v40, %v15006_v19  ;;  %v15014_v45 = vld [vmem:[#allocation131_spill] sm:$0xff]  ;;  %v15054_v48 = vld [vmem:[#allocation282_spill] sm:$0xff] }
 0x906   :  { %v15015_v25 = vld [vmem:[#allocation275_spill] sm:$0xff] }
 0x907   :  { %v5617_v21 = vpack.c.bf16 %v15007_v27, %v15004_v22  ;;  %v15016_v8 = vmax.f32 %v15014_v45, %v15015_v25  ;;  %v15017_v55 = vld [vmem:[#allocation135_spill] sm:$0xff]  ;;  %v15029_v45 = vld [vmem:[#allocation145_spill] sm:$0xff]  ;;  %6196 = vst [vmem:[%s12298_s4 + $0x68] sm:$0xff] %v5612_v32   ;;  %v15049_v27 = vld [vmem:[#allocation94_spill] sm:$0xff] }
 0x908   :  { %v15019_v19 = vmax.f32 %v15017_v55, %v15018_v34  ;;  %v15026_v62 = vld [vmem:[#allocation139_spill] sm:$0xff]  ;;  %v15031_v34 = vmax.f32 %v15029_v45, %v15030_v43  ;;  %v15050_v32 = vld [vmem:[#allocation156_spill] sm:$0xff]  ;;  %v15060_v55 = vld [vmem:[#allocation342_spill] sm:$0xff] }
 0x909   :  { %v15028_v25 = vmax.f32 %v15026_v62, %v15027_v3  ;;  %v15039_v42 = vld [vmem:[#allocation279_spill] sm:$0xff]  ;;  %6197 = vst [vmem:[%s12298_s4 + $0x70] sm:$0xff] %v5617_v21   ;;  %v15062_v21 = vld [vmem:[#allocation165_spill] sm:$0xff] }
 0x90a   :  { %v5622_v22 = vpack.c.bf16 %v15019_v19, %v15016_v8  ;;  %v15040_v3 = vmax.f32 %v15038_v30, %v15039_v42  ;;  %v15041_v62 = vld [vmem:[#allocation151_spill] sm:$0xff]  ;;  %v15052_v42 = vmax.f32 %v15050_v32, %v15051_v2  ;;  %v15053_v30 = vld [vmem:[#allocation161_spill] sm:$0xff]  ;;  %v15061_v19 = vld [vmem:[#allocation106_spill] sm:$0xff] }
 0x90b   :  { %v5627_v8 = vpack.c.bf16 %v15031_v34, %v15028_v25  ;;  %v15043_v43 = vmax.f32 %v15041_v62, %v15042_v28  ;;  %v15055_v28 = vmax.f32 %v15053_v30, %v15054_v48  ;;  %v15063_v40 = vld [vmem:[#allocation283_spill] sm:$0xff]  ;;  %v15065_v32 = vld [vmem:[#allocation284_spill] sm:$0xff]  ;;  %v15071_v45 = vld [vmem:[#allocation345_spill] sm:$0xff] }
 0x90c   :  { %6198 = vst [vmem:[%s12298_s4 + $0x78] sm:$0xff] %v5622_v22   ;;  %v15064_v2 = vmax.f32 %v15062_v21, %v15063_v40  ;;  %v15066_v48 = vmax.f32 %v14873_v50, %v15065_v32  ;;  %v15072_v34 = vld [vmem:[#allocation118_spill] sm:$0xff]  ;;  %v15073_v22 = vmax.f32 %v14875_v63, %v14874_v54  ;;  %v15080_v62 = vld [vmem:[#allocation348_spill] sm:$0xff]  ;;  %v15082_v63 = vmax.f32 %v14879_v7, %v14878_v56  ;;  %v15100_v47 = vld [vmem:[#allocation291_spill] sm:$0xff] }
 0x90d   :  { %v5632_v25 = vpack.c.bf16 %v15043_v43, %v15040_v3  ;;  %v5637_v3 = vpack.c.bf16 %v15055_v28, %v15052_v42  ;;  %v15068_v28 = vld [vmem:[#allocation110_spill] sm:$0xff]  ;;  %6199 = vst [vmem:[%s12298_s4 + $0x80] sm:$0xff] %v5627_v8   ;;  %v15090_v7 = vmax.f32 %v14883_v6, %v14882_v35 }
 0x90e   :  { %v5642_v42 = vpack.c.bf16 %v15066_v48, %v15064_v2  ;;  %v15074_v40 = vld [vmem:[#allocation286_spill] sm:$0xff]  ;;  %v15098_v48 = vld [vmem:[#allocation152_spill] sm:$0xff] }
 0x90f   :  { %v15075_v50 = vmax.f32 %v14877_v59, %v15074_v40  ;;  %v15076_v2 = vld [vmem:[#allocation346_spill] sm:$0xff]  ;;  %6200 = vst [vmem:[%s12298_s4 + $0x88] sm:$0xff] %v5632_v25   ;;  %v15083_v59 = vmax.f32 %v14881_v61, %v14880_v53  ;;  %v15107_v40 = vld [vmem:[#allocation357_spill] sm:$0xff]  ;;  %v15116_v25 = vld [vmem:[#allocation15_spill] sm:$0xff] }
 0x910   :  { %v15077_v32 = vld [vmem:[#allocation122_spill] sm:$0xff]  ;;  %6201 = vst [vmem:[%s12298_s4 + $0x90] sm:$0xff] %v5637_v3  }
 0x911   :  { %v5647_v21 = vpack.c.bf16 %v15075_v50, %v15073_v22  ;;  %v15081_v43 = vld [vmem:[#allocation130_spill] sm:$0xff]  ;;  %v5652_v54 = vpack.c.bf16 %v15083_v59, %v15082_v63  ;;  %6202 = vst [vmem:[%s12298_s4 + $0x98] sm:$0xff] %v5642_v42   ;;  %v15115_v59 = vld [vmem:[#allocation360_spill] sm:$0xff]  ;;  %v15133_v42 = vld [vmem:[#allocation27_spill] sm:$0xff] }
 0x912   :  { %v15085_v22 = vld [vmem:[#allocation134_spill] sm:$0xff] }
 0x913   :  { %v15089_v30 = vld [vmem:[#allocation142_spill] sm:$0xff]  ;;  %6203 = vst [vmem:[%s12298_s4 + $0xa0] sm:$0xff] %v5647_v21   ;;  %v15120_v21 = vld [vmem:[#allocation361_spill] sm:$0xff] }
 0x914   :  { %v15091_v56 = vld [vmem:[#allocation290_spill] sm:$0xff]  ;;  %6204 = vst [vmem:[%s12298_s4 + $0xa8] sm:$0xff] %v5652_v54   ;;  %v15141_v54 = vld [vmem:[#allocation129_spill] sm:$0xff] }
 0x915   :  { %v15092_v53 = vmax.f32 %v14885_v24, %v15091_v56  ;;  %v15094_v63 = vld [vmem:[#allocation146_spill] sm:$0xff]  ;;  %v15102_v24 = vmax.f32 %v14895_v44, %v14894_v17  ;;  %v15104_v56 = vld [vmem:[#allocation155_spill] sm:$0xff]  ;;  %v15110_v17 = vmax.f32 %v14899_v10, %v14898_v51 }
 0x916   :  { %v15097_v50 = vld [vmem:[#allocation354_spill] sm:$0xff] }
 0x917   :  { %v5657_v61 = vpack.c.bf16 %v15092_v53, %v15090_v7  ;;  %v15099_v3 = vld [vmem:[#allocation190_spill] sm:$0xff]  ;;  %v15103_v7 = vld [vmem:[#allocation355_spill] sm:$0xff]  ;;  %v15125_v53 = vld [vmem:[#allocation21_spill] sm:$0xff] }
 0x918   :  { %v15101_v35 = vmax.f32 %v15099_v3, %v15100_v47  ;;  %v15108_v8 = vld [vmem:[#allocation162_spill] sm:$0xff]  ;;  %v15109_v47 = vmax.f32 %v14897_v13, %v14896_v0  ;;  %v15117_v0 = vmax.f32 %v14903_v39, %v14902_v46  ;;  %v15118_v13 = vld [vmem:[#allocation296_spill] sm:$0xff]  ;;  %v15126_v46 = vmax.f32 %v14907_v60, %v14906_v14 }
 0x919   :  { %v15112_v3 = vld [vmem:[#allocation166_spill] sm:$0xff]  ;;  %v15119_v51 = vmax.f32 %v14905_v11, %v15118_v13  ;;  %6205 = vst [vmem:[%s12298_s4 + $0xb0] sm:$0xff] %v5657_v61   ;;  %v15127_v39 = vmax.f32 %v14911_v52, %v14910_v12  ;;  %v15137_v60 = vmax.f32 %v14915_v33, %v14914_v5  ;;  %v15140_v13 = vld [vmem:[#allocation371_spill] sm:$0xff]  ;;  %v15150_v52 = vld [vmem:[#allocation373_spill] sm:$0xff] }
 0x91a   :  { %v5662_v6 = vpack.c.bf16 %v15102_v24, %v15101_v35  ;;  %v5667_v44 = vpack.c.bf16 %v15110_v17, %v15109_v47  ;;  %v15121_v47 = vld [vmem:[#allocation17_spill] sm:$0xff]  ;;  %v15134_v61 = vld [vmem:[#allocation6_spill] sm:$0xff]  ;;  %v15135_v24 = vld [vmem:[#allocation299_spill] sm:$0xff]  ;;  %v4218_v58 = vmax.f32 %v15141_v54, %v15140_v13 }
 0x91b   :  { %v5672_v10 = vpack.c.bf16 %v15119_v51, %v15117_v0  ;;  %v5677_v11 = vpack.c.bf16 %v15127_v39, %v15126_v46  ;;  %v15129_v0 = vld [vmem:[#allocation23_spill] sm:$0xff]  ;;  %v15136_v14 = vmax.f32 %v15134_v61, %v15135_v24  ;;  %v15142_v51 = vld [vmem:[#allocation372_spill] sm:$0xff]  ;;  %v15143_v17 = vld [vmem:[#allocation133_spill] sm:$0xff] }
 0x91c   :  { %6206 = vst [vmem:[%s12298_s4 + $0xb8] sm:$0xff] %v5662_v6   ;;  %v4219_v41 = vmax.f32 %v15143_v17, %v15142_v51  ;;  %v15144_v6 = vmax.f32 %v14919_v26, %v14918_v36  ;;  %v15145_v24 = vld [vmem:[#allocation9_spill] sm:$0xff]  ;;  %v15146_v61 = vld [vmem:[#allocation302_spill] sm:$0xff]  ;;  %v15154_v36 = vmax.f32 %v14923_v31, %v14922_v37  ;;  %v15155_v26 = vmax.f32 %v14927_v38, %v14926_v16  ;;  %v15161_v39 = vld [vmem:[#allocation147_spill] sm:$0xff] }
 0x91d   :  { %v5682_v12 = vpack.c.bf16 %v15137_v60, %v15136_v14  ;;  %6207 = vst [vmem:[%s12298_s4 + $0xc0] sm:$0xff] %v5667_v44   ;;  %v15147_v5 = vmax.f32 %v15145_v24, %v15146_v61  ;;  %v15148_v14 = vld [vmem:[#allocation368_spill] sm:$0xff]  ;;  %v15149_v60 = vld [vmem:[#allocation31_spill] sm:$0xff]  ;;  %v15151_v46 = vld [vmem:[#allocation137_spill] sm:$0xff]  ;;  %v15165_v37 = vmax.f32 %v14931_v29, %v14930_v20 }
 0x91e   :  { %v4220_v54 = vmax.f32 %v15151_v46, %v15150_v52  ;;  %v15152_v13 = vld [vmem:[#allocation374_spill] sm:$0xff]  ;;  %v15153_v35 = vld [vmem:[#allocation141_spill] sm:$0xff]  ;;  %6208 = vst [vmem:[%s12298_s4 + $0xc8] sm:$0xff] %v5672_v10   ;;  %v5692_v44 = vpack.c.bf16 %v15155_v26, %v15154_v36  ;;  %v15158_v61 = vld [vmem:[#allocation375_spill] sm:$0xff] }
 0x91f   :  { %v5687_v33 = vpack.c.bf16 %v15147_v5, %v15144_v6  ;;  %v4221_v17 = vmax.f32 %v15153_v35, %v15152_v13  ;;  %v15159_v5 = vld [vmem:[#allocation144_spill] sm:$0xff]  ;;  %6209 = vst [vmem:[%s12298_s4 + $0xd0] sm:$0xff] %v5677_v11   ;;  %v15163_v13 = vld [vmem:[#allocation305_spill] sm:$0xff]  ;;  %v15167_v36 = vld [vmem:[#allocation35_spill] sm:$0xff]  ;;  %v15172_v11 = vmax.f32 %v14935_v1, %v14934_v15  ;;  %v15181_v15 = vmax.f32 %v14943_v23, %v14942_v9 }
 0x920   :  { %v4222_v52 = vmax.f32 %v15159_v5, %v15158_v61  ;;  %v15160_v46 = vld [vmem:[#allocation376_spill] sm:$0xff]  ;;  %v15168_v24 = vld [vmem:[#allocation377_spill] sm:$0xff]  ;;  %v15169_v51 = vld [vmem:[#allocation163_spill] sm:$0xff]  ;;  %6210 = vst [vmem:[%s12298_s4 + $0xd8] sm:$0xff] %v5682_v12   ;;  %v15180_v12 = vmax.f32 %v14939_v4, %v14938_v18  ;;  %v15189_v4 = vmax.f32 %v14947_v57, %v14946_v49 }
 0x921   :  { %v4223_v35 = vmax.f32 %v15161_v39, %v15160_v46  ;;  %v15162_v10 = vld [vmem:[#allocation12_spill] sm:$0xff]  ;;  %v4224_v61 = vmax.f32 %v15169_v51, %v15168_v24  ;;  %v15170_v5 = vld [vmem:[#allocation378_spill] sm:$0xff]  ;;  %v15179_v38 = vld [vmem:[#allocation181_spill] sm:$0xff]  ;;  %6211 = vst [vmem:[%s12298_s4 + $0xe0] sm:$0xff] %v5687_v33   ;;  %v11382_v9 = vpack.c.bf16 %v4221_v17, %v4220_v54 }
 0x922   :  { %v15164_v31 = vmax.f32 %v15162_v10, %v15163_v13  ;;  %v15171_v6 = vld [vmem:[#allocation168_spill] sm:$0xff]  ;;  %v15176_v13 = vld [vmem:[#allocation379_spill] sm:$0xff]  ;;  %v5707_v1 = vpack.c.bf16 %v15181_v15, %v15180_v12  ;;  %v15182_v24 = vld [vmem:[#allocation381_spill] sm:$0xff]  ;;  %6212 = vst [vmem:[%s12298_s4 + $0xe8] sm:$0xff] %v5692_v44  }
 0x923   :  { %v4225_v39 = vmax.f32 %v15171_v6, %v15170_v5  ;;  %v15173_v46 = vld [vmem:[#allocation16_spill] sm:$0xff]  ;;  %v11367_v6 = vpack.c.bf16 %v4219_v41, %v4218_v58  ;;  %v15183_v5 = vld [vmem:[#allocation183_spill] sm:$0xff]  ;;  %v15186_v33 = vld [vmem:[#allocation22_spill] sm:$0xff]  ;;  %v11397_v49 = vpack.c.bf16 %v4223_v35, %v4222_v52  ;;  %6247 = vst [vmem:[%s12298_s4 + $0x200] sm:$0xff] %v11382_v9  }
 0x924   :  { %v5697_v16 = vpack.c.bf16 %v15165_v37, %v15164_v31  ;;  %v15174_v10 = vld [vmem:[#allocation308_spill] sm:$0xff]  ;;  %v15177_v31 = vld [vmem:[#allocation178_spill] sm:$0xff]  ;;  %v15190_v41 = vld [vmem:[#allocation383_spill] sm:$0xff]  ;;  %6215 = vst [vmem:[%s12298_s4 + $0x100] sm:$0xff] %v5707_v1  }
 0x925   :  { %v15175_v29 = vmax.f32 %v15173_v46, %v15174_v10  ;;  %v4226_v37 = vmax.f32 %v15177_v31, %v15176_v13  ;;  %v15178_v26 = vld [vmem:[#allocation380_spill] sm:$0xff]  ;;  %v15184_v46 = vld [vmem:[#allocation382_spill] sm:$0xff]  ;;  %v15185_v10 = vld [vmem:[#allocation193_spill] sm:$0xff]  ;;  %6246 = vst [vmem:[%s12298_s4 + $0x1f8] sm:$0xff] %v11367_v6  }
 0x926   :  { %v4227_v51 = vmax.f32 %v15179_v38, %v15178_v26  ;;  %v15187_v38 = vld [vmem:[#allocation311_spill] sm:$0xff]  ;;  %v15192_v13 = vld [vmem:[#allocation384_spill] sm:$0xff]  ;;  %v15193_v31 = vld [vmem:[#allocation205_spill] sm:$0xff]  ;;  %6213 = vst [vmem:[%s12298_s4 + $0xf0] sm:$0xff] %v5697_v16  }
 0x927   :  { %v5702_v20 = vpack.c.bf16 %v15175_v29, %v15172_v11  ;;  %v4228_v11 = vmax.f32 %v15183_v5, %v15182_v24  ;;  %v4229_v29 = vmax.f32 %v15185_v10, %v15184_v46  ;;  %v15188_v26 = vmax.f32 %v15186_v33, %v15187_v38  ;;  %v15191_v58 = vld [vmem:[#allocation195_spill] sm:$0xff]  ;;  %v15194_v44 = vld [vmem:[#allocation26_spill] sm:$0xff]  ;;  %v15195_v15 = vld [vmem:[#allocation313_spill] sm:$0xff]  ;;  %6248 = vst [vmem:[%s12298_s4 + $0x208] sm:$0xff] %v11397_v49  }
 0x928   :  { %v4230_v23 = vmax.f32 %v15191_v58, %v15190_v41  ;;  %v4231_v12 = vmax.f32 %v15193_v31, %v15192_v13  ;;  %v15196_v24 = vmax.f32 %v15194_v44, %v15195_v15  ;;  %v15197_v5 = vld [vmem:[#allocation28_spill] sm:$0xff]  ;;  %v15198_v46 = vld [vmem:[#allocation314_spill] sm:$0xff]  ;;  %v15200_v54 = vld [vmem:[#allocation385_spill] sm:$0xff] }
 0x929   :  { %v5712_v18 = vpack.c.bf16 %v15189_v4, %v15188_v26  ;;  %v15199_v10 = vmax.f32 %v15197_v5, %v15198_v46  ;;  %v15201_v17 = vld [vmem:[#allocation207_spill] sm:$0xff]  ;;  %v15202_v38 = vld [vmem:[#allocation386_spill] sm:$0xff]  ;;  %v15203_v26 = vld [vmem:[#allocation212_spill] sm:$0xff]  ;;  %6214 = vst [vmem:[%s12298_s4 + $0xf8] sm:$0xff] %v5702_v20  }
 0x92a   :  { %v4232_v33 = vmax.f32 %v15201_v17, %v15200_v54  ;;  %v4233_v4 = vmax.f32 %v15203_v26, %v15202_v38  ;;  %v15204_v16 = vld [vmem:[#allocation30_spill] sm:$0xff]  ;;  %v15205_v41 = vld [vmem:[#allocation315_spill] sm:$0xff]  ;;  %v15207_v13 = vld [vmem:[#allocation32_spill] sm:$0xff] }
 0x92b   :  { %v5717_v57 = vpack.c.bf16 %v15199_v10, %v15196_v24  ;;  %v15206_v58 = vmax.f32 %v15204_v16, %v15205_v41  ;;  %v15208_v31 = vld [vmem:[#allocation316_spill] sm:$0xff]  ;;  %v11412_v24 = vpack.c.bf16 %v4225_v39, %v4224_v61  ;;  %v15211_v52 = vld [vmem:[#allocation387_spill] sm:$0xff]  ;;  %v15212_v35 = vld [vmem:[#allocation214_spill] sm:$0xff]  ;;  %6216 = vst [vmem:[%s12298_s4 + $0x108] sm:$0xff] %v5712_v18  }
 0x92c   :  { %v15209_v44 = vmax.f32 %v15207_v13, %v15208_v31  ;;  %v4234_v5 = vmax.f32 %v15212_v35, %v15211_v52  ;;  %v15213_v46 = vld [vmem:[#allocation388_spill] sm:$0xff]  ;;  %v15214_v10 = vld [vmem:[#allocation222_spill] sm:$0xff]  ;;  %v15216_v17 = vld [vmem:[#allocation317_spill] sm:$0xff] }
 0x92d   :  { %15210 = vst [vmem:[#allocation169_spill] sm:$0xff] %v11412_v24  ;;  %v4235_v54 = vmax.f32 %v15214_v10, %v15213_v46  ;;  %v15215_v20 = vld [vmem:[#allocation34_spill] sm:$0xff]  ;;  %v15218_v26 = vld [vmem:[#allocation36_spill] sm:$0xff]  ;;  %v15222_v61 = vld [vmem:[#allocation389_spill] sm:$0xff] }
 0x92e   :  { %v5722_v15 = vpack.c.bf16 %v15209_v44, %v15206_v58  ;;  %v15217_v38 = vmax.f32 %v15215_v20, %v15216_v17  ;;  %v15219_v16 = vld [vmem:[#allocation318_spill] sm:$0xff]  ;;  %v11427_v58 = vpack.c.bf16 %v4227_v51, %v4226_v37  ;;  %v15223_v39 = vld [vmem:[#allocation223_spill] sm:$0xff]  ;;  %v15225_v52 = vld [vmem:[#allocation224_spill] sm:$0xff]  ;;  %6217 = vst [vmem:[%s12298_s4 + $0x110] sm:$0xff] %v5717_v57  }
 0x92f   :  { %v15220_v41 = vmax.f32 %v15218_v26, %v15219_v16  ;;  %v4236_v31 = vmax.f32 %v15223_v39, %v15222_v61  ;;  %v15224_v44 = vld [vmem:[#allocation390_spill] sm:$0xff]  ;;  %v15227_v46 = vld [vmem:[#allocation319_spill] sm:$0xff]  ;;  %v15229_v20 = vld [vmem:[#allocation40_spill] sm:$0xff] }
 0x930   :  { %15221 = vst [vmem:[#allocation285_spill] sm:$0xff] %v11427_v58  ;;  %v4237_v35 = vmax.f32 %v15225_v52, %v15224_v44  ;;  %v15226_v1 = vld [vmem:[#allocation38_spill] sm:$0xff]  ;;  %v15230_v17 = vld [vmem:[#allocation320_spill] sm:$0xff]  ;;  %v15233_v37 = vld [vmem:[#allocation391_spill] sm:$0xff] }
 0x931   :  { %v5727_v13 = vpack.c.bf16 %v15220_v41, %v15217_v38  ;;  %v15228_v10 = vmax.f32 %v15226_v1, %v15227_v46  ;;  %v15231_v24 = vmax.f32 %v15229_v20, %v15230_v17  ;;  %v11442_v38 = vpack.c.bf16 %v4229_v29, %v4228_v11  ;;  %v15234_v51 = vld [vmem:[#allocation225_spill] sm:$0xff]  ;;  %v15235_v41 = vld [vmem:[#allocation392_spill] sm:$0xff]  ;;  %v15236_v61 = vld [vmem:[#allocation226_spill] sm:$0xff]  ;;  %6218 = vst [vmem:[%s12298_s4 + $0x118] sm:$0xff] %v5722_v15  }
 0x932   :  { %v4238_v16 = vmax.f32 %v15234_v51, %v15233_v37  ;;  %v4239_v39 = vmax.f32 %v15236_v61, %v15235_v41  ;;  %v15237_v18 = vld [vmem:[#allocation42_spill] sm:$0xff]  ;;  %v15238_v44 = vld [vmem:[#allocation321_spill] sm:$0xff]  ;;  %v15240_v1 = vld [vmem:[#allocation44_spill] sm:$0xff] }
 0x933   :  { %v5732_v26 = vpack.c.bf16 %v15231_v24, %v15228_v10  ;;  %15232 = vst [vmem:[#allocation173_spill] sm:$0xff] %v11442_v38  ;;  %v15239_v52 = vmax.f32 %v15237_v18, %v15238_v44  ;;  %v15241_v46 = vld [vmem:[#allocation322_spill] sm:$0xff]  ;;  %v11457_v24 = vpack.c.bf16 %v4231_v12, %v4230_v23  ;;  %v15244_v11 = vld [vmem:[#allocation393_spill] sm:$0xff]  ;;  %v15245_v29 = vld [vmem:[#allocation172_spill] sm:$0xff] }
 0x934   :  { %v15242_v58 = vmax.f32 %v15240_v1, %v15241_v46  ;;  %v4240_v10 = vmax.f32 %v15245_v29, %v15244_v11  ;;  %v15246_v17 = vld [vmem:[#allocation394_spill] sm:$0xff]  ;;  %v15247_v37 = vld [vmem:[#allocation175_spill] sm:$0xff]  ;;  %v15251_v18 = vld [vmem:[#allocation49_spill] sm:$0xff]  ;;  %6219 = vst [vmem:[%s12298_s4 + $0x120] sm:$0xff] %v5727_v13  }
 0x935   :  { %15243 = vst [vmem:[#allocation177_spill] sm:$0xff] %v11457_v24  ;;  %v4241_v51 = vmax.f32 %v15247_v37, %v15246_v17  ;;  %v15248_v57 = vld [vmem:[#allocation46_spill] sm:$0xff]  ;;  %v15249_v41 = vld [vmem:[#allocation323_spill] sm:$0xff]  ;;  %v15252_v44 = vld [vmem:[#allocation324_spill] sm:$0xff] }
 0x936   :  { %v5737_v20 = vpack.c.bf16 %v15242_v58, %v15239_v52  ;;  %v15250_v61 = vmax.f32 %v15248_v57, %v15249_v41  ;;  %v15253_v38 = vmax.f32 %v15251_v18, %v15252_v44  ;;  %v11472_v58 = vpack.c.bf16 %v4233_v4, %v4232_v33  ;;  %v15255_v23 = vld [vmem:[#allocation395_spill] sm:$0xff]  ;;  %v15256_v12 = vld [vmem:[#allocation185_spill] sm:$0xff]  ;;  %v15257_v46 = vld [vmem:[#allocation396_spill] sm:$0xff]  ;;  %6220 = vst [vmem:[%s12298_s4 + $0x128] sm:$0xff] %v5732_v26  }
 0x937   :  { %v4242_v52 = vmax.f32 %v15256_v12, %v15255_v23  ;;  %v15258_v11 = vld [vmem:[#allocation227_spill] sm:$0xff]  ;;  %v15259_v15 = vld [vmem:[#allocation52_spill] sm:$0xff]  ;;  %v15260_v17 = vld [vmem:[#allocation325_spill] sm:$0xff] }
 0x938   :  { %v5742_v1 = vpack.c.bf16 %v15253_v38, %v15250_v61  ;;  %15254 = vst [vmem:[#allocation287_spill] sm:$0xff] %v11472_v58  ;;  %v4243_v29 = vmax.f32 %v15258_v11, %v15257_v46  ;;  %v15261_v37 = vmax.f32 %v15259_v15, %v15260_v17  ;;  %v15262_v57 = vld [vmem:[#allocation55_spill] sm:$0xff]  ;;  %v15263_v41 = vld [vmem:[#allocation326_spill] sm:$0xff]  ;;  %v11487_v38 = vpack.c.bf16 %v4235_v54, %v4234_v5  ;;  %v15266_v33 = vld [vmem:[#allocation397_spill] sm:$0xff] }
 0x939   :  { %v15264_v24 = vmax.f32 %v15262_v57, %v15263_v41  ;;  %v15267_v4 = vld [vmem:[#allocation228_spill] sm:$0xff]  ;;  %v15268_v44 = vld [vmem:[#allocation398_spill] sm:$0xff]  ;;  %v15269_v23 = vld [vmem:[#allocation229_spill] sm:$0xff]  ;;  %6221 = vst [vmem:[%s12298_s4 + $0x130] sm:$0xff] %v5737_v20  }
 0x93a   :  { %15265 = vst [vmem:[#allocation180_spill] sm:$0xff] %v11487_v38  ;;  %v4244_v61 = vmax.f32 %v15267_v4, %v15266_v33  ;;  %v4245_v12 = vmax.f32 %v15269_v23, %v15268_v44  ;;  %v15270_v13 = vld [vmem:[#allocation58_spill] sm:$0xff]  ;;  %v15271_v46 = vld [vmem:[#allocation327_spill] sm:$0xff]  ;;  %v15273_v15 = vld [vmem:[#allocation61_spill] sm:$0xff] }
 0x93b   :  { %v5747_v18 = vpack.c.bf16 %v15264_v24, %v15261_v37  ;;  %v15272_v11 = vmax.f32 %v15270_v13, %v15271_v46  ;;  %v15274_v17 = vld [vmem:[#allocation328_spill] sm:$0xff]  ;;  %v11502_v24 = vpack.c.bf16 %v4237_v35, %v4236_v31  ;;  %v15277_v5 = vld [vmem:[#allocation399_spill] sm:$0xff]  ;;  %v15278_v54 = vld [vmem:[#allocation209_spill] sm:$0xff]  ;;  %6222 = vst [vmem:[%s12298_s4 + $0x138] sm:$0xff] %v5742_v1  }
 0x93c   :  { %v15275_v58 = vmax.f32 %v15273_v15, %v15274_v17  ;;  %v4246_v37 = vmax.f32 %v15278_v54, %v15277_v5  ;;  %v15279_v41 = vld [vmem:[#allocation400_spill] sm:$0xff]  ;;  %v15280_v33 = vld [vmem:[#allocation230_spill] sm:$0xff]  ;;  %v15282_v44 = vld [vmem:[#allocation329_spill] sm:$0xff] }
 0x93d   :  { %15276 = vst [vmem:[#allocation288_spill] sm:$0xff] %v11502_v24  ;;  %v4247_v4 = vmax.f32 %v15280_v33, %v15279_v41  ;;  %v15281_v26 = vld [vmem:[#allocation64_spill] sm:$0xff]  ;;  %v15284_v13 = vld [vmem:[#allocation67_spill] sm:$0xff]  ;;  %v15285_v46 = vld [vmem:[#allocation330_spill] sm:$0xff] }
 0x93e   :  { %v5752_v57 = vpack.c.bf16 %v15275_v58, %v15272_v11  ;;  %v15283_v23 = vmax.f32 %v15281_v26, %v15282_v44  ;;  %v15286_v38 = vmax.f32 %v15284_v13, %v15285_v46  ;;  %v11517_v58 = vpack.c.bf16 %v4239_v39, %v4238_v16  ;;  %v15288_v31 = vld [vmem:[#allocation401_spill] sm:$0xff]  ;;  %v15289_v35 = vld [vmem:[#allocation231_spill] sm:$0xff]  ;;  %v15290_v17 = vld [vmem:[#allocation402_spill] sm:$0xff]  ;;  %6223 = vst [vmem:[%s12298_s4 + $0x140] sm:$0xff] %v5747_v18  }
 0x93f   :  { %v4248_v11 = vmax.f32 %v15289_v35, %v15288_v31  ;;  %v15291_v5 = vld [vmem:[#allocation232_spill] sm:$0xff]  ;;  %v15292_v20 = vld [vmem:[#allocation70_spill] sm:$0xff]  ;;  %v15293_v41 = vld [vmem:[#allocation331_spill] sm:$0xff] }
 0x940   :  { %v5757_v15 = vpack.c.bf16 %v15286_v38, %v15283_v23  ;;  %15287 = vst [vmem:[#allocation182_spill] sm:$0xff] %v11517_v58  ;;  %v4249_v54 = vmax.f32 %v15291_v5, %v15290_v17  ;;  %v15294_v33 = vmax.f32 %v15292_v20, %v15293_v41  ;;  %v15295_v26 = vld [vmem:[#allocation73_spill] sm:$0xff]  ;;  %v15296_v44 = vld [vmem:[#allocation332_spill] sm:$0xff]  ;;  %v11532_v38 = vpack.c.bf16 %v4241_v51, %v4240_v10  ;;  %v15299_v16 = vld [vmem:[#allocation403_spill] sm:$0xff] }
 0x941   :  { %v15297_v24 = vmax.f32 %v15295_v26, %v15296_v44  ;;  %v15300_v39 = vld [vmem:[#allocation233_spill] sm:$0xff]  ;;  %v15301_v46 = vld [vmem:[#allocation404_spill] sm:$0xff]  ;;  %v15302_v31 = vld [vmem:[#allocation234_spill] sm:$0xff]  ;;  %6224 = vst [vmem:[%s12298_s4 + $0x148] sm:$0xff] %v5752_v57  }
 0x942   :  { %15298 = vst [vmem:[#allocation289_spill] sm:$0xff] %v11532_v38  ;;  %v4250_v23 = vmax.f32 %v15300_v39, %v15299_v16  ;;  %v4251_v35 = vmax.f32 %v15302_v31, %v15301_v46  ;;  %v15303_v1 = vld [vmem:[#allocation76_spill] sm:$0xff]  ;;  %v15304_v17 = vld [vmem:[#allocation333_spill] sm:$0xff]  ;;  %v15306_v20 = vld [vmem:[#allocation79_spill] sm:$0xff] }
 0x943   :  { %v5762_v13 = vpack.c.bf16 %v15297_v24, %v15294_v33  ;;  %v15305_v5 = vmax.f32 %v15303_v1, %v15304_v17  ;;  %v15307_v41 = vld [vmem:[#allocation334_spill] sm:$0xff]  ;;  %v11547_v24 = vpack.c.bf16 %v4243_v29, %v4242_v52  ;;  %v15310_v10 = vld [vmem:[#allocation405_spill] sm:$0xff]  ;;  %v15311_v51 = vld [vmem:[#allocation235_spill] sm:$0xff]  ;;  %6225 = vst [vmem:[%s12298_s4 + $0x150] sm:$0xff] %v5757_v15  }
 0x944   :  { %v15308_v58 = vmax.f32 %v15306_v20, %v15307_v41  ;;  %v4252_v33 = vmax.f32 %v15311_v51, %v15310_v10  ;;  %v15312_v44 = vld [vmem:[#allocation406_spill] sm:$0xff]  ;;  %v15313_v16 = vld [vmem:[#allocation236_spill] sm:$0xff]  ;;  %v15315_v46 = vld [vmem:[#allocation335_spill] sm:$0xff] }
 0x945   :  { %15309 = vst [vmem:[#allocation184_spill] sm:$0xff] %v11547_v24  ;;  %v4253_v39 = vmax.f32 %v15313_v16, %v15312_v44  ;;  %v15314_v18 = vld [vmem:[#allocation82_spill] sm:$0xff]  ;;  %v15317_v1 = vld [vmem:[#allocation85_spill] sm:$0xff]  ;;  %v15318_v17 = vld [vmem:[#allocation336_spill] sm:$0xff] }
 0x946   :  { %v5767_v26 = vpack.c.bf16 %v15308_v58, %v15305_v5  ;;  %v15316_v31 = vmax.f32 %v15314_v18, %v15315_v46  ;;  %v15319_v38 = vmax.f32 %v15317_v1, %v15318_v17  ;;  %v11562_v58 = vpack.c.bf16 %v4245_v12, %v4244_v61  ;;  %v15320_v52 = vld [vmem:[#allocation407_spill] sm:$0xff]  ;;  %v15321_v29 = vld [vmem:[#allocation237_spill] sm:$0xff]  ;;  %v15323_v10 = vld [vmem:[#allocation238_spill] sm:$0xff]  ;;  %6226 = vst [vmem:[%s12298_s4 + $0x158] sm:$0xff] %v5762_v13  }
 0x947   :  { %v4254_v5 = vmax.f32 %v15321_v29, %v15320_v52  ;;  %v15322_v41 = vld [vmem:[#allocation259_spill] sm:$0xff]  ;;  %v15324_v57 = vld [vmem:[#allocation88_spill] sm:$0xff]  ;;  %v15325_v44 = vld [vmem:[#allocation337_spill] sm:$0xff] }
 0x948   :  { %v5772_v20 = vpack.c.bf16 %v15319_v38, %v15316_v31  ;;  %v4255_v51 = vmax.f32 %v15323_v10, %v15322_v41  ;;  %v15326_v16 = vmax.f32 %v15324_v57, %v15325_v44  ;;  %v15327_v18 = vld [vmem:[#allocation91_spill] sm:$0xff]  ;;  %v15328_v46 = vld [vmem:[#allocation338_spill] sm:$0xff]  ;;  %v11577_v38 = vpack.c.bf16 %v4247_v4, %v4246_v37  ;;  %v15330_v61 = vld [vmem:[#allocation37_spill] sm:$0xff]  ;;  %6227 = vst [vmem:[%s12298_s4 + $0x160] sm:$0xff] %v5767_v26  }
 0x949   :  { %v15329_v24 = vmax.f32 %v15327_v18, %v15328_v46  ;;  %v15331_v12 = vld [vmem:[#allocation239_spill] sm:$0xff]  ;;  %v15332_v17 = vld [vmem:[#allocation408_spill] sm:$0xff]  ;;  %v15336_v10 = vld [vmem:[#allocation98_spill] sm:$0xff]  ;;  %6259 = vst [vmem:[%s12298_s4 + $0x260] sm:$0xff] %v11562_v58  }
 0x94a   :  { %v4256_v31 = vmax.f32 %v15331_v12, %v15330_v61  ;;  %v15333_v52 = vld [vmem:[#allocation75_spill] sm:$0xff]  ;;  %v15337_v57 = vld [vmem:[#allocation340_spill] sm:$0xff]  ;;  %v15340_v4 = vld [vmem:[#allocation78_spill] sm:$0xff]  ;;  %6228 = vst [vmem:[%s12298_s4 + $0x168] sm:$0xff] %v5772_v20   ;;  %v15360_v20 = vmax.f32 %v15072_v34, %v15071_v45  ;;  %v15369_v45 = vmax.f32 %v15081_v43, %v15080_v62 }
 0x94b   :  { %v5777_v1 = vpack.c.bf16 %v15329_v24, %v15326_v16  ;;  %v4257_v29 = vmax.f32 %v15333_v52, %v15332_v17  ;;  %v15334_v15 = vld [vmem:[#allocation339_spill] sm:$0xff]  ;;  %v15338_v44 = vmax.f32 %v15336_v10, %v15337_v57  ;;  %v11592_v24 = vpack.c.bf16 %v4249_v54, %v4248_v11  ;;  %v15341_v46 = vld [vmem:[#allocation409_spill] sm:$0xff]  ;;  %v15343_v13 = vld [vmem:[#allocation102_spill] sm:$0xff]  ;;  %6260 = vst [vmem:[%s12298_s4 + $0x268] sm:$0xff] %v11577_v38  }
 0x94c   :  { %v15335_v41 = vmax.f32 %v15049_v27, %v15334_v15  ;;  %v15339_v37 = vld [vmem:[#allocation39_spill] sm:$0xff]  ;;  %v15342_v61 = vld [vmem:[#allocation81_spill] sm:$0xff]  ;;  %v15346_v27 = vmax.f32 %v15061_v19, %v15060_v55  ;;  %v15347_v11 = vld [vmem:[#allocation410_spill] sm:$0xff]  ;;  %v11622_v19 = vpack.c.bf16 %v4253_v39, %v4252_v33 }
 0x94d   :  { %v4258_v16 = vmax.f32 %v15340_v4, %v15339_v37  ;;  %v4259_v12 = vmax.f32 %v15342_v61, %v15341_v46  ;;  %v15344_v17 = vld [vmem:[#allocation341_spill] sm:$0xff]  ;;  %v15348_v54 = vld [vmem:[#allocation84_spill] sm:$0xff]  ;;  %v15351_v26 = vld [vmem:[#allocation343_spill] sm:$0xff]  ;;  %6229 = vst [vmem:[%s12298_s4 + $0x170] sm:$0xff] %v5777_v1  }
 0x94e   :  { %v5782_v18 = vpack.c.bf16 %v15338_v44, %v15335_v41  ;;  %v15345_v52 = vmax.f32 %v15343_v13, %v15344_v17  ;;  %v11607_v41 = vpack.c.bf16 %v4251_v35, %v4250_v23  ;;  %v4260_v10 = vmax.f32 %v15348_v54, %v15347_v11  ;;  %v15349_v57 = vld [vmem:[#allocation41_spill] sm:$0xff]  ;;  %v15350_v44 = vld [vmem:[#allocation100_spill] sm:$0xff]  ;;  %v15353_v46 = vld [vmem:[#allocation114_spill] sm:$0xff]  ;;  %6261 = vst [vmem:[%s12298_s4 + $0x270] sm:$0xff] %v11592_v24  }
 0x94f   :  { %v4261_v37 = vmax.f32 %v15350_v44, %v15349_v57  ;;  %v15352_v4 = vmax.f32 %v15068_v28, %v15351_v26  ;;  %v15354_v61 = vld [vmem:[#allocation344_spill] sm:$0xff]  ;;  %v15356_v23 = vld [vmem:[#allocation411_spill] sm:$0xff]  ;;  %v15361_v28 = vmax.f32 %v15077_v32, %v15076_v2  ;;  %v11637_v57 = vpack.c.bf16 %v4255_v51, %v4254_v5  ;;  %v15366_v1 = vld [vmem:[#allocation126_spill] sm:$0xff]  ;;  %6263 = vst [vmem:[%s12298_s4 + $0x280] sm:$0xff] %v11622_v19  }
 0x950   :  { %v5787_v15 = vpack.c.bf16 %v15346_v27, %v15345_v52  ;;  %v15355_v13 = vmax.f32 %v15353_v46, %v15354_v61  ;;  %v15357_v35 = vld [vmem:[#allocation108_spill] sm:$0xff]  ;;  %v15364_v26 = vld [vmem:[#allocation43_spill] sm:$0xff]  ;;  %6230 = vst [vmem:[%s12298_s4 + $0x178] sm:$0xff] %v5782_v18   ;;  %v11652_v2 = vpack.c.bf16 %v4257_v29, %v4256_v31  ;;  %v15370_v32 = vld [vmem:[#allocation413_spill] sm:$0xff]  ;;  %v11667_v43 = vpack.c.bf16 %v4259_v12, %v4258_v16 }
 0x951   :  { %v4262_v17 = vmax.f32 %v15357_v35, %v15356_v23  ;;  %v15358_v52 = vld [vmem:[#allocation412_spill] sm:$0xff]  ;;  %v5797_v54 = vpack.c.bf16 %v15361_v28, %v15360_v20  ;;  %v15367_v61 = vld [vmem:[#allocation347_spill] sm:$0xff]  ;;  %v15372_v23 = vld [vmem:[#allocation45_spill] sm:$0xff]  ;;  %6262 = vst [vmem:[%s12298_s4 + $0x278] sm:$0xff] %v11607_v41  }
 0x952   :  { %v5792_v55 = vpack.c.bf16 %v15355_v13, %v15352_v4  ;;  %v15359_v27 = vld [vmem:[#allocation112_spill] sm:$0xff]  ;;  %v15368_v13 = vmax.f32 %v15366_v1, %v15367_v61  ;;  %v15373_v35 = vld [vmem:[#allocation143_spill] sm:$0xff]  ;;  %6231 = vst [vmem:[%s12298_s4 + $0x180] sm:$0xff] %v5787_v15   ;;  %v15374_v18 = vld [vmem:[#allocation349_spill] sm:$0xff] }
 0x953   :  { %v4263_v11 = vmax.f32 %v15359_v27, %v15358_v52  ;;  %v15362_v33 = vld [vmem:[#allocation260_spill] sm:$0xff]  ;;  %v4267_v52 = vmax.f32 %v15373_v35, %v15372_v23  ;;  %v15375_v27 = vmax.f32 %v15085_v22, %v15374_v18  ;;  %v15376_v20 = vld [vmem:[#allocation138_spill] sm:$0xff]  ;;  %v15380_v29 = vld [vmem:[#allocation167_spill] sm:$0xff]  ;;  %6233 = vst [vmem:[%s12298_s4 + $0x190] sm:$0xff] %v5797_v54   ;;  %v15401_v54 = vmax.f32 %v15104_v56, %v15103_v7 }
 0x954   :  { %v15363_v39 = vld [vmem:[#allocation132_spill] sm:$0xff]  ;;  %v5802_v34 = vpack.c.bf16 %v15369_v45, %v15368_v13  ;;  %v15377_v28 = vld [vmem:[#allocation350_spill] sm:$0xff]  ;;  %6232 = vst [vmem:[%s12298_s4 + $0x188] sm:$0xff] %v5792_v55   ;;  %v15383_v15 = vld [vmem:[#allocation351_spill] sm:$0xff] }
 0x955   :  { %v4264_v44 = vmax.f32 %v15363_v39, %v15362_v33  ;;  %v15365_v4 = vld [vmem:[#allocation136_spill] sm:$0xff]  ;;  %v15378_v33 = vmax.f32 %v15376_v20, %v15377_v28  ;;  %v15379_v31 = vld [vmem:[#allocation414_spill] sm:$0xff]  ;;  %v15384_v61 = vmax.f32 %v15089_v30, %v15383_v15  ;;  %v15388_v16 = vld [vmem:[#allocation47_spill] sm:$0xff]  ;;  %v15395_v30 = vmax.f32 %v15098_v48, %v15097_v50  ;;  %6264 = vst [vmem:[%s12298_s4 + $0x288] sm:$0xff] %v11637_v57  }
 0x956   :  { %v4265_v46 = vmax.f32 %v15365_v4, %v15364_v26  ;;  %v15371_v5 = vld [vmem:[#allocation140_spill] sm:$0xff]  ;;  %v4268_v39 = vmax.f32 %v15380_v29, %v15379_v31  ;;  %v15381_v26 = vld [vmem:[#allocation415_spill] sm:$0xff]  ;;  %v15389_v12 = vld [vmem:[#allocation174_spill] sm:$0xff]  ;;  %v11697_v28 = vpack.c.bf16 %v4263_v11, %v4262_v17  ;;  %6234 = vst [vmem:[%s12298_s4 + $0x198] sm:$0xff] %v5802_v34   ;;  %v15410_v34 = vmax.f32 %v15108_v8, %v15107_v40 }
 0x957   :  { %v4266_v51 = vmax.f32 %v15371_v5, %v15370_v32  ;;  %v5807_v62 = vpack.c.bf16 %v15378_v33, %v15375_v27  ;;  %v15382_v4 = vld [vmem:[#allocation171_spill] sm:$0xff]  ;;  %v15385_v22 = vld [vmem:[#allocation352_spill] sm:$0xff]  ;;  %v11682_v32 = vpack.c.bf16 %v4261_v37, %v4260_v10  ;;  %v4270_v5 = vmax.f32 %v15389_v12, %v15388_v16  ;;  %v15392_v55 = vld [vmem:[#allocation149_spill] sm:$0xff]  ;;  %6265 = vst [vmem:[%s12298_s4 + $0x290] sm:$0xff] %v11652_v2  }
 0x958   :  { %v4269_v1 = vmax.f32 %v15382_v4, %v15381_v26  ;;  %v15386_v13 = vmax.f32 %v15094_v63, %v15385_v22  ;;  %v15390_v23 = vld [vmem:[#allocation416_spill] sm:$0xff]  ;;  %v15393_v27 = vld [vmem:[#allocation353_spill] sm:$0xff]  ;;  %15396 = vst [vmem:[#allocation292_spill] sm:$0xff] %v11697_v28  ;;  %v15398_v37 = vld [vmem:[#allocation186_spill] sm:$0xff]  ;;  %v11712_v50 = vpack.c.bf16 %v4265_v46, %v4264_v44  ;;  %v15421_v8 = vmax.f32 %v15116_v25, %v15115_v59 }
 0x959   :  { %15387 = vst [vmem:[#allocation187_spill] sm:$0xff] %v11682_v32  ;;  %v15391_v35 = vld [vmem:[#allocation176_spill] sm:$0xff]  ;;  %v15394_v20 = vmax.f32 %v15392_v55, %v15393_v27  ;;  %v15397_v10 = vld [vmem:[#allocation417_spill] sm:$0xff]  ;;  %v15400_v29 = vld [vmem:[#allocation150_spill] sm:$0xff] }
 0x95a   :  { %v5812_v45 = vpack.c.bf16 %v15386_v13, %v15384_v61  ;;  %v4271_v18 = vmax.f32 %v15391_v35, %v15390_v23  ;;  %v4272_v33 = vmax.f32 %v15398_v37, %v15397_v10  ;;  %v15399_v31 = vld [vmem:[#allocation261_spill] sm:$0xff]  ;;  %v15402_v4 = vld [vmem:[#allocation159_spill] sm:$0xff]  ;;  %v15403_v15 = vld [vmem:[#allocation356_spill] sm:$0xff]  ;;  %15405 = vst [vmem:[#allocation192_spill] sm:$0xff] %v11712_v50  ;;  %v11727_v35 = vpack.c.bf16 %v4267_v52, %v4266_v51 }
 0x95b   :  { %v5817_v63 = vpack.c.bf16 %v15395_v30, %v15394_v20  ;;  %v4273_v26 = vmax.f32 %v15400_v29, %v15399_v31  ;;  %v15404_v61 = vmax.f32 %v15402_v4, %v15403_v15  ;;  %v15406_v17 = vld [vmem:[#allocation50_spill] sm:$0xff]  ;;  %6235 = vst [vmem:[%s12298_s4 + $0x1a0] sm:$0xff] %v5807_v62   ;;  %v15414_v44 = vld [vmem:[#allocation53_spill] sm:$0xff]  ;;  %v15415_v46 = vld [vmem:[#allocation188_spill] sm:$0xff] }
 0x95c   :  { %v15407_v11 = vld [vmem:[#allocation154_spill] sm:$0xff]  ;;  %15413 = vst [vmem:[#allocation293_spill] sm:$0xff] %v11727_v35  ;;  %v4276_v55 = vmax.f32 %v15415_v46, %v15414_v44  ;;  %v15416_v27 = vld [vmem:[#allocation419_spill] sm:$0xff]  ;;  %v15423_v51 = vld [vmem:[#allocation420_spill] sm:$0xff]  ;;  %v11757_v59 = vpack.c.bf16 %v4271_v18, %v4270_v5 }
 0x95d   :  { %v5822_v48 = vpack.c.bf16 %v15404_v61, %v15401_v54  ;;  %v4274_v22 = vmax.f32 %v15407_v11, %v15406_v17  ;;  %v15408_v13 = vld [vmem:[#allocation418_spill] sm:$0xff]  ;;  %v15417_v20 = vld [vmem:[#allocation191_spill] sm:$0xff]  ;;  %6236 = vst [vmem:[%s12298_s4 + $0x1a8] sm:$0xff] %v5812_v45   ;;  %v15425_v29 = vld [vmem:[#allocation56_spill] sm:$0xff]  ;;  %v15427_v45 = vmax.f32 %v15121_v47, %v15120_v21  ;;  %v11772_v44 = vpack.c.bf16 %v4273_v26, %v4272_v33 }
 0x95e   :  { %v15409_v16 = vld [vmem:[#allocation158_spill] sm:$0xff]  ;;  %v4277_v30 = vmax.f32 %v15417_v20, %v15416_v27  ;;  %v15419_v10 = vld [vmem:[#allocation359_spill] sm:$0xff]  ;;  %v15426_v54 = vld [vmem:[#allocation104_spill] sm:$0xff]  ;;  %6237 = vst [vmem:[%s12298_s4 + $0x1b0] sm:$0xff] %v5817_v63  }
 0x95f   :  { %v4275_v12 = vmax.f32 %v15409_v16, %v15408_v13  ;;  %v15411_v7 = vld [vmem:[#allocation358_spill] sm:$0xff]  ;;  %v4279_v4 = vmax.f32 %v15426_v54, %v15425_v29  ;;  %v15428_v15 = vld [vmem:[#allocation19_spill] sm:$0xff]  ;;  %15431 = vst [vmem:[#allocation294_spill] sm:$0xff] %v11757_v59  ;;  %v15435_v16 = vld [vmem:[#allocation201_spill] sm:$0xff] }
 0x960   :  { %v15412_v56 = vmax.f32 %v15112_v3, %v15411_v7  ;;  %v15418_v62 = vld [vmem:[#allocation170_spill] sm:$0xff]  ;;  %v11742_v3 = vpack.c.bf16 %v4269_v1, %v4268_v39  ;;  %v15432_v39 = vld [vmem:[#allocation421_spill] sm:$0xff]  ;;  %v15433_v1 = vld [vmem:[#allocation240_spill] sm:$0xff]  ;;  %6238 = vst [vmem:[%s12298_s4 + $0x1b8] sm:$0xff] %v5822_v48  }
 0x961   :  { %v15420_v37 = vmax.f32 %v15418_v62, %v15419_v10  ;;  %v15424_v52 = vld [vmem:[#allocation202_spill] sm:$0xff]  ;;  %v4280_v11 = vmax.f32 %v15433_v1, %v15432_v39  ;;  %v15436_v63 = vld [vmem:[#allocation363_spill] sm:$0xff]  ;;  %v15438_v21 = vld [vmem:[#allocation364_spill] sm:$0xff]  ;;  %15440 = vst [vmem:[#allocation197_spill] sm:$0xff] %v11772_v44  ;;  %v11802_v39 = vpack.c.bf16 %v4277_v30, %v4276_v55 }
 0x962   :  { %v5827_v23 = vpack.c.bf16 %v15412_v56, %v15410_v34  ;;  %15422 = vst [vmem:[#allocation194_spill] sm:$0xff] %v11742_v3  ;;  %v4278_v31 = vmax.f32 %v15424_v52, %v15423_v51  ;;  %v15429_v61 = vld [vmem:[#allocation362_spill] sm:$0xff]  ;;  %v15437_v7 = vmax.f32 %v15125_v53, %v15436_v63  ;;  %v15439_v47 = vmax.f32 %v15129_v0, %v15438_v21  ;;  %v15442_v18 = vld [vmem:[#allocation204_spill] sm:$0xff]  ;;  %v15443_v27 = vld [vmem:[#allocation59_spill] sm:$0xff] }
 0x963   :  { %v5832_v40 = vpack.c.bf16 %v15421_v8, %v15420_v37  ;;  %v15430_v17 = vmax.f32 %v15428_v15, %v15429_v61  ;;  %v15434_v13 = vld [vmem:[#allocation422_spill] sm:$0xff]  ;;  %v15444_v20 = vld [vmem:[#allocation48_spill] sm:$0xff]  ;;  %v15445_v48 = vld [vmem:[#allocation25_spill] sm:$0xff]  ;;  %v11787_v51 = vpack.c.bf16 %v4275_v12, %v4274_v22  ;;  %15459 = vst [vmem:[#allocation199_spill] sm:$0xff] %v11802_v39 }
 0x964   :  { %v4281_v34 = vmax.f32 %v15435_v16, %v15434_v13  ;;  %v5842_v56 = vpack.c.bf16 %v15439_v47, %v15437_v7  ;;  %v15441_v5 = vld [vmem:[#allocation262_spill] sm:$0xff]  ;;  %v4283_v62 = vmax.f32 %v15444_v20, %v15443_v27  ;;  %6239 = vst [vmem:[%s12298_s4 + $0x1c0] sm:$0xff] %v5827_v23   ;;  %v15446_v10 = vld [vmem:[#allocation365_spill] sm:$0xff]  ;;  %v15451_v33 = vld [vmem:[#allocation423_spill] sm:$0xff] }
 0x965   :  { %v5837_v25 = vpack.c.bf16 %v15430_v17, %v15427_v45  ;;  %v4282_v46 = vmax.f32 %v15442_v18, %v15441_v5  ;;  %v15447_v37 = vmax.f32 %v15445_v48, %v15446_v10  ;;  %v15448_v53 = vld [vmem:[#allocation366_spill] sm:$0xff]  ;;  %15450 = vst [vmem:[#allocation295_spill] sm:$0xff] %v11787_v51  ;;  %v15452_v26 = vld [vmem:[#allocation51_spill] sm:$0xff]  ;;  %v15455_v23 = vld [vmem:[#allocation29_spill] sm:$0xff]  ;;  %v15458_v17 = vmax.f32 %v15149_v60, %v15148_v14 }
 0x966   :  { %v15449_v8 = vmax.f32 %v15133_v42, %v15448_v53  ;;  %v4284_v52 = vmax.f32 %v15452_v26, %v15451_v33  ;;  %v15453_v29 = vld [vmem:[#allocation62_spill] sm:$0xff]  ;;  %6240 = vst [vmem:[%s12298_s4 + $0x1c8] sm:$0xff] %v5832_v40   ;;  %v15456_v15 = vld [vmem:[#allocation367_spill] sm:$0xff]  ;;  %v15460_v22 = vld [vmem:[#allocation424_spill] sm:$0xff]  ;;  %v11817_v60 = vpack.c.bf16 %v4279_v4, %v4278_v31 }
 0x967   :  { %v15454_v54 = vld [vmem:[#allocation54_spill] sm:$0xff]  ;;  %v15457_v61 = vmax.f32 %v15455_v23, %v15456_v15  ;;  %v15461_v12 = vld [vmem:[#allocation57_spill] sm:$0xff]  ;;  %v15463_v16 = vld [vmem:[#allocation60_spill] sm:$0xff]  ;;  %6241 = vst [vmem:[%s12298_s4 + $0x1d0] sm:$0xff] %v5837_v25   ;;  %v11829_v25 = vpack.c.bf16 %v4281_v34, %v4280_v11 }
 0x968   :  { %v5847_v0 = vpack.c.bf16 %v15449_v8, %v15447_v37  ;;  %v4285_v45 = vmax.f32 %v15454_v54, %v15453_v29  ;;  %v4286_v1 = vmax.f32 %v15461_v12, %v15460_v22  ;;  %v15462_v13 = vld [vmem:[#allocation425_spill] sm:$0xff]  ;;  %v15467_v47 = vld [vmem:[#allocation370_spill] sm:$0xff]  ;;  %15469 = vst [vmem:[#allocation3_spill] sm:$0xff] %v11817_v60  ;;  %v15472_v27 = vld [vmem:[#allocation63_spill] sm:$0xff]  ;;  %v11841_v54 = vpack.c.bf16 %v4283_v62, %v4282_v46 }
 0x969   :  { %v5852_v42 = vpack.c.bf16 %v15458_v17, %v15457_v61  ;;  %v4287_v63 = vmax.f32 %v15463_v16, %v15462_v13  ;;  %v15464_v40 = vld [vmem:[#allocation33_spill] sm:$0xff]  ;;  %v15468_v5 = vmax.f32 %v15167_v36, %v15467_v47  ;;  %v15470_v55 = vld [vmem:[#allocation90_spill] sm:$0xff]  ;;  %6242 = vst [vmem:[%s12298_s4 + $0x1d8] sm:$0xff] %v5842_v56   ;;  %v15476_v53 = vld [vmem:[#allocation211_spill] sm:$0xff] }
 0x96a   :  { %v15465_v7 = vld [vmem:[#allocation369_spill] sm:$0xff]  ;;  %v11820_v30 = vmul.f32 0.2, %v15470_v55  ;;  %v15473_v48 = vld [vmem:[#allocation426_spill] sm:$0xff]  ;;  %15475 = vst [vmem:[#allocation297_spill] sm:$0xff] %v11829_v25  ;;  %v15477_v31 = vld [vmem:[#allocation427_spill] sm:$0xff]  ;;  %v11853_v12 = vpack.c.bf16 %v4285_v45, %v4284_v52 }
 0x96b   :  { %v15466_v21 = vmax.f32 %v15464_v40, %v15465_v7  ;;  %v15471_v18 = vld [vmem:[#allocation65_spill] sm:$0xff]  ;;  %v15474_v10 = vld [vmem:[#allocation66_spill] sm:$0xff]  ;;  %v11832_v36 = vmul.f32 0.2, %v15476_v53  ;;  %v15479_v33 = vld [vmem:[#allocation263_spill] sm:$0xff]  ;;  %6243 = vst [vmem:[%s12298_s4 + $0x1e0] sm:$0xff] %v5847_v0   ;;  %v11865_v47 = vpack.c.bf16 %v4287_v63, %v4286_v1 }
 0x96c   :  { %v4288_v20 = vmax.f32 %v15472_v27, %v15471_v18  ;;  %v4289_v37 = vmax.f32 %v15474_v10, %v15473_v48  ;;  %v15478_v4 = vld [vmem:[#allocation69_spill] sm:$0xff]  ;;  %v15480_v26 = vld [vmem:[#allocation72_spill] sm:$0xff]  ;;  %15481 = vst [vmem:[#allocation4_spill] sm:$0xff] %v11841_v54  ;;  %v15484_v34 = vld [vmem:[#allocation87_spill] sm:$0xff] }
 0x96d   :  { %v5857_v14 = vpack.c.bf16 %v15468_v5, %v15466_v21  ;;  %v4290_v8 = vmax.f32 %v15478_v4, %v15477_v31  ;;  %v4291_v29 = vmax.f32 %v15480_v26, %v15479_v33  ;;  %v15482_v23 = vld [vmem:[#allocation213_spill] sm:$0xff]  ;;  %v15483_v11 = vld [vmem:[#allocation68_spill] sm:$0xff]  ;;  %6244 = vst [vmem:[%s12298_s4 + $0x1e8] sm:$0xff] %v5852_v42   ;;  %v15488_v13 = vld [vmem:[#allocation215_spill] sm:$0xff] }
 0x96e   :  { %v11844_v15 = vmul.f32 0.2, %v15482_v23  ;;  %v4292_v56 = vmax.f32 %v15484_v34, %v15483_v11  ;;  %v15485_v61 = vld [vmem:[#allocation428_spill] sm:$0xff]  ;;  %v15486_v17 = vld [vmem:[#allocation93_spill] sm:$0xff]  ;;  %15487 = vst [vmem:[#allocation298_spill] sm:$0xff] %v11853_v12  ;;  %v15489_v46 = vld [vmem:[#allocation71_spill] sm:$0xff]  ;;  %v11878_v31 = vpack.c.bf16 %v4289_v37, %v4288_v20 }
 0x96f   :  { %v4293_v22 = vmax.f32 %v15486_v17, %v15485_v61  ;;  %v11856_v16 = vmul.f32 0.2, %v15488_v13  ;;  %v15490_v62 = vld [vmem:[#allocation96_spill] sm:$0xff]  ;;  %v15491_v40 = vld [vmem:[#allocation429_spill] sm:$0xff]  ;;  %6245 = vst [vmem:[%s12298_s4 + $0x1f0] sm:$0xff] %v5857_v14   ;;  %v15495_v52 = vld [vmem:[#allocation430_spill] sm:$0xff]  ;;  %v11891_v61 = vpack.c.bf16 %v4291_v29, %v4290_v8 }
 0x970   :  { %v4294_v0 = vmax.f32 %v15490_v62, %v15489_v46  ;;  %v15492_v7 = vld [vmem:[#allocation116_spill] sm:$0xff]  ;;  %15493 = vst [vmem:[#allocation5_spill] sm:$0xff] %v11865_v47  ;;  %v15497_v27 = vld [vmem:[#allocation74_spill] sm:$0xff]  ;;  %v15500_v4 = vld [vmem:[#allocation217_spill] sm:$0xff] }
 0x971   :  { %v4295_v21 = vmax.f32 %v15492_v7, %v15491_v40  ;;  %v15494_v5 = vld [vmem:[#allocation216_spill] sm:$0xff]  ;;  %15499 = vst [vmem:[#allocation300_spill] sm:$0xff] %v11878_v31  ;;  %v11881_v14 = vmul.f32 0.2, %v15500_v4  ;;  %v15501_v1 = vld [vmem:[#allocation431_spill] sm:$0xff]  ;;  %v15504_v11 = vld [vmem:[#allocation153_spill] sm:$0xff] }
 0x972   :  { %v11868_v18 = vmul.f32 0.2, %v15494_v5  ;;  %v15496_v45 = vld [vmem:[#allocation120_spill] sm:$0xff]  ;;  %15505 = vst [vmem:[#allocation7_spill] sm:$0xff] %v11891_v61  ;;  %v15506_v17 = vld [vmem:[#allocation218_spill] sm:$0xff]  ;;  %v15508_v37 = vld [vmem:[#allocation157_spill] sm:$0xff] }
 0x973   :  { %v4296_v42 = vmax.f32 %v15496_v45, %v15495_v52  ;;  %v15498_v48 = vld [vmem:[#allocation124_spill] sm:$0xff]  ;;  %v11894_v6 = vmul.f32 0.2, %v15506_v17  ;;  %v15509_v62 = vld [vmem:[#allocation77_spill] sm:$0xff]  ;;  %v11904_v52 = vpack.c.bf16 %v4293_v22, %v4292_v56  ;;  %v15512_v45 = vld [vmem:[#allocation219_spill] sm:$0xff]  ;;  %6266 = vst [vmem:[%s12298_s4 + $0x298] sm:$0xff] %v11667_v43  }
 0x974   :  { %v4297_v10 = vmax.f32 %v15498_v48, %v15497_v27  ;;  %v15502_v63 = vld [vmem:[#allocation128_spill] sm:$0xff]  ;;  %v11907_v9 = vmul.f32 0.2, %v15512_v45  ;;  %v15513_v8 = vld [vmem:[#allocation433_spill] sm:$0xff]  ;;  %v15520_v56 = vld [vmem:[#allocation434_spill] sm:$0xff]  ;;  %v4326_v58 = vmax.f32 %v15494_v5, %v11868_v18 }
 0x975   :  { %v4298_v33 = vmax.f32 %v15502_v63, %v15501_v1  ;;  %v15503_v26 = vld [vmem:[#allocation432_spill] sm:$0xff]  ;;  %15511 = vst [vmem:[#allocation301_spill] sm:$0xff] %v11904_v52  ;;  %v15516_v1 = vld [vmem:[#allocation241_spill] sm:$0xff]  ;;  %v15521_v22 = vld [vmem:[#allocation242_spill] sm:$0xff]  ;;  %v4328_v38 = vmax.f32 %v15506_v17, %v11894_v6 }
 0x976   :  { %v4299_v34 = vmax.f32 %v15504_v11, %v15503_v26  ;;  %v15507_v20 = vld [vmem:[#allocation264_spill] sm:$0xff]  ;;  %v15517_v26 = vld [vmem:[#allocation169_spill] sm:$0xff]  ;;  %v11917_v11 = vpack.c.bf16 %v4295_v21, %v4294_v0  ;;  %v15527_v0 = vld [vmem:[#allocation83_spill] sm:$0xff] }
 0x977   :  { %v4300_v46 = vmax.f32 %v15508_v37, %v15507_v20  ;;  %v15510_v40 = vld [vmem:[#allocation160_spill] sm:$0xff]  ;;  %6249 = vst [vmem:[%s12298_s4 + $0x210] sm:$0xff] %v15517_v26   ;;  %v4304_v37 = vmax.f32 %v15521_v22, %v15520_v56  ;;  %v15528_v21 = vld [vmem:[#allocation189_spill] sm:$0xff]  ;;  %v15530_v61 = vld [vmem:[#allocation243_spill] sm:$0xff] }
 0x978   :  { %v4301_v7 = vmax.f32 %v15510_v40, %v15509_v62  ;;  %v15514_v29 = vld [vmem:[#allocation164_spill] sm:$0xff]  ;;  %15518 = vst [vmem:[#allocation8_spill] sm:$0xff] %v11917_v11  ;;  %v15522_v62 = vld [vmem:[#allocation435_spill] sm:$0xff]  ;;  %v4306_v26 = vmax.f32 %v15528_v21, %v15527_v0  ;;  %v15531_v56 = vld [vmem:[#allocation173_spill] sm:$0xff]  ;;  %v11943_v22 = vpack.c.bf16 %v4299_v34, %v4298_v33 }
 0x979   :  { %v4302_v27 = vmax.f32 %v15514_v29, %v15513_v8  ;;  %v15515_v48 = vld [vmem:[#allocation80_spill] sm:$0xff]  ;;  %v15523_v40 = vld [vmem:[#allocation179_spill] sm:$0xff]  ;;  %v15524_v8 = vld [vmem:[#allocation285_spill] sm:$0xff]  ;;  %v11930_v29 = vpack.c.bf16 %v4297_v10, %v4296_v42  ;;  %6251 = vst [vmem:[%s12298_s4 + $0x220] sm:$0xff] %v15531_v56  }
 0x97a   :  { %v4303_v63 = vmax.f32 %v15516_v1, %v15515_v48  ;;  %v15519_v20 = vld [vmem:[#allocation220_spill] sm:$0xff]  ;;  %v4305_v52 = vmax.f32 %v15523_v40, %v15522_v62  ;;  %6250 = vst [vmem:[%s12298_s4 + $0x218] sm:$0xff] %v15524_v8   ;;  %v15526_v48 = vld [vmem:[#allocation221_spill] sm:$0xff]  ;;  %v15541_v33 = vld [vmem:[#allocation86_spill] sm:$0xff] }
 0x97b   :  { %v11920_v49 = vmul.f32 0.2, %v15519_v20  ;;  %15525 = vst [vmem:[#allocation303_spill] sm:$0xff] %v11930_v29  ;;  %v11933_v1 = vmul.f32 0.2, %v15526_v48  ;;  %v15529_v11 = vld [vmem:[#allocation436_spill] sm:$0xff] }
 0x97c   :  { %v4307_v31 = vmax.f32 %v15530_v61, %v15529_v11  ;;  %15532 = vst [vmem:[#allocation10_spill] sm:$0xff] %v11943_v22  ;;  %v15533_v62 = vld [vmem:[#allocation97_spill] sm:$0xff]  ;;  %v15535_v10 = vld [vmem:[#allocation244_spill] sm:$0xff]  ;;  %v11956_v61 = vpack.c.bf16 %v4301_v7, %v4300_v46  ;;  %v15543_v22 = vld [vmem:[#allocation438_spill] sm:$0xff] }
 0x97d   :  { %v11946_v40 = vmul.f32 0.2, %v15533_v62  ;;  %v15534_v42 = vld [vmem:[#allocation437_spill] sm:$0xff]  ;;  %v15542_v34 = vld [vmem:[#allocation196_spill] sm:$0xff]  ;;  %v15544_v54 = vld [vmem:[#allocation198_spill] sm:$0xff]  ;;  %v4330_v24 = vmax.f32 %v15519_v20, %v11920_v49 }
 0x97e   :  { %v4308_v8 = vmax.f32 %v15535_v10, %v15534_v42  ;;  %v15536_v29 = vld [vmem:[#allocation265_spill] sm:$0xff]  ;;  %15539 = vst [vmem:[#allocation304_spill] sm:$0xff] %v11956_v61  ;;  %v4310_v56 = vmax.f32 %v15542_v34, %v15541_v33  ;;  %v4311_v25 = vmax.f32 %v15544_v54, %v15543_v22  ;;  %v15545_v42 = vld [vmem:[#allocation287_spill] sm:$0xff]  ;;  %v15549_v7 = vld [vmem:[#allocation246_spill] sm:$0xff]  ;;  %v11982_v54 = vpack.c.bf16 %v4305_v52, %v4304_v37 }
 0x97f   :  { %v15537_v47 = vld [vmem:[#allocation245_spill] sm:$0xff]  ;;  %6253 = vst [vmem:[%s12298_s4 + $0x230] sm:$0xff] %v15545_v42   ;;  %v15550_v61 = vld [vmem:[#allocation439_spill] sm:$0xff]  ;;  %v15552_v33 = vld [vmem:[#allocation180_spill] sm:$0xff]  ;;  %v4332_v41 = vmax.f32 %v15533_v62, %v11946_v40 }
 0x980   :  { %v4309_v12 = vmax.f32 %v15537_v47, %v15536_v29  ;;  %v15538_v0 = vld [vmem:[#allocation177_spill] sm:$0xff]  ;;  %v11969_v47 = vpack.c.bf16 %v4303_v63, %v4302_v27  ;;  %v15547_v29 = vld [vmem:[#allocation251_spill] sm:$0xff]  ;;  %6254 = vst [vmem:[%s12298_s4 + $0x238] sm:$0xff] %v15552_v33   ;;  %v15555_v27 = vld [vmem:[#allocation440_spill] sm:$0xff] }
 0x981   :  { %6252 = vst [vmem:[%s12298_s4 + $0x228] sm:$0xff] %v15538_v0   ;;  %v15540_v11 = vld [vmem:[#allocation101_spill] sm:$0xff]  ;;  %v11972_v10 = vmul.f32 0.2, %v15547_v29  ;;  %v15551_v60 = vld [vmem:[#allocation247_spill] sm:$0xff]  ;;  %v15556_v63 = vld [vmem:[#allocation248_spill] sm:$0xff] }
 0x982   :  { %v11959_v21 = vmul.f32 0.2, %v15540_v11  ;;  %15546 = vst [vmem:[#allocation11_spill] sm:$0xff] %v11969_v47  ;;  %v15548_v46 = vld [vmem:[#allocation89_spill] sm:$0xff]  ;;  %v4313_v39 = vmax.f32 %v15551_v60, %v15550_v61  ;;  %v4314_v42 = vmax.f32 %v15556_v63, %v15555_v27  ;;  %v15557_v47 = vld [vmem:[#allocation92_spill] sm:$0xff]  ;;  %v11995_v60 = vpack.c.bf16 %v4307_v31, %v4306_v26  ;;  %v15563_v37 = vld [vmem:[#allocation203_spill] sm:$0xff] }
 0x983   :  { %v4312_v0 = vmax.f32 %v15549_v7, %v15548_v46  ;;  %15553 = vst [vmem:[#allocation306_spill] sm:$0xff] %v11982_v54  ;;  %v15554_v22 = vld [vmem:[#allocation105_spill] sm:$0xff]  ;;  %v15558_v51 = vld [vmem:[#allocation200_spill] sm:$0xff]  ;;  %v15564_v54 = vld [vmem:[#allocation442_spill] sm:$0xff]  ;;  %v4334_v19 = vmax.f32 %v15547_v29, %v11972_v10 }
 0x984   :  { %v11985_v34 = vmul.f32 0.2, %v15554_v22  ;;  %v4315_v44 = vmax.f32 %v15558_v51, %v15557_v47  ;;  %v15559_v46 = vld [vmem:[#allocation288_spill] sm:$0xff]  ;;  %15560 = vst [vmem:[#allocation13_spill] sm:$0xff] %v11995_v60  ;;  %v15561_v61 = vld [vmem:[#allocation109_spill] sm:$0xff]  ;;  %v15566_v27 = vld [vmem:[#allocation182_spill] sm:$0xff]  ;;  %v12008_v51 = vpack.c.bf16 %v4309_v12, %v4308_v8 }
 0x985   :  { %6255 = vst [vmem:[%s12298_s4 + $0x240] sm:$0xff] %v15559_v46   ;;  %v11998_v7 = vmul.f32 0.2, %v15561_v61  ;;  %v15562_v52 = vld [vmem:[#allocation441_spill] sm:$0xff]  ;;  %v15569_v31 = vld [vmem:[#allocation443_spill] sm:$0xff]  ;;  %v15570_v26 = vld [vmem:[#allocation250_spill] sm:$0xff] }
 0x986   :  { %v4316_v33 = vmax.f32 %v15563_v37, %v15562_v52  ;;  %v15565_v59 = vld [vmem:[#allocation249_spill] sm:$0xff]  ;;  %6256 = vst [vmem:[%s12298_s4 + $0x248] sm:$0xff] %v15566_v27   ;;  %v4318_v46 = vmax.f32 %v15570_v26, %v15569_v31  ;;  %v15571_v60 = vld [vmem:[#allocation444_spill] sm:$0xff]  ;;  %v15572_v35 = vld [vmem:[#allocation206_spill] sm:$0xff] }
 0x987   :  { %v4317_v3 = vmax.f32 %v15565_v59, %v15564_v54  ;;  %15567 = vst [vmem:[#allocation307_spill] sm:$0xff] %v12008_v51  ;;  %v15568_v47 = vld [vmem:[#allocation113_spill] sm:$0xff]  ;;  %v4319_v50 = vmax.f32 %v15572_v35, %v15571_v60  ;;  %v12021_v59 = vpack.c.bf16 %v4311_v25, %v4310_v56  ;;  %v15576_v8 = vld [vmem:[#allocation208_spill] sm:$0xff]  ;;  %v15577_v51 = vld [vmem:[#allocation446_spill] sm:$0xff]  ;;  %v12034_v35 = vpack.c.bf16 %v4313_v39, %v4312_v0 }
 0x988   :  { %v12011_v63 = vmul.f32 0.2, %v15568_v47  ;;  %v15573_v52 = vld [vmem:[#allocation289_spill] sm:$0xff]  ;;  %v15578_v28 = vld [vmem:[#allocation210_spill] sm:$0xff]  ;;  %v15579_v31 = vld [vmem:[#allocation184_spill] sm:$0xff]  ;;  %v4322_v25 = vmax.f32 %v15470_v55, %v11820_v30  ;;  %v4323_v56 = vmax.f32 %v15476_v53, %v11832_v36  ;;  %v4324_v39 = vmax.f32 %v15482_v23, %v11844_v15 }
 0x989   :  { %6257 = vst [vmem:[%s12298_s4 + $0x250] sm:$0xff] %v15573_v52   ;;  %v15574_v54 = vld [vmem:[#allocation117_spill] sm:$0xff]  ;;  %v4321_v32 = vmax.f32 %v15578_v28, %v15577_v51  ;;  %v12045_v28 = vpack.c.bf16 %v4315_v44, %v4314_v42  ;;  %v4325_v0 = vmax.f32 %v15488_v13, %v11856_v16  ;;  %v12056_v55 = vpack.c.bf16 %v4317_v3, %v4316_v33  ;;  %v15582_v30 = vld [vmem:[#allocation252_spill] sm:$0xff]  ;;  %v15584_v16 = vld [vmem:[#allocation254_spill] sm:$0xff] }
 0x98a   :  { %v12024_v37 = vmul.f32 0.2, %v15574_v54  ;;  %v15575_v12 = vld [vmem:[#allocation445_spill] sm:$0xff]  ;;  %6258 = vst [vmem:[%s12298_s4 + $0x258] sm:$0xff] %v15579_v31   ;;  %v4085_v53 = vmul.f32 0.2, %v15582_v30  ;;  %v4327_v44 = vmax.f32 %v15500_v4, %v11881_v14  ;;  %v12067_v36 = vpack.c.bf16 %v4319_v50, %v4318_v46 }
 0x98b   :  { %v4320_v27 = vmax.f32 %v15576_v8, %v15575_v12  ;;  %v15580_v60 = vld [vmem:[#allocation121_spill] sm:$0xff]  ;;  %v4329_v3 = vmax.f32 %v15512_v45, %v11907_v9  ;;  %v4087_v5 = vmul.f32 0.2, %v15584_v16  ;;  %v4331_v50 = vmax.f32 %v15526_v48, %v11933_v1  ;;  %v15585_v4 = vld [vmem:[#allocation255_spill] sm:$0xff]  ;;  %v15586_v6 = vld [vmem:[#allocation256_spill] sm:$0xff]  ;;  %6292 = vst [vmem:[%s12298_s4 + $0x368] sm:$0xff] %v12021_v59  }
 0x98c   :  { %v4083_v26 = vmul.f32 0.2, %v15580_v60  ;;  %v15581_v51 = vld [vmem:[#allocation125_spill] sm:$0xff]  ;;  %v12089_v18 = vpack.c.bf16 %v4323_v56, %v4322_v25  ;;  %v4088_v14 = vmul.f32 0.2, %v15585_v4  ;;  %v6127_v17 = vpack.c.bf16 %v4325_v0, %v4324_v39  ;;  %v15588_v40 = vld [vmem:[#allocation258_spill] sm:$0xff] }
 0x98d   :  { %v4084_v52 = vmul.f32 0.2, %v15581_v51  ;;  %v15583_v23 = vld [vmem:[#allocation253_spill] sm:$0xff]  ;;  %v12078_v13 = vpack.c.bf16 %v4321_v32, %v4320_v27  ;;  %v4333_v32 = vmax.f32 %v15540_v11, %v11959_v21  ;;  %v4089_v45 = vmul.f32 0.2, %v15586_v6  ;;  %v15589_v29 = vld [vmem:[#allocation187_spill] sm:$0xff] }
 0x98e   :  { %v4086_v15 = vmul.f32 0.2, %v15583_v23  ;;  %v4335_v9 = vmax.f32 %v15554_v22, %v11985_v34  ;;  %v6132_v20 = vpack.c.bf16 %v4327_v44, %v4326_v58  ;;  %v15587_v49 = vld [vmem:[#allocation257_spill] sm:$0xff]  ;;  %v4336_v57 = vmax.f32 %v15561_v61, %v11998_v7  ;;  %6267 = vst [vmem:[%s12298_s4 + $0x2a0] sm:$0xff] %v15589_v29   ;;  %v15590_v42 = vld [vmem:[#allocation292_spill] sm:$0xff]  ;;  %v15593_v27 = vld [vmem:[#allocation194_spill] sm:$0xff] }
 0x98f   :  { %v4090_v48 = vmul.f32 0.2, %v15587_v49  ;;  %v4337_v1 = vmax.f32 %v15568_v47, %v12011_v63  ;;  %v6137_v62 = vpack.c.bf16 %v4329_v3, %v4328_v38  ;;  %v4091_v11 = vmul.f32 0.2, %v15588_v40  ;;  %6268 = vst [vmem:[%s12298_s4 + $0x2a8] sm:$0xff] %v15590_v42   ;;  %v15591_v33 = vld [vmem:[#allocation192_spill] sm:$0xff] }
 0x990   :  { %v4338_v2 = vmax.f32 %v15574_v54, %v12024_v37  ;;  %v4339_v21 = vmax.f32 %v15580_v60, %v4083_v26  ;;  %v6142_v10 = vpack.c.bf16 %v4331_v50, %v4330_v24  ;;  %v4340_v22 = vmax.f32 %v15581_v51, %v4084_v52  ;;  %6269 = vst [vmem:[%s12298_s4 + $0x2b0] sm:$0xff] %v15591_v33   ;;  %v15592_v54 = vld [vmem:[#allocation293_spill] sm:$0xff]  ;;  %v15594_v60 = vld [vmem:[#allocation294_spill] sm:$0xff]  ;;  %v15596_v51 = vld [vmem:[#allocation295_spill] sm:$0xff] }
 0x991   :  { %v4341_v34 = vmax.f32 %v15582_v30, %v4085_v53  ;;  %v6147_v43 = vpack.c.bf16 %v4333_v32, %v4332_v41  ;;  %v4342_v61 = vmax.f32 %v15583_v23, %v4086_v15  ;;  %v4343_v7 = vmax.f32 %v15584_v16, %v4087_v5  ;;  %6270 = vst [vmem:[%s12298_s4 + $0x2b8] sm:$0xff] %v15592_v54   ;;  %v15595_v25 = vld [vmem:[#allocation197_spill] sm:$0xff]  ;;  %v15597_v39 = vld [vmem:[#allocation199_spill] sm:$0xff]  ;;  %v15600_v58 = vld [vmem:[#allocation4_spill] sm:$0xff] }
 0x992   :  { %v6152_v47 = vpack.c.bf16 %v4335_v9, %v4334_v19  ;;  %v4344_v63 = vmax.f32 %v15585_v4, %v4088_v14  ;;  %v4345_v46 = vmax.f32 %v15586_v6, %v4089_v45  ;;  %v6157_v37 = vpack.c.bf16 %v4337_v1, %v4336_v57  ;;  %6271 = vst [vmem:[%s12298_s4 + $0x2c0] sm:$0xff] %v15593_v27   ;;  %v15598_v30 = vld [vmem:[#allocation3_spill] sm:$0xff]  ;;  %v15599_v53 = vld [vmem:[#allocation297_spill] sm:$0xff]  ;;  %v15601_v44 = vld [vmem:[#allocation298_spill] sm:$0xff] }
 0x993   :  { %v4346_v12 = vmax.f32 %v15587_v49, %v4090_v48  ;;  %v4347_v8 = vmax.f32 %v15588_v40, %v4091_v11  ;;  %v6162_v31 = vpack.c.bf16 %v4339_v21, %v4338_v2  ;;  %6272 = vst [vmem:[%s12298_s4 + $0x2c8] sm:$0xff] %v15594_v60   ;;  %v6167_v26 = vpack.c.bf16 %v4341_v34, %v4340_v22  ;;  %v15602_v23 = vld [vmem:[#allocation5_spill] sm:$0xff]  ;;  %v15603_v15 = vld [vmem:[#allocation300_spill] sm:$0xff]  ;;  %v15604_v38 = vld [vmem:[#allocation7_spill] sm:$0xff] }
 0x994   :  { %6273 = vst [vmem:[%s12298_s4 + $0x2d0] sm:$0xff] %v15595_v25   ;;  %v6172_v56 = vpack.c.bf16 %v4343_v7, %v4342_v61  ;;  %v6177_v52 = vpack.c.bf16 %v4345_v46, %v4344_v63  ;;  %v15605_v3 = vld [vmem:[#allocation301_spill] sm:$0xff]  ;;  %v15606_v16 = vld [vmem:[#allocation8_spill] sm:$0xff]  ;;  %v15607_v5 = vld [vmem:[#allocation303_spill] sm:$0xff] }
 0x995   :  { %6274 = vst [vmem:[%s12298_s4 + $0x2d8] sm:$0xff] %v15596_v51   ;;  %v6182_v0 = vpack.c.bf16 %v4347_v8, %v4346_v12  ;;  %v15608_v24 = vld [vmem:[#allocation10_spill] sm:$0xff]  ;;  %v15609_v50 = vld [vmem:[#allocation304_spill] sm:$0xff]  ;;  %v15610_v4 = vld [vmem:[#allocation11_spill] sm:$0xff] }
 0x996   :  { %6275 = vst [vmem:[%s12298_s4 + $0x2e0] sm:$0xff] %v15597_v39   ;;  %v15611_v14 = vld [vmem:[#allocation306_spill] sm:$0xff]  ;;  %v15612_v41 = vld [vmem:[#allocation13_spill] sm:$0xff]  ;;  %v15613_v32 = vld [vmem:[#allocation307_spill] sm:$0xff] }
 0x997   :  { %6276 = vst [vmem:[%s12298_s4 + $0x2e8] sm:$0xff] %v15598_v30  }
 0x998   :  { %6277 = vst [vmem:[%s12298_s4 + $0x2f0] sm:$0xff] %v15599_v53  }
 0x999   :  { %6278 = vst [vmem:[%s12298_s4 + $0x2f8] sm:$0xff] %v15600_v58  }
 0x99a   :  { %6279 = vst [vmem:[%s12298_s4 + $0x300] sm:$0xff] %v15601_v44  }
 0x99b   :  { %6280 = vst [vmem:[%s12298_s4 + $0x308] sm:$0xff] %v15602_v23  }
 0x99c   :  { %6281 = vst [vmem:[%s12298_s4 + $0x310] sm:$0xff] %v15603_v15  }
 0x99d   :  { %6282 = vst [vmem:[%s12298_s4 + $0x318] sm:$0xff] %v15604_v38  }
 0x99e   :  { %6283 = vst [vmem:[%s12298_s4 + $0x320] sm:$0xff] %v15605_v3  }
 0x99f   :  { %6284 = vst [vmem:[%s12298_s4 + $0x328] sm:$0xff] %v15606_v16  }
 0x9a0   :  { %6285 = vst [vmem:[%s12298_s4 + $0x330] sm:$0xff] %v15607_v5  }
 0x9a1   :  { %6286 = vst [vmem:[%s12298_s4 + $0x338] sm:$0xff] %v15608_v24  }
 0x9a2   :  { %6287 = vst [vmem:[%s12298_s4 + $0x340] sm:$0xff] %v15609_v50  }
 0x9a3   :  { %6288 = vst [vmem:[%s12298_s4 + $0x348] sm:$0xff] %v15610_v4  }
 0x9a4   :  { %6289 = vst [vmem:[%s12298_s4 + $0x350] sm:$0xff] %v15611_v14  }
 0x9a5   :  { %6290 = vst [vmem:[%s12298_s4 + $0x358] sm:$0xff] %v15612_v41  }
 0x9a6   :  { %6291 = vst [vmem:[%s12298_s4 + $0x360] sm:$0xff] %v15613_v32  }
 0x9a7   :  { %6293 = vst [vmem:[%s12298_s4 + $0x370] sm:$0xff] %v12034_v35  }
 0x9a8   :  { %6294 = vst [vmem:[%s12298_s4 + $0x378] sm:$0xff] %v12045_v28  }
 0x9a9   :  { %6295 = vst [vmem:[%s12298_s4 + $0x380] sm:$0xff] %v12056_v55  }
 0x9aa   :  { %6296 = vst [vmem:[%s12298_s4 + $0x388] sm:$0xff] %v12067_v36  }
 0x9ab   :  { %6297 = vst [vmem:[%s12298_s4 + $0x390] sm:$0xff] %v12078_v13  }
 0x9ac   :  { %6298 = vst [vmem:[%s12298_s4 + $0x398] sm:$0xff] %v12089_v18  }
 0x9ad   :  { %6299 = vst [vmem:[%s12298_s4 + $0x3a0] sm:$0xff] %v6127_v17  }
 0x9ae   :  { %6300 = vst [vmem:[%s12298_s4 + $0x3a8] sm:$0xff] %v6132_v20  }
 0x9af   :  { %6301 = vst [vmem:[%s12298_s4 + $0x3b0] sm:$0xff] %v6137_v62  }
 0x9b0   :  { %6302 = vst [vmem:[%s12298_s4 + $0x3b8] sm:$0xff] %v6142_v10  }
 0x9b1   :  { %6303 = vst [vmem:[%s12298_s4 + $0x3c0] sm:$0xff] %v6147_v43  }
 0x9b2   :  { %6304 = vst [vmem:[%s12298_s4 + $0x3c8] sm:$0xff] %v6152_v47  }
 0x9b3   :  { %6305 = vst [vmem:[%s12298_s4 + $0x3d0] sm:$0xff] %v6157_v37  }
 0x9b4   :  { %6306 = vst [vmem:[%s12298_s4 + $0x3d8] sm:$0xff] %v6162_v31  }
 0x9b5   :  { %6307 = vst [vmem:[%s12298_s4 + $0x3e0] sm:$0xff] %v6167_v26  }
 0x9b6   :  { %6308 = vst [vmem:[%s12298_s4 + $0x3e8] sm:$0xff] %v6172_v56  }
 0x9b7   :  { %6309 = vst [vmem:[%s12298_s4 + $0x3f0] sm:$0xff] %v6177_v52  }
 0x9b8   :  { %6310 = vst [vmem:[%s12298_s4 + $0x3f8] sm:$0xff] %v6182_v0  }

// kernel: forward.6
= control target key start
LH: loop header
LB: loop body
LE: loop exit
PB: predicated region body
PF: predicated region fallthrough
CT: control target
= control target key end

     0   :  { %s3081_s1 = inlined_call_operand.vmem [shape: bf16[128,128], index: 1, kind: input, shape index: {}]   ;;  %s3082_s0 = inlined_call_operand.vmem [shape: bf16[512,128], index: 0, kind: input, shape index: {}]   ;;  %s3083_s2 = inlined_call_operand.vmem [shape: f32[1,128], index: 2, kind: input, shape index: {}]   ;;  %s3084_s3 = inlined_call_operand.vmem [shape: f32[1,128], index: 3, kind: input, shape index: {}]   ;;  %s3085_s4 = inlined_call_operand.vmem [shape: bf16[512,128], index: 4, kind: output, shape index: {}]  }
   0x1   :  { %v1511_v0 = vld [vmem:[%s3081_s1 + $0x38] sm:$0xff]  ;;  %v1510_v1 = vld [vmem:[%s3081_s1 + $0x30] sm:$0xff]  ;;  %v1509_v2 = vld [vmem:[%s3081_s1 + $0x28] sm:$0xff] }
   0x2   :  { %337 = vmatpush.bf16.msra.mxu0 %v1511_v0  ;;  %1703 = vmatpush.bf16.msra.mxu1 %v1511_v0  ;;  %v1508_v3 = vld [vmem:[%s3081_s1 + $0x20] sm:$0xff]  ;;  %v1507_v4 = vld [vmem:[%s3081_s1 + $0x18] sm:$0xff]  ;;  %v1506_v5 = vld [vmem:[%s3081_s1 + $0x10] sm:$0xff] }
   0x3   :  { %1704 = vmatpush.bf16.msra.mxu2 %v1511_v0  ;;  %1705 = vmatpush.bf16.msra.mxu3 %v1511_v0  ;;  %v1505_v6 = vld [vmem:[%s3081_s1 + $0x8] sm:$0xff]  ;;  %v1504_v7 = vld [vmem:[%s3081_s1] sm:$0xff]  ;;  %v1474_v13 = vld [vmem:[%s3082_s0 + $0x10] sm:$0xff] }
   0x4   :  { %v1472_v8 = vld [vmem:[%s3082_s0] sm:$0xff]  ;;  %v1473_v10 = vld [vmem:[%s3082_s0 + $0x8] sm:$0xff]  ;;  %v1482_v14 = vld [vmem:[%s3082_s0 + $0x50] sm:$0xff] }
   0x5   :  { %v1480_v9 = vld [vmem:[%s3082_s0 + $0x40] sm:$0xff]  ;;  %v1481_v11 = vld [vmem:[%s3082_s0 + $0x48] sm:$0xff]  ;;  %v1475_v16 = vld [vmem:[%s3082_s0 + $0x18] sm:$0xff] }
   0x6   :  { %338 = vmatpush.bf16.msra.mxu0 %v1510_v1  ;;  %1706 = vmatpush.bf16.msra.mxu1 %v1510_v1  ;;  %v1488_v12 = vld [vmem:[%s3082_s0 + $0x80] sm:$0xff]  ;;  %v1489_v15 = vld [vmem:[%s3082_s0 + $0x88] sm:$0xff]  ;;  %v1483_v17 = vld [vmem:[%s3082_s0 + $0x58] sm:$0xff] }
   0x7   :  { %1707 = vmatpush.bf16.msra.mxu2 %v1510_v1  ;;  %1708 = vmatpush.bf16.msra.mxu3 %v1510_v1  ;;  %v1490_v18 = vld [vmem:[%s3082_s0 + $0x90] sm:$0xff]  ;;  %v1496_v19 = vld [vmem:[%s3082_s0 + $0xc0] sm:$0xff]  ;;  %v1491_v22 = vld [vmem:[%s3082_s0 + $0x98] sm:$0xff] }
   0x8   :  { %v1476_v20 = vld [vmem:[%s3082_s0 + $0x20] sm:$0xff]  ;;  %v1497_v23 = vld [vmem:[%s3082_s0 + $0xc8] sm:$0xff]  ;;  %v1498_v27 = vld [vmem:[%s3082_s0 + $0xd0] sm:$0xff] }
   0x9   :  { %v1484_v21 = vld [vmem:[%s3082_s0 + $0x60] sm:$0xff]  ;;  %v1477_v24 = vld [vmem:[%s3082_s0 + $0x28] sm:$0xff]  ;;  %v1478_v28 = vld [vmem:[%s3082_s0 + $0x30] sm:$0xff] }
   0xa   :  { %339 = vmatpush.bf16.msra.mxu0 %v1509_v2  ;;  %1709 = vmatpush.bf16.msra.mxu1 %v1509_v2  ;;  %v1485_v25 = vld [vmem:[%s3082_s0 + $0x68] sm:$0xff]  ;;  %v1492_v26 = vld [vmem:[%s3082_s0 + $0xa0] sm:$0xff]  ;;  %v1486_v29 = vld [vmem:[%s3082_s0 + $0x70] sm:$0xff] }
   0xb   :  { %1710 = vmatpush.bf16.msra.mxu2 %v1509_v2  ;;  %1711 = vmatpush.bf16.msra.mxu3 %v1509_v2  ;;  %v1493_v30 = vld [vmem:[%s3082_s0 + $0xa8] sm:$0xff]  ;;  %v1499_v31 = vld [vmem:[%s3082_s0 + $0xd8] sm:$0xff]  ;;  %v1494_v34 = vld [vmem:[%s3082_s0 + $0xb0] sm:$0xff] }
   0xc   :  { %v1479_v32 = vld [vmem:[%s3082_s0 + $0x38] sm:$0xff]  ;;  %v1500_v35 = vld [vmem:[%s3082_s0 + $0xe0] sm:$0xff]  ;;  %v1501_v38 = vld [vmem:[%s3082_s0 + $0xe8] sm:$0xff] }
   0xd   :  { %v1487_v33 = vld [vmem:[%s3082_s0 + $0x78] sm:$0xff]  ;;  %v1502_v43 = vld [vmem:[%s3082_s0 + $0xf0] sm:$0xff] }
   0xe   :  { %340 = vmatpush.bf16.msra.mxu0 %v1508_v3  ;;  %1712 = vmatpush.bf16.msra.mxu1 %v1508_v3  ;;  %v1495_v37 = vld [vmem:[%s3082_s0 + $0xb8] sm:$0xff] }
   0xf   :  { %1713 = vmatpush.bf16.msra.mxu2 %v1508_v3  ;;  %1714 = vmatpush.bf16.msra.mxu3 %v1508_v3  ;;  %v1503_v49 = vld [vmem:[%s3082_s0 + $0xf8] sm:$0xff] }
  0x12   :  { %341 = vmatpush.bf16.msra.mxu0 %v1507_v4  ;;  %1715 = vmatpush.bf16.msra.mxu1 %v1507_v4 }
  0x13   :  { %1716 = vmatpush.bf16.msra.mxu2 %v1507_v4  ;;  %1717 = vmatpush.bf16.msra.mxu3 %v1507_v4 }
  0x16   :  { %342 = vmatpush.bf16.msra.mxu0 %v1506_v5  ;;  %1718 = vmatpush.bf16.msra.mxu1 %v1506_v5 }
  0x17   :  { %1719 = vmatpush.bf16.msra.mxu2 %v1506_v5  ;;  %1720 = vmatpush.bf16.msra.mxu3 %v1506_v5 }
  0x1a   :  { %343 = vmatpush.bf16.msra.mxu0 %v1505_v6  ;;  %1721 = vmatpush.bf16.msra.mxu1 %v1505_v6 }
  0x1b   :  { %1722 = vmatpush.bf16.msra.mxu2 %v1505_v6  ;;  %1723 = vmatpush.bf16.msra.mxu3 %v1505_v6 }
  0x1e   :  { %344 = vmatpush.bf16.msra.mxu0 %v1504_v7  ;;  %1724 = vmatpush.bf16.msra.mxu1 %v1504_v7 }
  0x1f   :  { %1725 = vmatpush.bf16.msra.mxu2 %v1504_v7  ;;  %1726 = vmatpush.bf16.msra.mxu3 %v1504_v7 }
  0x21   :  { %345 = vmatmul.bf16.vlgmr.msra.gmra.mxu0 %v1472_v8  ;;  %385 = vmatmul.bf16.vlgmr.msra.gmra.mxu1 %v1480_v9 }
  0x22   :  { %425 = vmatmul.bf16.vlgmr.msra.gmra.mxu2 %v1488_v12  ;;  %465 = vmatmul.bf16.vlgmr.msra.gmra.mxu3 %v1496_v19 }
  0x31   :  { %350 = vmatmul.bf16.gmra.mxu0 %v1473_v10  ;;  %390 = vmatmul.bf16.gmra.mxu1 %v1481_v11 }
  0x32   :  { %430 = vmatmul.bf16.gmra.mxu2 %v1489_v15  ;;  %470 = vmatmul.bf16.gmra.mxu3 %v1497_v23 }
  0x41   :  { %355 = vmatmul.bf16.gmra.mxu0 %v1474_v13  ;;  %395 = vmatmul.bf16.gmra.mxu1 %v1482_v14 }
  0x42   :  { %435 = vmatmul.bf16.gmra.mxu2 %v1490_v18  ;;  %475 = vmatmul.bf16.gmra.mxu3 %v1498_v27 }
  0x51   :  { %360 = vmatmul.bf16.gmra.mxu0 %v1475_v16  ;;  %400 = vmatmul.bf16.gmra.mxu1 %v1483_v17 }
  0x52   :  { %440 = vmatmul.bf16.gmra.mxu2 %v1491_v22  ;;  %480 = vmatmul.bf16.gmra.mxu3 %v1499_v31 }
  0x61   :  { %365 = vmatmul.bf16.gmra.mxu0 %v1476_v20  ;;  %405 = vmatmul.bf16.gmra.mxu1 %v1484_v21 }
  0x62   :  { %445 = vmatmul.bf16.gmra.mxu2 %v1492_v26  ;;  %485 = vmatmul.bf16.gmra.mxu3 %v1500_v35 }
  0x71   :  { %370 = vmatmul.bf16.gmra.mxu0 %v1477_v24  ;;  %410 = vmatmul.bf16.gmra.mxu1 %v1485_v25 }
  0x72   :  { %450 = vmatmul.bf16.gmra.mxu2 %v1493_v30  ;;  %490 = vmatmul.bf16.gmra.mxu3 %v1501_v38 }
  0x81   :  { %375 = vmatmul.bf16.gmra.mxu0 %v1478_v28  ;;  %415 = vmatmul.bf16.gmra.mxu1 %v1486_v29 }
  0x82   :  { %455 = vmatmul.bf16.gmra.mxu2 %v1494_v34  ;;  %495 = vmatmul.bf16.gmra.mxu3 %v1502_v43 }
  0x91   :  { %380 = vmatmul.bf16.gmra.mxu0 %v1479_v32  ;;  %420 = vmatmul.bf16.gmra.mxu1 %v1487_v33 }
  0x92   :  { %460 = vmatmul.bf16.gmra.mxu2 %v1495_v37  ;;  %500 = vmatmul.bf16.gmra.mxu3 %v1503_v49 }
  0x9e   :  { %v1862_v36 = vpop.f32.mrf.mxu0  ;;  %v1870_v39 = vpop.f32.mrf.mxu1 }
  0xa5   :  { %v1889_v48 = vpop.f32.mrf.mxu2  ;;  %v1920_v63 = vpop.f32.mrf.mxu3 }
  0xa6   :  { %v1872_v40 = vpop.f32.mrf.mxu0  ;;  %v1874_v41 = vpop.f32.mrf.mxu1  ;;  %3177 = vst [vmem:[#allocation7_spill] sm:$0xff] %v1889_v48 }
  0xa7   :  { %3173 = vst [vmem:[#allocation3_spill] sm:$0xff] %v1872_v40  ;;  %v634_v6 = vadd.f32 %v1872_v40, %v1862_v36 }
  0xad   :  { %v1898_v52 = vpop.f32.mrf.mxu2  ;;  %v1928_v3 = vpop.f32.mrf.mxu3 }
  0xae   :  { %v1876_v42 = vpop.f32.mrf.mxu0  ;;  %v1881_v44 = vpop.f32.mrf.mxu1  ;;  %3178 = vst [vmem:[#allocation8_spill] sm:$0xff] %v1898_v52 }
  0xaf   :  { %3174 = vst [vmem:[#allocation4_spill] sm:$0xff] %v1876_v42  ;;  %v635_v9 = vadd.f32 %v634_v6, %v1876_v42 }
  0xb5   :  { %v1904_v55 = vpop.f32.mrf.mxu2  ;;  %v1938_v8 = vpop.f32.mrf.mxu3 }
  0xb6   :  { %v1883_v45 = vpop.f32.mrf.mxu0  ;;  %v1887_v47 = vpop.f32.mrf.mxu1  ;;  %3179 = vst [vmem:[#allocation9_spill] sm:$0xff] %v1904_v55 }
  0xb7   :  { %3175 = vst [vmem:[#allocation5_spill] sm:$0xff] %v1883_v45  ;;  %v636_v11 = vadd.f32 %v635_v9, %v1883_v45 }
  0xbd   :  { %v1910_v58 = vpop.f32.mrf.mxu2  ;;  %v1953_v18 = vpop.f32.mrf.mxu3 }
  0xbe   :  { %v1885_v46 = vpop.f32.mrf.mxu0  ;;  %v1896_v51 = vpop.f32.mrf.mxu1  ;;  %3184 = vst [vmem:[#allocation14_spill] sm:$0xff] %v1953_v18 }
  0xbf   :  { %3176 = vst [vmem:[#allocation6_spill] sm:$0xff] %v1885_v46  ;;  %v637_v12 = vadd.f32 %v636_v11, %v1885_v46 }
  0xc5   :  { %v1918_v62 = vpop.f32.mrf.mxu2  ;;  %v1966_v27 = vpop.f32.mrf.mxu3 }
  0xc6   :  { %v1894_v50 = vpop.f32.mrf.mxu0  ;;  %v1902_v54 = vpop.f32.mrf.mxu1  ;;  %3180 = vst [vmem:[#allocation10_spill] sm:$0xff] %v1918_v62 }
  0xc7   :  { %v638_v13 = vadd.f32 %v637_v12, %v1894_v50  ;;  %3186 = vst [vmem:[#allocation16_spill] sm:$0xff] %v1966_v27 }
  0xcd   :  { %v1926_v2 = vpop.f32.mrf.mxu2  ;;  %v1979_v37 = vpop.f32.mrf.mxu3 }
  0xce   :  { %v1900_v53 = vpop.f32.mrf.mxu0  ;;  %v1908_v57 = vpop.f32.mrf.mxu1  ;;  %3181 = vst [vmem:[#allocation11_spill] sm:$0xff] %v1926_v2 }
  0xcf   :  { %v639_v15 = vadd.f32 %v638_v13, %v1900_v53  ;;  %3188 = vst [vmem:[#allocation18_spill] sm:$0xff] %v1979_v37 }
  0xd5   :  { %v1936_v7 = vpop.f32.mrf.mxu2  ;;  %v1990_v13 = vpop.f32.mrf.mxu3 }
  0xd6   :  { %v1906_v56 = vpop.f32.mrf.mxu0  ;;  %v1916_v61 = vpop.f32.mrf.mxu1  ;;  %3182 = vst [vmem:[#allocation12_spill] sm:$0xff] %v1936_v7 }
  0xd7   :  { %v640_v19 = vadd.f32 %v639_v15, %v1906_v56  ;;  %3191 = vst [vmem:[#allocation21_spill] sm:$0xff] %v1990_v13 }
  0xdd   :  { %v1949_v16 = vpop.f32.mrf.mxu2 }
  0xde   :  { %v1912_v59 = vpop.f32.mrf.mxu0  ;;  %v1924_v1 = vpop.f32.mrf.mxu1  ;;  %3183 = vst [vmem:[#allocation13_spill] sm:$0xff] %v1949_v16 }
  0xdf   :  { %v641_v20 = vadd.f32 %v640_v19, %v1912_v59 }
  0xe5   :  { %v1964_v26 = vpop.f32.mrf.mxu2 }
  0xe6   :  { %v1914_v60 = vpop.f32.mrf.mxu0  ;;  %v1932_v5 = vpop.f32.mrf.mxu1 }
  0xe7   :  { %v642_v21 = vadd.f32 %v641_v20, %v1914_v60 }
  0xed   :  { %v1977_v35 = vpop.f32.mrf.mxu2 }
  0xee   :  { %v1922_v0 = vpop.f32.mrf.mxu0  ;;  %v1946_v14 = vpop.f32.mrf.mxu1  ;;  %3187 = vst [vmem:[#allocation17_spill] sm:$0xff] %v1977_v35 }
  0xef   :  { %v643_v22 = vadd.f32 %v642_v21, %v1922_v0 }
  0xf5   :  { %v1988_v12 = vpop.f32.mrf.mxu2 }
  0xf6   :  { %v1930_v4 = vpop.f32.mrf.mxu0  ;;  %v1961_v24 = vpop.f32.mrf.mxu1  ;;  %3190 = vst [vmem:[#allocation20_spill] sm:$0xff] %v1988_v12 }
  0xf7   :  { %3185 = vst [vmem:[#allocation15_spill] sm:$0xff] %v1961_v24  ;;  %v644_v25 = vadd.f32 %v643_v22, %v1930_v4 }
  0xfe   :  { %v1941_v10 = vpop.f32.mrf.mxu0  ;;  %v1974_v33 = vpop.f32.mrf.mxu1 }
  0xff   :  { %v645_v28 = vadd.f32 %v644_v25, %v1941_v10 }
 0x106   :  { %v1951_v17 = vpop.f32.mrf.mxu0  ;;  %v1985_v9 = vpop.f32.mrf.mxu1 }
 0x107   :  { %v646_v29 = vadd.f32 %v645_v28, %v1951_v17  ;;  %3189 = vst [vmem:[#allocation19_spill] sm:$0xff] %v1985_v9  ;;  %v1999_v28 = vpop.f32.mrf.mxu2 }
 0x108   :  { %3192 = vst [vmem:[#allocation22_spill] sm:$0xff] %v1999_v28 }
 0x10e   :  { %v1959_v23 = vpop.f32.mrf.mxu0  ;;  %v1996_v22 = vpop.f32.mrf.mxu1 }
 0x10f   :  { %v647_v30 = vadd.f32 %v646_v29, %v1959_v23  ;;  %v2001_v29 = vpop.f32.mrf.mxu3 }
 0x110   :  { %3193 = vst [vmem:[#allocation23_spill] sm:$0xff] %v2001_v29 }
 0x116   :  { %v1971_v31 = vpop.f32.mrf.mxu0 }
 0x117   :  { %v648_v32 = vadd.f32 %v647_v30, %v1971_v31 }
 0x119   :  { %v649_v34 = vadd.f32 %v648_v32, %v1870_v39 }
 0x11b   :  { %v650_v38 = vadd.f32 %v649_v34, %v1874_v41 }
 0x11d   :  { %v651_v43 = vadd.f32 %v650_v38, %v1881_v44 }
 0x11f   :  { %v652_v49 = vadd.f32 %v651_v43, %v1887_v47  ;;  %v2007_v43 = vpop.f32.mrf.mxu1 }
 0x120   :  { %3194 = vst [vmem:[#allocation24_spill] sm:$0xff] %v2007_v43 }
 0x121   :  { %v653_v6 = vadd.f32 %v652_v49, %v1896_v51 }
 0x123   :  { %v654_v11 = vadd.f32 %v653_v6, %v1902_v54  ;;  %v2010_v6 = vpop.f32.mrf.mxu2 }
 0x125   :  { %v655_v15 = vadd.f32 %v654_v11, %v1908_v57  ;;  %v2012_v11 = vpop.f32.mrf.mxu3 }
 0x126   :  { %3195 = vst [vmem:[#allocation25_spill] sm:$0xff] %v2012_v11 }
 0x127   :  { %v656_v19 = vadd.f32 %v655_v15, %v1916_v61 }
 0x129   :  { %v657_v20 = vadd.f32 %v656_v19, %v1924_v1 }
 0x12b   :  { %v658_v21 = vadd.f32 %v657_v20, %v1932_v5 }
 0x12d   :  { %v659_v25 = vadd.f32 %v658_v21, %v1946_v14 }
 0x12f   :  { %v660_v30 = vadd.f32 %v659_v25, %v1961_v24 }
 0x131   :  { %v661_v32 = vadd.f32 %v660_v30, %v1974_v33  ;;  %v2019_v30 = vpop.f32.mrf.mxu2 }
 0x133   :  { %v662_v34 = vadd.f32 %v661_v32, %v1985_v9  ;;  %v2021_v32 = vpop.f32.mrf.mxu3 }
 0x134   :  { %3196 = vst [vmem:[#allocation26_spill] sm:$0xff] %v2021_v32 }
 0x135   :  { %v663_v38 = vadd.f32 %v662_v34, %v1996_v22 }
 0x137   :  { %v664_v49 = vadd.f32 %v663_v38, %v2007_v43 }
 0x139   :  { %v665_v15 = vadd.f32 %v664_v49, %v1889_v48 }
 0x13b   :  { %v666_v19 = vadd.f32 %v665_v15, %v1898_v52  ;;  %v2028_v52 = vpop.f32.mrf.mxu2 }
 0x13c   :  { %3197 = vst [vmem:[#allocation27_spill] sm:$0xff] %v2028_v52 }
 0x13d   :  { %v667_v20 = vadd.f32 %v666_v19, %v1904_v55  ;;  %v2030_v19 = vpop.f32.mrf.mxu3 }
 0x13e   :  { %3198 = vst [vmem:[#allocation28_spill] sm:$0xff] %v2030_v19 }
 0x13f   :  { %v668_v21 = vadd.f32 %v667_v20, %v1910_v58 }
 0x141   :  { %v669_v25 = vadd.f32 %v668_v21, %v1918_v62 }
 0x143   :  { %v670_v34 = vadd.f32 %v669_v25, %v1926_v2 }
 0x145   :  { %v671_v38 = vadd.f32 %v670_v34, %v1936_v7  ;;  %v2037_v7 = vpop.f32.mrf.mxu2 }
 0x146   :  { %3199 = vst [vmem:[#allocation29_spill] sm:$0xff] %v2037_v7 }
 0x147   :  { %v672_v43 = vadd.f32 %v671_v38, %v1949_v16  ;;  %v2039_v38 = vpop.f32.mrf.mxu3 }
 0x148   :  { %3200 = vst [vmem:[#allocation30_spill] sm:$0xff] %v2039_v38 }
 0x149   :  { %v673_v49 = vadd.f32 %v672_v43, %v1964_v26 }
 0x14b   :  { %v674_v15 = vadd.f32 %v673_v49, %v1977_v35 }
 0x14d   :  { %v675_v20 = vadd.f32 %v674_v15, %v1988_v12 }
 0x14f   :  { %v676_v21 = vadd.f32 %v675_v20, %v1999_v28  ;;  %v2046_v28 = vpop.f32.mrf.mxu3 }
 0x150   :  { %3201 = vst [vmem:[#allocation31_spill] sm:$0xff] %v2046_v28 }
 0x151   :  { %v677_v62 = vadd.f32 %v676_v21, %v2010_v6 }
 0x153   :  { %v678_v25 = vadd.f32 %v677_v62, %v2019_v30 }
 0x155   :  { %v679_v34 = vadd.f32 %v678_v25, %v2028_v52 }
 0x157   :  { %v680_v43 = vadd.f32 %v679_v34, %v2037_v7  ;;  %v2053_v7 = vpop.f32.mrf.mxu3 }
 0x158   :  { %3202 = vst [vmem:[#allocation32_spill] sm:$0xff] %v2053_v7 }
 0x159   :  { %v681_v49 = vadd.f32 %v680_v43, %v1920_v63 }
 0x15b   :  { %v682_v35 = vadd.f32 %v681_v49, %v1928_v3 }
 0x15d   :  { %v683_v15 = vadd.f32 %v682_v35, %v1938_v8 }
 0x15f   :  { %v684_v20 = vadd.f32 %v683_v15, %v1953_v18  ;;  %v2059_v18 = vpop.f32.mrf.mxu3 }
 0x160   :  { %3203 = vst [vmem:[#allocation33_spill] sm:$0xff] %v2059_v18 }
 0x161   :  { %v685_v62 = vadd.f32 %v684_v20, %v1966_v27 }
 0x163   :  { %v686_v21 = vadd.f32 %v685_v62, %v1979_v37 }
 0x165   :  { %v687_v25 = vadd.f32 %v686_v21, %v1990_v13 }
 0x167   :  { %v688_v52 = vadd.f32 %v687_v25, %v2001_v29  ;;  %v2063_v21 = vpop.f32.mrf.mxu3 }
 0x168   :  { %3204 = vst [vmem:[#allocation34_spill] sm:$0xff] %v2063_v21 }
 0x169   :  { %v689_v34 = vadd.f32 %v688_v52, %v2012_v11 }
 0x16b   :  { %v690_v43 = vadd.f32 %v689_v34, %v2021_v32 }
 0x16d   :  { %v691_v35 = vadd.f32 %v690_v43, %v2030_v19 }
 0x16f   :  { %v692_v49 = vadd.f32 %v691_v35, %v2039_v38 }
 0x171   :  { %v693_v15 = vadd.f32 %v692_v49, %v2046_v28 }
 0x173   :  { %v694_v20 = vadd.f32 %v693_v15, %v2053_v7 }
 0x175   :  { %v695_v62 = vadd.f32 %v694_v20, %v2059_v18 }
 0x177   :  { %v696_v52 = vadd.f32 %v695_v62, %v2063_v21 }
 0x179   :  { %v697_v25 = vrot.slane %v696_v52, 4 }
 0x17b   :  { %v698_v11 = vadd.f32 %v697_v25, %v696_v52 }
 0x17d   :  { %v699_v29 = vrot.slane %v698_v11, 2 }
 0x17f   :  { %v700_v34 = vadd.f32 %v699_v29, %v698_v11 }
 0x181   :  { %v701_v32 = vrot.slane %v700_v34, 1 }
 0x183   :  { %v702_v43 = vadd.f32 %v701_v32, %v700_v34 }
 0x185   :  { %v2066_v19 = vmul.f32 0.001953125, %v702_v43 }
 0x187   :  { %v704_v35 = vsub.f32 %v1862_v36, %v2066_v19  ;;  %v705_v49 = vsub.f32 %v1872_v40, %v2066_v19  ;;  %v706_v15 = vsub.f32 %v1876_v42, %v2066_v19  ;;  %v707_v62 = vsub.f32 %v1883_v45, %v2066_v19 }
 0x188   :  { %v708_v29 = vsub.f32 %v1885_v46, %v2066_v19  ;;  %v709_v52 = vsub.f32 %v1894_v50, %v2066_v19  ;;  %v710_v43 = vsub.f32 %v1900_v53, %v2066_v19  ;;  %v712_v46 = vsub.f32 %v1912_v59, %v2066_v19 }
 0x189   :  { %v768_v20 = vmul.f32 %v704_v35, %v704_v35  ;;  %v769_v18 = vmul.f32 %v705_v49, %v705_v49  ;;  %v770_v11 = vmul.f32 %v706_v15, %v706_v15  ;;  %v771_v25 = vmul.f32 %v707_v62, %v707_v62 }
 0x18a   :  { %v772_v40 = vmul.f32 %v708_v29, %v708_v29  ;;  %v711_v35 = vsub.f32 %v1906_v56, %v2066_v19  ;;  %v773_v49 = vmul.f32 %v709_v52, %v709_v52  ;;  %v774_v15 = vmul.f32 %v710_v43, %v710_v43 }
 0x18b   :  { %v832_v32 = vadd.f32 %v769_v18, %v768_v20  ;;  %v713_v20 = vsub.f32 %v1914_v60, %v2066_v19  ;;  %v776_v29 = vmul.f32 %v712_v46, %v712_v46 }
 0x18c   :  { %v775_v62 = vmul.f32 %v711_v35, %v711_v35 }
 0x18d   :  { %v833_v34 = vadd.f32 %v832_v32, %v770_v11  ;;  %v714_v32 = vsub.f32 %v1922_v0, %v2066_v19  ;;  %v777_v52 = vmul.f32 %v713_v20, %v713_v20 }
 0x18f   :  { %v834_v42 = vadd.f32 %v833_v34, %v771_v25  ;;  %v715_v34 = vsub.f32 %v1930_v4, %v2066_v19  ;;  %v778_v43 = vmul.f32 %v714_v32, %v714_v32 }
 0x191   :  { %v835_v45 = vadd.f32 %v834_v42, %v772_v40  ;;  %v716_v42 = vsub.f32 %v1941_v10, %v2066_v19  ;;  %v779_v35 = vmul.f32 %v715_v34, %v715_v34 }
 0x193   :  { %v836_v18 = vadd.f32 %v835_v45, %v773_v49  ;;  %v717_v49 = vsub.f32 %v1951_v17, %v2066_v19  ;;  %v780_v46 = vmul.f32 %v716_v42, %v716_v42 }
 0x195   :  { %v837_v11 = vadd.f32 %v836_v18, %v774_v15  ;;  %v718_v18 = vsub.f32 %v1959_v23, %v2066_v19  ;;  %v781_v20 = vmul.f32 %v717_v49, %v717_v49 }
 0x197   :  { %v838_v25 = vadd.f32 %v837_v11, %v775_v62  ;;  %v719_v11 = vsub.f32 %v1971_v31, %v2066_v19  ;;  %v782_v32 = vmul.f32 %v718_v18, %v718_v18 }
 0x199   :  { %v839_v40 = vadd.f32 %v838_v25, %v776_v29  ;;  %v720_v25 = vsub.f32 %v1870_v39, %v2066_v19  ;;  %v783_v34 = vmul.f32 %v719_v11, %v719_v11 }
 0x19b   :  { %v840_v45 = vadd.f32 %v839_v40, %v777_v52  ;;  %v721_v40 = vsub.f32 %v1874_v41, %v2066_v19  ;;  %v784_v42 = vmul.f32 %v720_v25, %v720_v25 }
 0x19d   :  { %v841_v15 = vadd.f32 %v840_v45, %v778_v43  ;;  %v722_v45 = vsub.f32 %v1881_v44, %v2066_v19  ;;  %v785_v49 = vmul.f32 %v721_v40, %v721_v40 }
 0x19f   :  { %v842_v62 = vadd.f32 %v841_v15, %v779_v35  ;;  %v723_v15 = vsub.f32 %v1887_v47, %v2066_v19  ;;  %v786_v18 = vmul.f32 %v722_v45, %v722_v45 }
 0x1a1   :  { %v843_v29 = vadd.f32 %v842_v62, %v780_v46  ;;  %v724_v62 = vsub.f32 %v1896_v51, %v2066_v19  ;;  %v787_v11 = vmul.f32 %v723_v15, %v723_v15 }
 0x1a3   :  { %v844_v52 = vadd.f32 %v843_v29, %v781_v20  ;;  %v725_v29 = vsub.f32 %v1902_v54, %v2066_v19  ;;  %v788_v25 = vmul.f32 %v724_v62, %v724_v62 }
 0x1a5   :  { %v845_v43 = vadd.f32 %v844_v52, %v782_v32  ;;  %v726_v52 = vsub.f32 %v1908_v57, %v2066_v19  ;;  %v789_v40 = vmul.f32 %v725_v29, %v725_v29 }
 0x1a7   :  { %v846_v35 = vadd.f32 %v845_v43, %v783_v34  ;;  %v727_v43 = vsub.f32 %v1916_v61, %v2066_v19  ;;  %v790_v45 = vmul.f32 %v726_v52, %v726_v52 }
 0x1a9   :  { %v847_v46 = vadd.f32 %v846_v35, %v784_v42  ;;  %v728_v35 = vsub.f32 %v1924_v1, %v2066_v19  ;;  %v791_v15 = vmul.f32 %v727_v43, %v727_v43 }
 0x1ab   :  { %v848_v20 = vadd.f32 %v847_v46, %v785_v49  ;;  %v729_v46 = vsub.f32 %v1932_v5, %v2066_v19  ;;  %v792_v62 = vmul.f32 %v728_v35, %v728_v35 }
 0x1ad   :  { %v849_v32 = vadd.f32 %v848_v20, %v786_v18  ;;  %v730_v20 = vsub.f32 %v1946_v14, %v2066_v19  ;;  %v793_v29 = vmul.f32 %v729_v46, %v729_v46 }
 0x1af   :  { %v850_v34 = vadd.f32 %v849_v32, %v787_v11  ;;  %v731_v32 = vsub.f32 %v1961_v24, %v2066_v19  ;;  %v794_v52 = vmul.f32 %v730_v20, %v730_v20 }
 0x1b1   :  { %v851_v42 = vadd.f32 %v850_v34, %v788_v25  ;;  %v732_v34 = vsub.f32 %v1974_v33, %v2066_v19  ;;  %v795_v43 = vmul.f32 %v731_v32, %v731_v32 }
 0x1b3   :  { %v852_v49 = vadd.f32 %v851_v42, %v789_v40  ;;  %v733_v42 = vsub.f32 %v1985_v9, %v2066_v19  ;;  %v796_v35 = vmul.f32 %v732_v34, %v732_v34 }
 0x1b5   :  { %v853_v18 = vadd.f32 %v852_v49, %v790_v45  ;;  %v734_v49 = vsub.f32 %v1996_v22, %v2066_v19  ;;  %v797_v46 = vmul.f32 %v733_v42, %v733_v42 }
 0x1b7   :  { %v854_v11 = vadd.f32 %v853_v18, %v791_v15  ;;  %v3205_v18 = vld [vmem:[#allocation24_spill] sm:$0xff]  ;;  %v798_v20 = vmul.f32 %v734_v49, %v734_v49 }
 0x1b8   :  { %v735_v24 = vsub.f32 %v3205_v18, %v2066_v19 }
 0x1b9   :  { %v855_v25 = vadd.f32 %v854_v11, %v792_v62  ;;  %v736_v11 = vsub.f32 %v1889_v48, %v2066_v19 }
 0x1ba   :  { %v799_v32 = vmul.f32 %v735_v24, %v735_v24 }
 0x1bb   :  { %v856_v40 = vadd.f32 %v855_v25, %v793_v29  ;;  %v3206_v25 = vld [vmem:[#allocation8_spill] sm:$0xff]  ;;  %v800_v34 = vmul.f32 %v736_v11, %v736_v11 }
 0x1bc   :  { %v737_v9 = vsub.f32 %v3206_v25, %v2066_v19 }
 0x1bd   :  { %v857_v45 = vadd.f32 %v856_v40, %v794_v52  ;;  %v738_v40 = vsub.f32 %v1904_v55, %v2066_v19 }
 0x1be   :  { %v801_v42 = vmul.f32 %v737_v9, %v737_v9 }
 0x1bf   :  { %v858_v15 = vadd.f32 %v857_v45, %v795_v43  ;;  %v739_v45 = vsub.f32 %v1910_v58, %v2066_v19  ;;  %v802_v49 = vmul.f32 %v738_v40, %v738_v40 }
 0x1c1   :  { %v859_v62 = vadd.f32 %v858_v15, %v796_v35  ;;  %v3207_v15 = vld [vmem:[#allocation10_spill] sm:$0xff]  ;;  %v803_v24 = vmul.f32 %v739_v45, %v739_v45 }
 0x1c2   :  { %v740_v48 = vsub.f32 %v3207_v15, %v2066_v19 }
 0x1c3   :  { %v860_v29 = vadd.f32 %v859_v62, %v797_v46  ;;  %v741_v62 = vsub.f32 %v1926_v2, %v2066_v19 }
 0x1c4   :  { %v804_v11 = vmul.f32 %v740_v48, %v740_v48 }
 0x1c5   :  { %v861_v52 = vadd.f32 %v860_v29, %v798_v20  ;;  %v3208_v29 = vld [vmem:[#allocation12_spill] sm:$0xff]  ;;  %v805_v9 = vmul.f32 %v741_v62, %v741_v62 }
 0x1c6   :  { %v742_v55 = vsub.f32 %v3208_v29, %v2066_v19 }
 0x1c7   :  { %v862_v43 = vadd.f32 %v861_v52, %v799_v32  ;;  %v743_v52 = vsub.f32 %v1949_v16, %v2066_v19 }
 0x1c8   :  { %v806_v40 = vmul.f32 %v742_v55, %v742_v55 }
 0x1c9   :  { %v863_v35 = vadd.f32 %v862_v43, %v800_v34  ;;  %v744_v43 = vsub.f32 %v1964_v26, %v2066_v19  ;;  %v807_v45 = vmul.f32 %v743_v52, %v743_v52 }
 0x1cb   :  { %v864_v46 = vadd.f32 %v863_v35, %v801_v42  ;;  %v3209_v35 = vld [vmem:[#allocation17_spill] sm:$0xff]  ;;  %v808_v48 = vmul.f32 %v744_v43, %v744_v43 }
 0x1cc   :  { %v745_v2 = vsub.f32 %v3209_v35, %v2066_v19 }
 0x1cd   :  { %v865_v20 = vadd.f32 %v864_v46, %v802_v49  ;;  %v746_v46 = vsub.f32 %v1988_v12, %v2066_v19 }
 0x1ce   :  { %v809_v62 = vmul.f32 %v745_v2, %v745_v2 }
 0x1cf   :  { %v866_v32 = vadd.f32 %v865_v20, %v803_v24  ;;  %v3210_v20 = vld [vmem:[#allocation22_spill] sm:$0xff]  ;;  %v810_v55 = vmul.f32 %v746_v46, %v746_v46 }
 0x1d0   :  { %v747_v16 = vsub.f32 %v3210_v20, %v2066_v19 }
 0x1d1   :  { %v867_v34 = vadd.f32 %v866_v32, %v804_v11  ;;  %v748_v32 = vsub.f32 %v2010_v6, %v2066_v19 }
 0x1d2   :  { %v811_v52 = vmul.f32 %v747_v16, %v747_v16 }
 0x1d3   :  { %v868_v42 = vadd.f32 %v867_v34, %v805_v9  ;;  %v749_v34 = vsub.f32 %v2019_v30, %v2066_v19  ;;  %v812_v43 = vmul.f32 %v748_v32, %v748_v32 }
 0x1d5   :  { %v869_v49 = vadd.f32 %v868_v42, %v806_v40  ;;  %v3211_v42 = vld [vmem:[#allocation27_spill] sm:$0xff]  ;;  %v813_v2 = vmul.f32 %v749_v34, %v749_v34 }
 0x1d6   :  { %v750_v12 = vsub.f32 %v3211_v42, %v2066_v19 }
 0x1d7   :  { %v870_v24 = vadd.f32 %v869_v49, %v807_v45  ;;  %v3212_v49 = vld [vmem:[#allocation29_spill] sm:$0xff] }
 0x1d8   :  { %v751_v20 = vsub.f32 %v3212_v49, %v2066_v19  ;;  %v814_v46 = vmul.f32 %v750_v12, %v750_v12 }
 0x1d9   :  { %v871_v11 = vadd.f32 %v870_v24, %v808_v48  ;;  %v752_v24 = vsub.f32 %v1920_v63, %v2066_v19 }
 0x1da   :  { %v815_v16 = vmul.f32 %v751_v20, %v751_v20 }
 0x1db   :  { %v872_v9 = vadd.f32 %v871_v11, %v809_v62  ;;  %v753_v11 = vsub.f32 %v1928_v3, %v2066_v19  ;;  %v816_v32 = vmul.f32 %v752_v24, %v752_v24 }
 0x1dd   :  { %v873_v40 = vadd.f32 %v872_v9, %v810_v55  ;;  %v754_v9 = vsub.f32 %v1938_v8, %v2066_v19  ;;  %v817_v34 = vmul.f32 %v753_v11, %v753_v11 }
 0x1df   :  { %v874_v45 = vadd.f32 %v873_v40, %v811_v52  ;;  %v3213_v40 = vld [vmem:[#allocation14_spill] sm:$0xff]  ;;  %v818_v12 = vmul.f32 %v754_v9, %v754_v9 }
 0x1e0   :  { %v755_v49 = vsub.f32 %v3213_v40, %v2066_v19 }
 0x1e1   :  { %v875_v48 = vadd.f32 %v874_v45, %v812_v43  ;;  %v756_v45 = vsub.f32 %v1966_v27, %v2066_v19 }
 0x1e2   :  { %v819_v20 = vmul.f32 %v755_v49, %v755_v49 }
 0x1e3   :  { %v876_v62 = vadd.f32 %v875_v48, %v813_v2  ;;  %v757_v48 = vsub.f32 %v1979_v37, %v2066_v19  ;;  %v820_v24 = vmul.f32 %v756_v45, %v756_v45 }
 0x1e5   :  { %v877_v55 = vadd.f32 %v876_v62, %v814_v46  ;;  %v758_v62 = vsub.f32 %v1990_v13, %v2066_v19  ;;  %v821_v11 = vmul.f32 %v757_v48, %v757_v48 }
 0x1e7   :  { %v878_v52 = vadd.f32 %v877_v55, %v815_v16  ;;  %v3214_v55 = vld [vmem:[#allocation23_spill] sm:$0xff]  ;;  %v822_v9 = vmul.f32 %v758_v62, %v758_v62 }
 0x1e8   :  { %v759_v40 = vsub.f32 %v3214_v55, %v2066_v19 }
 0x1e9   :  { %v879_v43 = vadd.f32 %v878_v52, %v816_v32  ;;  %v3215_v52 = vld [vmem:[#allocation25_spill] sm:$0xff] }
 0x1ea   :  { %v760_v27 = vsub.f32 %v3215_v52, %v2066_v19  ;;  %v823_v49 = vmul.f32 %v759_v40, %v759_v40 }
 0x1eb   :  { %v880_v2 = vadd.f32 %v879_v43, %v817_v34  ;;  %v3216_v43 = vld [vmem:[#allocation26_spill] sm:$0xff] }
 0x1ec   :  { %v761_v37 = vsub.f32 %v3216_v43, %v2066_v19  ;;  %v824_v45 = vmul.f32 %v760_v27, %v760_v27 }
 0x1ed   :  { %v881_v46 = vadd.f32 %v880_v2, %v818_v12  ;;  %v3217_v2 = vld [vmem:[#allocation28_spill] sm:$0xff] }
 0x1ee   :  { %v762_v13 = vsub.f32 %v3217_v2, %v2066_v19  ;;  %v825_v48 = vmul.f32 %v761_v37, %v761_v37 }
 0x1ef   :  { %v882_v16 = vadd.f32 %v881_v46, %v819_v20  ;;  %v763_v46 = vsub.f32 %v2039_v38, %v2066_v19 }
 0x1f0   :  { %v826_v62 = vmul.f32 %v762_v13, %v762_v13 }
 0x1f1   :  { %v883_v32 = vadd.f32 %v882_v16, %v820_v24  ;;  %v764_v16 = vsub.f32 %v2046_v28, %v2066_v19  ;;  %v827_v40 = vmul.f32 %v763_v46, %v763_v46 }
 0x1f3   :  { %v884_v34 = vadd.f32 %v883_v32, %v821_v11  ;;  %v765_v32 = vsub.f32 %v2053_v7, %v2066_v19  ;;  %v828_v27 = vmul.f32 %v764_v16, %v764_v16 }
 0x1f5   :  { %v885_v12 = vadd.f32 %v884_v34, %v822_v9  ;;  %v3218_v34 = vld [vmem:[#allocation33_spill] sm:$0xff]  ;;  %v829_v37 = vmul.f32 %v765_v32, %v765_v32 }
 0x1f6   :  { %v766_v2 = vsub.f32 %v3218_v34, %v2066_v19 }
 0x1f7   :  { %v886_v20 = vadd.f32 %v885_v12, %v823_v49  ;;  %v767_v12 = vsub.f32 %v2063_v21, %v2066_v19 }
 0x1f9   :  { %v887_v24 = vadd.f32 %v886_v20, %v824_v45  ;;  %v830_v20 = vmul.f32 %v766_v2, %v766_v2  ;;  %v831_v28 = vmul.f32 %v767_v12, %v767_v12 }
 0x1fb   :  { %v888_v11 = vadd.f32 %v887_v24, %v825_v48 }
 0x1fd   :  { %v889_v9 = vadd.f32 %v888_v11, %v826_v62 }
 0x1ff   :  { %v890_v49 = vadd.f32 %v889_v9, %v827_v40 }
 0x201   :  { %v891_v45 = vadd.f32 %v890_v49, %v828_v27 }
 0x203   :  { %v892_v38 = vadd.f32 %v891_v45, %v829_v37  ;;  %v3220_v37 = vld [vmem:[#allocation4_spill] sm:$0xff] }
 0x205   :  { %v893_v13 = vadd.f32 %v892_v38, %v830_v20 }
 0x207   :  { %v894_v48 = vadd.f32 %v893_v13, %v831_v28  ;;  %v902_v28 = vld [vmem:[%s3083_s2] sm:$0x1]  ;;  %v3222_v13 = vld [vmem:[#allocation6_spill] sm:$0xff] }
 0x209   :  { %v895_v24 = vrot.slane %v894_v48, 4 }
 0x20b   :  { %v896_v43 = vadd.f32 %v895_v24, %v894_v48 }
 0x20d   :  { %v897_v7 = vrot.slane %v896_v43, 2 }
 0x20f   :  { %v898_v46 = vadd.f32 %v897_v7, %v896_v43 }
 0x211   :  { %v899_v62 = vrot.slane %v898_v46, 1 }
 0x213   :  { %v900_v11 = vadd.f32 %v899_v62, %v898_v46 }
 0x215   :  { %v901_v52 = vmul.f32 0.001953125, %v900_v11 }
 0x217   :  { %v903_v34 = vadd.f32 1e-05, %v901_v52  ;;  %v915_v52 = vld [vmem:[%s3084_s3] sm:$0x1] }
 0x219   :  { %1727 = vrsqrt.f32 %v903_v34  ;;  %vm910_vm1 = vweird.f32 %v903_v34 }
 0x21f   :  { %v1728_v16 = vpop.eup %1727 }
 0x220   :  { %v905_v40 = vmul.f32 %v1728_v16, %v903_v34  ;;  %vm911_vm0 = vweird.f32 %v1728_v16  ;;  %v3219_v34 = vld [vmem:[#allocation3_spill] sm:$0xff] }
 0x221   :  { %vm912_vm2 = vmor %vm910_vm1, %vm911_vm0 }
 0x222   :  { %v906_v9 = vmul.f32 %v1728_v16, %v905_v40  ;;  %v3224_v40 = vld [vmem:[#allocation19_spill] sm:$0xff] }
 0x224   :  { %v907_v21 = vmul.f32 0.5, %v906_v9  ;;  %v3225_v9 = vld [vmem:[#allocation7_spill] sm:$0xff] }
 0x226   :  { %v908_v32 = vsub.f32 1.5, %v907_v21 }
 0x228   :  { %v909_v27 = vmul.f32 %v1728_v16, %v908_v32 }
 0x22a   :  { %v913_v38 = vsel %vm912_vm2, %v1728_v16, %v909_v27  ;;  %v3223_v16 = vld [vmem:[#allocation15_spill] sm:$0xff]  ;;  %v3226_v27 = vld [vmem:[#allocation9_spill] sm:$0xff] }
 0x22b   :  { %v914_v7 = vmul.f32 %v913_v38, %v902_v28  ;;  %v3227_v38 = vld [vmem:[#allocation11_spill] sm:$0xff] }
 0x22d   :  { %v916_v43 = vmul.f32 %v914_v7, %v2066_v19  ;;  %v2200_v2 = vperm.slane %v914_v7, 0  ;;  %v3221_v19 = vld [vmem:[#allocation5_spill] sm:$0xff] }
 0x22f   :  { %v917_v49 = vsub.f32 %v915_v52, %v916_v43  ;;  %v2207_v21 = vmul.f32 %v2200_v2, %v1862_v36  ;;  %v2211_v12 = vmul.f32 %v2200_v2, %v3219_v34  ;;  %v2215_v45 = vmul.f32 %v2200_v2, %v3220_v37  ;;  %v3228_v43 = vld [vmem:[#allocation13_spill] sm:$0xff]  ;;  %v3229_v34 = vld [vmem:[#allocation20_spill] sm:$0xff] }
 0x230   :  { %v2219_v20 = vmul.f32 %v2200_v2, %v3221_v19  ;;  %v2223_v48 = vmul.f32 %v2200_v2, %v3222_v13  ;;  %v2227_v36 = vmul.f32 %v2200_v2, %v1894_v50  ;;  %v2231_v24 = vmul.f32 %v2200_v2, %v1900_v53  ;;  %v3230_v19 = vld [vmem:[#allocation22_spill] sm:$0xff] }
 0x231   :  { %v2235_v46 = vmul.f32 %v2200_v2, %v1906_v56  ;;  %v2239_v62 = vmul.f32 %v2200_v2, %v1912_v59  ;;  %v2243_v11 = vmul.f32 %v2200_v2, %v1914_v60  ;;  %v2247_v50 = vmul.f32 %v2200_v2, %v1922_v0 }
 0x232   :  { %v2251_v53 = vmul.f32 %v2200_v2, %v1930_v4  ;;  %v2255_v56 = vmul.f32 %v2200_v2, %v1941_v10  ;;  %v2259_v59 = vmul.f32 %v2200_v2, %v1951_v17  ;;  %v2263_v60 = vmul.f32 %v2200_v2, %v1959_v23 }
 0x233   :  { %v2267_v0 = vmul.f32 %v2200_v2, %v1971_v31  ;;  %v2271_v4 = vmul.f32 %v2200_v2, %v1870_v39  ;;  %v2275_v10 = vmul.f32 %v2200_v2, %v1874_v41  ;;  %v2279_v17 = vmul.f32 %v2200_v2, %v1881_v44 }
 0x234   :  { %v2283_v23 = vmul.f32 %v2200_v2, %v1887_v47  ;;  %v2287_v31 = vmul.f32 %v2200_v2, %v1896_v51  ;;  %v2291_v39 = vmul.f32 %v2200_v2, %v1902_v54  ;;  %v2295_v41 = vmul.f32 %v2200_v2, %v1908_v57 }
 0x235   :  { %v2299_v44 = vmul.f32 %v2200_v2, %v1916_v61  ;;  %v2303_v47 = vmul.f32 %v2200_v2, %v1924_v1  ;;  %v2307_v51 = vmul.f32 %v2200_v2, %v1932_v5  ;;  %v2311_v54 = vmul.f32 %v2200_v2, %v1946_v14 }
 0x236   :  { %v2315_v57 = vmul.f32 %v2200_v2, %v3223_v16  ;;  %v2319_v61 = vmul.f32 %v2200_v2, %v1974_v33  ;;  %v2323_v1 = vmul.f32 %v2200_v2, %v3224_v40  ;;  %v2327_v5 = vmul.f32 %v2200_v2, %v1996_v22  ;;  %v3231_v16 = vld [vmem:[#allocation29_spill] sm:$0xff] }
 0x237   :  { %v2331_v14 = vmul.f32 %v2200_v2, %v3205_v18  ;;  %v2335_v32 = vmul.f32 %v2200_v2, %v3225_v9  ;;  %v2339_v33 = vmul.f32 %v2200_v2, %v3206_v25  ;;  %v2343_v28 = vmul.f32 %v2200_v2, %v3226_v27  ;;  %v3232_v27 = vld [vmem:[#allocation14_spill] sm:$0xff] }
 0x238   :  { %v2347_v22 = vmul.f32 %v2200_v2, %v1910_v58  ;;  %v2351_v18 = vmul.f32 %v2200_v2, %v3207_v15  ;;  %v2355_v7 = vmul.f32 %v2200_v2, %v3227_v38  ;;  %v2359_v25 = vmul.f32 %v2200_v2, %v3208_v29 }
 0x239   :  { %v2363_v52 = vmul.f32 %v2200_v2, %v3228_v43  ;;  %v2367_v58 = vmul.f32 %v2200_v2, %v1964_v26  ;;  %v2371_v15 = vmul.f32 %v2200_v2, %v3209_v35  ;;  %v2375_v37 = vmul.f32 %v2200_v2, %v3229_v34  ;;  %v3234_v43 = vld [vmem:[#allocation16_spill] sm:$0xff] }
 0x23a   :  { %v2379_v29 = vmul.f32 %v2200_v2, %v3230_v19  ;;  %v2383_v13 = vmul.f32 %v2200_v2, %v2010_v6  ;;  %v2387_v26 = vmul.f32 %v2200_v2, %v2019_v30  ;;  %v2391_v35 = vmul.f32 %v2200_v2, %v3211_v42 }
 0x23b   :  { %v2395_v40 = vmul.f32 %v2200_v2, %v3231_v16  ;;  %v2399_v9 = vmul.f32 %v2200_v2, %v1920_v63  ;;  %v2403_v6 = vmul.f32 %v2200_v2, %v1928_v3  ;;  %v2407_v30 = vmul.f32 %v2200_v2, %v1938_v8  ;;  %v3236_v63 = vld [vmem:[#allocation18_spill] sm:$0xff]  ;;  %v3238_v3 = vld [vmem:[#allocation21_spill] sm:$0xff] }
 0x23c   :  { %v2411_v42 = vmul.f32 %v2200_v2, %v3232_v27  ;;  %v2413_v38 = vperm.slane %v917_v49, 0  ;;  %v2417_v34 = vmul.f32 %v2200_v2, %v3234_v43  ;;  %v2421_v19 = vmul.f32 %v2200_v2, %v3236_v63  ;;  %v3241_v27 = vld [vmem:[#allocation25_spill] sm:$0xff] }
 0x23d   :  { %v2425_v16 = vmul.f32 %v2200_v2, %v3238_v3  ;;  %v2429_v8 = vmul.f32 %v2200_v2, %v3214_v55  ;;  %v2433_v49 = vmul.f32 %v2200_v2, %v3241_v27 }
 0x23e   :  { %3233 = vst [vmem:[#allocation24_spill] sm:$0xff] %v2411_v42  ;;  %v3243_v42 = vld [vmem:[#allocation26_spill] sm:$0xff] }
 0x23f   :  { %3235 = vst [vmem:[#allocation8_spill] sm:$0xff] %v2417_v34  ;;  %v2437_v43 = vmul.f32 %v2200_v2, %v3243_v42  ;;  %v3245_v34 = vld [vmem:[#allocation28_spill] sm:$0xff] }
 0x240   :  { %3237 = vst [vmem:[#allocation10_spill] sm:$0xff] %v2421_v19  ;;  %v2441_v63 = vmul.f32 %v2200_v2, %v3245_v34  ;;  %v3246_v19 = vld [vmem:[#allocation30_spill] sm:$0xff] }
 0x241   :  { %3239 = vst [vmem:[#allocation12_spill] sm:$0xff] %v2425_v16  ;;  %v2445_v3 = vmul.f32 %v2200_v2, %v3246_v19  ;;  %v3247_v16 = vld [vmem:[#allocation31_spill] sm:$0xff]  ;;  %v2465_v19 = vadd.f32 %v2413_v38, %v2207_v21  ;;  %v2485_v21 = vadd.f32 %v2413_v38, %v2227_v36  ;;  %v2505_v36 = vadd.f32 %v2413_v38, %v2247_v50 }
 0x242   :  { %3240 = vst [vmem:[#allocation17_spill] sm:$0xff] %v2429_v8  ;;  %v2449_v55 = vmul.f32 %v2200_v2, %v3247_v16  ;;  %v3248_v8 = vld [vmem:[#allocation32_spill] sm:$0xff]  ;;  %v2469_v16 = vadd.f32 %v2413_v38, %v2211_v12  ;;  %v2489_v12 = vadd.f32 %v2413_v38, %v2231_v24  ;;  %v2509_v24 = vadd.f32 %v2413_v38, %v2251_v53 }
 0x243   :  { %3242 = vst [vmem:[#allocation27_spill] sm:$0xff] %v2433_v49  ;;  %v2453_v27 = vmul.f32 %v2200_v2, %v3248_v8  ;;  %v3249_v49 = vld [vmem:[#allocation33_spill] sm:$0xff]  ;;  %v2473_v8 = vadd.f32 %v2413_v38, %v2215_v45  ;;  %v2493_v45 = vadd.f32 %v2413_v38, %v2235_v46  ;;  %v2513_v46 = vadd.f32 %v2413_v38, %v2255_v56 }
 0x244   :  { %3244 = vst [vmem:[#allocation23_spill] sm:$0xff] %v2437_v43  ;;  %v2457_v42 = vmul.f32 %v2200_v2, %v3249_v49  ;;  %v3250_v43 = vld [vmem:[#allocation34_spill] sm:$0xff]  ;;  %v2477_v49 = vadd.f32 %v2413_v38, %v2219_v20  ;;  %v2497_v20 = vadd.f32 %v2413_v38, %v2239_v62  ;;  %v2517_v62 = vadd.f32 %v2413_v38, %v2259_v59 }
 0x245   :  { %v2461_v34 = vmul.f32 %v2200_v2, %v3250_v43  ;;  %v2481_v2 = vadd.f32 %v2413_v38, %v2223_v48  ;;  %v2501_v48 = vadd.f32 %v2413_v38, %v2243_v11  ;;  %v2521_v11 = vadd.f32 %v2413_v38, %v2263_v60  ;;  %v3279_v43 = vld [vmem:[#allocation24_spill] sm:$0xff] }
 0x246   :  { %3251 = vst [vmem:[#allocation3_spill] sm:$0xff] %v2517_v62  ;;  %v2525_v50 = vadd.f32 %v2413_v38, %v2267_v0  ;;  %v2529_v53 = vadd.f32 %v2413_v38, %v2271_v4  ;;  %v2533_v56 = vadd.f32 %v2413_v38, %v2275_v10  ;;  %v2537_v59 = vadd.f32 %v2413_v38, %v2279_v17 }
 0x247   :  { %v2541_v60 = vadd.f32 %v2413_v38, %v2283_v23  ;;  %v2545_v0 = vadd.f32 %v2413_v38, %v2287_v31  ;;  %v2549_v4 = vadd.f32 %v2413_v38, %v2291_v39  ;;  %v2553_v10 = vadd.f32 %v2413_v38, %v2295_v41 }
 0x248   :  { %3252 = vst [vmem:[#allocation4_spill] sm:$0xff] %v2525_v50  ;;  %v2557_v17 = vadd.f32 %v2413_v38, %v2299_v44  ;;  %v2561_v23 = vadd.f32 %v2413_v38, %v2303_v47  ;;  %v2565_v31 = vadd.f32 %v2413_v38, %v2307_v51  ;;  %v2569_v39 = vadd.f32 %v2413_v38, %v2311_v54 }
 0x249   :  { %3253 = vst [vmem:[#allocation5_spill] sm:$0xff] %v2529_v53  ;;  %v2573_v41 = vadd.f32 %v2413_v38, %v2315_v57  ;;  %v2577_v44 = vadd.f32 %v2413_v38, %v2319_v61  ;;  %v2581_v47 = vadd.f32 %v2413_v38, %v2323_v1  ;;  %v2585_v51 = vadd.f32 %v2413_v38, %v2327_v5 }
 0x24a   :  { %3254 = vst [vmem:[#allocation6_spill] sm:$0xff] %v2537_v59  ;;  %v2589_v54 = vadd.f32 %v2413_v38, %v2331_v14  ;;  %v2593_v57 = vadd.f32 %v2413_v38, %v2335_v32  ;;  %v2597_v61 = vadd.f32 %v2413_v38, %v2339_v33  ;;  %v2601_v1 = vadd.f32 %v2413_v38, %v2343_v28 }
 0x24b   :  { %3255 = vst [vmem:[#allocation15_spill] sm:$0xff] %v2541_v60  ;;  %v2605_v5 = vadd.f32 %v2413_v38, %v2347_v22  ;;  %v2609_v14 = vadd.f32 %v2413_v38, %v2351_v18  ;;  %v2613_v32 = vadd.f32 %v2413_v38, %v2355_v7  ;;  %v2617_v33 = vadd.f32 %v2413_v38, %v2359_v25 }
 0x24c   :  { %3256 = vst [vmem:[#allocation19_spill] sm:$0xff] %v2549_v4  ;;  %v2621_v28 = vadd.f32 %v2413_v38, %v2363_v52  ;;  %v2625_v22 = vadd.f32 %v2413_v38, %v2367_v58  ;;  %v2629_v18 = vadd.f32 %v2413_v38, %v2371_v15  ;;  %v2633_v7 = vadd.f32 %v2413_v38, %v2375_v37 }
 0x24d   :  { %3257 = vst [vmem:[#allocation7_spill] sm:$0xff] %v2553_v10  ;;  %v2637_v25 = vadd.f32 %v2413_v38, %v2379_v29  ;;  %v2641_v52 = vadd.f32 %v2413_v38, %v2383_v13  ;;  %v2645_v58 = vadd.f32 %v2413_v38, %v2387_v26  ;;  %v2649_v15 = vadd.f32 %v2413_v38, %v2391_v35 }
 0x24e   :  { %3258 = vst [vmem:[#allocation9_spill] sm:$0xff] %v2561_v23  ;;  %v2653_v37 = vadd.f32 %v2413_v38, %v2395_v40  ;;  %v2657_v29 = vadd.f32 %v2413_v38, %v2399_v9  ;;  %v2661_v13 = vadd.f32 %v2413_v38, %v2403_v6  ;;  %v2665_v26 = vadd.f32 %v2413_v38, %v2407_v30 }
 0x24f   :  { %3259 = vst [vmem:[#allocation11_spill] sm:$0xff] %v2565_v31  ;;  %v2669_v35 = vadd.f32 %v2413_v38, %v3279_v43 }
 0x250   :  { %3260 = vst [vmem:[#allocation13_spill] sm:$0xff] %v2573_v41 }
 0x251   :  { %3261 = vst [vmem:[#allocation20_spill] sm:$0xff] %v2577_v44 }
 0x252   :  { %3262 = vst [vmem:[#allocation22_spill] sm:$0xff] %v2585_v51 }
 0x253   :  { %3263 = vst [vmem:[#allocation29_spill] sm:$0xff] %v2589_v54 }
 0x254   :  { %3264 = vst [vmem:[#allocation14_spill] sm:$0xff] %v2597_v61 }
 0x255   :  { %3265 = vst [vmem:[#allocation16_spill] sm:$0xff] %v2601_v1 }
 0x256   :  { %3266 = vst [vmem:[#allocation18_spill] sm:$0xff] %v2613_v32 }
 0x257   :  { %3267 = vst [vmem:[#allocation21_spill] sm:$0xff] %v2621_v28 }
 0x258   :  { %3268 = vst [vmem:[#allocation25_spill] sm:$0xff] %v2625_v22 }
 0x259   :  { %3269 = vst [vmem:[#allocation26_spill] sm:$0xff] %v2629_v18 }
 0x25a   :  { %3270 = vst [vmem:[#allocation28_spill] sm:$0xff] %v2633_v7 }
 0x25b   :  { %3271 = vst [vmem:[#allocation30_spill] sm:$0xff] %v2637_v25 }
 0x25c   :  { %3272 = vst [vmem:[#allocation31_spill] sm:$0xff] %v2641_v52  ;;  %v2760_v52 = vmul.f32 0.2, %v2537_v59  ;;  %v2780_v59 = vmul.f32 0.2, %v2561_v23 }
 0x25d   :  { %3273 = vst [vmem:[#allocation32_spill] sm:$0xff] %v2645_v58  ;;  %v2753_v58 = vmul.f32 0.2, %v2529_v53  ;;  %v2773_v53 = vmul.f32 0.2, %v2553_v10 }
 0x25e   :  { %3274 = vst [vmem:[#allocation33_spill] sm:$0xff] %v2649_v15  ;;  %v3281_v15 = vld [vmem:[#allocation8_spill] sm:$0xff]  ;;  %v2793_v10 = vmul.f32 0.2, %v2577_v44  ;;  %v2800_v23 = vmul.f32 0.2, %v2585_v51 }
 0x25f   :  { %3275 = vst [vmem:[#allocation34_spill] sm:$0xff] %v2653_v37  ;;  %v2673_v40 = vadd.f32 %v2413_v38, %v3281_v15  ;;  %v3283_v37 = vld [vmem:[#allocation10_spill] sm:$0xff]  ;;  %v2813_v44 = vmul.f32 0.2, %v2601_v1  ;;  %v2820_v51 = vmul.f32 0.2, %v2609_v14 }
 0x260   :  { %3276 = vst [vmem:[#allocation35_spill] sm:$0xff] %v2657_v29  ;;  %v2677_v9 = vadd.f32 %v2413_v38, %v3283_v37  ;;  %v3285_v29 = vld [vmem:[#allocation12_spill] sm:$0xff]  ;;  %v2697_v37 = vadd.f32 %v2413_v38, %v2441_v63  ;;  %v2717_v63 = vadd.f32 %v2413_v38, %v2457_v42  ;;  %v1061_v42 = vmul.f32 0.2, %v2501_v48 }
 0x261   :  { %3277 = vst [vmem:[#allocation36_spill] sm:$0xff] %v2661_v13  ;;  %v2681_v6 = vadd.f32 %v2413_v38, %v3285_v29  ;;  %v3287_v13 = vld [vmem:[#allocation17_spill] sm:$0xff]  ;;  %v2704_v29 = vadd.f32 %v2413_v38, %v2445_v3  ;;  %v1056_v3 = vmul.f32 0.2, %v2481_v2  ;;  %v2833_v1 = vmul.f32 0.2, %v2625_v22 }
 0x262   :  { %3278 = vst [vmem:[#allocation37_spill] sm:$0xff] %v2665_v26  ;;  %v2685_v30 = vadd.f32 %v2413_v38, %v3287_v13  ;;  %v3289_v26 = vld [vmem:[#allocation27_spill] sm:$0xff]  ;;  %v2708_v13 = vadd.f32 %v2413_v38, %v2449_v55  ;;  %v2724_v55 = vadd.f32 %v2413_v38, %v2461_v34  ;;  %v2743_v34 = vmul.f32 0.2, %v2517_v62 }
 0x263   :  { %3280 = vst [vmem:[#allocation24_spill] sm:$0xff] %v2669_v35  ;;  %v2689_v43 = vadd.f32 %v2413_v38, %v3289_v26  ;;  %v3291_v35 = vld [vmem:[#allocation23_spill] sm:$0xff]  ;;  %v2712_v26 = vadd.f32 %v2413_v38, %v2453_v27  ;;  %v1058_v27 = vmul.f32 0.2, %v2489_v12  ;;  %v2763_v62 = vmul.f32 0.2, %v2541_v60 }
 0x264   :  { %3282 = vst [vmem:[#allocation8_spill] sm:$0xff] %v2673_v40  ;;  %v2693_v15 = vadd.f32 %v2413_v38, %v3291_v35  ;;  %v1053_v35 = vmul.f32 0.2, %v2469_v16  ;;  %v2740_v38 = vmul.f32 0.2, %v2513_v46  ;;  %v3304_v22 = vld [vmem:[#allocation3_spill] sm:$0xff] }
 0x265   :  { %3284 = vst [vmem:[#allocation10_spill] sm:$0xff] %v2677_v9  ;;  %v2700_v9 = vmul.f32 0.2, %v2465_v19  ;;  %v2750_v40 = vmul.f32 0.2, %v2525_v50 }
 0x266   :  { %3286 = vst [vmem:[#allocation12_spill] sm:$0xff] %v2681_v6  ;;  %v2747_v6 = vmul.f32 0.2, %v2521_v11  ;;  %v2770_v50 = vmul.f32 0.2, %v2549_v4 }
 0x267   :  { %3288 = vst [vmem:[#allocation17_spill] sm:$0xff] %v2685_v30  ;;  %v2737_v30 = vmul.f32 0.2, %v2509_v24  ;;  %v2783_v60 = vmul.f32 0.2, %v2565_v31 }
 0x268   :  { %3290 = vst [vmem:[#allocation27_spill] sm:$0xff] %v2689_v43  ;;  %v1116_v43 = vmax.f32 %v2465_v19, %v2700_v9  ;;  %v2757_v9 = vmul.f32 0.2, %v2533_v56  ;;  %v2790_v4 = vmul.f32 0.2, %v2573_v41 }
 0x269   :  { %3292 = vst [vmem:[#allocation23_spill] sm:$0xff] %v2693_v15  ;;  %v1055_v15 = vmul.f32 0.2, %v2477_v49  ;;  %v2803_v31 = vmul.f32 0.2, %v2589_v54 }
 0x26a   :  { %3293 = vst [vmem:[#allocation38_spill] sm:$0xff] %v2697_v37  ;;  %v1054_v37 = vmul.f32 0.2, %v2473_v8  ;;  %v2810_v41 = vmul.f32 0.2, %v2597_v61 }
 0x26b   :  { %3294 = vst [vmem:[#allocation39_spill] sm:$0xff] %v2704_v29  ;;  %v1060_v29 = vmul.f32 0.2, %v2497_v20  ;;  %v2823_v54 = vmul.f32 0.2, %v2613_v32 }
 0x26c   :  { %3295 = vst [vmem:[#allocation40_spill] sm:$0xff] %v2708_v13  ;;  %v1057_v13 = vmul.f32 0.2, %v2485_v21  ;;  %v1118_v19 = vmax.f32 %v2473_v8, %v1054_v37  ;;  %v1120_v8 = vmax.f32 %v2481_v2, %v1056_v3  ;;  %v2777_v37 = vmul.f32 0.2, %v2557_v17 }
 0x26d   :  { %3296 = vst [vmem:[#allocation41_spill] sm:$0xff] %v2712_v26  ;;  %v1059_v26 = vmul.f32 0.2, %v2493_v45  ;;  %v1122_v2 = vmax.f32 %v2489_v12, %v1058_v27  ;;  %v2797_v3 = vmul.f32 0.2, %v2581_v47  ;;  %v1124_v12 = vmax.f32 %v2497_v20, %v1060_v29 }
 0x26e   :  { %3297 = vst [vmem:[#allocation42_spill] sm:$0xff] %v2717_v63  ;;  %v2732_v63 = vmul.f32 0.2, %v2505_v36  ;;  %v2817_v27 = vmul.f32 0.2, %v2605_v5 }
 0x26f   :  { %3298 = vst [vmem:[#allocation43_spill] sm:$0xff] %v2724_v55  ;;  %v1117_v55 = vmax.f32 %v2469_v16, %v1053_v35  ;;  %v1119_v16 = vmax.f32 %v2477_v49, %v1055_v15  ;;  %v2767_v35 = vmul.f32 0.2, %v2545_v0  ;;  %v1121_v49 = vmax.f32 %v2485_v21, %v1057_v13 }
 0x270   :  { %v2787_v15 = vmul.f32 0.2, %v2569_v39  ;;  %v1123_v21 = vmax.f32 %v2493_v45, %v1059_v26  ;;  %v2807_v13 = vmul.f32 0.2, %v2593_v57  ;;  %v1125_v45 = vmax.f32 %v2501_v48, %v1061_v42  ;;  %3300 = vst [vmem:[#allocation45_spill] sm:$0xff] %v2833_v1 }
 0x271   :  { %v2827_v26 = vmul.f32 0.2, %v2617_v33  ;;  %v2830_v61 = vmul.f32 0.2, %v2621_v28  ;;  %v1126_v20 = vmax.f32 %v2505_v36, %v2732_v63  ;;  %v2838_v29 = vmul.f32 0.2, %v2629_v18 }
 0x272   :  { %v2841_v32 = vmul.f32 0.2, %v2633_v7  ;;  %v2844_v48 = vmul.f32 0.2, %v2637_v25  ;;  %v1127_v42 = vmax.f32 %v2509_v24, %v2737_v30  ;;  %v1128_v28 = vmax.f32 %v2513_v46, %v2740_v38  ;;  %v3305_v7 = vld [vmem:[#allocation4_spill] sm:$0xff]  ;;  %v3307_v24 = vld [vmem:[#allocation5_spill] sm:$0xff] }
 0x273   :  { %3299 = vst [vmem:[#allocation44_spill] sm:$0xff] %v2830_v61  ;;  %v1129_v1 = vmax.f32 %v3304_v22, %v2743_v34  ;;  %v1515_v61 = vpack.c.bf16 %v1117_v55, %v1116_v43  ;;  %v1520_v36 = vpack.c.bf16 %v1119_v16, %v1118_v19  ;;  %v1130_v63 = vmax.f32 %v2521_v11, %v2747_v6  ;;  %v3308_v11 = vld [vmem:[#allocation32_spill] sm:$0xff]  ;;  %v3310_v43 = vld [vmem:[#allocation15_spill] sm:$0xff] }
 0x274   :  { %3301 = vst [vmem:[#allocation46_spill] sm:$0xff] %v2838_v29  ;;  %v1525_v18 = vpack.c.bf16 %v1121_v49, %v1120_v8  ;;  %v1530_v25 = vpack.c.bf16 %v1123_v21, %v1122_v2  ;;  %v1132_v30 = vmax.f32 %v3307_v24, %v2753_v58  ;;  %v1133_v46 = vmax.f32 %v2533_v56, %v2757_v9  ;;  %v3311_v56 = vld [vmem:[#allocation33_spill] sm:$0xff]  ;;  %v3312_v34 = vld [vmem:[#allocation19_spill] sm:$0xff] }
 0x275   :  { %3302 = vst [vmem:[#allocation47_spill] sm:$0xff] %v2841_v32  ;;  %v1131_v32 = vmax.f32 %v3305_v7, %v2750_v40  ;;  %v1535_v22 = vpack.c.bf16 %v1125_v45, %v1124_v12  ;;  %v2867_v6 = vmul.f32 0.2, %v3308_v11  ;;  %v3309_v7 = vld [vmem:[#allocation6_spill] sm:$0xff]  ;;  %v1135_v55 = vmax.f32 %v3310_v43, %v2763_v62  ;;  %v3314_v16 = vld [vmem:[#allocation7_spill] sm:$0xff]  ;;  %v3321_v45 = vld [vmem:[#allocation20_spill] sm:$0xff] }
 0x276   :  { %3303 = vst [vmem:[#allocation48_spill] sm:$0xff] %v2844_v48  ;;  %v3306_v48 = vld [vmem:[#allocation31_spill] sm:$0xff]  ;;  %v1134_v40 = vmax.f32 %v3309_v7, %v2760_v52  ;;  %v1540_v58 = vpack.c.bf16 %v1127_v42, %v1126_v20  ;;  %v2877_v38 = vmul.f32 0.2, %v3311_v56  ;;  %v1137_v19 = vmax.f32 %v3312_v34, %v2770_v50  ;;  %v3313_v62 = vld [vmem:[#allocation34_spill] sm:$0xff]  ;;  %v3324_v24 = vld [vmem:[#allocation29_spill] sm:$0xff] }
 0x277   :  { %v2857_v29 = vmul.f32 0.2, %v3306_v48  ;;  %1516 = vst [vmem:[%s3085_s4] sm:$0xff] %v1515_v61   ;;  %v1136_v61 = vmax.f32 %v2545_v0, %v2767_v35  ;;  %v1545_v52 = vpack.c.bf16 %v1129_v1, %v1128_v28  ;;  %v2887_v9 = vmul.f32 0.2, %v3313_v62  ;;  %v3315_v50 = vld [vmem:[#allocation35_spill] sm:$0xff]  ;;  %v3328_v43 = vld [vmem:[#allocation16_spill] sm:$0xff] }
 0x278   :  { %1672 = vst [vmem:[%s3085_s4 + $0x8] sm:$0xff] %v1520_v36   ;;  %v1138_v8 = vmax.f32 %v3314_v16, %v2773_v53  ;;  %v1139_v49 = vmax.f32 %v2557_v17, %v2777_v37  ;;  %v1550_v0 = vpack.c.bf16 %v1131_v32, %v1130_v63  ;;  %v2897_v35 = vmul.f32 0.2, %v3315_v50  ;;  %v3317_v28 = vld [vmem:[#allocation11_spill] sm:$0xff]  ;;  %v3318_v17 = vld [vmem:[#allocation36_spill] sm:$0xff]  ;;  %v3323_v36 = vld [vmem:[#allocation22_spill] sm:$0xff] }
 0x279   :  { %1673 = vst [vmem:[%s3085_s4 + $0x10] sm:$0xff] %v1525_v18   ;;  %v3316_v18 = vld [vmem:[#allocation9_spill] sm:$0xff]  ;;  %v1141_v2 = vmax.f32 %v3317_v28, %v2783_v60  ;;  %v1555_v53 = vpack.c.bf16 %v1133_v46, %v1132_v30  ;;  %v2907_v37 = vmul.f32 0.2, %v3318_v17  ;;  %v1142_v32 = vmax.f32 %v2569_v39, %v2787_v15  ;;  %v3330_v34 = vld [vmem:[#allocation18_spill] sm:$0xff] }
 0x27a   :  { %1674 = vst [vmem:[%s3085_s4 + $0x18] sm:$0xff] %v1530_v25   ;;  %v1140_v1 = vmax.f32 %v3316_v18, %v2780_v59  ;;  %v3319_v25 = vld [vmem:[#allocation13_spill] sm:$0xff]  ;;  %v1560_v59 = vpack.c.bf16 %v1135_v55, %v1134_v40  ;;  %v1144_v20 = vmax.f32 %v3321_v45, %v2793_v10  ;;  %v1145_v42 = vmax.f32 %v2581_v47, %v2797_v3  ;;  %v3325_v47 = vld [vmem:[#allocation8_spill] sm:$0xff] }
 0x27b   :  { %1675 = vst [vmem:[%s3085_s4 + $0x20] sm:$0xff] %v1535_v22   ;;  %v1143_v21 = vmax.f32 %v3319_v25, %v2790_v4  ;;  %v3320_v60 = vld [vmem:[#allocation37_spill] sm:$0xff]  ;;  %v1565_v39 = vpack.c.bf16 %v1137_v19, %v1136_v61  ;;  %v3322_v4 = vld [vmem:[#allocation24_spill] sm:$0xff]  ;;  %v1146_v63 = vmax.f32 %v3323_v36, %v2800_v23  ;;  %v1147_v30 = vmax.f32 %v3324_v24, %v2803_v31  ;;  %v3326_v22 = vld [vmem:[#allocation14_spill] sm:$0xff] }
 0x27c   :  { %1676 = vst [vmem:[%s3085_s4 + $0x28] sm:$0xff] %v1540_v58   ;;  %v2917_v12 = vmul.f32 0.2, %v3320_v60  ;;  %v2927_v15 = vmul.f32 0.2, %v3322_v4  ;;  %v1570_v10 = vpack.c.bf16 %v1139_v49, %v1138_v8  ;;  %v1148_v46 = vmax.f32 %v2593_v57, %v2807_v13  ;;  %v3327_v31 = vld [vmem:[#allocation10_spill] sm:$0xff] }
 0x27d   :  { %1677 = vst [vmem:[%s3085_s4 + $0x30] sm:$0xff] %v1545_v52   ;;  %v2937_v3 = vmul.f32 0.2, %v3325_v47  ;;  %v1149_v7 = vmax.f32 %v3326_v22, %v2810_v41  ;;  %v1575_v23 = vpack.c.bf16 %v1141_v2, %v1140_v1  ;;  %v2947_v40 = vmul.f32 0.2, %v3327_v31  ;;  %v3329_v41 = vld [vmem:[#allocation12_spill] sm:$0xff] }
 0x27e   :  { %1678 = vst [vmem:[%s3085_s4 + $0x38] sm:$0xff] %v1550_v0   ;;  %v1150_v55 = vmax.f32 %v3328_v43, %v2813_v44  ;;  %v1151_v58 = vmax.f32 %v2605_v5, %v2817_v27  ;;  %v1580_v57 = vpack.c.bf16 %v1143_v21, %v1142_v32  ;;  %v2957_v13 = vmul.f32 0.2, %v3329_v41  ;;  %v3331_v5 = vld [vmem:[#allocation17_spill] sm:$0xff]  ;;  %v3332_v16 = vld [vmem:[#allocation44_spill] sm:$0xff]  ;;  %v3337_v28 = vld [vmem:[#allocation46_spill] sm:$0xff] }
 0x27f   :  { %1679 = vst [vmem:[%s3085_s4 + $0x40] sm:$0xff] %v1555_v53   ;;  %v1152_v61 = vmax.f32 %v2609_v14, %v2820_v51  ;;  %v1153_v19 = vmax.f32 %v3330_v34, %v2823_v54  ;;  %v1585_v44 = vpack.c.bf16 %v1145_v42, %v1144_v20  ;;  %v1107_v27 = vmul.f32 0.2, %v3331_v5  ;;  %v3333_v8 = vld [vmem:[#allocation21_spill] sm:$0xff]  ;;  %v3334_v14 = vld [vmem:[#allocation27_spill] sm:$0xff]  ;;  %v3338_v2 = vld [vmem:[#allocation26_spill] sm:$0xff] }
 0x280   :  { %1680 = vst [vmem:[%s3085_s4 + $0x48] sm:$0xff] %v1560_v59   ;;  %v1154_v52 = vmax.f32 %v2617_v33, %v2827_v26  ;;  %v1155_v49 = vmax.f32 %v3333_v8, %v3332_v16  ;;  %v1590_v51 = vpack.c.bf16 %v1147_v30, %v1146_v63  ;;  %v1108_v54 = vmul.f32 0.2, %v3334_v14  ;;  %v3335_v0 = vld [vmem:[#allocation45_spill] sm:$0xff]  ;;  %v3339_v26 = vld [vmem:[#allocation23_spill] sm:$0xff]  ;;  %v3341_v21 = vld [vmem:[#allocation28_spill] sm:$0xff] }
 0x281   :  { %1681 = vst [vmem:[%s3085_s4 + $0x50] sm:$0xff] %v1565_v39   ;;  %v3336_v18 = vld [vmem:[#allocation25_spill] sm:$0xff]  ;;  %v1157_v53 = vmax.f32 %v3338_v2, %v3337_v28  ;;  %v1595_v33 = vpack.c.bf16 %v1149_v7, %v1148_v46  ;;  %v1109_v32 = vmul.f32 0.2, %v3339_v26  ;;  %v3340_v25 = vld [vmem:[#allocation47_spill] sm:$0xff]  ;;  %v3342_v45 = vld [vmem:[#allocation48_spill] sm:$0xff]  ;;  %v1600_v39 = vpack.c.bf16 %v1151_v58, %v1150_v55 }
 0x282   :  { %1682 = vst [vmem:[%s3085_s4 + $0x58] sm:$0xff] %v1570_v10   ;;  %v1156_v1 = vmax.f32 %v3336_v18, %v3335_v0  ;;  %v1158_v59 = vmax.f32 %v3341_v21, %v3340_v25  ;;  %v3343_v20 = vld [vmem:[#allocation30_spill] sm:$0xff]  ;;  %v1160_v24 = vmax.f32 %v3306_v48, %v2857_v29  ;;  %v1161_v30 = vmax.f32 %v3308_v11, %v2867_v6  ;;  %v3345_v46 = vld [vmem:[#allocation39_spill] sm:$0xff]  ;;  %v3346_v48 = vld [vmem:[#allocation40_spill] sm:$0xff] }
 0x283   :  { %1683 = vst [vmem:[%s3085_s4 + $0x60] sm:$0xff] %v1575_v23   ;;  %v1159_v42 = vmax.f32 %v3343_v20, %v3342_v45  ;;  %v3344_v36 = vld [vmem:[#allocation38_spill] sm:$0xff]  ;;  %v1605_v10 = vpack.c.bf16 %v1153_v19, %v1152_v61  ;;  %v1111_v22 = vmul.f32 0.2, %v3345_v46  ;;  %v1162_v7 = vmax.f32 %v3311_v56, %v2877_v38  ;;  %v3347_v38 = vld [vmem:[#allocation41_spill] sm:$0xff] }
 0x284   :  { %1684 = vst [vmem:[%s3085_s4 + $0x68] sm:$0xff] %v1580_v57   ;;  %v1110_v63 = vmul.f32 0.2, %v3344_v36  ;;  %v1163_v23 = vmax.f32 %v3313_v62, %v2887_v9  ;;  %v1610_v29 = vpack.c.bf16 %v1155_v49, %v1154_v52  ;;  %v1112_v11 = vmul.f32 0.2, %v3346_v48 }
 0x285   :  { %1685 = vst [vmem:[%s3085_s4 + $0x70] sm:$0xff] %v1585_v44   ;;  %v1164_v6 = vmax.f32 %v3315_v50, %v2897_v35  ;;  %v1165_v43 = vmax.f32 %v3318_v17, %v2907_v37  ;;  %v1615_v56 = vpack.c.bf16 %v1157_v53, %v1156_v1  ;;  %v1113_v62 = vmul.f32 0.2, %v3347_v38  ;;  %v3348_v35 = vld [vmem:[#allocation42_spill] sm:$0xff] }
 0x286   :  { %1686 = vst [vmem:[%s3085_s4 + $0x78] sm:$0xff] %v1590_v51   ;;  %v1166_v9 = vmax.f32 %v3320_v60, %v2917_v12  ;;  %v1167_v55 = vmax.f32 %v3322_v4, %v2927_v15  ;;  %v1620_v50 = vpack.c.bf16 %v1159_v42, %v1158_v59  ;;  %v1114_v17 = vmul.f32 0.2, %v3348_v35  ;;  %v3349_v12 = vld [vmem:[#allocation43_spill] sm:$0xff] }
 0x287   :  { %1687 = vst [vmem:[%s3085_s4 + $0x80] sm:$0xff] %v1595_v33   ;;  %v1168_v37 = vmax.f32 %v3325_v47, %v2937_v3  ;;  %v1169_v58 = vmax.f32 %v3327_v31, %v2947_v40  ;;  %v1625_v60 = vpack.c.bf16 %v1161_v30, %v1160_v24  ;;  %v1115_v4 = vmul.f32 0.2, %v3349_v12 }
 0x288   :  { %1688 = vst [vmem:[%s3085_s4 + $0x88] sm:$0xff] %v1600_v39   ;;  %v1170_v15 = vmax.f32 %v3329_v41, %v2957_v13  ;;  %v1171_v57 = vmax.f32 %v3331_v5, %v1107_v27  ;;  %v1630_v47 = vpack.c.bf16 %v1163_v23, %v1162_v7  ;;  %v1172_v3 = vmax.f32 %v3334_v14, %v1108_v54 }
 0x289   :  { %1689 = vst [vmem:[%s3085_s4 + $0x90] sm:$0xff] %v1605_v10   ;;  %v1173_v31 = vmax.f32 %v3339_v26, %v1109_v32  ;;  %v1635_v40 = vpack.c.bf16 %v1165_v43, %v1164_v6  ;;  %v1174_v61 = vmax.f32 %v3344_v36, %v1110_v63  ;;  %v1175_v41 = vmax.f32 %v3345_v46, %v1111_v22 }
 0x28a   :  { %1690 = vst [vmem:[%s3085_s4 + $0x98] sm:$0xff] %v1610_v29   ;;  %v1640_v13 = vpack.c.bf16 %v1167_v55, %v1166_v9  ;;  %v1176_v34 = vmax.f32 %v3346_v48, %v1112_v11  ;;  %v1177_v19 = vmax.f32 %v3347_v38, %v1113_v62  ;;  %v1645_v44 = vpack.c.bf16 %v1169_v58, %v1168_v37 }
 0x28b   :  { %1691 = vst [vmem:[%s3085_s4 + $0xa0] sm:$0xff] %v1615_v56   ;;  %v1178_v5 = vmax.f32 %v3348_v35, %v1114_v17  ;;  %v1179_v27 = vmax.f32 %v3349_v12, %v1115_v4  ;;  %v1650_v52 = vpack.c.bf16 %v1171_v57, %v1170_v15  ;;  %v1655_v16 = vpack.c.bf16 %v1173_v31, %v1172_v3 }
 0x28c   :  { %1692 = vst [vmem:[%s3085_s4 + $0xa8] sm:$0xff] %v1620_v50   ;;  %v1660_v8 = vpack.c.bf16 %v1175_v41, %v1174_v61  ;;  %v1665_v49 = vpack.c.bf16 %v1177_v19, %v1176_v34 }
 0x28d   :  { %1693 = vst [vmem:[%s3085_s4 + $0xb0] sm:$0xff] %v1625_v60   ;;  %v1670_v51 = vpack.c.bf16 %v1179_v27, %v1178_v5 }
 0x28e   :  { %1694 = vst [vmem:[%s3085_s4 + $0xb8] sm:$0xff] %v1630_v47  }
 0x28f   :  { %1695 = vst [vmem:[%s3085_s4 + $0xc0] sm:$0xff] %v1635_v40  }
 0x290   :  { %1696 = vst [vmem:[%s3085_s4 + $0xc8] sm:$0xff] %v1640_v13  }
 0x291   :  { %1697 = vst [vmem:[%s3085_s4 + $0xd0] sm:$0xff] %v1645_v44  }
 0x292   :  { %1698 = vst [vmem:[%s3085_s4 + $0xd8] sm:$0xff] %v1650_v52  }
 0x293   :  { %1699 = vst [vmem:[%s3085_s4 + $0xe0] sm:$0xff] %v1655_v16  }
 0x294   :  { %1700 = vst [vmem:[%s3085_s4 + $0xe8] sm:$0xff] %v1660_v8  }
 0x295   :  { %1701 = vst [vmem:[%s3085_s4 + $0xf0] sm:$0xff] %v1665_v49  }
 0x296   :  { %1702 = vst [vmem:[%s3085_s4 + $0xf8] sm:$0xff] %v1670_v51  }

// kernel: forward.7
= control target key start
LH: loop header
LB: loop body
LE: loop exit
PB: predicated region body
PF: predicated region fallthrough
CT: control target
= control target key end

     0   :  { %s1092_s1 = inlined_call_operand.vmem [shape: bf16[256,128], index: 1, kind: input, shape index: {}]   ;;  %s1093_s0 = inlined_call_operand.vmem [shape: bf16[128,256], index: 0, kind: input, shape index: {}]   ;;  %s1094_s2 = inlined_call_operand.vmem [shape: f32[1,128], index: 2, kind: input, shape index: {}]   ;;  %s1095_s3 = inlined_call_operand.vmem [shape: f32[1,128], index: 3, kind: input, shape index: {}]   ;;  %s1096_s4 = inlined_call_operand.vmem [shape: bf16[128,128], index: 4, kind: output, shape index: {}]  }
   0x1   :  { %v720_v0 = vld [vmem:[%s1092_s1 + $0x38] sm:$0xff]  ;;  %v719_v2 = vld [vmem:[%s1092_s1 + $0x30] sm:$0xff]  ;;  %v718_v4 = vld [vmem:[%s1092_s1 + $0x28] sm:$0xff] }
   0x2   :  { %v728_v1 = vld [vmem:[%s1092_s1 + $0x78] sm:$0xff]  ;;  %241 = vmatpush.bf16.msra.mxu0 %v720_v0  ;;  %v727_v3 = vld [vmem:[%s1092_s1 + $0x70] sm:$0xff]  ;;  %776 = vmatpush.bf16.msra.mxu2 %v720_v0  ;;  %v726_v5 = vld [vmem:[%s1092_s1 + $0x68] sm:$0xff] }
   0x3   :  { %290 = vmatpush.bf16.msra.mxu1 %v728_v1  ;;  %784 = vmatpush.bf16.msra.mxu3 %v728_v1  ;;  %v717_v6 = vld [vmem:[%s1092_s1 + $0x20] sm:$0xff]  ;;  %v716_v8 = vld [vmem:[%s1092_s1 + $0x18] sm:$0xff]  ;;  %v715_v10 = vld [vmem:[%s1092_s1 + $0x10] sm:$0xff] }
   0x4   :  { %v725_v7 = vld [vmem:[%s1092_s1 + $0x60] sm:$0xff]  ;;  %v724_v9 = vld [vmem:[%s1092_s1 + $0x58] sm:$0xff]  ;;  %v723_v11 = vld [vmem:[%s1092_s1 + $0x50] sm:$0xff] }
   0x5   :  { %v714_v12 = vld [vmem:[%s1092_s1 + $0x8] sm:$0xff]  ;;  %v713_v14 = vld [vmem:[%s1092_s1] sm:$0xff]  ;;  %v579_v28 = vld [vmem:[%s1093_s0 + $0x10] sm:$0xf] }
   0x6   :  { %242 = vmatpush.bf16.msra.mxu0 %v719_v2  ;;  %777 = vmatpush.bf16.msra.mxu2 %v719_v2  ;;  %v722_v13 = vld [vmem:[%s1092_s1 + $0x48] sm:$0xff]  ;;  %v721_v15 = vld [vmem:[%s1092_s1 + $0x40] sm:$0xff]  ;;  %v700_v29 = vld [vmem:[%s1093_s0 + $0x14] sm:$0xf0] }
   0x7   :  { %291 = vmatpush.bf16.msra.mxu1 %v727_v3  ;;  %785 = vmatpush.bf16.msra.mxu3 %v727_v3  ;;  %v571_v16 = vld [vmem:[%s1093_s0] sm:$0xf]  ;;  %v698_v17 = vld [vmem:[%s1093_s0 + $0x4] sm:$0xf0]  ;;  %v697_v18 = vld [vmem:[%s1093_s0 + $0x4] sm:$0xf]  ;;  %v580_v36 = vor.u32 %v700_v29, %v579_v28 }
   0x8   :  { %v573_v19 = vld [vmem:[%s1093_s0 + $0x8] sm:$0xf0]  ;;  %v603_v20 = vld [vmem:[%s1093_s0 + $0x40] sm:$0xf]  ;;  %v706_v21 = vld [vmem:[%s1093_s0 + $0x44] sm:$0xf0]  ;;  %v572_v24 = vor.u32 %v698_v17, %v571_v16 }
   0x9   :  { %v705_v22 = vld [vmem:[%s1093_s0 + $0x44] sm:$0xf]  ;;  %v605_v23 = vld [vmem:[%s1093_s0 + $0x48] sm:$0xf0]  ;;  %v576_v25 = vor.u32 %v697_v18, %v573_v19  ;;  %v604_v26 = vor.u32 %v706_v21, %v603_v20  ;;  %v699_v30 = vld [vmem:[%s1093_s0 + $0x14] sm:$0xf] }
   0xa   :  { %243 = vmatpush.bf16.msra.mxu0 %v718_v4  ;;  %778 = vmatpush.bf16.msra.mxu2 %v718_v4  ;;  %v608_v27 = vor.u32 %v705_v22, %v605_v23  ;;  %v581_v31 = vld [vmem:[%s1093_s0 + $0x18] sm:$0xf0]  ;;  %v611_v32 = vld [vmem:[%s1093_s0 + $0x50] sm:$0xf]  ;;  %v708_v33 = vld [vmem:[%s1093_s0 + $0x54] sm:$0xf0] }
   0xb   :  { %292 = vmatpush.bf16.msra.mxu1 %v726_v5  ;;  %786 = vmatpush.bf16.msra.mxu3 %v726_v5  ;;  %v707_v34 = vld [vmem:[%s1093_s0 + $0x54] sm:$0xf]  ;;  %v613_v35 = vld [vmem:[%s1093_s0 + $0x58] sm:$0xf0]  ;;  %v584_v37 = vor.u32 %v699_v30, %v581_v31  ;;  %v612_v38 = vor.u32 %v708_v33, %v611_v32  ;;  %v587_v40 = vld [vmem:[%s1093_s0 + $0x20] sm:$0xf] }
   0xc   :  { %v616_v39 = vor.u32 %v707_v34, %v613_v35  ;;  %v702_v41 = vld [vmem:[%s1093_s0 + $0x24] sm:$0xf0]  ;;  %v701_v42 = vld [vmem:[%s1093_s0 + $0x24] sm:$0xf]  ;;  %v589_v43 = vld [vmem:[%s1093_s0 + $0x28] sm:$0xf0] }
   0xd   :  { %v619_v44 = vld [vmem:[%s1093_s0 + $0x60] sm:$0xf]  ;;  %v710_v45 = vld [vmem:[%s1093_s0 + $0x64] sm:$0xf0]  ;;  %v709_v46 = vld [vmem:[%s1093_s0 + $0x64] sm:$0xf]  ;;  %v588_v48 = vor.u32 %v702_v41, %v587_v40  ;;  %v592_v49 = vor.u32 %v701_v42, %v589_v43 }
   0xe   :  { %244 = vmatpush.bf16.msra.mxu0 %v717_v6  ;;  %779 = vmatpush.bf16.msra.mxu2 %v717_v6  ;;  %v621_v47 = vld [vmem:[%s1093_s0 + $0x68] sm:$0xf0]  ;;  %v620_v50 = vor.u32 %v710_v45, %v619_v44  ;;  %v595_v52 = vld [vmem:[%s1093_s0 + $0x30] sm:$0xf]  ;;  %v704_v53 = vld [vmem:[%s1093_s0 + $0x34] sm:$0xf0] }
   0xf   :  { %293 = vmatpush.bf16.msra.mxu1 %v725_v7  ;;  %787 = vmatpush.bf16.msra.mxu3 %v725_v7  ;;  %v624_v51 = vor.u32 %v709_v46, %v621_v47  ;;  %v703_v54 = vld [vmem:[%s1093_s0 + $0x34] sm:$0xf]  ;;  %v597_v55 = vld [vmem:[%s1093_s0 + $0x38] sm:$0xf0]  ;;  %v627_v56 = vld [vmem:[%s1093_s0 + $0x70] sm:$0xf]  ;;  %v596_v60 = vor.u32 %v704_v53, %v595_v52 }
  0x10   :  { %v712_v57 = vld [vmem:[%s1093_s0 + $0x74] sm:$0xf0]  ;;  %v711_v58 = vld [vmem:[%s1093_s0 + $0x74] sm:$0xf]  ;;  %v629_v59 = vld [vmem:[%s1093_s0 + $0x78] sm:$0xf0]  ;;  %v600_v61 = vor.u32 %v703_v54, %v597_v55 }
  0x11   :  { %v628_v62 = vor.u32 %v712_v57, %v627_v56  ;;  %v632_v63 = vor.u32 %v711_v58, %v629_v59 }
  0x12   :  { %245 = vmatpush.bf16.msra.mxu0 %v716_v8  ;;  %780 = vmatpush.bf16.msra.mxu2 %v716_v8 }
  0x13   :  { %294 = vmatpush.bf16.msra.mxu1 %v724_v9  ;;  %788 = vmatpush.bf16.msra.mxu3 %v724_v9 }
  0x16   :  { %246 = vmatpush.bf16.msra.mxu0 %v715_v10  ;;  %781 = vmatpush.bf16.msra.mxu2 %v715_v10 }
  0x17   :  { %295 = vmatpush.bf16.msra.mxu1 %v723_v11  ;;  %789 = vmatpush.bf16.msra.mxu3 %v723_v11 }
  0x1a   :  { %247 = vmatpush.bf16.msra.mxu0 %v714_v12  ;;  %782 = vmatpush.bf16.msra.mxu2 %v714_v12 }
  0x1b   :  { %296 = vmatpush.bf16.msra.mxu1 %v722_v13  ;;  %790 = vmatpush.bf16.msra.mxu3 %v722_v13 }
  0x1e   :  { %248 = vmatpush.bf16.msra.mxu0 %v713_v14  ;;  %783 = vmatpush.bf16.msra.mxu2 %v713_v14 }
  0x1f   :  { %297 = vmatpush.bf16.msra.mxu1 %v721_v15  ;;  %791 = vmatpush.bf16.msra.mxu3 %v721_v15 }
  0x21   :  { %249 = vmatmul.bf16.vlgmr.msra.gmra.mxu0 %v572_v24  ;;  %269 = vmatmul.bf16.vlgmr.msra.gmra.mxu2 %v604_v26 }
  0x22   :  { %298 = vmatmul.bf16.vlgmr.msra.gmra.mxu1 %v576_v25  ;;  %318 = vmatmul.bf16.vlgmr.msra.gmra.mxu3 %v608_v27 }
  0x31   :  { %254 = vmatmul.bf16.gmra.mxu0 %v580_v36  ;;  %274 = vmatmul.bf16.gmra.mxu2 %v612_v38 }
  0x32   :  { %303 = vmatmul.bf16.gmra.mxu1 %v584_v37  ;;  %323 = vmatmul.bf16.gmra.mxu3 %v616_v39 }
  0x41   :  { %259 = vmatmul.bf16.gmra.mxu0 %v588_v48  ;;  %279 = vmatmul.bf16.gmra.mxu2 %v620_v50 }
  0x42   :  { %308 = vmatmul.bf16.gmra.mxu1 %v592_v49  ;;  %328 = vmatmul.bf16.gmra.mxu3 %v624_v51 }
  0x51   :  { %264 = vmatmul.bf16.gmra.mxu0 %v596_v60  ;;  %284 = vmatmul.bf16.gmra.mxu2 %v628_v62 }
  0x52   :  { %313 = vmatmul.bf16.gmra.mxu1 %v600_v61  ;;  %333 = vmatmul.bf16.gmra.mxu3 %v632_v63 }
  0x9e   :  { %v250_v0 = vpop.f32.mrf.mxu0 }
  0x9f   :  { %v299_v1 = vpop.f32.mrf.mxu1 }
  0xa0   :  { %v965_v23 = vadd.f32 %v299_v1, %v250_v0 }
  0xa4   :  { %v270_v2 = vpop.f32.mrf.mxu2 }
  0xa5   :  { %v319_v3 = vpop.f32.mrf.mxu3 }
  0xa6   :  { %v252_v4 = vpop.f32.mrf.mxu0  ;;  %v986_v42 = vadd.f32 %v319_v3, %v270_v2 }
  0xa7   :  { %v301_v5 = vpop.f32.mrf.mxu1 }
  0xa8   :  { %v963_v22 = vadd.f32 %v301_v5, %v252_v4 }
  0xaa   :  { %v371_v25 = vadd.f32 %v963_v22, %v965_v23 }
  0xac   :  { %v272_v6 = vpop.f32.mrf.mxu2 }
  0xad   :  { %v321_v7 = vpop.f32.mrf.mxu3 }
  0xae   :  { %v255_v8 = vpop.f32.mrf.mxu0  ;;  %v989_v46 = vadd.f32 %v321_v7, %v272_v6 }
  0xaf   :  { %v304_v9 = vpop.f32.mrf.mxu1 }
  0xb0   :  { %v967_v24 = vadd.f32 %v304_v9, %v255_v8 }
  0xb2   :  { %v372_v29 = vadd.f32 %v371_v25, %v967_v24 }
  0xb4   :  { %v275_v10 = vpop.f32.mrf.mxu2 }
  0xb5   :  { %v324_v11 = vpop.f32.mrf.mxu3 }
  0xb6   :  { %v257_v12 = vpop.f32.mrf.mxu0  ;;  %v992_v48 = vadd.f32 %v324_v11, %v275_v10 }
  0xb7   :  { %v306_v13 = vpop.f32.mrf.mxu1 }
  0xb8   :  { %v971_v26 = vadd.f32 %v306_v13, %v257_v12 }
  0xba   :  { %v373_v33 = vadd.f32 %v372_v29, %v971_v26 }
  0xbc   :  { %v277_v14 = vpop.f32.mrf.mxu2 }
  0xbd   :  { %v326_v15 = vpop.f32.mrf.mxu3 }
  0xbe   :  { %v260_v16 = vpop.f32.mrf.mxu0  ;;  %v995_v50 = vadd.f32 %v326_v15, %v277_v14 }
  0xbf   :  { %v309_v17 = vpop.f32.mrf.mxu1 }
  0xc0   :  { %v974_v30 = vadd.f32 %v309_v17, %v260_v16 }
  0xc2   :  { %v374_v35 = vadd.f32 %v373_v33, %v974_v30 }
  0xc4   :  { %v280_v18 = vpop.f32.mrf.mxu2 }
  0xc5   :  { %v329_v19 = vpop.f32.mrf.mxu3 }
  0xc6   :  { %v262_v20 = vpop.f32.mrf.mxu0  ;;  %v998_v52 = vadd.f32 %v329_v19, %v280_v18 }
  0xc7   :  { %v311_v21 = vpop.f32.mrf.mxu1 }
  0xc8   :  { %v977_v34 = vadd.f32 %v311_v21, %v262_v20 }
  0xca   :  { %v375_v37 = vadd.f32 %v374_v35, %v977_v34 }
  0xcc   :  { %v282_v31 = vpop.f32.mrf.mxu2 }
  0xcd   :  { %v331_v32 = vpop.f32.mrf.mxu3 }
  0xce   :  { %v265_v27 = vpop.f32.mrf.mxu0  ;;  %v1001_v54 = vadd.f32 %v331_v32, %v282_v31 }
  0xcf   :  { %v314_v28 = vpop.f32.mrf.mxu1 }
  0xd0   :  { %v980_v36 = vadd.f32 %v314_v28, %v265_v27 }
  0xd2   :  { %v376_v40 = vadd.f32 %v375_v37, %v980_v36 }
  0xd4   :  { %v285_v44 = vpop.f32.mrf.mxu2 }
  0xd5   :  { %v334_v45 = vpop.f32.mrf.mxu3 }
  0xd6   :  { %v267_v38 = vpop.f32.mrf.mxu0  ;;  %v1004_v58 = vadd.f32 %v334_v45, %v285_v44 }
  0xd7   :  { %v316_v39 = vpop.f32.mrf.mxu1 }
  0xd8   :  { %v984_v41 = vadd.f32 %v316_v39, %v267_v38 }
  0xda   :  { %v377_v43 = vadd.f32 %v376_v40, %v984_v41 }
  0xdc   :  { %v378_v47 = vadd.f32 %v377_v43, %v986_v42  ;;  %v287_v56 = vpop.f32.mrf.mxu2 }
  0xdd   :  { %v336_v57 = vpop.f32.mrf.mxu3 }
  0xde   :  { %v379_v49 = vadd.f32 %v378_v47, %v989_v46  ;;  %v1008_v61 = vadd.f32 %v336_v57, %v287_v56 }
  0xe0   :  { %v380_v51 = vadd.f32 %v379_v49, %v992_v48 }
  0xe2   :  { %v381_v53 = vadd.f32 %v380_v51, %v995_v50 }
  0xe4   :  { %v382_v55 = vadd.f32 %v381_v53, %v998_v52 }
  0xe6   :  { %v383_v59 = vadd.f32 %v382_v55, %v1001_v54 }
  0xe8   :  { %v384_v60 = vadd.f32 %v383_v59, %v1004_v58 }
  0xea   :  { %v385_v62 = vadd.f32 %v384_v60, %v1008_v61 }
  0xec   :  { %v386_v63 = vrot.slane %v385_v62, 4 }
  0xee   :  { %v387_v0 = vadd.f32 %v386_v63, %v385_v62 }
  0xf0   :  { %v388_v1 = vrot.slane %v387_v0, 2 }
  0xf2   :  { %v389_v2 = vadd.f32 %v388_v1, %v387_v0 }
  0xf4   :  { %v390_v3 = vrot.slane %v389_v2, 1 }
  0xf6   :  { %v391_v4 = vadd.f32 %v390_v3, %v389_v2 }
  0xf8   :  { %v1011_v5 = vmul.f32 0.0078125, %v391_v4 }
  0xfa   :  { %v393_v6 = vsub.f32 %v965_v23, %v1011_v5  ;;  %v394_v7 = vsub.f32 %v963_v22, %v1011_v5  ;;  %v395_v8 = vsub.f32 %v967_v24, %v1011_v5  ;;  %v396_v11 = vsub.f32 %v971_v26, %v1011_v5 }
  0xfb   :  { %v397_v12 = vsub.f32 %v974_v30, %v1011_v5  ;;  %v398_v15 = vsub.f32 %v977_v34, %v1011_v5  ;;  %v399_v18 = vsub.f32 %v980_v36, %v1011_v5  ;;  %v400_v21 = vsub.f32 %v984_v41, %v1011_v5 }
  0xfc   :  { %v409_v9 = vmul.f32 %v393_v6, %v393_v6  ;;  %v410_v10 = vmul.f32 %v394_v7, %v394_v7  ;;  %v411_v13 = vmul.f32 %v395_v8, %v395_v8  ;;  %v412_v16 = vmul.f32 %v396_v11, %v396_v11 }
  0xfd   :  { %v413_v19 = vmul.f32 %v397_v12, %v397_v12  ;;  %v414_v25 = vmul.f32 %v398_v15, %v398_v15  ;;  %v401_v28 = vsub.f32 %v986_v42, %v1011_v5  ;;  %v415_v29 = vmul.f32 %v399_v18, %v399_v18 }
  0xfe   :  { %v425_v14 = vadd.f32 %v410_v10, %v409_v9  ;;  %v402_v32 = vsub.f32 %v989_v46, %v1011_v5  ;;  %v416_v33 = vmul.f32 %v400_v21, %v400_v21  ;;  %v403_v37 = vsub.f32 %v992_v48, %v1011_v5 }
  0xff   :  { %v417_v38 = vmul.f32 %v401_v28, %v401_v28  ;;  %v404_v40 = vsub.f32 %v995_v50, %v1011_v5  ;;  %v405_v45 = vsub.f32 %v998_v52, %v1011_v5  ;;  %v406_v51 = vsub.f32 %v1001_v54, %v1011_v5 }
 0x100   :  { %v426_v17 = vadd.f32 %v425_v14, %v411_v13  ;;  %v418_v43 = vmul.f32 %v402_v32, %v402_v32  ;;  %v419_v47 = vmul.f32 %v403_v37, %v403_v37  ;;  %v407_v56 = vsub.f32 %v1004_v58, %v1011_v5 }
 0x101   :  { %v420_v53 = vmul.f32 %v404_v40, %v404_v40  ;;  %v421_v57 = vmul.f32 %v405_v45, %v405_v45  ;;  %v408_v60 = vsub.f32 %v1008_v61, %v1011_v5  ;;  %v422_v62 = vmul.f32 %v406_v51, %v406_v51 }
 0x102   :  { %v427_v20 = vadd.f32 %v426_v17, %v412_v16  ;;  %v423_v0 = vmul.f32 %v407_v56, %v407_v56 }
 0x103   :  { %v424_v2 = vmul.f32 %v408_v60, %v408_v60 }
 0x104   :  { %v428_v27 = vadd.f32 %v427_v20, %v413_v19  ;;  %v447_v19 = vld [vmem:[%s1094_s2] sm:$0x1] }
 0x106   :  { %v429_v31 = vadd.f32 %v428_v27, %v414_v25  ;;  %v460_v27 = vld [vmem:[%s1095_s3] sm:$0x1] }
 0x108   :  { %v430_v35 = vadd.f32 %v429_v31, %v415_v29 }
 0x10a   :  { %v431_v39 = vadd.f32 %v430_v35, %v416_v33 }
 0x10c   :  { %v432_v44 = vadd.f32 %v431_v39, %v417_v38 }
 0x10e   :  { %v433_v49 = vadd.f32 %v432_v44, %v418_v43 }
 0x110   :  { %v434_v55 = vadd.f32 %v433_v49, %v419_v47 }
 0x112   :  { %v435_v59 = vadd.f32 %v434_v55, %v420_v53 }
 0x114   :  { %v436_v63 = vadd.f32 %v435_v59, %v421_v57 }
 0x116   :  { %v437_v1 = vadd.f32 %v436_v63, %v422_v62 }
 0x118   :  { %v438_v3 = vadd.f32 %v437_v1, %v423_v0 }
 0x11a   :  { %v439_v4 = vadd.f32 %v438_v3, %v424_v2 }
 0x11c   :  { %v440_v6 = vrot.slane %v439_v4, 4 }
 0x11e   :  { %v441_v7 = vadd.f32 %v440_v6, %v439_v4 }
 0x120   :  { %v442_v8 = vrot.slane %v441_v7, 2 }
 0x122   :  { %v443_v9 = vadd.f32 %v442_v8, %v441_v7 }
 0x124   :  { %v444_v10 = vrot.slane %v443_v9, 1 }
 0x126   :  { %v445_v11 = vadd.f32 %v444_v10, %v443_v9 }
 0x128   :  { %v446_v12 = vmul.f32 0.0078125, %v445_v11 }
 0x12a   :  { %v448_v13 = vadd.f32 1e-05, %v446_v12 }
 0x12c   :  { %792 = vrsqrt.f32 %v448_v13  ;;  %vm455_vm1 = vweird.f32 %v448_v13 }
 0x132   :  { %v793_v14 = vpop.eup %792 }
 0x133   :  { %v450_v15 = vmul.f32 %v793_v14, %v448_v13  ;;  %vm456_vm0 = vweird.f32 %v793_v14 }
 0x134   :  { %vm457_vm2 = vmor %vm455_vm1, %vm456_vm0 }
 0x135   :  { %v451_v16 = vmul.f32 %v793_v14, %v450_v15 }
 0x137   :  { %v452_v17 = vmul.f32 0.5, %v451_v16 }
 0x139   :  { %v453_v18 = vsub.f32 1.5, %v452_v17 }
 0x13b   :  { %v454_v20 = vmul.f32 %v793_v14, %v453_v18 }
 0x13d   :  { %v458_v21 = vsel %vm457_vm2, %v793_v14, %v454_v20 }
 0x13e   :  { %v459_v25 = vmul.f32 %v458_v21, %v447_v19 }
 0x140   :  { %v461_v28 = vmul.f32 %v459_v25, %v1011_v5  ;;  %v464_v29 = vperm.slane %v459_v25, 0 }
 0x142   :  { %v462_v31 = vsub.f32 %v460_v27, %v461_v28  ;;  %v466_v32 = vmul.f32 %v464_v29, %v965_v23  ;;  %v467_v33 = vmul.f32 %v464_v29, %v963_v22  ;;  %v468_v35 = vmul.f32 %v464_v29, %v967_v24 }
 0x143   :  { %v469_v37 = vmul.f32 %v464_v29, %v971_v26  ;;  %v470_v38 = vmul.f32 %v464_v29, %v974_v30  ;;  %v471_v39 = vmul.f32 %v464_v29, %v977_v34  ;;  %v472_v40 = vmul.f32 %v464_v29, %v980_v36 }
 0x144   :  { %v473_v43 = vmul.f32 %v464_v29, %v984_v41  ;;  %v474_v5 = vmul.f32 %v464_v29, %v986_v42  ;;  %v475_v44 = vmul.f32 %v464_v29, %v989_v46  ;;  %v483_v45 = vperm.slane %v462_v31, 0 }
 0x145   :  { %v476_v23 = vmul.f32 %v464_v29, %v992_v48  ;;  %v477_v22 = vmul.f32 %v464_v29, %v995_v50  ;;  %v478_v24 = vmul.f32 %v464_v29, %v998_v52  ;;  %v479_v26 = vmul.f32 %v464_v29, %v1001_v54 }
 0x146   :  { %v480_v30 = vmul.f32 %v464_v29, %v1004_v58  ;;  %v485_v34 = vadd.f32 %v483_v45, %v466_v32  ;;  %v486_v47 = vadd.f32 %v483_v45, %v467_v33  ;;  %v487_v36 = vadd.f32 %v483_v45, %v468_v35 }
 0x147   :  { %v481_v41 = vmul.f32 %v464_v29, %v1008_v61  ;;  %v488_v49 = vadd.f32 %v483_v45, %v469_v37  ;;  %v489_v42 = vadd.f32 %v483_v45, %v470_v38  ;;  %v490_v51 = vadd.f32 %v483_v45, %v471_v39 }
 0x148   :  { %v491_v46 = vadd.f32 %v483_v45, %v472_v40  ;;  %v492_v53 = vadd.f32 %v483_v45, %v473_v43  ;;  %v493_v55 = vadd.f32 %v483_v45, %v474_v5  ;;  %v494_v48 = vadd.f32 %v483_v45, %v475_v44 }
 0x149   :  { %v495_v56 = vadd.f32 %v483_v45, %v476_v23  ;;  %v496_v50 = vadd.f32 %v483_v45, %v477_v22  ;;  %v497_v57 = vadd.f32 %v483_v45, %v478_v24  ;;  %v498_v52 = vadd.f32 %v483_v45, %v479_v26 }
 0x14a   :  { %v499_v59 = vadd.f32 %v483_v45, %v480_v30  ;;  %v501_v54 = vmul.f32 0.2, %v485_v34  ;;  %v502_v60 = vmul.f32 0.2, %v486_v47  ;;  %v503_v58 = vmul.f32 0.2, %v487_v36 }
 0x14b   :  { %v500_v62 = vadd.f32 %v483_v45, %v481_v41  ;;  %v504_v63 = vmul.f32 0.2, %v488_v49  ;;  %v505_v0 = vmul.f32 0.2, %v489_v42  ;;  %v506_v1 = vmul.f32 0.2, %v490_v51 }
 0x14c   :  { %v507_v61 = vmul.f32 0.2, %v491_v46  ;;  %v508_v2 = vmul.f32 0.2, %v492_v53  ;;  %v509_v3 = vmul.f32 0.2, %v493_v55  ;;  %v517_v4 = vmax.f32 %v485_v34, %v501_v54 }
 0x14d   :  { %v510_v6 = vmul.f32 0.2, %v494_v48  ;;  %v511_v7 = vmul.f32 0.2, %v495_v56  ;;  %v512_v8 = vmul.f32 0.2, %v496_v50  ;;  %v518_v9 = vmax.f32 %v486_v47, %v502_v60 }
 0x14e   :  { %v513_v10 = vmul.f32 0.2, %v497_v57  ;;  %v514_v11 = vmul.f32 0.2, %v498_v52  ;;  %v515_v12 = vmul.f32 0.2, %v499_v59  ;;  %v519_v13 = vmax.f32 %v487_v36, %v503_v58 }
 0x14f   :  { %v516_v14 = vmul.f32 0.2, %v500_v62  ;;  %v520_v15 = vmax.f32 %v488_v49, %v504_v63  ;;  %v521_v16 = vmax.f32 %v489_v42, %v505_v0  ;;  %v522_v17 = vmax.f32 %v490_v51, %v506_v1 }
 0x150   :  { %v523_v18 = vmax.f32 %v491_v46, %v507_v61  ;;  %v524_v19 = vmax.f32 %v492_v53, %v508_v2  ;;  %v525_v20 = vmax.f32 %v493_v55, %v509_v3  ;;  %v526_v21 = vmax.f32 %v494_v48, %v510_v6 }
 0x151   :  { %v527_v25 = vmax.f32 %v495_v56, %v511_v7  ;;  %v528_v27 = vmax.f32 %v496_v50, %v512_v8  ;;  %v529_v28 = vmax.f32 %v497_v57, %v513_v10  ;;  %v530_v29 = vmax.f32 %v498_v52, %v514_v11 }
 0x152   :  { %v732_v31 = vpack.c.bf16 %v518_v9, %v517_v4  ;;  %v737_v32 = vpack.c.bf16 %v520_v15, %v519_v13  ;;  %v531_v33 = vmax.f32 %v499_v59, %v515_v12  ;;  %v532_v35 = vmax.f32 %v500_v62, %v516_v14 }
 0x153   :  { %v742_v37 = vpack.c.bf16 %v522_v17, %v521_v16  ;;  %v747_v38 = vpack.c.bf16 %v524_v19, %v523_v18  ;;  %v752_v39 = vpack.c.bf16 %v526_v21, %v525_v20  ;;  %v757_v40 = vpack.c.bf16 %v528_v27, %v527_v25 }
 0x154   :  { %733 = vst [vmem:[%s1096_s4] sm:$0xff] %v732_v31   ;;  %v762_v43 = vpack.c.bf16 %v530_v29, %v529_v28  ;;  %v767_v5 = vpack.c.bf16 %v532_v35, %v531_v33 }
 0x155   :  { %769 = vst [vmem:[%s1096_s4 + $0x8] sm:$0xff] %v737_v32  }
 0x156   :  { %770 = vst [vmem:[%s1096_s4 + $0x10] sm:$0xff] %v742_v37  }
 0x157   :  { %771 = vst [vmem:[%s1096_s4 + $0x18] sm:$0xff] %v747_v38  }
 0x158   :  { %772 = vst [vmem:[%s1096_s4 + $0x20] sm:$0xff] %v752_v39  }
 0x159   :  { %773 = vst [vmem:[%s1096_s4 + $0x28] sm:$0xff] %v757_v40  }
 0x15a   :  { %774 = vst [vmem:[%s1096_s4 + $0x30] sm:$0xff] %v762_v43  }
 0x15b   :  { %775 = vst [vmem:[%s1096_s4 + $0x38] sm:$0xff] %v767_v5  }

// kernel: forward.8
= control target key start
LH: loop header
LB: loop body
LE: loop exit
PB: predicated region body
PF: predicated region fallthrough
CT: control target
= control target key end

     0   :  { %s877_s1 = inlined_call_operand.vmem [shape: bf16[512,128], index: 1, kind: input, shape index: {}]   ;;  %s878_s0 = inlined_call_operand.vmem [shape: bf16[32,512], index: 0, kind: input, shape index: {}]   ;;  %s879_s2 = inlined_call_operand.vmem [shape: f32[1,128], index: 2, kind: input, shape index: {}]   ;;  %s880_s3 = inlined_call_operand.vmem [shape: f32[1,128], index: 3, kind: input, shape index: {}]   ;;  %s881_s4 = inlined_call_operand.vmem [shape: bf16[32,128], index: 4, kind: output, shape index: {}]  }
   0x1   :  { %v658_v0 = vld [vmem:[%s877_s1 + $0x38] sm:$0xff]  ;;  %v657_v4 = vld [vmem:[%s877_s1 + $0x30] sm:$0xff]  ;;  %v656_v8 = vld [vmem:[%s877_s1 + $0x28] sm:$0xff] }
   0x2   :  { %v666_v1 = vld [vmem:[%s877_s1 + $0x78] sm:$0xff]  ;;  %321 = vmatpush.bf16.msra.mxu0 %v658_v0  ;;  %v665_v5 = vld [vmem:[%s877_s1 + $0x70] sm:$0xff]  ;;  %v664_v9 = vld [vmem:[%s877_s1 + $0x68] sm:$0xff] }
   0x3   :  { %v674_v2 = vld [vmem:[%s877_s1 + $0xb8] sm:$0xff]  ;;  %340 = vmatpush.bf16.msra.mxu1 %v666_v1  ;;  %v673_v6 = vld [vmem:[%s877_s1 + $0xb0] sm:$0xff]  ;;  %v672_v10 = vld [vmem:[%s877_s1 + $0xa8] sm:$0xff] }
   0x4   :  { %v682_v3 = vld [vmem:[%s877_s1 + $0xf8] sm:$0xff]  ;;  %359 = vmatpush.bf16.msra.mxu2 %v674_v2  ;;  %v681_v7 = vld [vmem:[%s877_s1 + $0xf0] sm:$0xff]  ;;  %v680_v11 = vld [vmem:[%s877_s1 + $0xe8] sm:$0xff] }
   0x5   :  { %378 = vmatpush.bf16.msra.mxu3 %v682_v3  ;;  %v655_v12 = vld [vmem:[%s877_s1 + $0x20] sm:$0xff]  ;;  %v654_v16 = vld [vmem:[%s877_s1 + $0x18] sm:$0xff]  ;;  %v653_v20 = vld [vmem:[%s877_s1 + $0x10] sm:$0xff] }
   0x6   :  { %322 = vmatpush.bf16.msra.mxu0 %v657_v4  ;;  %v663_v13 = vld [vmem:[%s877_s1 + $0x60] sm:$0xff]  ;;  %v662_v17 = vld [vmem:[%s877_s1 + $0x58] sm:$0xff]  ;;  %v661_v21 = vld [vmem:[%s877_s1 + $0x50] sm:$0xff] }
   0x7   :  { %341 = vmatpush.bf16.msra.mxu1 %v665_v5  ;;  %v671_v14 = vld [vmem:[%s877_s1 + $0xa0] sm:$0xff]  ;;  %v670_v18 = vld [vmem:[%s877_s1 + $0x98] sm:$0xff]  ;;  %v669_v22 = vld [vmem:[%s877_s1 + $0x90] sm:$0xff] }
   0x8   :  { %360 = vmatpush.bf16.msra.mxu2 %v673_v6  ;;  %v679_v15 = vld [vmem:[%s877_s1 + $0xe0] sm:$0xff]  ;;  %v678_v19 = vld [vmem:[%s877_s1 + $0xd8] sm:$0xff]  ;;  %v677_v23 = vld [vmem:[%s877_s1 + $0xd0] sm:$0xff] }
   0x9   :  { %379 = vmatpush.bf16.msra.mxu3 %v681_v7  ;;  %v652_v24 = vld [vmem:[%s877_s1 + $0x8] sm:$0xff]  ;;  %v651_v28 = vld [vmem:[%s877_s1] sm:$0xff]  ;;  %v645_v33 = vld [vmem:[%s878_s0 + $0xc] sm:$0xf0] }
   0xa   :  { %323 = vmatpush.bf16.msra.mxu0 %v656_v8  ;;  %v660_v25 = vld [vmem:[%s877_s1 + $0x48] sm:$0xff]  ;;  %v659_v29 = vld [vmem:[%s877_s1 + $0x40] sm:$0xff]  ;;  %v487_v35 = vld [vmem:[%s878_s0 + $0x10] sm:$0xf0] }
   0xb   :  { %342 = vmatpush.bf16.msra.mxu1 %v664_v9  ;;  %v668_v26 = vld [vmem:[%s877_s1 + $0x88] sm:$0xff]  ;;  %v667_v30 = vld [vmem:[%s877_s1 + $0x80] sm:$0xff]  ;;  %v646_v37 = vld [vmem:[%s878_s0 + $0x14] sm:$0xf0] }
   0xc   :  { %361 = vmatpush.bf16.msra.mxu2 %v672_v10  ;;  %v676_v27 = vld [vmem:[%s877_s1 + $0xc8] sm:$0xff]  ;;  %v675_v31 = vld [vmem:[%s877_s1 + $0xc0] sm:$0xff]  ;;  %v495_v39 = vld [vmem:[%s878_s0 + $0x18] sm:$0xf0] }
   0xd   :  { %380 = vmatpush.bf16.msra.mxu3 %v680_v11  ;;  %v485_v32 = vld [vmem:[%s878_s0] sm:$0xf]  ;;  %v643_v34 = vld [vmem:[%s878_s0 + $0x4] sm:$0xf]  ;;  %v493_v36 = vld [vmem:[%s878_s0 + $0x8] sm:$0xf] }
   0xe   :  { %324 = vmatpush.bf16.msra.mxu0 %v655_v12  ;;  %v644_v38 = vld [vmem:[%s878_s0 + $0xc] sm:$0xf]  ;;  %v486_v40 = vor.u32 %v645_v33, %v485_v32  ;;  %v490_v41 = vor.u32 %v643_v34, %v487_v35  ;;  %v494_v42 = vor.u32 %v646_v37, %v493_v36  ;;  %v501_v44 = vld [vmem:[%s878_s0 + $0x20] sm:$0xf]  ;;  %v649_v45 = vld [vmem:[%s878_s0 + $0x2c] sm:$0xf0] }
   0xf   :  { %343 = vmatpush.bf16.msra.mxu1 %v663_v13  ;;  %v498_v43 = vor.u32 %v644_v38, %v495_v39  ;;  %v647_v46 = vld [vmem:[%s878_s0 + $0x24] sm:$0xf]  ;;  %v503_v47 = vld [vmem:[%s878_s0 + $0x30] sm:$0xf0]  ;;  %v509_v48 = vld [vmem:[%s878_s0 + $0x28] sm:$0xf]  ;;  %v502_v52 = vor.u32 %v649_v45, %v501_v44 }
  0x10   :  { %362 = vmatpush.bf16.msra.mxu2 %v671_v14  ;;  %v650_v49 = vld [vmem:[%s878_s0 + $0x34] sm:$0xf0]  ;;  %v648_v50 = vld [vmem:[%s878_s0 + $0x2c] sm:$0xf]  ;;  %v511_v51 = vld [vmem:[%s878_s0 + $0x38] sm:$0xf0]  ;;  %v506_v53 = vor.u32 %v647_v46, %v503_v47 }
  0x11   :  { %381 = vmatpush.bf16.msra.mxu3 %v679_v15  ;;  %v510_v54 = vor.u32 %v650_v49, %v509_v48  ;;  %v514_v55 = vor.u32 %v648_v50, %v511_v51 }
  0x12   :  { %325 = vmatpush.bf16.msra.mxu0 %v654_v16 }
  0x13   :  { %344 = vmatpush.bf16.msra.mxu1 %v662_v17 }
  0x14   :  { %363 = vmatpush.bf16.msra.mxu2 %v670_v18 }
  0x15   :  { %382 = vmatpush.bf16.msra.mxu3 %v678_v19 }
  0x16   :  { %326 = vmatpush.bf16.msra.mxu0 %v653_v20 }
  0x17   :  { %345 = vmatpush.bf16.msra.mxu1 %v661_v21 }
  0x18   :  { %364 = vmatpush.bf16.msra.mxu2 %v669_v22 }
  0x19   :  { %383 = vmatpush.bf16.msra.mxu3 %v677_v23 }
  0x1a   :  { %327 = vmatpush.bf16.msra.mxu0 %v652_v24 }
  0x1b   :  { %346 = vmatpush.bf16.msra.mxu1 %v660_v25 }
  0x1c   :  { %365 = vmatpush.bf16.msra.mxu2 %v668_v26 }
  0x1d   :  { %384 = vmatpush.bf16.msra.mxu3 %v676_v27 }
  0x1e   :  { %328 = vmatpush.bf16.msra.mxu0 %v651_v28 }
  0x1f   :  { %347 = vmatpush.bf16.msra.mxu1 %v659_v29 }
  0x20   :  { %366 = vmatpush.bf16.msra.mxu2 %v667_v30 }
  0x21   :  { %385 = vmatpush.bf16.msra.mxu3 %v675_v31  ;;  %329 = vmatmul.bf16.vlgmr.msra.gmra.mxu0 %v486_v40 }
  0x22   :  { %348 = vmatmul.bf16.vlgmr.msra.gmra.mxu1 %v490_v41 }
  0x23   :  { %367 = vmatmul.bf16.vlgmr.msra.gmra.mxu2 %v494_v42 }
  0x24   :  { %386 = vmatmul.bf16.vlgmr.msra.gmra.mxu3 %v498_v43 }
  0x31   :  { %334 = vmatmul.bf16.gmra.mxu0 %v502_v52 }
  0x32   :  { %353 = vmatmul.bf16.gmra.mxu1 %v506_v53 }
  0x33   :  { %372 = vmatmul.bf16.gmra.mxu2 %v510_v54  ;;  %v433_v54 = vld [vmem:[%s879_s2] sm:$0x1] }
  0x34   :  { %391 = vmatmul.bf16.gmra.mxu3 %v514_v55 }
  0x9e   :  { %v330_v56 = vpop.f32.mrf.mxu0 }
  0x9f   :  { %v349_v57 = vpop.f32.mrf.mxu1 }
  0xa0   :  { %v350_v2 = vadd.f32 %v349_v57, %v330_v56 }
  0xa6   :  { %v368_v58 = vpop.f32.mrf.mxu2  ;;  %v332_v60 = vpop.f32.mrf.mxu0 }
  0xa7   :  { %v387_v59 = vpop.f32.mrf.mxu3  ;;  %v351_v61 = vpop.f32.mrf.mxu1  ;;  %v369_v8 = vadd.f32 %v368_v58, %v350_v2  ;;  %v446_v58 = vld [vmem:[%s880_s3] sm:$0x1] }
  0xa8   :  { %v352_v3 = vadd.f32 %v351_v61, %v332_v60 }
  0xa9   :  { %v388_v13 = vadd.f32 %v387_v59, %v369_v8 }
  0xae   :  { %v370_v62 = vpop.f32.mrf.mxu2  ;;  %v335_v0 = vpop.f32.mrf.mxu0 }
  0xaf   :  { %v389_v63 = vpop.f32.mrf.mxu3  ;;  %v354_v1 = vpop.f32.mrf.mxu1  ;;  %v371_v7 = vadd.f32 %v370_v62, %v352_v3 }
  0xb0   :  { %v355_v4 = vadd.f32 %v354_v1, %v335_v0 }
  0xb1   :  { %v390_v12 = vadd.f32 %v389_v63, %v371_v7 }
  0xb3   :  { %v405_v17 = vadd.f32 %v390_v12, %v388_v13 }
  0xb6   :  { %v373_v5 = vpop.f32.mrf.mxu2  ;;  %v337_v10 = vpop.f32.mrf.mxu0 }
  0xb7   :  { %v392_v6 = vpop.f32.mrf.mxu3  ;;  %v374_v9 = vadd.f32 %v373_v5, %v355_v4  ;;  %v356_v11 = vpop.f32.mrf.mxu1 }
  0xb8   :  { %v357_v15 = vadd.f32 %v356_v11, %v337_v10 }
  0xb9   :  { %v393_v14 = vadd.f32 %v392_v6, %v374_v9 }
  0xbb   :  { %v406_v20 = vadd.f32 %v405_v17, %v393_v14 }
  0xbe   :  { %v375_v16 = vpop.f32.mrf.mxu2 }
  0xbf   :  { %v376_v18 = vadd.f32 %v375_v16, %v357_v15  ;;  %v394_v19 = vpop.f32.mrf.mxu3 }
  0xc1   :  { %v395_v21 = vadd.f32 %v394_v19, %v376_v18 }
  0xc3   :  { %v407_v22 = vadd.f32 %v406_v20, %v395_v21 }
  0xc5   :  { %v408_v23 = vrot.slane %v407_v22, 4 }
  0xc7   :  { %v409_v24 = vadd.f32 %v408_v23, %v407_v22 }
  0xc9   :  { %v410_v25 = vrot.slane %v409_v24, 2 }
  0xcb   :  { %v411_v26 = vadd.f32 %v410_v25, %v409_v24 }
  0xcd   :  { %v412_v27 = vrot.slane %v411_v26, 1 }
  0xcf   :  { %v413_v28 = vadd.f32 %v412_v27, %v411_v26 }
  0xd1   :  { %v414_v29 = vmul.f32 0.03125, %v413_v28 }
  0xd3   :  { %v415_v30 = vsub.f32 %v388_v13, %v414_v29  ;;  %v416_v31 = vsub.f32 %v390_v12, %v414_v29  ;;  %v417_v32 = vsub.f32 %v393_v14, %v414_v29  ;;  %v418_v33 = vsub.f32 %v395_v21, %v414_v29 }
  0xd5   :  { %v419_v34 = vmul.f32 %v415_v30, %v415_v30  ;;  %v420_v35 = vmul.f32 %v416_v31, %v416_v31  ;;  %v421_v36 = vmul.f32 %v417_v32, %v417_v32  ;;  %v422_v38 = vmul.f32 %v418_v33, %v418_v33 }
  0xd7   :  { %v423_v37 = vadd.f32 %v420_v35, %v419_v34 }
  0xd9   :  { %v424_v39 = vadd.f32 %v423_v37, %v421_v36 }
  0xdb   :  { %v425_v40 = vadd.f32 %v424_v39, %v422_v38 }
  0xdd   :  { %v426_v41 = vrot.slane %v425_v40, 4 }
  0xdf   :  { %v427_v42 = vadd.f32 %v426_v41, %v425_v40 }
  0xe1   :  { %v428_v43 = vrot.slane %v427_v42, 2 }
  0xe3   :  { %v429_v44 = vadd.f32 %v428_v43, %v427_v42 }
  0xe5   :  { %v430_v45 = vrot.slane %v429_v44, 1 }
  0xe7   :  { %v431_v46 = vadd.f32 %v430_v45, %v429_v44 }
  0xe9   :  { %v432_v47 = vmul.f32 0.03125, %v431_v46 }
  0xeb   :  { %v434_v48 = vadd.f32 1e-05, %v432_v47 }
  0xed   :  { %694 = vrsqrt.f32 %v434_v48  ;;  %vm441_vm1 = vweird.f32 %v434_v48 }
  0xf3   :  { %v695_v49 = vpop.eup %694 }
  0xf4   :  { %v436_v50 = vmul.f32 %v695_v49, %v434_v48  ;;  %vm442_vm0 = vweird.f32 %v695_v49 }
  0xf5   :  { %vm443_vm2 = vmor %vm441_vm1, %vm442_vm0 }
  0xf6   :  { %v437_v51 = vmul.f32 %v695_v49, %v436_v50 }
  0xf8   :  { %v438_v52 = vmul.f32 0.5, %v437_v51 }
  0xfa   :  { %v439_v53 = vsub.f32 1.5, %v438_v52 }
  0xfc   :  { %v440_v55 = vmul.f32 %v695_v49, %v439_v53 }
  0xfe   :  { %v444_v56 = vsel %vm443_vm2, %v695_v49, %v440_v55 }
  0xff   :  { %v445_v57 = vmul.f32 %v444_v56, %v433_v54 }
 0x101   :  { %v447_v59 = vmul.f32 %v445_v57, %v414_v29  ;;  %v450_v60 = vperm.slane %v445_v57, 0 }
 0x103   :  { %v448_v61 = vsub.f32 %v446_v58, %v447_v59  ;;  %v452_v62 = vmul.f32 %v450_v60, %v388_v13  ;;  %v453_v63 = vmul.f32 %v450_v60, %v390_v12  ;;  %v454_v0 = vmul.f32 %v450_v60, %v393_v14 }
 0x104   :  { %v455_v1 = vmul.f32 %v450_v60, %v395_v21 }
 0x105   :  { %v457_v2 = vperm.slane %v448_v61, 0 }
 0x107   :  { %v459_v3 = vadd.f32 %v457_v2, %v452_v62  ;;  %v460_v4 = vadd.f32 %v457_v2, %v453_v63  ;;  %v461_v5 = vadd.f32 %v457_v2, %v454_v0  ;;  %v462_v6 = vadd.f32 %v457_v2, %v455_v1 }
 0x109   :  { %v463_v7 = vmul.f32 0.2, %v459_v3  ;;  %v464_v8 = vmul.f32 0.2, %v460_v4  ;;  %v465_v9 = vmul.f32 0.2, %v461_v5 }
 0x10a   :  { %v466_v10 = vmul.f32 0.2, %v462_v6 }
 0x10b   :  { %v467_v11 = vmax.f32 %v459_v3, %v463_v7  ;;  %v468_v15 = vmax.f32 %v460_v4, %v464_v8  ;;  %v469_v16 = vmax.f32 %v461_v5, %v465_v9 }
 0x10c   :  { %v470_v17 = vmax.f32 %v462_v6, %v466_v10 }
 0x10d   :  { %v686_v18 = vpack.c.bf16 %v468_v15, %v467_v11 }
 0x10e   :  { %v691_v19 = vpack.c.bf16 %v470_v17, %v469_v16 }
 0x10f   :  { %687 = vst [vmem:[%s881_s4] sm:$0xff] %v686_v18  }
 0x110   :  { %693 = vst [vmem:[%s881_s4 + $0x8] sm:$0xff] %v691_v19  }

// kernel: forward.9
= control target key start
LH: loop header
LB: loop body
LE: loop exit
PB: predicated region body
PF: predicated region fallthrough
CT: control target
= control target key end

     0   :  { %s1388_s1 = inlined_call_operand.vmem [shape: bf16[1024,128], index: 1, kind: input, shape index: {}]   ;;  %s1389_s2 = inlined_call_operand.vmem [shape: f32[1,128], index: 2, kind: input, shape index: {}]   ;;  %s1390_s0 = inlined_call_operand.vmem [shape: bf16[8,1024], index: 0, kind: input, shape index: {}]   ;;  %s1391_s4 = inlined_call_operand.vmem [shape: f32[1,128], index: 4, kind: input, shape index: {}]   ;;  %s1392_s3 = inlined_call_operand.vmem [shape: bf16[128,128], index: 3, kind: input, shape index: {}]   ;;  %s1393_s5 = inlined_call_operand.vmem [shape: f32[8,128], index: 5, kind: output, shape index: {}]  }
   0x1   :  { %v1054_v0 = vld [vmem:[%s1388_s1 + $0x38] sm:$0xff]  ;;  %v1053_v4 = vld [vmem:[%s1388_s1 + $0x30] sm:$0xff]  ;;  %v1052_v8 = vld [vmem:[%s1388_s1 + $0x28] sm:$0xff] }
   0x2   :  { %v1062_v1 = vld [vmem:[%s1388_s1 + $0x78] sm:$0xff]  ;;  %568 = vmatpush.bf16.msra.mxu0 %v1054_v0  ;;  %v1061_v5 = vld [vmem:[%s1388_s1 + $0x70] sm:$0xff]  ;;  %v1060_v9 = vld [vmem:[%s1388_s1 + $0x68] sm:$0xff] }
   0x3   :  { %v1070_v2 = vld [vmem:[%s1388_s1 + $0xb8] sm:$0xff]  ;;  %581 = vmatpush.bf16.msra.mxu1 %v1062_v1  ;;  %v1069_v6 = vld [vmem:[%s1388_s1 + $0xb0] sm:$0xff]  ;;  %v1068_v10 = vld [vmem:[%s1388_s1 + $0xa8] sm:$0xff] }
   0x4   :  { %v1078_v3 = vld [vmem:[%s1388_s1 + $0xf8] sm:$0xff]  ;;  %594 = vmatpush.bf16.msra.mxu2 %v1070_v2  ;;  %v1077_v7 = vld [vmem:[%s1388_s1 + $0xf0] sm:$0xff]  ;;  %v1076_v11 = vld [vmem:[%s1388_s1 + $0xe8] sm:$0xff] }
   0x5   :  { %607 = vmatpush.bf16.msra.mxu3 %v1078_v3  ;;  %v1051_v12 = vld [vmem:[%s1388_s1 + $0x20] sm:$0xff]  ;;  %v1050_v16 = vld [vmem:[%s1388_s1 + $0x18] sm:$0xff]  ;;  %v1049_v20 = vld [vmem:[%s1388_s1 + $0x10] sm:$0xff] }
   0x6   :  { %569 = vmatpush.bf16.msra.mxu0 %v1053_v4  ;;  %v1059_v13 = vld [vmem:[%s1388_s1 + $0x60] sm:$0xff]  ;;  %v1058_v17 = vld [vmem:[%s1388_s1 + $0x58] sm:$0xff]  ;;  %v1057_v21 = vld [vmem:[%s1388_s1 + $0x50] sm:$0xff] }
   0x7   :  { %582 = vmatpush.bf16.msra.mxu1 %v1061_v5  ;;  %v1067_v14 = vld [vmem:[%s1388_s1 + $0xa0] sm:$0xff]  ;;  %v1066_v18 = vld [vmem:[%s1388_s1 + $0x98] sm:$0xff]  ;;  %v1065_v22 = vld [vmem:[%s1388_s1 + $0x90] sm:$0xff] }
   0x8   :  { %595 = vmatpush.bf16.msra.mxu2 %v1069_v6  ;;  %v1075_v15 = vld [vmem:[%s1388_s1 + $0xe0] sm:$0xff]  ;;  %v1074_v19 = vld [vmem:[%s1388_s1 + $0xd8] sm:$0xff]  ;;  %v1073_v23 = vld [vmem:[%s1388_s1 + $0xd0] sm:$0xff] }
   0x9   :  { %608 = vmatpush.bf16.msra.mxu3 %v1077_v7  ;;  %v1048_v24 = vld [vmem:[%s1388_s1 + $0x8] sm:$0xff]  ;;  %v20_v29 = vld [vmem:[%s1390_s0] sm:$0xff]  ;;  %v1086_v38 = vld [vmem:[%s1388_s1 + $0x138] sm:$0xff] }
   0xa   :  { %570 = vmatpush.bf16.msra.mxu0 %v1052_v8  ;;  %v1056_v25 = vld [vmem:[%s1388_s1 + $0x48] sm:$0xff]  ;;  %v1047_v30 = vld [vmem:[%s1388_s1] sm:$0xff]  ;;  %v160_v33 = vunpack.c.l.b16 %v20_v29  ;;  %v161_v37 = vunpack.c.h.b16 %v20_v29  ;;  %v1094_v39 = vld [vmem:[%s1388_s1 + $0x178] sm:$0xff] }
   0xb   :  { %583 = vmatpush.bf16.msra.mxu1 %v1060_v9  ;;  %v1064_v26 = vld [vmem:[%s1388_s1 + $0x88] sm:$0xff]  ;;  %v1055_v31 = vld [vmem:[%s1388_s1 + $0x40] sm:$0xff]  ;;  %v1102_v40 = vld [vmem:[%s1388_s1 + $0x1b8] sm:$0xff] }
   0xc   :  { %596 = vmatpush.bf16.msra.mxu2 %v1068_v10  ;;  %v1072_v27 = vld [vmem:[%s1388_s1 + $0xc8] sm:$0xff]  ;;  %v1063_v34 = vld [vmem:[%s1388_s1 + $0x80] sm:$0xff]  ;;  %v1110_v41 = vld [vmem:[%s1388_s1 + $0x1f8] sm:$0xff]  ;;  %v168_v43 = vpack.c.b16 %v160_v33, %v160_v33  ;;  %v169_v45 = vpack.c.b16 %v161_v37, %v161_v37 }
   0xd   :  { %609 = vmatpush.bf16.msra.mxu3 %v1076_v11  ;;  %v21_v28 = vld [vmem:[%s1390_s0 + $0x8] sm:$0xff]  ;;  %v1071_v35 = vld [vmem:[%s1388_s1 + $0xc0] sm:$0xff]  ;;  %v1085_v46 = vld [vmem:[%s1388_s1 + $0x130] sm:$0xff] }
   0xe   :  { %571 = vmatpush.bf16.msra.mxu0 %v1051_v12  ;;  %v162_v32 = vunpack.c.l.b16 %v21_v28  ;;  %v163_v36 = vunpack.c.h.b16 %v21_v28  ;;  %v1093_v47 = vld [vmem:[%s1388_s1 + $0x170] sm:$0xff]  ;;  %v1084_v50 = vld [vmem:[%s1388_s1 + $0x128] sm:$0xff]  ;;  %v1083_v54 = vld [vmem:[%s1388_s1 + $0x120] sm:$0xff] }
   0xf   :  { %584 = vmatpush.bf16.msra.mxu1 %v1059_v13  ;;  %v1101_v48 = vld [vmem:[%s1388_s1 + $0x1b0] sm:$0xff]  ;;  %v1092_v51 = vld [vmem:[%s1388_s1 + $0x168] sm:$0xff]  ;;  %v1091_v55 = vld [vmem:[%s1388_s1 + $0x160] sm:$0xff] }
  0x10   :  { %597 = vmatpush.bf16.msra.mxu2 %v1067_v14  ;;  %v170_v42 = vpack.c.b16 %v162_v32, %v162_v32  ;;  %v171_v44 = vpack.c.b16 %v163_v36, %v163_v36  ;;  %v1109_v49 = vld [vmem:[%s1388_s1 + $0x1f0] sm:$0xff]  ;;  %v1100_v52 = vld [vmem:[%s1388_s1 + $0x1a8] sm:$0xff]  ;;  %v1099_v56 = vld [vmem:[%s1388_s1 + $0x1a0] sm:$0xff] }
  0x11   :  { %610 = vmatpush.bf16.msra.mxu3 %v1075_v15  ;;  %v1108_v53 = vld [vmem:[%s1388_s1 + $0x1e8] sm:$0xff]  ;;  %v1107_v57 = vld [vmem:[%s1388_s1 + $0x1e0] sm:$0xff]  ;;  %v1082_v58 = vld [vmem:[%s1388_s1 + $0x118] sm:$0xff] }
  0x12   :  { %572 = vmatpush.bf16.msra.mxu0 %v1050_v16  ;;  %v1090_v59 = vld [vmem:[%s1388_s1 + $0x158] sm:$0xff]  ;;  %v1081_v62 = vld [vmem:[%s1388_s1 + $0x110] sm:$0xff]  ;;  %v1080_v2 = vld [vmem:[%s1388_s1 + $0x108] sm:$0xff] }
  0x13   :  { %585 = vmatpush.bf16.msra.mxu1 %v1058_v17  ;;  %v1098_v60 = vld [vmem:[%s1388_s1 + $0x198] sm:$0xff]  ;;  %v1089_v63 = vld [vmem:[%s1388_s1 + $0x150] sm:$0xff]  ;;  %v1088_v3 = vld [vmem:[%s1388_s1 + $0x148] sm:$0xff] }
  0x14   :  { %598 = vmatpush.bf16.msra.mxu2 %v1066_v18  ;;  %v1106_v61 = vld [vmem:[%s1388_s1 + $0x1d8] sm:$0xff]  ;;  %v1097_v0 = vld [vmem:[%s1388_s1 + $0x190] sm:$0xff]  ;;  %v1096_v5 = vld [vmem:[%s1388_s1 + $0x188] sm:$0xff] }
  0x15   :  { %611 = vmatpush.bf16.msra.mxu3 %v1074_v19  ;;  %v1105_v1 = vld [vmem:[%s1388_s1 + $0x1d0] sm:$0xff]  ;;  %v1104_v6 = vld [vmem:[%s1388_s1 + $0x1c8] sm:$0xff]  ;;  %v23_v7 = vld [vmem:[%s1390_s0 + $0x18] sm:$0xff] }
  0x16   :  { %573 = vmatpush.bf16.msra.mxu0 %v1049_v20  ;;  %v22_v4 = vld [vmem:[%s1390_s0 + $0x10] sm:$0xff]  ;;  %v1079_v10 = vld [vmem:[%s1388_s1 + $0x100] sm:$0xff]  ;;  %v166_v12 = vunpack.c.l.b16 %v23_v7  ;;  %v167_v13 = vunpack.c.h.b16 %v23_v7  ;;  %v1118_v20 = vld [vmem:[%s1392_s3 + $0x38] sm:$0xff] }
  0x17   :  { %586 = vmatpush.bf16.msra.mxu1 %v1057_v21  ;;  %v164_v8 = vunpack.c.l.b16 %v22_v4  ;;  %v165_v9 = vunpack.c.h.b16 %v22_v4  ;;  %v1087_v11 = vld [vmem:[%s1388_s1 + $0x140] sm:$0xff]  ;;  %v1117_v21 = vld [vmem:[%s1392_s3 + $0x30] sm:$0xff]  ;;  %v1112_v28 = vld [vmem:[%s1392_s3 + $0x8] sm:$0xff] }
  0x18   :  { %599 = vmatpush.bf16.msra.mxu2 %v1065_v22  ;;  %v1095_v14 = vld [vmem:[%s1388_s1 + $0x180] sm:$0xff]  ;;  %v174_v18 = vpack.c.b16 %v166_v12, %v166_v12  ;;  %v175_v19 = vpack.c.b16 %v167_v13, %v167_v13  ;;  %v1116_v22 = vld [vmem:[%s1392_s3 + $0x28] sm:$0xff] }
  0x19   :  { %612 = vmatpush.bf16.msra.mxu3 %v1073_v23  ;;  %v1103_v15 = vld [vmem:[%s1388_s1 + $0x1c0] sm:$0xff]  ;;  %v172_v16 = vpack.c.b16 %v164_v8, %v164_v8  ;;  %v173_v17 = vpack.c.b16 %v165_v9, %v165_v9 }
  0x1a   :  { %574 = vmatpush.bf16.msra.mxu0 %v1048_v24  ;;  %v1115_v23 = vld [vmem:[%s1392_s3 + $0x20] sm:$0xff]  ;;  %v1114_v24 = vld [vmem:[%s1392_s3 + $0x18] sm:$0xff] }
  0x1b   :  { %587 = vmatpush.bf16.msra.mxu1 %v1056_v25  ;;  %v1113_v25 = vld [vmem:[%s1392_s3 + $0x10] sm:$0xff] }
  0x1c   :  { %600 = vmatpush.bf16.msra.mxu2 %v1064_v26 }
  0x1d   :  { %613 = vmatpush.bf16.msra.mxu3 %v1072_v27 }
  0x1e   :  { %575 = vmatpush.bf16.msra.mxu0 %v1047_v30  ;;  %v1111_v30 = vld [vmem:[%s1392_s3] sm:$0xff] }
  0x1f   :  { %588 = vmatpush.bf16.msra.mxu1 %v1055_v31 }
  0x20   :  { %601 = vmatpush.bf16.msra.mxu2 %v1063_v34  ;;  %v1119_v34 = vld [vmem:[%s1389_s2] ss:$0 sm:$0xff] }
  0x21   :  { %614 = vmatpush.bf16.msra.mxu3 %v1071_v35  ;;  %576 = vmatmul.bf16.vlgmr.msra.gmra.mxu0 %v168_v43 }
  0x22   :  { %620 = vmatpush.bf16.msrb.mxu0 %v1086_v38  ;;  %589 = vmatmul.bf16.vlgmr.msra.gmra.mxu1 %v169_v45 }
  0x23   :  { %633 = vmatpush.bf16.msrb.mxu1 %v1094_v39  ;;  %602 = vmatmul.bf16.vlgmr.msra.gmra.mxu2 %v170_v42 }
  0x24   :  { %646 = vmatpush.bf16.msrb.mxu2 %v1102_v40  ;;  %615 = vmatmul.bf16.vlgmr.msra.gmra.mxu3 %v171_v44 }
  0x25   :  { %659 = vmatpush.bf16.msrb.mxu3 %v1110_v41 }
  0x26   :  { %621 = vmatpush.bf16.msrb.mxu0 %v1085_v46 }
  0x27   :  { %634 = vmatpush.bf16.msrb.mxu1 %v1093_v47 }
  0x28   :  { %647 = vmatpush.bf16.msrb.mxu2 %v1101_v48 }
  0x29   :  { %660 = vmatpush.bf16.msrb.mxu3 %v1109_v49 }
  0x2a   :  { %622 = vmatpush.bf16.msrb.mxu0 %v1084_v50 }
  0x2b   :  { %635 = vmatpush.bf16.msrb.mxu1 %v1092_v51 }
  0x2c   :  { %648 = vmatpush.bf16.msrb.mxu2 %v1100_v52 }
  0x2d   :  { %661 = vmatpush.bf16.msrb.mxu3 %v1108_v53 }
  0x2e   :  { %623 = vmatpush.bf16.msrb.mxu0 %v1083_v54  ;;  %v1120_v54 = vld [vmem:[%s1391_s4] ss:$0 sm:$0xff] }
  0x2f   :  { %636 = vmatpush.bf16.msrb.mxu1 %v1091_v55 }
  0x30   :  { %649 = vmatpush.bf16.msrb.mxu2 %v1099_v56 }
  0x31   :  { %662 = vmatpush.bf16.msrb.mxu3 %v1107_v57 }
  0x32   :  { %624 = vmatpush.bf16.msrb.mxu0 %v1082_v58 }
  0x33   :  { %637 = vmatpush.bf16.msrb.mxu1 %v1090_v59 }
  0x34   :  { %650 = vmatpush.bf16.msrb.mxu2 %v1098_v60 }
  0x35   :  { %663 = vmatpush.bf16.msrb.mxu3 %v1106_v61 }
  0x36   :  { %625 = vmatpush.bf16.msrb.mxu0 %v1081_v62 }
  0x37   :  { %638 = vmatpush.bf16.msrb.mxu1 %v1089_v63 }
  0x38   :  { %651 = vmatpush.bf16.msrb.mxu2 %v1097_v0 }
  0x39   :  { %664 = vmatpush.bf16.msrb.mxu3 %v1105_v1 }
  0x3a   :  { %626 = vmatpush.bf16.msrb.mxu0 %v1080_v2 }
  0x3b   :  { %639 = vmatpush.bf16.msrb.mxu1 %v1088_v3 }
  0x3c   :  { %652 = vmatpush.bf16.msrb.mxu2 %v1096_v5 }
  0x3d   :  { %665 = vmatpush.bf16.msrb.mxu3 %v1104_v6 }
  0x3e   :  { %627 = vmatpush.bf16.msrb.mxu0 %v1079_v10 }
  0x3f   :  { %640 = vmatpush.bf16.msrb.mxu1 %v1087_v11 }
  0x40   :  { %653 = vmatpush.bf16.msrb.mxu2 %v1095_v14 }
  0x41   :  { %666 = vmatpush.bf16.msrb.mxu3 %v1103_v15  ;;  %628 = vmatmul.bf16.vlgmr.msrb.gmra.mxu0 %v172_v16 }
  0x42   :  { %641 = vmatmul.bf16.vlgmr.msrb.gmra.mxu1 %v173_v17  ;;  %741 = vmatpush.bf16.msra.mxu0 %v1118_v20 }
  0x43   :  { %654 = vmatmul.bf16.vlgmr.msrb.gmra.mxu2 %v174_v18 }
  0x44   :  { %667 = vmatmul.bf16.vlgmr.msrb.gmra.mxu3 %v175_v19 }
  0x46   :  { %742 = vmatpush.bf16.msra.mxu0 %v1117_v21 }
  0x4a   :  { %743 = vmatpush.bf16.msra.mxu0 %v1116_v22 }
  0x4e   :  { %744 = vmatpush.bf16.msra.mxu0 %v1115_v23 }
  0x52   :  { %745 = vmatpush.bf16.msra.mxu0 %v1114_v24 }
  0x56   :  { %746 = vmatpush.bf16.msra.mxu0 %v1113_v25 }
  0x5a   :  { %747 = vmatpush.bf16.msra.mxu0 %v1112_v28 }
  0x5e   :  { %748 = vmatpush.bf16.msra.mxu0 %v1111_v30 }
  0x9e   :  { %v577_v26 = vpop.f32.mrf.mxu0 }
  0x9f   :  { %v590_v27 = vpop.f32.mrf.mxu1  ;;  %v578_v37 = vadd.f32 %v1119_v34, %v577_v26 }
  0xa1   :  { %v591_v38 = vadd.f32 %v590_v27, %v578_v37 }
  0xa6   :  { %v603_v29 = vpop.f32.mrf.mxu2  ;;  %v579_v32 = vpop.f32.mrf.mxu0 }
  0xa7   :  { %v616_v31 = vpop.f32.mrf.mxu3  ;;  %v592_v33 = vpop.f32.mrf.mxu1  ;;  %v604_v39 = vadd.f32 %v603_v29, %v591_v38 }
  0xa9   :  { %v617_v40 = vadd.f32 %v616_v31, %v604_v39 }
  0xae   :  { %v605_v35 = vpop.f32.mrf.mxu2 }
  0xaf   :  { %v618_v36 = vpop.f32.mrf.mxu3 }
  0xbe   :  { %v629_v41 = vpop.f32.mrf.mxu0 }
  0xbf   :  { %v642_v42 = vpop.f32.mrf.mxu1  ;;  %v630_v43 = vadd.f32 %v629_v41, %v617_v40 }
  0xc1   :  { %v643_v44 = vadd.f32 %v642_v42, %v630_v43 }
  0xc6   :  { %v655_v45 = vpop.f32.mrf.mxu2  ;;  %v631_v48 = vpop.f32.mrf.mxu0 }
  0xc7   :  { %v668_v46 = vpop.f32.mrf.mxu3  ;;  %v656_v47 = vadd.f32 %v655_v45, %v643_v44  ;;  %v644_v49 = vpop.f32.mrf.mxu1 }
  0xc9   :  { %v669_v50 = vadd.f32 %v668_v46, %v656_v47 }
  0xcb   :  { %v672_v51 = vpack.c.bf16 %v669_v50, %v669_v50 }
  0xcd   :  { %749 = vmatmul.bf16.vlgmr.msra.gmra.mxu0 %v672_v51 }
  0xce   :  { %v657_v52 = vpop.f32.mrf.mxu2 }
  0xcf   :  { %v670_v53 = vpop.f32.mrf.mxu3 }
 0x14a   :  { %v750_v55 = vpop.f32.mrf.mxu0 }
 0x14b   :  { %v751_v56 = vadd.f32 %v1120_v54, %v750_v55 }
 0x14d   :  { %754 = vst [vmem:[%s1393_s5] sm:$0xff] %v751_v56 }
 0x152   :  { %v752_v57 = vpop.f32.mrf.mxu0 }

</bundles_post_ra>
